<compile_context>
chip_gen: v6e
topology: v6e:2x2x1
jax: 0.10.0
libtpu: 0.0.40
codegen_flags: <defaults>
</compile_context>

<pallas_src>
import functools

import jax
import jax.numpy as jnp
from jax.experimental import pallas as pl
from jax.experimental.pallas import tpu as pltpu

IMG = 28                       # input spatial size (forced by Linear(24*24*64, 128))
C1_OUT = 128
C2_OUT = 64
H2_SIDE = 24                   # conv2 output spatial size
SHIFTS = tuple(kh * IMG + kw for kh in range(3) for kw in range(3))  # 3x3 tap offsets

# "wide" (pixel-pair) raster geometry: raster positions (2q, 2q+1) share row q;
# even position in lanes [0:128), odd in [128:256).
WROWS = 368                    # conv1 wide rows (>= 365 needed, multiple of 16)
ACC2_ROWS = 336                # conv2 wide rows kept (= 24*14, covers all valid pixels)
XFLAT = 800                    # padded flat image length (>= 2*(WROWS-1)+1 + 58 + 1)
CONV1_K = 32                   # conv1 im2col K (2 pixel groups x 16 slots, 9 taps each)

FC1_IN = H2_SIDE * H2_SIDE * C2_OUT    # 36864
FC1_OUT = 128
NCLS = 10
TK = 9216                      # fc1 K tile -> 4 grid steps (DMA per step >> step overhead)
FC_CHUNK = 2304                # in-kernel dequant chunk (bounds bf16/f32 temporaries)


# ----------------------------------------------------------------------------
# Fused Conv1+ReLU -> Conv2+ReLU kernel (one batch element per grid step).
# ----------------------------------------------------------------------------
def _conv_fused_kernel(xcolw_ref, w1w_ref, b1w_ref, w2w_ref, b2w_ref, o_ref,
                       h1w_ref, acc_ref):
    # ---- conv1 (wide): single bf16 MXU matmul, bias + ReLU, stays in VMEM (f32).
    h1 = jnp.dot(xcolw_ref[0], w1w_ref[...], preferred_element_type=jnp.float32)
    h1w_ref[...] = jnp.maximum(h1 + b1w_ref[...], 0.0)            # (WROWS, 256)

    # ---- conv2 (wide): 6 row-shifted matmuls with K=256, f32 VMEM accumulation.
    #      Shift s = kh*14 + m covers taps (kh, kw = 2m+g-e) for both pixels of
    #      the pair; w2w is pre-packed accordingly (see init_params).
    for kh in range(3):
        for m in range(2):
            idx = kh * 2 + m
            s = kh * (IMG // 2) + m
            lhs = h1w_ref[s:s + ACC2_ROWS, :].astype(jnp.bfloat16)   # (336, 256)
            part = jnp.dot(lhs, w2w_ref[idx], preferred_element_type=jnp.float32)
            if idx == 0:
                acc_ref[...] = part
            else:
                acc_ref[...] += part

    # ---- bias + ReLU (f32).  Output row q holds pixels (2q, 2q+1); last dim is
    #      128 -> lane-dense, unmasked stores.  Junk pixel-pairs (j >= 24) are
    #      dropped by the wrapper.
    o_ref[...] = jnp.maximum(acc_ref[...] + b2w_ref[...], 0.0)[None].astype(o_ref.dtype)


def conv_stack(x_cols, w1w, b1w, w2w, b2w):
    N = x_cols.shape[0]
    return pl.pallas_call(
        _conv_fused_kernel,
        out_shape=jax.ShapeDtypeStruct((N, ACC2_ROWS, 2 * C2_OUT), jnp.bfloat16),
        grid=(N,),
        in_specs=[
            pl.BlockSpec((1, WROWS, CONV1_K), lambda n: (n, 0, 0)),
            pl.BlockSpec((CONV1_K, 2 * C1_OUT), lambda n: (0, 0)),
            pl.BlockSpec((1, 2 * C1_OUT), lambda n: (0, 0)),
            pl.BlockSpec((6, 2 * C1_OUT, 2 * C2_OUT), lambda n: (0, 0, 0)),
            pl.BlockSpec((1, 2 * C2_OUT), lambda n: (0, 0)),
        ],
        out_specs=pl.BlockSpec((1, ACC2_ROWS, 2 * C2_OUT), lambda n: (n, 0, 0)),
        scratch_shapes=[
            pltpu.VMEM((WROWS, 2 * C1_OUT), jnp.float32),      # conv1 activations (VMEM only)
            pltpu.VMEM((ACC2_ROWS, 2 * C2_OUT), jnp.float32),  # conv2 accumulator
        ],
        compiler_params=pltpu.CompilerParams(dimension_semantics=("parallel",)),
    )(x_cols, w1w, b1w, w2w, b2w)


# ----------------------------------------------------------------------------
# Fused Linear(36864->128)+ReLU + Linear(128->10), K-tiled over the int8 weight.
# ----------------------------------------------------------------------------
def _fc_fused_kernel(n_chunks, x_ref, w3q_ref, s3_ref, b3_ref, w4_ref, b4_ref,
                     o_ref, acc_ref):
    k = pl.program_id(0)

    @pl.when(k == 0)
    def _():
        acc_ref[...] = jnp.zeros_like(acc_ref)

    # int8 weight tile -> bf16 (exact: |q| <= 127), bf16 x bf16 MXU matmul with
    # f32 accumulation.  Chunked so the dequant temporaries stay small.
    for c in range(n_chunks):
        lo = c * FC_CHUNK
        w_bf16 = (w3q_ref[lo:lo + FC_CHUNK, :]
                  .astype(jnp.float32).astype(jnp.bfloat16))
        acc_ref[...] += jnp.dot(x_ref[:, lo:lo + FC_CHUNK], w_bf16,
                                preferred_element_type=jnp.float32)

    @pl.when(k == pl.num_programs(0) - 1)
    def _():
        # Per-output-column dequant scale + bias + ReLU in f32 (v5e-safe), then
        # the tiny Linear(128,10) folded into the last grid step.
        h = jnp.maximum(acc_ref[...] * s3_ref[...] + b3_ref[...], 0.0)
        o_ref[...] = (jnp.dot(h, w4_ref[...], preferred_element_type=jnp.float32)
                      + b4_ref[...]).astype(o_ref.dtype)


def fc_stack(h2_flat, w3q, s3, b3, w4, b4, tk=TK):
    N, K = h2_flat.shape
    F = w3q.shape[1]
    assert K % tk == 0 and tk % FC_CHUNK == 0
    nk = K // tk
    kernel = functools.partial(_fc_fused_kernel, tk // FC_CHUNK)
    return pl.pallas_call(
        kernel,
        out_shape=jax.ShapeDtypeStruct((N, NCLS), jnp.float32),
        grid=(nk,),
        in_specs=[
            pl.BlockSpec((N, tk), lambda k: (0, k)),
            pl.BlockSpec((tk, F), lambda k: (k, 0)),
            pl.BlockSpec((1, F), lambda k: (0, 0)),
            pl.BlockSpec((1, F), lambda k: (0, 0)),
            pl.BlockSpec((F, NCLS), lambda k: (0, 0)),
            pl.BlockSpec((1, NCLS), lambda k: (0, 0)),
        ],
        out_specs=pl.BlockSpec((N, NCLS), lambda k: (0, 0)),
        scratch_shapes=[pltpu.VMEM((N, F), jnp.float32)],
        compiler_params=pltpu.CompilerParams(dimension_semantics=("arbitrary",)),
    )(h2_flat, w3q, s3, b3, w4, b4)


# ----------------------------------------------------------------------------
# Parameters (deterministic, synthetic — shapes follow Net3.__init__).
# ----------------------------------------------------------------------------
def init_params(key):
    k1, k2, k3, k4, kb1, kb2, kb3, kb4 = jax.random.split(key, 8)
    s = lambda fan_in: 1.0 / jnp.sqrt(jnp.float32(fan_in))
    w1 = jax.random.normal(k1, (9, C1_OUT), jnp.float32) * s(9)
    b1 = jax.random.normal(kb1, (1, C1_OUT), jnp.float32) * 0.05
    w2 = jax.random.normal(k2, (3, 3, C1_OUT, C2_OUT), jnp.float32) * s(9 * C1_OUT)
    b2 = jax.random.normal(kb2, (1, C2_OUT), jnp.float32) * 0.05
    w3 = jax.random.normal(k3, (FC1_IN, FC1_OUT), jnp.float32) * s(FC1_IN)
    b3 = jax.random.normal(kb3, (1, FC1_OUT), jnp.float32) * 0.05
    w4 = jax.random.normal(k4, (FC1_OUT, NCLS), jnp.float32) * s(FC1_OUT)
    b4 = jax.random.normal(kb4, (1, NCLS), jnp.float32) * 0.05

    # --- fc1 weight quantized to int8 with a per-output-column scale (applied
    #     in the kernel's f32 epilogue).  Halves the dominant HBM stream.
    s3 = jnp.max(jnp.abs(w3), axis=0, keepdims=True) / 127.0        # (1, 128)
    w3q = jnp.round(w3 / s3).astype(jnp.int8)                        # (36864, 128)

    # --- packed "wide" conv1 weight: block-diagonal over the two pixel groups.
    w1w = jnp.zeros((CONV1_K, 2 * C1_OUT), jnp.float32)
    w1w = w1w.at[0:9, 0:C1_OUT].set(w1)
    w1w = w1w.at[16:25, C1_OUT:2 * C1_OUT].set(w1)
    b1w = jnp.concatenate([b1, b1], axis=1)                          # (1, 256)

    # --- packed "wide" conv2 weight:
    #     w2w[kh*2+m, g*128+ci, e*64+co] = w2[kh, 2m+g-e, ci, co]  (0 if kw out of range)
    w2w = jnp.zeros((3, 2, 2, C1_OUT, 2, C2_OUT), jnp.float32)
    for kh in range(3):
        for m in range(2):
            for g in range(2):
                for e in range(2):
                    kw = 2 * m + g - e
                    if 0 <= kw <= 2:
                        w2w = w2w.at[kh, m, g, :, e, :].set(w2[kh, kw])
    w2w = w2w.reshape(6, 2 * C1_OUT, 2 * C2_OUT)
    b2w = jnp.concatenate([b2, b2], axis=1)                          # (1, 128)

    return dict(
        w1=w1, b1=b1, w2=w2, b2=b2,                                  # reference layout
        w3q=w3q, s3=s3, b3=b3, w4=w4, b4=b4,
        w1w=w1w.astype(jnp.bfloat16), b1w=b1w,
        w2w=w2w.astype(jnp.bfloat16), b2w=b2w,
    )


@jax.jit
def net3_forward(x_nchw, params):
    N = x_nchw.shape[0]
    # Tiny XLA-side "wide" im2col of the 28x28 image for conv1: K slot g*16+t
    # holds the padded flat image at positions (2q + g + SHIFTS[t]).
    xf = x_nchw.reshape(N, IMG * IMG).astype(jnp.float32)
    xf = jnp.pad(xf, ((0, 0), (0, XFLAT - IMG * IMG)))
    zero = jnp.zeros((N, WROWS), jnp.float32)
    cols = []
    for g in range(2):
        for off in SHIFTS:
            st = g + off
            cols.append(xf[:, st:st + 2 * WROWS:2])                  # (N, 368)
        cols.extend([zero] * (16 - len(SHIFTS)))
    x_cols = jnp.stack(cols, axis=-1).astype(jnp.bfloat16)           # (N, 368, 32)

    h2w = conv_stack(x_cols, params["w1w"], params["b1w"],
                     params["w2w"], params["b2w"])                   # (N, 336, 128) bf16
    # Drop the 2 junk pixel-pairs per image row (j >= 24) and flatten; the
    # result is exactly the (H, W, C)-ordered flatten that w3's rows use.
    h2_flat = h2w.reshape(N, H2_SIDE, IMG // 2, 2 * C2_OUT)[:, :, :H2_SIDE // 2, :]
    h2_flat = h2_flat.reshape(N, FC1_IN)
    # Dropout(0.25) / Dropout(0.5): identity at inference.
    # TODO(synk): training-mode dropout (pltpu.prng_*) not implemented.
    return fc_stack(h2_flat, params["w3q"], params["s3"], params["b3"],
                    params["w4"], params["b4"])


# ----------------------------------------------------------------------------
# Pure-XLA reference for correctness checking (uses the dequantized fc1 weight).
# ----------------------------------------------------------------------------
@jax.jit
def net3_reference(x_nchw, params):
    N = x_nchw.shape[0]
    x = x_nchw.astype(jnp.float32)
    w1 = jnp.transpose(params["w1"].reshape(3, 3, C1_OUT), (2, 0, 1))[:, None]  # (128,1,3,3)
    h1 = jax.lax.conv_general_dilated(x, w1, (1, 1), "VALID",
                                      dimension_numbers=("NCHW", "OIHW", "NCHW"))
    h1 = jax.nn.relu(h1 + params["b1"].reshape(1, C1_OUT, 1, 1))
    w2 = jnp.transpose(params["w2"], (3, 2, 0, 1))                               # (64,128,3,3)
    h2 = jax.lax.conv_general_dilated(h1, w2, (1, 1), "VALID",
                                      dimension_numbers=("NCHW", "OIHW", "NCHW"))
    h2 = jax.nn.relu(h2 + params["b2"].reshape(1, C2_OUT, 1, 1))
    h2_flat = jnp.transpose(h2, (0, 2, 3, 1)).reshape(N, -1)                     # (H,W,C) order
    w3 = params["w3q"].astype(jnp.float32) * params["s3"]
    h3 = jax.nn.relu(h2_flat @ w3 + params["b3"])
    return h3 @ params["w4"] + params["b4"]


if __name__ == "__main__":
    key = jax.random.PRNGKey(0)
    kx, kp = jax.random.split(key)
    # Batch of 2 FMNIST-sized images (28x28 is forced by Linear(24*24*64, 128)).
    x = jax.random.normal(kx, (2, 1, IMG, IMG), jnp.float32)
    params = init_params(kp)

    out = jax.block_until_ready(net3_forward(x, params))
    assert out.shape == (2, NCLS) and out.dtype == jnp.float32

    ref = jax.block_until_ready(net3_reference(x, params))
    err = float(jnp.max(jnp.abs(out - ref)))
    assert err < 5e-2, f"max abs error vs reference = {err}"
    print("KERNEL_OK")
</pallas_src>

<mosaic_0001>
module attributes {stable_mosaic.version = 11 : i64} {
  func.func @_conv_fused_kernel(%arg0: i32, %arg1: memref<1x368x32xbf16, #tpu.memory_space<vmem>>, %arg2: memref<32x256xbf16, #tpu.memory_space<vmem>>, %arg3: memref<1x256xf32, #tpu.memory_space<vmem>>, %arg4: memref<6x256x128xbf16, #tpu.memory_space<vmem>>, %arg5: memref<1x128xf32, #tpu.memory_space<vmem>>, %arg6: memref<1x336x128xbf16, #tpu.memory_space<vmem>>, %arg7: memref<368x256xf32, #tpu.memory_space<vmem>>, %arg8: memref<336x128xf32, #tpu.memory_space<vmem>>) attributes {dimension_semantics = [#tpu.dimension_semantics<parallel>], iteration_bounds = array<i64: 2>, scalar_prefetch = 0 : i64, scratch_operands = 2 : i64, tpu.core_type = #tpu.core_type<tc>, window_params = [{transform_indices = @transform_0, window_bounds = array<i64: 1, 368, 32>}, {pipeline_mode = #tpu.pipeline_mode<synchronous>, transform_indices = @transform_1, window_bounds = array<i64: 32, 256>}, {pipeline_mode = #tpu.pipeline_mode<synchronous>, transform_indices = @transform_2, window_bounds = array<i64: 1, 256>}, {pipeline_mode = #tpu.pipeline_mode<synchronous>, transform_indices = @transform_3, window_bounds = array<i64: 6, 256, 128>}, {pipeline_mode = #tpu.pipeline_mode<synchronous>, transform_indices = @transform_4, window_bounds = array<i64: 1, 128>}, {transform_indices = @transform_5, window_bounds = array<i64: 1, 336, 128>}]} {
    %c0 = arith.constant 0 : index
    %c0_0 = arith.constant 0 : index
    %c0_1 = arith.constant 0 : index
    %0 = vector.load %arg1[%c0, %c0_0, %c0_1] : memref<1x368x32xbf16, #tpu.memory_space<vmem>>, vector<1x368x32xbf16>
    %1 = vector.shape_cast %0 : vector<1x368x32xbf16> to vector<368x32xbf16>
    %c0_2 = arith.constant 0 : index
    %c0_3 = arith.constant 0 : index
    %2 = vector.load %arg2[%c0_2, %c0_3] : memref<32x256xbf16, #tpu.memory_space<vmem>>, vector<32x256xbf16>
    %cst = arith.constant dense<0.000000e+00> : vector<368x256xf32>
    %3 = tpu.matmul %1, %2, %cst {dimension_numbers = #tpu.dot_dimension_numbers<[1], [0], [0], [1], [0, 0, 1, 1], [], []>} : vector<368x32xbf16>, vector<32x256xbf16>, vector<368x256xf32> -> vector<368x256xf32>
    %c0_4 = arith.constant 0 : index
    %c0_5 = arith.constant 0 : index
    %4 = vector.load %arg3[%c0_4, %c0_5] : memref<1x256xf32, #tpu.memory_space<vmem>>, vector<1x256xf32>
    %5 = vector.broadcast %4 : vector<1x256xf32> to vector<368x256xf32>
    %6 = arith.addf %3, %5 : vector<368x256xf32>
    %cst_6 = arith.constant 0.000000e+00 : f32
    %7 = vector.broadcast %cst_6 : f32 to vector<368x256xf32>
    %8 = arith.maximumf %6, %7 : vector<368x256xf32>
    %c0_7 = arith.constant 0 : index
    %c0_8 = arith.constant 0 : index
    %9 = vector.load %arg7[%c0_7, %c0_8] : memref<368x256xf32, #tpu.memory_space<vmem>>, vector<368x256xf32>
    tpu.vector_store %arg7[%c0_7, %c0_8], %8 {strides = array<i32>} : memref<368x256xf32, #tpu.memory_space<vmem>>, vector<368x256xf32>,
    %c0_9 = arith.constant 0 : index
    %c0_10 = arith.constant 0 : index
    %10 = vector.load %arg7[%c0_9, %c0_10] : memref<368x256xf32, #tpu.memory_space<vmem>>, vector<336x256xf32>
    %11 = arith.truncf %10 : vector<336x256xf32> to vector<336x256xbf16>
    %c0_11 = arith.constant 0 : index
    %c0_12 = arith.constant 0 : index
    %c0_13 = arith.constant 0 : index
    %12 = vector.load %arg4[%c0_11, %c0_12, %c0_13] : memref<6x256x128xbf16, #tpu.memory_space<vmem>>, vector<1x256x128xbf16>
    %13 = vector.shape_cast %12 : vector<1x256x128xbf16> to vector<256x128xbf16>
    %cst_14 = arith.constant dense<0.000000e+00> : vector<336x128xf32>
    %14 = tpu.matmul %11, %13, %cst_14 {dimension_numbers = #tpu.dot_dimension_numbers<[1], [0], [0], [1], [0, 0, 1, 1], [], []>} : vector<336x256xbf16>, vector<256x128xbf16>, vector<336x128xf32> -> vector<336x128xf32>
    %c0_15 = arith.constant 0 : index
    %c0_16 = arith.constant 0 : index
    %15 = vector.load %arg8[%c0_15, %c0_16] : memref<336x128xf32, #tpu.memory_space<vmem>>, vector<336x128xf32>
    tpu.vector_store %arg8[%c0_15, %c0_16], %14 {strides = array<i32>} : memref<336x128xf32, #tpu.memory_space<vmem>>, vector<336x128xf32>,
    %c1 = arith.constant 1 : index
    %c0_17 = arith.constant 0 : index
    %16 = vector.load %arg7[%c1, %c0_17] : memref<368x256xf32, #tpu.memory_space<vmem>>, vector<336x256xf32>
    %17 = arith.truncf %16 : vector<336x256xf32> to vector<336x256xbf16>
    %c1_18 = arith.constant 1 : index
    %c0_19 = arith.constant 0 : index
    %c0_20 = arith.constant 0 : index
    %18 = vector.load %arg4[%c1_18, %c0_19, %c0_20] : memref<6x256x128xbf16, #tpu.memory_space<vmem>>, vector<1x256x128xbf16>
    %19 = vector.shape_cast %18 : vector<1x256x128xbf16> to vector<256x128xbf16>
    %cst_21 = arith.constant dense<0.000000e+00> : vector<336x128xf32>
    %20 = tpu.matmul %17, %19, %cst_21 {dimension_numbers = #tpu.dot_dimension_numbers<[1], [0], [0], [1], [0, 0, 1, 1], [], []>} : vector<336x256xbf16>, vector<256x128xbf16>, vector<336x128xf32> -> vector<336x128xf32>
    %c0_22 = arith.constant 0 : index
    %c0_23 = arith.constant 0 : index
    %21 = vector.load %arg8[%c0_22, %c0_23] : memref<336x128xf32, #tpu.memory_space<vmem>>, vector<336x128xf32>
    %22 = arith.addf %21, %20 : vector<336x128xf32>
    %c0_24 = arith.constant 0 : index
    %c0_25 = arith.constant 0 : index
    %23 = vector.load %arg8[%c0_24, %c0_25] : memref<336x128xf32, #tpu.memory_space<vmem>>, vector<336x128xf32>
    tpu.vector_store %arg8[%c0_24, %c0_25], %22 {strides = array<i32>} : memref<336x128xf32, #tpu.memory_space<vmem>>, vector<336x128xf32>,
    %c14 = arith.constant 14 : index
    %c0_26 = arith.constant 0 : index
    %24 = vector.load %arg7[%c14, %c0_26] : memref<368x256xf32, #tpu.memory_space<vmem>>, vector<336x256xf32>
    %25 = arith.truncf %24 : vector<336x256xf32> to vector<336x256xbf16>
    %c2 = arith.constant 2 : index
    %c0_27 = arith.constant 0 : index
    %c0_28 = arith.constant 0 : index
    %26 = vector.load %arg4[%c2, %c0_27, %c0_28] : memref<6x256x128xbf16, #tpu.memory_space<vmem>>, vector<1x256x128xbf16>
    %27 = vector.shape_cast %26 : vector<1x256x128xbf16> to vector<256x128xbf16>
    %cst_29 = arith.constant dense<0.000000e+00> : vector<336x128xf32>
    %28 = tpu.matmul %25, %27, %cst_29 {dimension_numbers = #tpu.dot_dimension_numbers<[1], [0], [0], [1], [0, 0, 1, 1], [], []>} : vector<336x256xbf16>, vector<256x128xbf16>, vector<336x128xf32> -> vector<336x128xf32>
    %c0_30 = arith.constant 0 : index
    %c0_31 = arith.constant 0 : index
    %29 = vector.load %arg8[%c0_30, %c0_31] : memref<336x128xf32, #tpu.memory_space<vmem>>, vector<336x128xf32>
    %30 = arith.addf %29, %28 : vector<336x128xf32>
    %c0_32 = arith.constant 0 : index
    %c0_33 = arith.constant 0 : index
    %31 = vector.load %arg8[%c0_32, %c0_33] : memref<336x128xf32, #tpu.memory_space<vmem>>, vector<336x128xf32>
    tpu.vector_store %arg8[%c0_32, %c0_33], %30 {strides = array<i32>} : memref<336x128xf32, #tpu.memory_space<vmem>>, vector<336x128xf32>,
    %c15 = arith.constant 15 : index
    %c0_34 = arith.constant 0 : index
    %32 = vector.load %arg7[%c15, %c0_34] : memref<368x256xf32, #tpu.memory_space<vmem>>, vector<336x256xf32>
    %33 = arith.truncf %32 : vector<336x256xf32> to vector<336x256xbf16>
    %c3 = arith.constant 3 : index
    %c0_35 = arith.constant 0 : index
    %c0_36 = arith.constant 0 : index
    %34 = vector.load %arg4[%c3, %c0_35, %c0_36] : memref<6x256x128xbf16, #tpu.memory_space<vmem>>, vector<1x256x128xbf16>
    %35 = vector.shape_cast %34 : vector<1x256x128xbf16> to vector<256x128xbf16>
    %cst_37 = arith.constant dense<0.000000e+00> : vector<336x128xf32>
    %36 = tpu.matmul %33, %35, %cst_37 {dimension_numbers = #tpu.dot_dimension_numbers<[1], [0], [0], [1], [0, 0, 1, 1], [], []>} : vector<336x256xbf16>, vector<256x128xbf16>, vector<336x128xf32> -> vector<336x128xf32>
    %c0_38 = arith.constant 0 : index
    %c0_39 = arith.constant 0 : index
    %37 = vector.load %arg8[%c0_38, %c0_39] : memref<336x128xf32, #tpu.memory_space<vmem>>, vector<336x128xf32>
    %38 = arith.addf %37, %36 : vector<336x128xf32>
    %c0_40 = arith.constant 0 : index
    %c0_41 = arith.constant 0 : index
    %39 = vector.load %arg8[%c0_40, %c0_41] : memref<336x128xf32, #tpu.memory_space<vmem>>, vector<336x128xf32>
    tpu.vector_store %arg8[%c0_40, %c0_41], %38 {strides = array<i32>} : memref<336x128xf32, #tpu.memory_space<vmem>>, vector<336x128xf32>,
    %c28 = arith.constant 28 : index
    %c0_42 = arith.constant 0 : index
    %40 = vector.load %arg7[%c28, %c0_42] : memref<368x256xf32, #tpu.memory_space<vmem>>, vector<336x256xf32>
    %41 = arith.truncf %40 : vector<336x256xf32> to vector<336x256xbf16>
    %c4 = arith.constant 4 : index
    %c0_43 = arith.constant 0 : index
    %c0_44 = arith.constant 0 : index
    %42 = vector.load %arg4[%c4, %c0_43, %c0_44] : memref<6x256x128xbf16, #tpu.memory_space<vmem>>, vector<1x256x128xbf16>
    %43 = vector.shape_cast %42 : vector<1x256x128xbf16> to vector<256x128xbf16>
    %cst_45 = arith.constant dense<0.000000e+00> : vector<336x128xf32>
    %44 = tpu.matmul %41, %43, %cst_45 {dimension_numbers = #tpu.dot_dimension_numbers<[1], [0], [0], [1], [0, 0, 1, 1], [], []>} : vector<336x256xbf16>, vector<256x128xbf16>, vector<336x128xf32> -> vector<336x128xf32>
    %c0_46 = arith.constant 0 : index
    %c0_47 = arith.constant 0 : index
    %45 = vector.load %arg8[%c0_46, %c0_47] : memref<336x128xf32, #tpu.memory_space<vmem>>, vector<336x128xf32>
    %46 = arith.addf %45, %44 : vector<336x128xf32>
    %c0_48 = arith.constant 0 : index
    %c0_49 = arith.constant 0 : index
    %47 = vector.load %arg8[%c0_48, %c0_49] : memref<336x128xf32, #tpu.memory_space<vmem>>, vector<336x128xf32>
    tpu.vector_store %arg8[%c0_48, %c0_49], %46 {strides = array<i32>} : memref<336x128xf32, #tpu.memory_space<vmem>>, vector<336x128xf32>,
    %c29 = arith.constant 29 : index
    %c0_50 = arith.constant 0 : index
    %48 = vector.load %arg7[%c29, %c0_50] : memref<368x256xf32, #tpu.memory_space<vmem>>, vector<336x256xf32>
    %49 = arith.truncf %48 : vector<336x256xf32> to vector<336x256xbf16>
    %c5 = arith.constant 5 : index
    %c0_51 = arith.constant 0 : index
    %c0_52 = arith.constant 0 : index
    %50 = vector.load %arg4[%c5, %c0_51, %c0_52] : memref<6x256x128xbf16, #tpu.memory_space<vmem>>, vector<1x256x128xbf16>
    %51 = vector.shape_cast %50 : vector<1x256x128xbf16> to vector<256x128xbf16>
    %cst_53 = arith.constant dense<0.000000e+00> : vector<336x128xf32>
    %52 = tpu.matmul %49, %51, %cst_53 {dimension_numbers = #tpu.dot_dimension_numbers<[1], [0], [0], [1], [0, 0, 1, 1], [], []>} : vector<336x256xbf16>, vector<256x128xbf16>, vector<336x128xf32> -> vector<336x128xf32>
    %c0_54 = arith.constant 0 : index
    %c0_55 = arith.constant 0 : index
    %53 = vector.load %arg8[%c0_54, %c0_55] : memref<336x128xf32, #tpu.memory_space<vmem>>, vector<336x128xf32>
    %54 = arith.addf %53, %52 : vector<336x128xf32>
    %c0_56 = arith.constant 0 : index
    %c0_57 = arith.constant 0 : index
    %55 = vector.load %arg8[%c0_56, %c0_57] : memref<336x128xf32, #tpu.memory_space<vmem>>, vector<336x128xf32>
    tpu.vector_store %arg8[%c0_56, %c0_57], %54 {strides = array<i32>} : memref<336x128xf32, #tpu.memory_space<vmem>>, vector<336x128xf32>,
    %c0_58 = arith.constant 0 : index
    %c0_59 = arith.constant 0 : index
    %56 = vector.load %arg8[%c0_58, %c0_59] : memref<336x128xf32, #tpu.memory_space<vmem>>, vector<336x128xf32>
    %c0_60 = arith.constant 0 : index
    %c0_61 = arith.constant 0 : index
    %57 = vector.load %arg5[%c0_60, %c0_61] : memref<1x128xf32, #tpu.memory_space<vmem>>, vector<1x128xf32>
    %58 = vector.broadcast %57 : vector<1x128xf32> to vector<336x128xf32>
    %59 = arith.addf %56, %58 : vector<336x128xf32>
    %cst_62 = arith.constant 0.000000e+00 : f32
    %60 = vector.broadcast %cst_62 : f32 to vector<336x128xf32>
    %61 = arith.maximumf %59, %60 : vector<336x128xf32>
    %62 = vector.shape_cast %61 : vector<336x128xf32> to vector<1x336x128xf32>
    %63 = arith.truncf %62 : vector<1x336x128xf32> to vector<1x336x128xbf16>
    %c0_63 = arith.constant 0 : index
    %c0_64 = arith.constant 0 : index
    %c0_65 = arith.constant 0 : index
    %64 = vector.load %arg6[%c0_63, %c0_64, %c0_65] : memref<1x336x128xbf16, #tpu.memory_space<vmem>>, vector<1x336x128xbf16>
    tpu.vector_store %arg6[%c0_63, %c0_64, %c0_65], %63 {strides = array<i32>} : memref<1x336x128xbf16, #tpu.memory_space<vmem>>, vector<1x336x128xbf16>,
    return
  }
  func.func @transform_0(%arg0: i32) -> (i32, i32, i32) {
    %c0_i32 = arith.constant 0 : i32
    %c0_i32_0 = arith.constant 0 : i32
    %c0_i32_1 = arith.constant 0 : i32
    return %arg0, %c0_i32, %c0_i32_0 : i32, i32, i32
  }
  func.func @transform_1(%arg0: i32) -> (i32, i32) {
    %c0_i32 = arith.constant 0 : i32
    %c0_i32_0 = arith.constant 0 : i32
    %c0_i32_1 = arith.constant 0 : i32
    return %c0_i32, %c0_i32_0 : i32, i32
  }
  func.func @transform_2(%arg0: i32) -> (i32, i32) {
    %c0_i32 = arith.constant 0 : i32
    %c0_i32_0 = arith.constant 0 : i32
    %c0_i32_1 = arith.constant 0 : i32
    return %c0_i32, %c0_i32_0 : i32, i32
  }
  func.func @transform_3(%arg0: i32) -> (i32, i32, i32) {
    %c0_i32 = arith.constant 0 : i32
    %c0_i32_0 = arith.constant 0 : i32
    %c0_i32_1 = arith.constant 0 : i32
    %c0_i32_2 = arith.constant 0 : i32
    return %c0_i32, %c0_i32_0, %c0_i32_1 : i32, i32, i32
  }
  func.func @transform_4(%arg0: i32) -> (i32, i32) {
    %c0_i32 = arith.constant 0 : i32
    %c0_i32_0 = arith.constant 0 : i32
    %c0_i32_1 = arith.constant 0 : i32
    return %c0_i32, %c0_i32_0 : i32, i32
  }
  func.func @transform_5(%arg0: i32) -> (i32, i32, i32) {
    %c0_i32 = arith.constant 0 : i32
    %c0_i32_0 = arith.constant 0 : i32
    %c0_i32_1 = arith.constant 0 : i32
    return %arg0, %c0_i32, %c0_i32_0 : i32, i32, i32
  }
}

module attributes {stable_mosaic.version = 11 : i64} {
  func.func @_fc_fused_kernel(%arg0: i32, %arg1: memref<2x9216xbf16, #tpu.memory_space<vmem>>, %arg2: memref<9216x128xi8, #tpu.memory_space<vmem>>, %arg3: memref<1x128xf32, #tpu.memory_space<vmem>>, %arg4: memref<1x128xf32, #tpu.memory_space<vmem>>, %arg5: memref<128x10xf32, #tpu.memory_space<vmem>>, %arg6: memref<1x10xf32, #tpu.memory_space<vmem>>, %arg7: memref<2x10xf32, #tpu.memory_space<vmem>>, %arg8: memref<2x128xf32, #tpu.memory_space<vmem>>) attributes {dimension_semantics = [#tpu.dimension_semantics<arbitrary>], iteration_bounds = array<i64: 4>, scalar_prefetch = 0 : i64, scratch_operands = 1 : i64, tpu.core_type = #tpu.core_type<tc>, window_params = [{transform_indices = @transform_0, window_bounds = array<i64: 2, 9216>}, {transform_indices = @transform_1, window_bounds = array<i64: 9216, 128>}, {pipeline_mode = #tpu.pipeline_mode<synchronous>, transform_indices = @transform_2, window_bounds = array<i64: 1, 128>}, {pipeline_mode = #tpu.pipeline_mode<synchronous>, transform_indices = @transform_3, window_bounds = array<i64: 1, 128>}, {pipeline_mode = #tpu.pipeline_mode<synchronous>, transform_indices = @transform_4, window_bounds = array<i64: 128, 10>}, {pipeline_mode = #tpu.pipeline_mode<synchronous>, transform_indices = @transform_5, window_bounds = array<i64: 1, 10>}, {pipeline_mode = #tpu.pipeline_mode<synchronous>, transform_indices = @transform_6, window_bounds = array<i64: 2, 10>}]} {
    %c0_i32 = arith.constant 0 : i32
    %0 = arith.cmpi eq, %arg0, %c0_i32 : i32
    %1 = arith.extui %0 : i1 to i32
    %c0_i32_0 = arith.constant 0 : i32
    %2 = arith.cmpi ne, %1, %c0_i32_0 : i32
    scf.if %2 {
      %cst_33 = arith.constant 0.000000e+00 : f32
      %38 = vector.broadcast %cst_33 : f32 to vector<2x128xf32>
      %c0_34 = arith.constant 0 : index
      %c0_35 = arith.constant 0 : index
      %39 = vector.load %arg8[%c0_34, %c0_35] : memref<2x128xf32, #tpu.memory_space<vmem>>, vector<2x128xf32>
      tpu.vector_store %arg8[%c0_34, %c0_35], %38 {strides = array<i32>} : memref<2x128xf32, #tpu.memory_space<vmem>>, vector<2x128xf32>,
    } else {
    }
    %c0 = arith.constant 0 : index
    %c0_1 = arith.constant 0 : index
    %3 = vector.load %arg2[%c0, %c0_1] : memref<9216x128xi8, #tpu.memory_space<vmem>>, vector<2304x128xi8>
    %4 = arith.sitofp %3 : vector<2304x128xi8> to vector<2304x128xf32>
    %5 = arith.truncf %4 : vector<2304x128xf32> to vector<2304x128xbf16>
    %c0_2 = arith.constant 0 : index
    %c0_3 = arith.constant 0 : index
    %6 = vector.load %arg8[%c0_2, %c0_3] : memref<2x128xf32, #tpu.memory_space<vmem>>, vector<2x128xf32>
    %c0_4 = arith.constant 0 : index
    %c0_5 = arith.constant 0 : index
    %7 = vector.load %arg1[%c0_4, %c0_5] : memref<2x9216xbf16, #tpu.memory_space<vmem>>, vector<2x2304xbf16>
    %cst = arith.constant dense<0.000000e+00> : vector<2x128xf32>
    %8 = tpu.matmul %7, %5, %cst {dimension_numbers = #tpu.dot_dimension_numbers<[1], [0], [0], [1], [0, 0, 1, 1], [], []>} : vector<2x2304xbf16>, vector<2304x128xbf16>, vector<2x128xf32> -> vector<2x128xf32>
    %9 = arith.addf %6, %8 : vector<2x128xf32>
    %c0_6 = arith.constant 0 : index
    %c0_7 = arith.constant 0 : index
    %10 = vector.load %arg8[%c0_6, %c0_7] : memref<2x128xf32, #tpu.memory_space<vmem>>, vector<2x128xf32>
    tpu.vector_store %arg8[%c0_6, %c0_7], %9 {strides = array<i32>} : memref<2x128xf32, #tpu.memory_space<vmem>>, vector<2x128xf32>,
    %c2304 = arith.constant 2304 : index
    %c0_8 = arith.constant 0 : index
    %11 = vector.load %arg2[%c2304, %c0_8] : memref<9216x128xi8, #tpu.memory_space<vmem>>, vector<2304x128xi8>
    %12 = arith.sitofp %11 : vector<2304x128xi8> to vector<2304x128xf32>
    %13 = arith.truncf %12 : vector<2304x128xf32> to vector<2304x128xbf16>
    %c0_9 = arith.constant 0 : index
    %c0_10 = arith.constant 0 : index
    %14 = vector.load %arg8[%c0_9, %c0_10] : memref<2x128xf32, #tpu.memory_space<vmem>>, vector<2x128xf32>
    %c0_11 = arith.constant 0 : index
    %c2304_12 = arith.constant 2304 : index
    %15 = vector.load %arg1[%c0_11, %c2304_12] : memref<2x9216xbf16, #tpu.memory_space<vmem>>, vector<2x2304xbf16>
    %cst_13 = arith.constant dense<0.000000e+00> : vector<2x128xf32>
    %16 = tpu.matmul %15, %13, %cst_13 {dimension_numbers = #tpu.dot_dimension_numbers<[1], [0], [0], [1], [0, 0, 1, 1], [], []>} : vector<2x2304xbf16>, vector<2304x128xbf16>, vector<2x128xf32> -> vector<2x128xf32>
    %17 = arith.addf %14, %16 : vector<2x128xf32>
    %c0_14 = arith.constant 0 : index
    %c0_15 = arith.constant 0 : index
    %18 = vector.load %arg8[%c0_14, %c0_15] : memref<2x128xf32, #tpu.memory_space<vmem>>, vector<2x128xf32>
    tpu.vector_store %arg8[%c0_14, %c0_15], %17 {strides = array<i32>} : memref<2x128xf32, #tpu.memory_space<vmem>>, vector<2x128xf32>,
    %c4608 = arith.constant 4608 : index
    %c0_16 = arith.constant 0 : index
    %19 = vector.load %arg2[%c4608, %c0_16] : memref<9216x128xi8, #tpu.memory_space<vmem>>, vector<2304x128xi8>
    %20 = arith.sitofp %19 : vector<2304x128xi8> to vector<2304x128xf32>
    %21 = arith.truncf %20 : vector<2304x128xf32> to vector<2304x128xbf16>
    %c0_17 = arith.constant 0 : index
    %c0_18 = arith.constant 0 : index
    %22 = vector.load %arg8[%c0_17, %c0_18] : memref<2x128xf32, #tpu.memory_space<vmem>>, vector<2x128xf32>
    %c0_19 = arith.constant 0 : index
    %c4608_20 = arith.constant 4608 : index
    %23 = vector.load %arg1[%c0_19, %c4608_20] : memref<2x9216xbf16, #tpu.memory_space<vmem>>, vector<2x2304xbf16>
    %cst_21 = arith.constant dense<0.000000e+00> : vector<2x128xf32>
    %24 = tpu.matmul %23, %21, %cst_21 {dimension_numbers = #tpu.dot_dimension_numbers<[1], [0], [0], [1], [0, 0, 1, 1], [], []>} : vector<2x2304xbf16>, vector<2304x128xbf16>, vector<2x128xf32> -> vector<2x128xf32>
    %25 = arith.addf %22, %24 : vector<2x128xf32>
    %c0_22 = arith.constant 0 : index
    %c0_23 = arith.constant 0 : index
    %26 = vector.load %arg8[%c0_22, %c0_23] : memref<2x128xf32, #tpu.memory_space<vmem>>, vector<2x128xf32>
    tpu.vector_store %arg8[%c0_22, %c0_23], %25 {strides = array<i32>} : memref<2x128xf32, #tpu.memory_space<vmem>>, vector<2x128xf32>,
    %c6912 = arith.constant 6912 : index
    %c0_24 = arith.constant 0 : index
    %27 = vector.load %arg2[%c6912, %c0_24] : memref<9216x128xi8, #tpu.memory_space<vmem>>, vector<2304x128xi8>
    %28 = arith.sitofp %27 : vector<2304x128xi8> to vector<2304x128xf32>
    %29 = arith.truncf %28 : vector<2304x128xf32> to vector<2304x128xbf16>
    %c0_25 = arith.constant 0 : index
    %c0_26 = arith.constant 0 : index
    %30 = vector.load %arg8[%c0_25, %c0_26] : memref<2x128xf32, #tpu.memory_space<vmem>>, vector<2x128xf32>
    %c0_27 = arith.constant 0 : index
    %c6912_28 = arith.constant 6912 : index
    %31 = vector.load %arg1[%c0_27, %c6912_28] : memref<2x9216xbf16, #tpu.memory_space<vmem>>, vector<2x2304xbf16>
    %cst_29 = arith.constant dense<0.000000e+00> : vector<2x128xf32>
    %32 = tpu.matmul %31, %29, %cst_29 {dimension_numbers = #tpu.dot_dimension_numbers<[1], [0], [0], [1], [0, 0, 1, 1], [], []>} : vector<2x2304xbf16>, vector<2304x128xbf16>, vector<2x128xf32> -> vector<2x128xf32>
    %33 = arith.addf %30, %32 : vector<2x128xf32>
    %c0_30 = arith.constant 0 : index
    %c0_31 = arith.constant 0 : index
    %34 = vector.load %arg8[%c0_30, %c0_31] : memref<2x128xf32, #tpu.memory_space<vmem>>, vector<2x128xf32>
    tpu.vector_store %arg8[%c0_30, %c0_31], %33 {strides = array<i32>} : memref<2x128xf32, #tpu.memory_space<vmem>>, vector<2x128xf32>,
    %c3_i32 = arith.constant 3 : i32
    %35 = arith.cmpi eq, %arg0, %c3_i32 : i32
    %36 = arith.extui %35 : i1 to i32
    %c0_i32_32 = arith.constant 0 : i32
    %37 = arith.cmpi ne, %36, %c0_i32_32 : i32
    scf.if %37 {
      %c0_33 = arith.constant 0 : index
      %c0_34 = arith.constant 0 : index
      %38 = vector.load %arg8[%c0_33, %c0_34] : memref<2x128xf32, #tpu.memory_space<vmem>>, vector<2x128xf32>
      %c0_35 = arith.constant 0 : index
      %c0_36 = arith.constant 0 : index
      %39 = vector.load %arg3[%c0_35, %c0_36] : memref<1x128xf32, #tpu.memory_space<vmem>>, vector<1x128xf32>
      %40 = vector.broadcast %39 : vector<1x128xf32> to vector<2x128xf32>
      %41 = arith.mulf %38, %40 : vector<2x128xf32>
      %c0_37 = arith.constant 0 : index
      %c0_38 = arith.constant 0 : index
      %42 = vector.load %arg4[%c0_37, %c0_38] : memref<1x128xf32, #tpu.memory_space<vmem>>, vector<1x128xf32>
      %43 = vector.broadcast %42 : vector<1x128xf32> to vector<2x128xf32>
      %44 = arith.addf %41, %43 : vector<2x128xf32>
      %cst_39 = arith.constant 0.000000e+00 : f32
      %45 = vector.broadcast %cst_39 : f32 to vector<2x128xf32>
      %46 = arith.maximumf %44, %45 : vector<2x128xf32>
      %c0_40 = arith.constant 0 : index
      %c0_41 = arith.constant 0 : index
      %47 = vector.load %arg5[%c0_40, %c0_41] : memref<128x10xf32, #tpu.memory_space<vmem>>, vector<128x10xf32>
      %cst_42 = arith.constant dense<0.000000e+00> : vector<2x10xf32>
      %48 = tpu.matmul %46, %47, %cst_42 {dimension_numbers = #tpu.dot_dimension_numbers<[1], [0], [0], [1], [0, 0, 1, 1], [], []>} : vector<2x128xf32>, vector<128x10xf32>, vector<2x10xf32> -> vector<2x10xf32>
      %c0_43 = arith.constant 0 : index
      %c0_44 = arith.constant 0 : index
      %49 = vector.load %arg6[%c0_43, %c0_44] : memref<1x10xf32, #tpu.memory_space<vmem>>, vector<1x10xf32>
      %50 = vector.broadcast %49 : vector<1x10xf32> to vector<2x10xf32>
      %51 = arith.addf %48, %50 : vector<2x10xf32>
      %c0_45 = arith.constant 0 : index
      %c0_46 = arith.constant 0 : index
      %52 = vector.load %arg7[%c0_45, %c0_46] : memref<2x10xf32, #tpu.memory_space<vmem>>, vector<2x10xf32>
      tpu.vector_store %arg7[%c0_45, %c0_46], %51 {strides = array<i32>} : memref<2x10xf32, #tpu.memory_space<vmem>>, vector<2x10xf32>,
    } else {
    }
    return
  }
  func.func @transform_0(%arg0: i32) -> (i32, i32) {
    %c0_i32 = arith.constant 0 : i32
    %c0_i32_0 = arith.constant 0 : i32
    return %c0_i32, %arg0 : i32, i32
  }
  func.func @transform_1(%arg0: i32) -> (i32, i32) {
    %c0_i32 = arith.constant 0 : i32
    %c0_i32_0 = arith.constant 0 : i32
    return %arg0, %c0_i32 : i32, i32
  }
  func.func @transform_2(%arg0: i32) -> (i32, i32) {
    %c0_i32 = arith.constant 0 : i32
    %c0_i32_0 = arith.constant 0 : i32
    %c0_i32_1 = arith.constant 0 : i32
    return %c0_i32, %c0_i32_0 : i32, i32
  }
  func.func @transform_3(%arg0: i32) -> (i32, i32) {
    %c0_i32 = arith.constant 0 : i32
    %c0_i32_0 = arith.constant 0 : i32
    %c0_i32_1 = arith.constant 0 : i32
    return %c0_i32, %c0_i32_0 : i32, i32
  }
  func.func @transform_4(%arg0: i32) -> (i32, i32) {
    %c0_i32 = arith.constant 0 : i32
    %c0_i32_0 = arith.constant 0 : i32
    %c0_i32_1 = arith.constant 0 : i32
    return %c0_i32, %c0_i32_0 : i32, i32
  }
  func.func @transform_5(%arg0: i32) -> (i32, i32) {
    %c0_i32 = arith.constant 0 : i32
    %c0_i32_0 = arith.constant 0 : i32
    %c0_i32_1 = arith.constant 0 : i32
    return %c0_i32, %c0_i32_0 : i32, i32
  }
  func.func @transform_6(%arg0: i32) -> (i32, i32) {
    %c0_i32 = arith.constant 0 : i32
    %c0_i32_0 = arith.constant 0 : i32
    %c0_i32_1 = arith.constant 0 : i32
    return %c0_i32, %c0_i32_0 : i32, i32
  }
}

</mosaic_0001>

<bundles_post_ra>
// kernel: net3_forward.3
= control target key start
LH: loop header
LB: loop body
LE: loop exit
PB: predicated region body
PF: predicated region fallthrough
CT: control target
= control target key end

     0   :  { %11 = vsyncpa [#allocation4], 0  ;;  %s4294_s21 = smov 0   ;;  %s5024_s0 = inlined_call_operand.vmem [shape: bf16[2,36864], index: 0, kind: input, shape index: {}]   ;;  %s5025_s1 = inlined_call_operand.vmem [shape: s8[36864,128], index: 1, kind: input, shape index: {}]   ;;  %s5026_s2 = inlined_call_operand.vmem [shape: f32[1,128], index: 2, kind: input, shape index: {}]   ;;  %s5027_s3 = inlined_call_operand.vmem [shape: f32[1,128], index: 3, kind: input, shape index: {}]   ;;  %s5028_s4 = inlined_call_operand.vmem [shape: f32[128,10], index: 4, kind: input, shape index: {}]   ;;  %s5029_s5 = inlined_call_operand.vmem [shape: f32[1,10], index: 5, kind: input, shape index: {}]   ;;  %s5030_s6 = inlined_call_operand.hbm [shape: f32[2,10], index: 6, kind: output, shape index: {}]  }
   0x1 LB: > { %s4300_s22 = sadd.s32 4294967295, %s4252_s21   ;;  %p3332_p0 = scmp.ge.s32.totalorder %s4252_s21, 1  ;;  %s4252_s21 = sphi %s4294_s21, %s17_s21  }
   0x2   : > { %p219_p1 = scmp.lt.s32.totalorder %s4252_s21, 5 }
   0x4   : > { %p220_p2 = pnand %p3332_p0, %p219_p1 }
   0x5   : > { %s248_s23 = smul.u32 (!%p220_p2), 72, %s4300_s22  ;;  %p3334_p5 = scmp.ne.s32.totalorder (!%p220_p2), %s4300_s22, 0 }
   0x6   : > { %223 = sbr.rel (%p220_p2) target bundleno = 1048 (0x418), region = 44 }
   0x7   : > { %s253_s24 = smul.u32 (!%p220_p2), 288, %s4300_s22  ;;  %p249_p3 = scmp.lt.s32.totalorder (!%p220_p2), %s248_s23, 287 }
   0x9   : > { %p254_p4 = scmp.lt.s32.totalorder (!%p220_p2), %s253_s24, 1151 }
   0xb   : > { %s5032_s23 = smov (!%p249_p3, %s248_s23), 287  ;;  %s5034_s24 = smov (!%p254_p4, %s253_s24), 1151 }
   0xc   : > { %s4309_s27 = scalar_lea.vmem %s5024_s0, %s5032_s23  ;;  %s3333_s28 = sshll.u32 %s5034_s24, 3 }
   0xd   : > { %s4314_s7 = scalar_lea.vmem %s5025_s1, %s3333_s28  ;;  %263 = sbr.rel (%p3334_p5) target bundleno = 20 (0x14), region = 48 }
  0x12   : > { %v4254_v0 = vmov 0.0  }
  0x13   : > { %264 = vst [vmem:[#allocation2] sm:$0x3] %v4254_v0 }
  0x14 PF: > { %v272_v1 = vld [vmem:[%s4314_s7 + $0x38] sm:$0xff]  ;;  %v271_v11 = vld [vmem:[%s4314_s7 + $0x30] sm:$0xff]  ;;  %v492_v19 = vlaneseq  ;;  %v4255_v24 = vmov 1966171168   ;;  %v270_v27 = vld [vmem:[%s4314_s7 + $0x28] sm:$0xff]  ;;  %p3339_p6 = scmp.ne.s32.totalorder %s4300_s22, 3 }
  0x15   : > { %v280_v2 = vld [vmem:[%s4314_s7 + $0x78] sm:$0xff]  ;;  %v351_v4 = vunpack.c.l.s8.bf16 %v272_v1  ;;  %v352_v5 = vunpack.c.h.s8.bf16 %v272_v1  ;;  %v279_v12 = vld [vmem:[%s4314_s7 + $0x70] sm:$0xff]  ;;  %v350_v15 = vunpack.c.h.s8.bf16 %v271_v11  ;;  %v349_v22 = vunpack.c.l.s8.bf16 %v271_v11  ;;  %v278_v28 = vld [vmem:[%s4314_s7 + $0x68] sm:$0xff] }
  0x16   : > { %v268_v3 = vld [vmem:[%s4314_s7 + $0x18] sm:$0xff]  ;;  %v367_v6 = vunpack.c.l.s8.bf16 %v280_v2  ;;  %v368_v7 = vunpack.c.h.s8.bf16 %v280_v2  ;;  %v366_v16 = vunpack.c.h.s8.bf16 %v279_v12  ;;  %v267_v17 = vld [vmem:[%s4314_s7 + $0x10] sm:$0xff]  ;;  %v365_v23 = vunpack.c.l.s8.bf16 %v279_v12  ;;  %v482_v32 = vld [vmem:[%s4309_s27] sm:$0xff] }
  0x17   : > { %v276_v8 = vld [vmem:[%s4314_s7 + $0x58] sm:$0xff]  ;;  %v344_v9 = vunpack.c.h.s8.bf16 %v268_v3  ;;  %3347 = vmatprep.subr.bf16.mxu0 %v352_v5  ;;  %v343_v13 = vunpack.c.l.s8.bf16 %v268_v3  ;;  %v275_v18 = vld [vmem:[%s4314_s7 + $0x50] sm:$0xff]  ;;  %v342_v20 = vunpack.c.h.s8.bf16 %v267_v17  ;;  %v490_v25 = vunpack.c.l.s4 %v4255_v24  ;;  %v266_v35 = vld [vmem:[%s4314_s7 + $0x8] sm:$0xff] }
  0x18   : > { %v360_v10 = vunpack.c.h.s8.bf16 %v276_v8  ;;  %3369 = vmatprep.subr.bf16.mxu1 %v368_v7  ;;  %v359_v14 = vunpack.c.l.s8.bf16 %v276_v8  ;;  %v358_v21 = vunpack.c.h.s8.bf16 %v275_v18  ;;  %v493_v26 = vshrl.u32 %v492_v19, 7  ;;  %v274_v36 = vld [vmem:[%s4314_s7 + $0x48] sm:$0xff]  ;;  %v269_v44 = vld [vmem:[%s4314_s7 + $0x20] sm:$0xff]  ;;  %v288_v60 = vld [vmem:[%s4314_s7 + $0xb8] sm:$0xff] }
  0x19   : > { %3348 = vmatpush3.bf16.msra.mxu0 %v344_v9  ;;  %v491_v29 = vunpack.c.0.s8 %v490_v25  ;;  %v341_v30 = vunpack.c.l.s8.bf16 %v267_v17  ;;  %v357_v31 = vunpack.c.l.s8.bf16 %v275_v18  ;;  %v348_v33 = vunpack.c.h.s8.bf16 %v270_v27  ;;  %v277_v45 = vld [vmem:[%s4314_s7 + $0x60] sm:$0xff]  ;;  %v296_v61 = vld [vmem:[%s4314_s7 + $0xf8] sm:$0xff]  ;;  %v287_v12 = vld [vmem:[%s4314_s7 + $0xb0] sm:$0xff] }
  0x1a   : > { %3370 = vmatpush3.bf16.msra.mxu1 %v360_v10  ;;  %3349 = vmatprep.subr.bf16.mxu0 %v351_v4  ;;  %v364_v34 = vunpack.c.h.s8.bf16 %v278_v28  ;;  %v340_v39 = vunpack.c.h.s8.bf16 %v266_v35  ;;  %v356_v40 = vunpack.c.h.s8.bf16 %v274_v36  ;;  %v347_v41 = vunpack.c.l.s8.bf16 %v270_v27  ;;  %v265_v52 = vld [vmem:[%s4314_s7] sm:$0xff]  ;;  %v284_v4 = vld [vmem:[%s4314_s7 + $0x98] sm:$0xff]  ;;  %v283_v19 = vld [vmem:[%s4314_s7 + $0x90] sm:$0xff] }
  0x1b   : > { %3371 = vmatprep.subr.bf16.mxu1 %v367_v6  ;;  %v4330_v37 = vsub.s32 %v491_v29, %v493_v26  ;;  %v363_v42 = vunpack.c.l.s8.bf16 %v278_v28  ;;  %v488_v46 = vcombine.high %v482_v32, %v482_v32  ;;  %v339_v48 = vunpack.c.l.s8.bf16 %v266_v35  ;;  %v273_v53 = vld [vmem:[%s4314_s7 + $0x40] sm:$0xff]  ;;  %v292_v5 = vld [vmem:[%s4314_s7 + $0xd8] sm:$0xff]  ;;  %v286_v25 = vld [vmem:[%s4314_s7 + $0xa8] sm:$0xff] }
  0x1c   : > { %v355_v49 = vunpack.c.l.s8.bf16 %v274_v36  ;;  %v346_v50 = vunpack.c.h.s8.bf16 %v269_v44  ;;  %v362_v51 = vunpack.c.h.s8.bf16 %v277_v45  ;;  %v338_v56 = vunpack.c.h.s8.bf16 %v265_v52  ;;  %v294_v26 = vld [vmem:[%s4314_s7 + $0xe8] sm:$0xff] }
  0x1d   : > { %3350 = vmatpush3.bf16.msra.mxu0 %v343_v13  ;;  %v495_v38 = vrot.slane %v482_v32, %v4330_v37  ;;  %v4339_v55 = vrot.slane %v488_v46, %v4330_v37  ;;  %v354_v57 = vunpack.c.h.s8.bf16 %v273_v53  ;;  %v345_v58 = vunpack.c.l.s8.bf16 %v269_v44  ;;  %v295_v13 = vld [vmem:[%s4314_s7 + $0xf0] sm:$0xff]  ;;  %v290_v32 = vld [vmem:[%s4314_s7 + $0xc8] sm:$0xff]  ;;  %v289_v46 = vld [vmem:[%s4314_s7 + $0xc0] sm:$0xff] }
  0x1e   : > { %3372 = vmatpush3.bf16.msra.mxu1 %v359_v14  ;;  %3351 = vmatprep.subr.bf16.mxu0 %v350_v15  ;;  %v361_v59 = vunpack.c.l.s8.bf16 %v277_v45  ;;  %v337_v0 = vunpack.c.l.s8.bf16 %v265_v52  ;;  %v353_v1 = vunpack.c.l.s8.bf16 %v273_v53  ;;  %v384_v2 = vunpack.c.h.s8.bf16 %v288_v60  ;;  %v281_v45 = vld [vmem:[%s4314_s7 + $0x80] sm:$0xff]  ;;  %v304_v52 = vld [vmem:[%s4314_s7 + $0x138] sm:$0xff] }
  0x1f   : > { %3373 = vmatprep.subr.bf16.mxu1 %v366_v16  ;;  %v503_v43 = vcombine.high %v495_v38, %v495_v38  ;;  %v504_v62 = vcombine.high %v4339_v55, %v4339_v55  ;;  %v511_v63 = vrot.slane %v495_v38, %v4330_v37  ;;  %v400_v3 = vunpack.c.h.s8.bf16 %v296_v61  ;;  %v285_v38 = vld [vmem:[%s4314_s7 + $0xa0] sm:$0xff]  ;;  %v312_v53 = vld [vmem:[%s4314_s7 + $0x178] sm:$0xff] }
  0x20   : > { %v376_v8 = vunpack.c.h.s8.bf16 %v284_v4  ;;  %v392_v9 = vunpack.c.h.s8.bf16 %v292_v5  ;;  %v383_v10 = vunpack.c.l.s8.bf16 %v288_v60  ;;  %v399_v11 = vunpack.c.l.s8.bf16 %v296_v61  ;;  %v300_v61 = vld [vmem:[%s4314_s7 + $0x118] sm:$0xff] }
  0x21   : > { %3352 = vmatpush3.bf16.msra.mxu0 %v342_v20  ;;  %v525_v47 = vrot.slane %v503_v43, %v4330_v37  ;;  %v532_v6 = vrot.slane %v504_v62, %v4330_v37  ;;  %v533_v7 = vcombine.high %v511_v63, %v511_v63  ;;  %v375_v15 = vunpack.c.l.s8.bf16 %v284_v4  ;;  %v291_v20 = vld [vmem:[%s4314_s7 + $0xd0] sm:$0xff]  ;;  %v308_v62 = vld [vmem:[%s4314_s7 + $0x158] sm:$0xff] }
  0x22   : > { %3374 = vmatpush3.bf16.msra.mxu1 %v358_v21  ;;  %3353 = vmatprep.subr.bf16.mxu0 %v349_v22  ;;  %v391_v16 = vunpack.c.l.s8.bf16 %v292_v5  ;;  %v382_v17 = vunpack.c.h.s8.bf16 %v287_v12  ;;  %v398_v18 = vunpack.c.h.s8.bf16 %v295_v13  ;;  %v374_v21 = vunpack.c.h.s8.bf16 %v283_v19  ;;  %v303_v4 = vld [vmem:[%s4314_s7 + $0x130] sm:$0xff] }
  0x23   : > { %3375 = vmatprep.subr.bf16.mxu1 %v365_v23  ;;  %v535_v54 = vcombine.high %v525_v47, %v525_v47  ;;  %658 = vmatprep.mubr.bf16.mxu0 %v525_v47  ;;  %v536_v14 = vcombine.high %v532_v6, %v532_v6  ;;  %v390_v22 = vunpack.c.h.s8.bf16 %v291_v20  ;;  %v381_v23 = vunpack.c.l.s8.bf16 %v287_v12  ;;  %v311_v5 = vld [vmem:[%s4314_s7 + $0x170] sm:$0xff] }
  0x24   : > { %v397_v24 = vunpack.c.l.s8.bf16 %v295_v13  ;;  %v373_v27 = vunpack.c.l.s8.bf16 %v283_v19  ;;  %v389_v28 = vunpack.c.l.s8.bf16 %v291_v20  ;;  %v380_v29 = vunpack.c.h.s8.bf16 %v286_v25  ;;  %v307_v12 = vld [vmem:[%s4314_s7 + $0x150] sm:$0xff] }
  0x25   : > { %3354 = vmatpush3.bf16.msra.mxu0 %v341_v30  ;;  %698 = vmatprep.mubr.bf16.mxu1 %v535_v54  ;;  %v396_v30 = vunpack.c.h.s8.bf16 %v294_v26  ;;  %v379_v35 = vunpack.c.l.s8.bf16 %v286_v25  ;;  %v395_v36 = vunpack.c.l.s8.bf16 %v294_v26  ;;  %v378_v43 = vunpack.c.h.s8.bf16 %v285_v38 }
  0x26   : > { %3376 = vmatpush3.bf16.msra.mxu1 %v357_v31  ;;  %3355 = vmatprep.subr.bf16.mxu0 %v348_v33  ;;  %v282_v31 = vld [vmem:[%s4314_s7 + $0x88] sm:$0xff]  ;;  %v432_v60 = vunpack.c.h.s8.bf16 %v312_v53  ;;  %v421_v20 = vunpack.c.l.s8.bf16 %v307_v12 }
  0x27   : > { %3377 = vmatprep.subr.bf16.mxu1 %v364_v34  ;;  %v372_v33 = vunpack.c.h.s8.bf16 %v282_v31  ;;  %v388_v34 = vunpack.c.h.s8.bf16 %v290_v32 }
  0x29   : > { %3356 = vmatpush3.bf16.msra.mxu0 %v340_v39  ;;  %v293_v39 = vld [vmem:[%s4314_s7 + $0xe0] sm:$0xff] }
  0x2a   : > { %3378 = vmatpush3.bf16.msra.mxu1 %v356_v40  ;;  %3357 = vmatprep.subr.bf16.mxu0 %v347_v41  ;;  %v4360_v40 = vld [vmem:[%s4309_s27 + $0x8] sm:$0xff]  ;;  %v371_v41 = vunpack.c.l.s8.bf16 %v282_v31  ;;  %v394_v44 = vunpack.c.h.s8.bf16 %v293_v39 }
  0x2b   : > { %3379 = vmatprep.subr.bf16.mxu1 %v363_v42  ;;  %v387_v42 = vunpack.c.l.s8.bf16 %v290_v32  ;;  %v4366_v47 = vrot.slane %v4360_v40, %v4330_v37  ;;  %v537_v31 = vcombine.high %v4360_v40, %v4360_v40 }
  0x2d   : > { %3358 = vmatpush3.bf16.msra.mxu0 %v339_v48  ;;  %v370_v48 = vunpack.c.h.s8.bf16 %v281_v45  ;;  %v552_v54 = vcombine.high %v4366_v47, %v4366_v47 }
  0x2e   : > { %3380 = vmatpush3.bf16.msra.mxu1 %v355_v49  ;;  %3359 = vmatprep.subr.bf16.mxu0 %v346_v50  ;;  %v386_v49 = vunpack.c.h.s8.bf16 %v289_v46  ;;  %v377_v50 = vunpack.c.l.s8.bf16 %v285_v38  ;;  %v305_v38 = vld [vmem:[%s4314_s7 + $0x140] sm:$0xff] }
  0x2f   : > { %3381 = vmatprep.subr.bf16.mxu1 %v362_v51  ;;  %v393_v51 = vunpack.c.l.s8.bf16 %v293_v39  ;;  %v4392_v39 = vrot.slane %v537_v31, %v4330_v37 }
  0x31   : > { %3360 = vmatpush3.bf16.msra.mxu0 %v338_v56  ;;  %v518_v56 = vrot.slane %v4339_v55, %v4330_v37  ;;  %v415_v55 = vunpack.c.l.s8.bf16 %v304_v52 }
  0x32   : > { %3382 = vmatpush3.bf16.msra.mxu1 %v354_v57  ;;  %3361 = vmatprep.subr.bf16.mxu0 %v345_v58  ;;  %v369_v57 = vunpack.c.l.s8.bf16 %v281_v45  ;;  %v385_v58 = vunpack.c.l.s8.bf16 %v289_v46  ;;  %v328_v45 = vld [vmem:[%s4314_s7 + $0x1f8] sm:$0xff]  ;;  %v553_v46 = vcombine.high %v4392_v39, %v4392_v39 }
  0x33   : > { %3383 = vmatprep.subr.bf16.mxu1 %v361_v59  ;;  %v416_v59 = vunpack.c.h.s8.bf16 %v304_v52  ;;  %v464_v52 = vunpack.c.h.s8.bf16 %v328_v45 }
  0x35   : > { %3362 = vmatpush3.bf16.msra.mxu0 %v337_v0  ;;  %v534_v0 = vcombine.high %v518_v56, %v518_v56 }
  0x36   : > { %3384 = vmatpush3.bf16.msra.mxu1 %v353_v1  ;;  %3391 = vmatprep.subr.bf16.mxu0 %v384_v2  ;;  %v408_v1 = vunpack.c.h.s8.bf16 %v300_v61  ;;  %v424_v2 = vunpack.c.h.s8.bf16 %v308_v62 }
  0x37   : > { %3413 = vmatprep.subr.bf16.mxu1 %v400_v3  ;;  %v431_v3 = vunpack.c.l.s8.bf16 %v312_v53  ;;  %v316_v53 = vld [vmem:[%s4314_s7 + $0x198] sm:$0xff] }
  0x38   : > { %659 = vmatmul.mubr.bf16.vlgmr.msra.gmra.mxu0 %v511_v63  ;;  %v574_v63 = vrot.slane %v552_v54, %v4330_v37  ;;  %v324_v54 = vld [vmem:[%s4314_s7 + $0x1d8] sm:$0xff] }
  0x39   : > { %699 = vmatmul.mubr.bf16.vlgmr.msra.gmra.mxu1 %v533_v7  ;;  %3392 = vmatpush3.bf16.msra.mxu0 %v376_v8  ;;  %v407_v7 = vunpack.c.l.s8.bf16 %v300_v61  ;;  %v423_v8 = vunpack.c.l.s8.bf16 %v308_v62  ;;  %v319_v61 = vld [vmem:[%s4314_s7 + $0x1b0] sm:$0xff] }
  0x3a   : > { %3414 = vmatpush3.bf16.msra.mxu1 %v392_v9  ;;  %3393 = vmatprep.subr.bf16.mxu0 %v383_v10  ;;  %v414_v9 = vunpack.c.h.s8.bf16 %v303_v4  ;;  %v430_v10 = vunpack.c.h.s8.bf16 %v311_v5  ;;  %v327_v62 = vld [vmem:[%s4314_s7 + $0x1f0] sm:$0xff] }
  0x3b   : > { %3415 = vmatprep.subr.bf16.mxu1 %v399_v11  ;;  %738 = vmatprep.mubr.bf16.mxu0 %v532_v6  ;;  %v584_v6 = vcombine.high %v574_v63, %v574_v63  ;;  %v299_v11 = vld [vmem:[%s4314_s7 + $0x110] sm:$0xff] }
  0x3c   : > { %778 = vmatprep.mubr.bf16.mxu1 %v536_v14  ;;  %v406_v13 = vunpack.c.h.s8.bf16 %v299_v11  ;;  %v422_v14 = vunpack.c.h.s8.bf16 %v307_v12  ;;  %v405_v19 = vunpack.c.l.s8.bf16 %v299_v11 }
  0x3d   : > { %3394 = vmatpush3.bf16.msra.mxu0 %v375_v15  ;;  %v413_v15 = vunpack.c.l.s8.bf16 %v303_v4  ;;  %v323_v4 = vld [vmem:[%s4314_s7 + $0x1d0] sm:$0xff] }
  0x3e   : > { %3416 = vmatpush3.bf16.msra.mxu1 %v391_v16  ;;  %3395 = vmatprep.subr.bf16.mxu0 %v382_v17  ;;  %v429_v16 = vunpack.c.l.s8.bf16 %v311_v5  ;;  %v302_v17 = vld [vmem:[%s4314_s7 + $0x128] sm:$0xff]  ;;  %v453_v12 = vunpack.c.l.s8.bf16 %v323_v4 }
  0x3f   : > { %3417 = vmatprep.subr.bf16.mxu1 %v398_v18  ;;  %v310_v18 = vld [vmem:[%s4314_s7 + $0x168] sm:$0xff] }
  0x41   : > { %3396 = vmatpush3.bf16.msra.mxu0 %v374_v21  ;;  %v412_v21 = vunpack.c.h.s8.bf16 %v302_v17 }
  0x42   : > { %3418 = vmatpush3.bf16.msra.mxu1 %v390_v22  ;;  %3397 = vmatprep.subr.bf16.mxu0 %v381_v23  ;;  %v428_v22 = vunpack.c.h.s8.bf16 %v310_v18  ;;  %v298_v23 = vld [vmem:[%s4314_s7 + $0x108] sm:$0xff] }
  0x43   : > { %3419 = vmatprep.subr.bf16.mxu1 %v397_v24  ;;  %v306_v24 = vld [vmem:[%s4314_s7 + $0x148] sm:$0xff]  ;;  %v404_v25 = vunpack.c.h.s8.bf16 %v298_v23  ;;  %v403_v32 = vunpack.c.l.s8.bf16 %v298_v23 }
  0x44   : > { %v420_v26 = vunpack.c.h.s8.bf16 %v306_v24 }
  0x45   : > { %3398 = vmatpush3.bf16.msra.mxu0 %v373_v27  ;;  %v411_v27 = vunpack.c.l.s8.bf16 %v302_v17 }
  0x46   : > { %3420 = vmatpush3.bf16.msra.mxu1 %v389_v28  ;;  %3399 = vmatprep.subr.bf16.mxu0 %v380_v29  ;;  %v427_v28 = vunpack.c.l.s8.bf16 %v310_v18  ;;  %v301_v29 = vld [vmem:[%s4314_s7 + $0x120] sm:$0xff] }
  0x47   : > { %3421 = vmatprep.subr.bf16.mxu1 %v396_v30  ;;  %v309_v30 = vld [vmem:[%s4314_s7 + $0x160] sm:$0xff]  ;;  %v409_v40 = vunpack.c.l.s8.bf16 %v301_v29 }
  0x49   : > { %3400 = vmatpush3.bf16.msra.mxu0 %v372_v33  ;;  %v419_v33 = vunpack.c.l.s8.bf16 %v306_v24 }
  0x4a   : > { %3422 = vmatpush3.bf16.msra.mxu1 %v388_v34  ;;  %3401 = vmatprep.subr.bf16.mxu0 %v379_v35  ;;  %v410_v34 = vunpack.c.h.s8.bf16 %v301_v29  ;;  %v426_v35 = vunpack.c.h.s8.bf16 %v309_v30  ;;  %v4416_v29 = vld [vmem:[%s4309_s27 + $0x12] sm:$0xff] }
  0x4b   : > { %3423 = vmatprep.subr.bf16.mxu1 %v395_v36  ;;  %v297_v36 = vld [vmem:[%s4314_s7 + $0x100] sm:$0xff] }
  0x4d   : > { %3402 = vmatpush3.bf16.msra.mxu0 %v371_v41  ;;  %v402_v41 = vunpack.c.h.s8.bf16 %v297_v36 }
  0x4e   : > { %3424 = vmatpush3.bf16.msra.mxu1 %v387_v42  ;;  %3403 = vmatprep.subr.bf16.mxu0 %v378_v43  ;;  %v418_v42 = vunpack.c.h.s8.bf16 %v305_v38  ;;  %v425_v43 = vunpack.c.l.s8.bf16 %v309_v30 }
  0x4f   : > { %3425 = vmatprep.subr.bf16.mxu1 %v394_v44  ;;  %v320_v44 = vld [vmem:[%s4314_s7 + $0x1b8] sm:$0xff] }
  0x51   : > { %3404 = vmatpush3.bf16.msra.mxu0 %v370_v48  ;;  %v560_v48 = vrot.slane %v4366_v47, %v4330_v37  ;;  %v447_v47 = vunpack.c.l.s8.bf16 %v320_v44 }
  0x52   : > { %3426 = vmatpush3.bf16.msra.mxu1 %v386_v49  ;;  %3405 = vmatprep.subr.bf16.mxu0 %v377_v50  ;;  %v401_v49 = vunpack.c.l.s8.bf16 %v297_v36  ;;  %v417_v50 = vunpack.c.l.s8.bf16 %v305_v38  ;;  %v4422_v36 = vrot.slane %v4416_v29, %v4330_v37  ;;  %v567_v38 = vrot.slane %v4392_v39, %v4330_v37 }
  0x53   : > { %3427 = vmatprep.subr.bf16.mxu1 %v393_v51  ;;  %v448_v51 = vunpack.c.h.s8.bf16 %v320_v44 }
  0x54   : > { %v1226_v39 = vcombine.high %v4422_v36, %v4422_v36 }
  0x55   : > { %3406 = vmatpush3.bf16.msra.mxu0 %v369_v57  ;;  %v582_v57 = vcombine.high %v560_v48, %v560_v48 }
  0x56   : > { %3428 = vmatpush3.bf16.msra.mxu1 %v385_v58  ;;  %3435 = vmatprep.subr.bf16.mxu0 %v416_v59  ;;  %v440_v58 = vunpack.c.h.s8.bf16 %v316_v53  ;;  %v456_v59 = vunpack.c.h.s8.bf16 %v324_v54 }
  0x57   : > { %3457 = vmatprep.subr.bf16.mxu1 %v432_v60  ;;  %v463_v60 = vunpack.c.l.s8.bf16 %v328_v45  ;;  %v332_v45 = vld [vmem:[%s4314_s7 + $0x218] sm:$0xff] }
  0x58   : > { %739 = vmatmul.mubr.bf16.vlgmr.msra.gmra.mxu0 %v518_v56  ;;  %v581_v56 = vrot.slane %v553_v46, %v4330_v37  ;;  %v991_v46 = vld [vmem:[%s4314_s7 + $0x258] sm:$0xff] }
  0x59   : > { %779 = vmatmul.mubr.bf16.vlgmr.msra.gmra.mxu1 %v534_v0  ;;  %3436 = vmatpush3.bf16.msra.mxu0 %v408_v1  ;;  %v439_v0 = vunpack.c.l.s8.bf16 %v316_v53  ;;  %v455_v1 = vunpack.c.l.s8.bf16 %v324_v54  ;;  %v335_v54 = vld [vmem:[%s4314_s7 + $0x230] sm:$0xff] }
  0x5a   : > { %3458 = vmatpush3.bf16.msra.mxu1 %v424_v2  ;;  %3437 = vmatprep.subr.bf16.mxu0 %v415_v55  ;;  %v446_v2 = vunpack.c.h.s8.bf16 %v319_v61  ;;  %v462_v55 = vunpack.c.h.s8.bf16 %v327_v62 }
  0x5b   : > { %3459 = vmatprep.subr.bf16.mxu1 %v431_v3  ;;  %818 = vmatprep.mubr.bf16.mxu0 %v574_v63  ;;  %v585_v63 = vcombine.high %v581_v56, %v581_v56  ;;  %v315_v3 = vld [vmem:[%s4314_s7 + $0x190] sm:$0xff] }
  0x5c   : > { %858 = vmatprep.mubr.bf16.mxu1 %v584_v6  ;;  %v438_v5 = vunpack.c.h.s8.bf16 %v315_v3  ;;  %v454_v6 = vunpack.c.h.s8.bf16 %v323_v4  ;;  %v437_v11 = vunpack.c.l.s8.bf16 %v315_v3  ;;  %v334_v3 = vld [vmem:[%s4314_s7 + $0x228] sm:$0xff] }
  0x5d   : > { %3438 = vmatpush3.bf16.msra.mxu0 %v407_v7  ;;  %v445_v7 = vunpack.c.l.s8.bf16 %v319_v61  ;;  %v993_v4 = vld [vmem:[%s4314_s7 + $0x268] sm:$0xff] }
  0x5e   : > { %3460 = vmatpush3.bf16.msra.mxu1 %v423_v8  ;;  %3439 = vmatprep.subr.bf16.mxu0 %v414_v9  ;;  %v461_v8 = vunpack.c.l.s8.bf16 %v327_v62  ;;  %v318_v9 = vld [vmem:[%s4314_s7 + $0x1a8] sm:$0xff]  ;;  %v331_v62 = vld [vmem:[%s4314_s7 + $0x210] sm:$0xff] }
  0x5f   : > { %3461 = vmatprep.subr.bf16.mxu1 %v430_v10  ;;  %v326_v10 = vld [vmem:[%s4314_s7 + $0x1e8] sm:$0xff] }
  0x61   : > { %3440 = vmatpush3.bf16.msra.mxu0 %v406_v13  ;;  %v444_v13 = vunpack.c.h.s8.bf16 %v318_v9 }
  0x62   : > { %3462 = vmatpush3.bf16.msra.mxu1 %v422_v14  ;;  %3441 = vmatprep.subr.bf16.mxu0 %v413_v15  ;;  %v460_v14 = vunpack.c.h.s8.bf16 %v326_v10  ;;  %v314_v15 = vld [vmem:[%s4314_s7 + $0x188] sm:$0xff] }
  0x63   : > { %3463 = vmatprep.subr.bf16.mxu1 %v429_v16  ;;  %v322_v16 = vld [vmem:[%s4314_s7 + $0x1c8] sm:$0xff]  ;;  %v436_v17 = vunpack.c.h.s8.bf16 %v314_v15  ;;  %v435_v23 = vunpack.c.l.s8.bf16 %v314_v15  ;;  %v333_v15 = vld [vmem:[%s4314_s7 + $0x220] sm:$0xff] }
  0x64   : > { %v452_v18 = vunpack.c.h.s8.bf16 %v322_v16  ;;  %v451_v24 = vunpack.c.l.s8.bf16 %v322_v16  ;;  %v992_v16 = vld [vmem:[%s4314_s7 + $0x260] sm:$0xff] }
  0x65   : > { %3442 = vmatpush3.bf16.msra.mxu0 %v405_v19  ;;  %v443_v19 = vunpack.c.l.s8.bf16 %v318_v9  ;;  %v330_v9 = vld [vmem:[%s4314_s7 + $0x208] sm:$0xff] }
  0x66   : > { %3464 = vmatpush3.bf16.msra.mxu1 %v421_v20  ;;  %3443 = vmatprep.subr.bf16.mxu0 %v412_v21  ;;  %v459_v20 = vunpack.c.l.s8.bf16 %v326_v10  ;;  %v317_v21 = vld [vmem:[%s4314_s7 + $0x1a0] sm:$0xff]  ;;  %v989_v10 = vld [vmem:[%s4314_s7 + $0x248] sm:$0xff] }
  0x67   : > { %3465 = vmatprep.subr.bf16.mxu1 %v428_v22  ;;  %v325_v22 = vld [vmem:[%s4314_s7 + $0x1e0] sm:$0xff] }
  0x69   : > { %3444 = vmatpush3.bf16.msra.mxu0 %v404_v25  ;;  %v442_v25 = vunpack.c.h.s8.bf16 %v317_v21 }
  0x6a   : > { %3466 = vmatpush3.bf16.msra.mxu1 %v420_v26  ;;  %3445 = vmatprep.subr.bf16.mxu0 %v411_v27  ;;  %v458_v26 = vunpack.c.h.s8.bf16 %v325_v22  ;;  %v313_v27 = vld [vmem:[%s4314_s7 + $0x180] sm:$0xff] }
  0x6b   : > { %3467 = vmatprep.subr.bf16.mxu1 %v427_v28  ;;  %v321_v28 = vld [vmem:[%s4314_s7 + $0x1c0] sm:$0xff]  ;;  %v434_v30 = vunpack.c.h.s8.bf16 %v313_v27 }
  0x6c   : > { %v450_v31 = vunpack.c.h.s8.bf16 %v321_v28 }
  0x6d   : > { %3446 = vmatpush3.bf16.msra.mxu0 %v403_v32  ;;  %v441_v32 = vunpack.c.l.s8.bf16 %v317_v21  ;;  %v329_v21 = vld [vmem:[%s4314_s7 + $0x200] sm:$0xff] }
  0x6e   : > { %3468 = vmatpush3.bf16.msra.mxu1 %v419_v33  ;;  %3447 = vmatprep.subr.bf16.mxu0 %v410_v34  ;;  %v457_v33 = vunpack.c.l.s8.bf16 %v325_v22  ;;  %v336_v34 = vld [vmem:[%s4314_s7 + $0x238] sm:$0xff]  ;;  %v988_v22 = vld [vmem:[%s4314_s7 + $0x240] sm:$0xff] }
  0x6f   : > { %3469 = vmatprep.subr.bf16.mxu1 %v426_v35  ;;  %v995_v35 = vld [vmem:[%s4314_s7 + $0x278] sm:$0xff] }
  0x70   : > { %v1075_v44 = vunpack.c.h.s8.bf16 %v995_v35  ;;  %v1074_v53 = vunpack.c.l.s8.bf16 %v995_v35  ;;  %v999_v35 = vld [vmem:[%s4314_s7 + $0x298] sm:$0xff] }
  0x71   : > { %3448 = vmatpush3.bf16.msra.mxu0 %v402_v41  ;;  %v4427_v41 = vld.sshfl [vmem:[%s4309_s27 + $0x10] sm:$0x11 pattern:$0x75316420] }
  0x72   : > { %3470 = vmatpush3.bf16.msra.mxu1 %v418_v42  ;;  %3449 = vmatprep.subr.bf16.mxu0 %v409_v40  ;;  %v433_v42 = vunpack.c.l.s8.bf16 %v313_v27  ;;  %v449_v40 = vunpack.c.l.s8.bf16 %v321_v28  ;;  %v1068_v27 = vunpack.c.l.s8.bf16 %v992_v16  ;;  %v1003_v28 = vld [vmem:[%s4314_s7 + $0x2b8] sm:$0xff] }
  0x73   : > { %3471 = vmatprep.subr.bf16.mxu1 %v425_v43  ;;  %v480_v43 = vunpack.c.h.s8.bf16 %v336_v34 }
  0x75   : > { %3450 = vmatpush3.bf16.msra.mxu0 %v401_v49  ;;  %v583_v49 = vcombine.high %v567_v38, %v567_v38 }
  0x76   : > { %3472 = vmatpush3.bf16.msra.mxu1 %v417_v50  ;;  %3479 = vmatprep.subr.bf16.mxu0 %v448_v51  ;;  %v472_v50 = vunpack.c.h.s8.bf16 %v332_v45  ;;  %v1067_v51 = vunpack.c.h.s8.bf16 %v991_v46 }
  0x77   : > { %3501 = vmatprep.subr.bf16.mxu1 %v464_v52  ;;  %v479_v52 = vunpack.c.l.s8.bf16 %v336_v34 }
  0x78   : > { %819 = vmatmul.mubr.bf16.vlgmr.msra.gmra.mxu0 %v560_v48  ;;  %v593_v48 = vcombine.high %v4427_v41, %v4427_v41 }
  0x79   : > { %859 = vmatmul.mubr.bf16.vlgmr.msra.gmra.mxu1 %v582_v57  ;;  %3480 = vmatpush3.bf16.msra.mxu0 %v440_v58  ;;  %v4439_v58 = vrot.slane %v1226_v39, %v4330_v37  ;;  %v1002_v39 = vld [vmem:[%s4314_s7 + $0x2b0] sm:$0xff] }
  0x7a   : > { %3502 = vmatpush3.bf16.msra.mxu1 %v456_v59  ;;  %3481 = vmatprep.subr.bf16.mxu0 %v447_v47  ;;  %v607_v57 = vrot.slane %v593_v48, %v4330_v37  ;;  %v471_v59 = vunpack.c.l.s8.bf16 %v332_v45  ;;  %v1066_v47 = vunpack.c.l.s8.bf16 %v991_v46  ;;  %v1090_v46 = vunpack.c.l.s8.bf16 %v1003_v28 }
  0x7b   : > { %3503 = vmatprep.subr.bf16.mxu1 %v463_v60  ;;  %898 = vmatprep.mubr.bf16.mxu0 %v581_v56  ;;  %v994_v56 = vld [vmem:[%s4314_s7 + $0x270] sm:$0xff]  ;;  %v478_v60 = vunpack.c.h.s8.bf16 %v335_v54 }
  0x7c   : > { %938 = vmatprep.mubr.bf16.mxu1 %v585_v63  ;;  %v1073_v61 = vunpack.c.h.s8.bf16 %v994_v56  ;;  %v990_v63 = vld [vmem:[%s4314_s7 + $0x250] sm:$0xff] }
  0x7d   : > { %3482 = vmatpush3.bf16.msra.mxu0 %v439_v0  ;;  %v470_v0 = vunpack.c.h.s8.bf16 %v331_v62 }
  0x7e   : > { %3504 = vmatpush3.bf16.msra.mxu1 %v455_v1  ;;  %3483 = vmatprep.subr.bf16.mxu0 %v446_v2  ;;  %v1065_v1 = vunpack.c.h.s8.bf16 %v990_v63  ;;  %v477_v2 = vunpack.c.l.s8.bf16 %v335_v54  ;;  %v998_v54 = vld [vmem:[%s4314_s7 + $0x290] sm:$0xff] }
  0x7f   : > { %3505 = vmatprep.subr.bf16.mxu1 %v462_v55  ;;  %v1072_v55 = vunpack.c.l.s8.bf16 %v994_v56  ;;  %v1006_v56 = vld [vmem:[%s4314_s7 + $0x2d0] sm:$0xff] }
  0x81   : > { %3484 = vmatpush3.bf16.msra.mxu0 %v438_v5  ;;  %v469_v5 = vunpack.c.l.s8.bf16 %v331_v62  ;;  %v1080_v62 = vunpack.c.l.s8.bf16 %v998_v54 }
  0x82   : > { %3506 = vmatpush3.bf16.msra.mxu1 %v454_v6  ;;  %3485 = vmatprep.subr.bf16.mxu0 %v445_v7  ;;  %v1064_v6 = vunpack.c.l.s8.bf16 %v990_v63  ;;  %v476_v7 = vunpack.c.h.s8.bf16 %v334_v3  ;;  %v1096_v63 = vunpack.c.l.s8.bf16 %v1006_v56 }
  0x83   : > { %3507 = vmatprep.subr.bf16.mxu1 %v461_v8  ;;  %v1071_v8 = vunpack.c.h.s8.bf16 %v993_v4 }
  0x85   : > { %3486 = vmatpush3.bf16.msra.mxu0 %v437_v11  ;;  %v468_v11 = vunpack.c.h.s8.bf16 %v330_v9 }
  0x86   : > { %3508 = vmatpush3.bf16.msra.mxu1 %v453_v12  ;;  %3487 = vmatprep.subr.bf16.mxu0 %v444_v13  ;;  %v1063_v12 = vunpack.c.h.s8.bf16 %v989_v10  ;;  %v475_v13 = vunpack.c.l.s8.bf16 %v334_v3 }
  0x87   : > { %3509 = vmatprep.subr.bf16.mxu1 %v460_v14  ;;  %v1070_v14 = vunpack.c.l.s8.bf16 %v993_v4 }
  0x89   : > { %3488 = vmatpush3.bf16.msra.mxu0 %v436_v17  ;;  %v467_v17 = vunpack.c.l.s8.bf16 %v330_v9 }
  0x8a   : > { %3510 = vmatpush3.bf16.msra.mxu1 %v452_v18  ;;  %3489 = vmatprep.subr.bf16.mxu0 %v443_v19  ;;  %v1062_v18 = vunpack.c.l.s8.bf16 %v989_v10  ;;  %v474_v19 = vunpack.c.h.s8.bf16 %v333_v15 }
  0x8b   : > { %3511 = vmatprep.subr.bf16.mxu1 %v459_v20  ;;  %v1069_v20 = vunpack.c.h.s8.bf16 %v992_v16 }
  0x8d   : > { %3490 = vmatpush3.bf16.msra.mxu0 %v435_v23  ;;  %v1211_v23 = vcombine.high %v4416_v29, %v4416_v29  ;;  %v1091_v29 = vunpack.c.h.s8.bf16 %v1003_v28  ;;  %v1023_v28 = vld [vmem:[%s4314_s7 + $0x358] sm:$0xff] }
  0x8e   : > { %3512 = vmatpush3.bf16.msra.mxu1 %v451_v24  ;;  %3491 = vmatprep.subr.bf16.mxu0 %v442_v25  ;;  %v466_v24 = vunpack.c.h.s8.bf16 %v329_v21  ;;  %v1061_v25 = vunpack.c.h.s8.bf16 %v988_v22 }
  0x8f   : > { %3513 = vmatprep.subr.bf16.mxu1 %v458_v26  ;;  %v473_v26 = vunpack.c.l.s8.bf16 %v333_v15  ;;  %v4489_v15 = vld [vmem:[%s4309_s27 + $0x1a] sm:$0xff] }
  0x91   : > { %3492 = vmatpush3.bf16.msra.mxu0 %v434_v30  ;;  %v1011_v30 = vld [vmem:[%s4314_s7 + $0x2f8] sm:$0xff] }
  0x92   : > { %3514 = vmatpush3.bf16.msra.mxu1 %v450_v31  ;;  %3493 = vmatprep.subr.bf16.mxu0 %v441_v32  ;;  %v4457_v31 = vrot.slane %v1211_v23, %v4330_v37  ;;  %v465_v32 = vunpack.c.l.s8.bf16 %v329_v21  ;;  %v1107_v34 = vunpack.c.h.s8.bf16 %v1011_v30  ;;  %v1106_v48 = vunpack.c.l.s8.bf16 %v1011_v30  ;;  %v1027_v21 = vld [vmem:[%s4314_s7 + $0x378] sm:$0xff] }
  0x93   : > { %3515 = vmatprep.subr.bf16.mxu1 %v457_v33  ;;  %v1060_v33 = vunpack.c.l.s8.bf16 %v988_v22  ;;  %v4495_v22 = vrot.slane %v4489_v15, %v4330_v37 }
  0x95   : > { %3494 = vmatpush3.bf16.msra.mxu0 %v433_v42  ;;  %v1227_v42 = vcombine.high %v4457_v31, %v4457_v31  ;;  %v1275_v30 = vcombine.high %v4495_v22, %v4495_v22 }
  0x96   : > { %3516 = vmatpush3.bf16.msra.mxu1 %v449_v40  ;;  %3523 = vmatprep.subr.bf16.mxu0 %v480_v43  ;;  %v600_v40 = vrot.slane %v4427_v41, %v4330_v37  ;;  %v4467_v43 = vrot.slane %v4422_v36, %v4330_v37  ;;  %v1082_v36 = vunpack.c.l.s8.bf16 %v999_v35 }
  0x97   : > { %3545 = vmatprep.subr.bf16.mxu1 %v1075_v44  ;;  %v1083_v44 = vunpack.c.h.s8.bf16 %v999_v35  ;;  %v4474_v41 = vrot.slane %v1227_v42, %v4330_v37  ;;  %v1018_v42 = vld [vmem:[%s4314_s7 + $0x330] sm:$0xff] }
  0x98   : > { %899 = vmatmul.mubr.bf16.vlgmr.msra.gmra.mxu0 %v567_v38  ;;  %v1007_v38 = vld [vmem:[%s4314_s7 + $0x2d8] sm:$0xff] }
  0x99   : > { %939 = vmatmul.mubr.bf16.vlgmr.msra.gmra.mxu1 %v583_v49  ;;  %3524 = vmatpush3.bf16.msra.mxu0 %v472_v50  ;;  %v1099_v45 = vunpack.c.h.s8.bf16 %v1007_v38  ;;  %v1010_v49 = vld [vmem:[%s4314_s7 + $0x2f0] sm:$0xff]  ;;  %v1258_v50 = vcombine.high %v4439_v58, %v4439_v58 }
  0x9a   : > { %3546 = vmatpush3.bf16.msra.mxu1 %v1067_v51  ;;  %3525 = vmatprep.subr.bf16.mxu0 %v479_v52  ;;  %v1098_v51 = vunpack.c.l.s8.bf16 %v1007_v38  ;;  %v1089_v52 = vunpack.c.h.s8.bf16 %v1002_v39  ;;  %v1138_v38 = vunpack.c.l.s8.bf16 %v1027_v21 }
  0x9b   : > { %3547 = vmatprep.subr.bf16.mxu1 %v1074_v53  ;;  %978 = vmatprep.mubr.bf16.mxu0 %v607_v57  ;;  %v1105_v53 = vunpack.c.h.s8.bf16 %v1010_v49  ;;  %v1081_v57 = vunpack.c.h.s8.bf16 %v998_v54 }
  0x9c   : > { %1381 = vmatprep.mubr.bf16.mxu1 %v4439_v58  ;;  %v1097_v58 = vunpack.c.h.s8.bf16 %v1006_v56 }
  0x9d   : > { %3526 = vmatpush3.bf16.msra.mxu0 %v471_v59  ;;  %v1088_v59 = vunpack.c.l.s8.bf16 %v1002_v39  ;;  %v1014_v39 = vld [vmem:[%s4314_s7 + $0x310] sm:$0xff] }
  0x9e   : > { %3548 = vmatpush3.bf16.msra.mxu1 %v1066_v47  ;;  %3527 = vmatprep.subr.bf16.mxu0 %v478_v60  ;;  %v1104_v47 = vunpack.c.l.s8.bf16 %v1010_v49  ;;  %v1001_v60 = vld [vmem:[%s4314_s7 + $0x2a8] sm:$0xff]  ;;  %v1022_v49 = vld [vmem:[%s4314_s7 + $0x350] sm:$0xff]  ;;  %v1112_v54 = vunpack.c.l.s8.bf16 %v1014_v39 }
  0x9f   : > { %3549 = vmatprep.subr.bf16.mxu1 %v1073_v61  ;;  %v1009_v61 = vld [vmem:[%s4314_s7 + $0x2e8] sm:$0xff]  ;;  %v1128_v56 = vunpack.c.l.s8.bf16 %v1022_v49 }
  0xa1   : > { %3528 = vmatpush3.bf16.msra.mxu0 %v470_v0  ;;  %v1087_v0 = vunpack.c.h.s8.bf16 %v1001_v60 }
  0xa2   : > { %3550 = vmatpush3.bf16.msra.mxu1 %v1065_v1  ;;  %3529 = vmatprep.subr.bf16.mxu0 %v477_v2  ;;  %v1103_v1 = vunpack.c.h.s8.bf16 %v1009_v61  ;;  %v997_v2 = vld [vmem:[%s4314_s7 + $0x288] sm:$0xff] }
  0xa3   : > { %3551 = vmatprep.subr.bf16.mxu1 %v1072_v55  ;;  %v1005_v55 = vld [vmem:[%s4314_s7 + $0x2c8] sm:$0xff]  ;;  %v1079_v3 = vunpack.c.h.s8.bf16 %v997_v2  ;;  %v1078_v9 = vunpack.c.l.s8.bf16 %v997_v2 }
  0xa4   : > { %v1095_v4 = vunpack.c.h.s8.bf16 %v1005_v55  ;;  %v1094_v10 = vunpack.c.l.s8.bf16 %v1005_v55 }
  0xa5   : > { %3530 = vmatpush3.bf16.msra.mxu0 %v469_v5  ;;  %v1086_v5 = vunpack.c.l.s8.bf16 %v1001_v60 }
  0xa6   : > { %3552 = vmatpush3.bf16.msra.mxu1 %v1064_v6  ;;  %3531 = vmatprep.subr.bf16.mxu0 %v476_v7  ;;  %v1102_v6 = vunpack.c.l.s8.bf16 %v1009_v61  ;;  %v1000_v7 = vld [vmem:[%s4314_s7 + $0x2a0] sm:$0xff] }
  0xa7   : > { %3553 = vmatprep.subr.bf16.mxu1 %v1071_v8  ;;  %v1008_v8 = vld [vmem:[%s4314_s7 + $0x2e0] sm:$0xff] }
  0xa9   : > { %3532 = vmatpush3.bf16.msra.mxu0 %v468_v11  ;;  %v1085_v11 = vunpack.c.h.s8.bf16 %v1000_v7 }
  0xaa   : > { %3554 = vmatpush3.bf16.msra.mxu1 %v1063_v12  ;;  %3533 = vmatprep.subr.bf16.mxu0 %v475_v13  ;;  %v1101_v12 = vunpack.c.h.s8.bf16 %v1008_v8  ;;  %v996_v13 = vld [vmem:[%s4314_s7 + $0x280] sm:$0xff] }
  0xab   : > { %3555 = vmatprep.subr.bf16.mxu1 %v1070_v14  ;;  %v1004_v14 = vld [vmem:[%s4314_s7 + $0x2c0] sm:$0xff]  ;;  %v1077_v16 = vunpack.c.h.s8.bf16 %v996_v13  ;;  %v1076_v23 = vunpack.c.l.s8.bf16 %v996_v13  ;;  %v1043_v13 = vld [vmem:[%s4314_s7 + $0x3f8] sm:$0xff] }
  0xad   : > { %3534 = vmatpush3.bf16.msra.mxu0 %v467_v17  ;;  %v1093_v17 = vunpack.c.h.s8.bf16 %v1004_v14 }
  0xae   : > { %3556 = vmatpush3.bf16.msra.mxu1 %v1062_v18  ;;  %3535 = vmatprep.subr.bf16.mxu0 %v474_v19  ;;  %v1084_v18 = vunpack.c.l.s8.bf16 %v1000_v7  ;;  %v1100_v19 = vunpack.c.l.s8.bf16 %v1008_v8  ;;  %v1260_v7 = vcombine.high %v4489_v15, %v4489_v15 }
  0xaf   : > { %3557 = vmatprep.subr.bf16.mxu1 %v1069_v20  ;;  %v1019_v20 = vld [vmem:[%s4314_s7 + $0x338] sm:$0xff] }
  0xb0   : > { %v1122_v35 = vunpack.c.l.s8.bf16 %v1019_v20 }
  0xb1   : > { %3536 = vmatpush3.bf16.msra.mxu0 %v466_v24  ;;  %v1092_v24 = vunpack.c.l.s8.bf16 %v1004_v14  ;;  %v4531_v14 = vrot.slane %v1260_v7, %v4330_v37 }
  0xb2   : > { %3558 = vmatpush3.bf16.msra.mxu1 %v1061_v25  ;;  %3537 = vmatprep.subr.bf16.mxu0 %v473_v26  ;;  %v1123_v25 = vunpack.c.h.s8.bf16 %v1019_v20  ;;  %v1139_v26 = vunpack.c.h.s8.bf16 %v1027_v21  ;;  %v1039_v20 = vld [vmem:[%s4314_s7 + $0x3d8] sm:$0xff] }
  0xb3   : > { %3559 = vmatprep.subr.bf16.mxu1 %v1068_v27  ;;  %v1015_v27 = vld [vmem:[%s4314_s7 + $0x318] sm:$0xff]  ;;  %v1276_v21 = vcombine.high %v4531_v14, %v4531_v14 }
  0xb5   : > { %3538 = vmatpush3.bf16.msra.mxu0 %v465_v32  ;;  %v1256_v32 = vcombine.high %v4467_v43, %v4467_v43 }
  0xb6   : > { %3560 = vmatpush3.bf16.msra.mxu1 %v1060_v33  ;;  %3567 = vmatprep.subr.bf16.mxu0 %v1091_v29  ;;  %v4505_v33 = vrot.slane %v4457_v31, %v4330_v37  ;;  %v1115_v29 = vunpack.c.h.s8.bf16 %v1015_v27  ;;  %v1114_v31 = vunpack.c.l.s8.bf16 %v1015_v27 }
  0xb7   : > { %3589 = vmatprep.subr.bf16.mxu1 %v1107_v34  ;;  %v1131_v34 = vunpack.c.h.s8.bf16 %v1023_v28 }
  0xb8   : > { %979 = vmatmul.mubr.bf16.vlgmr.msra.gmra.mxu0 %v600_v40  ;;  %v1026_v40 = vld [vmem:[%s4314_s7 + $0x370] sm:$0xff] }
  0xb9   : > { %1382 = vmatmul.mubr.bf16.vlgmr.msra.gmra.mxu1 %v4467_v43  ;;  %3568 = vmatpush3.bf16.msra.mxu0 %v1083_v44  ;;  %v1259_v44 = vcombine.high %v4474_v41, %v4474_v41  ;;  %v4512_v43 = vrot.slane %v1275_v30, %v4330_v37  ;;  %v1034_v30 = vld [vmem:[%s4314_s7 + $0x3b0] sm:$0xff] }
  0xba   : > { %3590 = vmatpush3.bf16.msra.mxu1 %v1099_v45  ;;  %3569 = vmatprep.subr.bf16.mxu0 %v1090_v46  ;;  %v1130_v45 = vunpack.c.l.s8.bf16 %v1023_v28  ;;  %v1121_v46 = vunpack.c.h.s8.bf16 %v1018_v42  ;;  %v1170_v28 = vunpack.c.l.s8.bf16 %v1043_v13 }
  0xbb   : > { %3591 = vmatprep.subr.bf16.mxu1 %v1106_v48  ;;  %1421 = vmatprep.mubr.bf16.mxu0 %v1258_v50  ;;  %v1137_v48 = vunpack.c.h.s8.bf16 %v1026_v40  ;;  %v1113_v50 = vunpack.c.h.s8.bf16 %v1014_v39 }
  0xbc   : > { %1461 = vmatprep.mubr.bf16.mxu1 %v4474_v41  ;;  %v1129_v41 = vunpack.c.h.s8.bf16 %v1022_v49 }
  0xbd   : > { %3570 = vmatpush3.bf16.msra.mxu0 %v1082_v36  ;;  %v1120_v36 = vunpack.c.l.s8.bf16 %v1018_v42 }
  0xbe   : > { %3592 = vmatpush3.bf16.msra.mxu1 %v1098_v51  ;;  %3571 = vmatprep.subr.bf16.mxu0 %v1089_v52  ;;  %v1136_v51 = vunpack.c.l.s8.bf16 %v1026_v40  ;;  %v1017_v52 = vld [vmem:[%s4314_s7 + $0x328] sm:$0xff] }
  0xbf   : > { %3593 = vmatprep.subr.bf16.mxu1 %v1105_v53  ;;  %v1025_v53 = vld [vmem:[%s4314_s7 + $0x368] sm:$0xff] }
  0xc1   : > { %3572 = vmatpush3.bf16.msra.mxu0 %v1081_v57  ;;  %v1119_v57 = vunpack.c.h.s8.bf16 %v1017_v52 }
  0xc2   : > { %3594 = vmatpush3.bf16.msra.mxu1 %v1097_v58  ;;  %3573 = vmatprep.subr.bf16.mxu0 %v1088_v59  ;;  %v1135_v58 = vunpack.c.h.s8.bf16 %v1025_v53  ;;  %v1013_v59 = vld [vmem:[%s4314_s7 + $0x308] sm:$0xff] }
  0xc3   : > { %3595 = vmatprep.subr.bf16.mxu1 %v1104_v47  ;;  %v1021_v47 = vld [vmem:[%s4314_s7 + $0x348] sm:$0xff]  ;;  %v1111_v60 = vunpack.c.h.s8.bf16 %v1013_v59  ;;  %v1110_v2 = vunpack.c.l.s8.bf16 %v1013_v59 }
  0xc4   : > { %v1127_v61 = vunpack.c.h.s8.bf16 %v1021_v47  ;;  %v1126_v55 = vunpack.c.l.s8.bf16 %v1021_v47 }
  0xc5   : > { %3574 = vmatpush3.bf16.msra.mxu0 %v1080_v62  ;;  %v1118_v62 = vunpack.c.l.s8.bf16 %v1017_v52 }
  0xc6   : > { %3596 = vmatpush3.bf16.msra.mxu1 %v1096_v63  ;;  %3575 = vmatprep.subr.bf16.mxu0 %v1087_v0  ;;  %v1134_v63 = vunpack.c.l.s8.bf16 %v1025_v53  ;;  %v1016_v0 = vld [vmem:[%s4314_s7 + $0x320] sm:$0xff]  ;;  %v1152_v53 = vunpack.c.l.s8.bf16 %v1034_v30 }
  0xc7   : > { %3597 = vmatprep.subr.bf16.mxu1 %v1103_v1  ;;  %v1024_v1 = vld [vmem:[%s4314_s7 + $0x360] sm:$0xff] }
  0xc9   : > { %3576 = vmatpush3.bf16.msra.mxu0 %v1079_v3  ;;  %v1117_v3 = vunpack.c.h.s8.bf16 %v1016_v0 }
  0xca   : > { %3598 = vmatpush3.bf16.msra.mxu1 %v1095_v4  ;;  %3577 = vmatprep.subr.bf16.mxu0 %v1086_v5  ;;  %v1133_v4 = vunpack.c.h.s8.bf16 %v1024_v1  ;;  %v1012_v5 = vld [vmem:[%s4314_s7 + $0x300] sm:$0xff] }
  0xcb   : > { %3599 = vmatprep.subr.bf16.mxu1 %v1102_v6  ;;  %v1020_v6 = vld [vmem:[%s4314_s7 + $0x340] sm:$0xff]  ;;  %v1109_v8 = vunpack.c.h.s8.bf16 %v1012_v5 }
  0xcd   : > { %3578 = vmatpush3.bf16.msra.mxu0 %v1078_v9  ;;  %v1125_v9 = vunpack.c.h.s8.bf16 %v1020_v6 }
  0xce   : > { %3600 = vmatpush3.bf16.msra.mxu1 %v1094_v10  ;;  %3579 = vmatprep.subr.bf16.mxu0 %v1085_v11  ;;  %v1116_v10 = vunpack.c.l.s8.bf16 %v1016_v0  ;;  %v1132_v11 = vunpack.c.l.s8.bf16 %v1024_v1 }
  0xcf   : > { %3601 = vmatprep.subr.bf16.mxu1 %v1101_v12  ;;  %v1035_v12 = vld [vmem:[%s4314_s7 + $0x3b8] sm:$0xff] }
  0xd0   : > { %v1155_v15 = vunpack.c.h.s8.bf16 %v1035_v12  ;;  %v1154_v27 = vunpack.c.l.s8.bf16 %v1035_v12 }
  0xd1   : > { %3580 = vmatpush3.bf16.msra.mxu0 %v1077_v16  ;;  %v1108_v16 = vunpack.c.l.s8.bf16 %v1012_v5 }
  0xd2   : > { %3602 = vmatpush3.bf16.msra.mxu1 %v1093_v17  ;;  %3581 = vmatprep.subr.bf16.mxu0 %v1084_v18  ;;  %v1124_v17 = vunpack.c.l.s8.bf16 %v1020_v6  ;;  %v1171_v18 = vunpack.c.h.s8.bf16 %v1043_v13 }
  0xd3   : > { %3603 = vmatprep.subr.bf16.mxu1 %v1100_v19  ;;  %v1031_v19 = vld [vmem:[%s4314_s7 + $0x398] sm:$0xff] }
  0xd5   : > { %3582 = vmatpush3.bf16.msra.mxu0 %v1076_v23  ;;  %v1257_v23 = vcombine.high %v4505_v33, %v4505_v33 }
  0xd6   : > { %3604 = vmatpush3.bf16.msra.mxu1 %v1092_v24  ;;  %3611 = vmatprep.subr.bf16.mxu0 %v1123_v25  ;;  %v4541_v24 = vrot.slane %v4495_v22, %v4330_v37  ;;  %v1147_v25 = vunpack.c.h.s8.bf16 %v1031_v19 }
  0xd7   : > { %3633 = vmatprep.subr.bf16.mxu1 %v1139_v26  ;;  %v1163_v26 = vunpack.c.h.s8.bf16 %v1039_v20 }
  0xd8   : > { %1422 = vmatmul.mubr.bf16.vlgmr.msra.gmra.mxu0 %v1256_v32  ;;  %v1042_v32 = vld [vmem:[%s4314_s7 + $0x3f0] sm:$0xff] }
  0xd9   : > { %1462 = vmatmul.mubr.bf16.vlgmr.msra.gmra.mxu1 %v4505_v33  ;;  %3612 = vmatpush3.bf16.msra.mxu0 %v1115_v29  ;;  %v1307_v29 = vcombine.high %v4512_v43, %v4512_v43  ;;  %v4548_v33 = vrot.slane %v1276_v21, %v4330_v37 }
  0xda   : > { %3634 = vmatpush3.bf16.msra.mxu1 %v1131_v34  ;;  %3613 = vmatprep.subr.bf16.mxu0 %v1122_v35  ;;  %v1146_v35 = vunpack.c.l.s8.bf16 %v1031_v19 }
  0xdb   : > { %3635 = vmatprep.subr.bf16.mxu1 %v1138_v38  ;;  %1501 = vmatprep.mubr.bf16.mxu0 %v1259_v44  ;;  %v1162_v38 = vunpack.c.l.s8.bf16 %v1039_v20  ;;  %v1153_v44 = vunpack.c.h.s8.bf16 %v1034_v30 }
  0xdc   : > { %1541 = vmatprep.mubr.bf16.mxu1 %v4512_v43  ;;  %v1169_v43 = vunpack.c.h.s8.bf16 %v1042_v32 }
  0xdd   : > { %3614 = vmatpush3.bf16.msra.mxu0 %v1114_v31  ;;  %v1030_v31 = vld [vmem:[%s4314_s7 + $0x390] sm:$0xff] }
  0xde   : > { %3636 = vmatpush3.bf16.msra.mxu1 %v1130_v45  ;;  %3615 = vmatprep.subr.bf16.mxu0 %v1121_v46  ;;  %v1038_v45 = vld [vmem:[%s4314_s7 + $0x3d0] sm:$0xff] }
  0xdf   : > { %3637 = vmatprep.subr.bf16.mxu1 %v1137_v48  ;;  %v1160_v59 = vunpack.c.l.s8.bf16 %v1038_v45 }
  0xe1   : > { %3616 = vmatpush3.bf16.msra.mxu0 %v1113_v50 }
  0xe2   : > { %3638 = vmatpush3.bf16.msra.mxu1 %v1129_v41  ;;  %3617 = vmatprep.subr.bf16.mxu0 %v1120_v36  ;;  %v1145_v41 = vunpack.c.h.s8.bf16 %v1030_v31  ;;  %v1161_v36 = vunpack.c.h.s8.bf16 %v1038_v45 }
  0xe3   : > { %3639 = vmatprep.subr.bf16.mxu1 %v1136_v51 }
  0xe5   : > { %3618 = vmatpush3.bf16.msra.mxu0 %v1112_v54  ;;  %v1168_v54 = vunpack.c.l.s8.bf16 %v1042_v32 }
  0xe6   : > { %3640 = vmatpush3.bf16.msra.mxu1 %v1128_v56  ;;  %3619 = vmatprep.subr.bf16.mxu0 %v1119_v57  ;;  %v1033_v56 = vld [vmem:[%s4314_s7 + $0x3a8] sm:$0xff] }
  0xe7   : > { %3641 = vmatprep.subr.bf16.mxu1 %v1135_v58  ;;  %v1041_v57 = vld [vmem:[%s4314_s7 + $0x3e8] sm:$0xff]  ;;  %v1144_v58 = vunpack.c.l.s8.bf16 %v1030_v31  ;;  %v1151_v47 = vunpack.c.h.s8.bf16 %v1033_v56  ;;  %v1150_v1 = vunpack.c.l.s8.bf16 %v1033_v56 }
  0xe9   : > { %3620 = vmatpush3.bf16.msra.mxu0 %v1111_v60  ;;  %v1167_v60 = vunpack.c.h.s8.bf16 %v1041_v57 }
  0xea   : > { %3642 = vmatpush3.bf16.msra.mxu1 %v1127_v61  ;;  %3621 = vmatprep.subr.bf16.mxu0 %v1118_v62  ;;  %v1029_v61 = vld [vmem:[%s4314_s7 + $0x388] sm:$0xff] }
  0xeb   : > { %3643 = vmatprep.subr.bf16.mxu1 %v1134_v63  ;;  %v1037_v62 = vld [vmem:[%s4314_s7 + $0x3c8] sm:$0xff]  ;;  %v1143_v63 = vunpack.c.h.s8.bf16 %v1029_v61 }
  0xec   : > { %v1159_v0 = vunpack.c.h.s8.bf16 %v1037_v62  ;;  %v1158_v5 = vunpack.c.l.s8.bf16 %v1037_v62 }
  0xed   : > { %3622 = vmatpush3.bf16.msra.mxu0 %v1110_v2  ;;  %v1166_v2 = vunpack.c.l.s8.bf16 %v1041_v57 }
  0xee   : > { %3644 = vmatpush3.bf16.msra.mxu1 %v1126_v55  ;;  %3623 = vmatprep.subr.bf16.mxu0 %v1117_v3  ;;  %v1032_v55 = vld [vmem:[%s4314_s7 + $0x3a0] sm:$0xff] }
  0xef   : > { %3645 = vmatprep.subr.bf16.mxu1 %v1133_v4  ;;  %v1040_v3 = vld [vmem:[%s4314_s7 + $0x3e0] sm:$0xff]  ;;  %v1142_v4 = vunpack.c.l.s8.bf16 %v1029_v61  ;;  %v1149_v6 = vunpack.c.h.s8.bf16 %v1032_v55  ;;  %v1148_v12 = vunpack.c.l.s8.bf16 %v1032_v55 }
  0xf0   : > { %v1165_v7 = vunpack.c.h.s8.bf16 %v1040_v3  ;;  %v1164_v13 = vunpack.c.l.s8.bf16 %v1040_v3 }
  0xf1   : > { %3624 = vmatpush3.bf16.msra.mxu0 %v1109_v8  ;;  %v1028_v8 = vld [vmem:[%s4314_s7 + $0x380] sm:$0xff] }
  0xf2   : > { %3646 = vmatpush3.bf16.msra.mxu1 %v1125_v9  ;;  %3625 = vmatprep.subr.bf16.mxu0 %v1116_v10  ;;  %v1036_v9 = vld [vmem:[%s4314_s7 + $0x3c0] sm:$0xff]  ;;  %v1141_v10 = vunpack.c.h.s8.bf16 %v1028_v8 }
  0xf3   : > { %3647 = vmatprep.subr.bf16.mxu1 %v1132_v11  ;;  %v1157_v11 = vunpack.c.h.s8.bf16 %v1036_v9  ;;  %v1156_v19 = vunpack.c.l.s8.bf16 %v1036_v9 }
  0xf5   : > { %3626 = vmatpush3.bf16.msra.mxu0 %v1108_v16  ;;  %v1051_v16 = vld [vmem:[%s4314_s7 + $0x438] sm:$0xff] }
  0xf6   : > { %3648 = vmatpush3.bf16.msra.mxu1 %v1124_v17  ;;  %3655 = vmatprep.subr.bf16.mxu0 %v1155_v15  ;;  %v1059_v17 = vld [vmem:[%s4314_s7 + $0x478] sm:$0xff]  ;;  %v4567_v15 = vld.sshfl [vmem:[%s4309_s27 + $0x22] sm:$0x11 pattern:$0x75316420]  ;;  %v1187_v20 = vunpack.c.h.s8.bf16 %v1051_v16 }
  0xf7   : > { %3677 = vmatprep.subr.bf16.mxu1 %v1171_v18  ;;  %v1140_v18 = vunpack.c.l.s8.bf16 %v1028_v8  ;;  %v1203_v21 = vunpack.c.h.s8.bf16 %v1059_v17 }
  0xf8   : > { %v3363_v22 = vpop.f32.mrf.mxu0  ;;  %1502 = vmatmul.mubr.bf16.vlgmr.msra.gmra.mxu0 %v1257_v23  ;;  %v1047_v23 = vld [vmem:[%s4314_s7 + $0x418] sm:$0xff] }
  0xf9   : > { %v3385_v34 = vpop.f32.mrf.mxu1  ;;  %1542 = vmatmul.mubr.bf16.vlgmr.msra.gmra.mxu1 %v4541_v24  ;;  %3656 = vmatpush3.bf16.msra.mxu0 %v1147_v25  ;;  %v1055_v25 = vld [vmem:[%s4314_s7 + $0x458] sm:$0xff]  ;;  %v1179_v30 = vunpack.c.h.s8.bf16 %v1047_v23 }
  0xfa   : > { %3678 = vmatpush3.bf16.msra.mxu1 %v1163_v26  ;;  %v3364_v42 = vpop.f32.mrf.mxu0  ;;  %3657 = vmatprep.subr.bf16.mxu0 %v1154_v27  ;;  %v1316_v26 = vcombine.high %v4567_v15, %v4567_v15  ;;  %v1305_v27 = vcombine.high %v4541_v24, %v4541_v24  ;;  %v1195_v32 = vunpack.c.h.s8.bf16 %v1055_v25 }
  0xfb   : > { %v3386_v40 = vpop.f32.mrf.mxu1  ;;  %3679 = vmatprep.subr.bf16.mxu1 %v1170_v28  ;;  %v3365_v46 = vadd.f32 %v3364_v42, %v3363_v22  ;;  %1581 = vmatprep.mubr.bf16.mxu0 %v1307_v29  ;;  %v4577_v28 = vrot.slane %v4531_v14, %v4330_v37  ;;  %v1186_v29 = vunpack.c.l.s8.bf16 %v1051_v16  ;;  %v1202_v22 = vunpack.c.l.s8.bf16 %v1059_v17 }
  0xfc   : > { %v3387_v48 = vadd.f32 %v3386_v40, %v3385_v34  ;;  %1621 = vmatprep.mubr.bf16.mxu1 %v4548_v33  ;;  %v3366_v39 = vpop.f32.mrf.mxu0  ;;  %v1050_v34 = vld [vmem:[%s4314_s7 + $0x430] sm:$0xff]  ;;  %v1330_v24 = vrot.slane %v1316_v26, %v4330_v37  ;;  %v1178_v40 = vunpack.c.l.s8.bf16 %v1047_v23  ;;  %v1726_v23 = vld [vmem:[%s4314_s7 + $0x4f8] sm:$0xff] }
  0xfd   : > { %v3388_v49 = vpop.f32.mrf.mxu1  ;;  %3658 = vmatpush3.bf16.msra.mxu0 %v1146_v35  ;;  %v1058_v35 = vld [vmem:[%s4314_s7 + $0x470] sm:$0xff]  ;;  %v1185_v45 = vunpack.c.h.s8.bf16 %v1050_v34  ;;  %v1184_v57 = vunpack.c.l.s8.bf16 %v1050_v34 }
  0xfe   : > { %v4554_v50 = vadd.f32 %v3387_v48, %v3365_v46  ;;  %3680 = vmatpush3.bf16.msra.mxu1 %v1162_v38  ;;  %v3367_v51 = vpop.f32.mrf.mxu0  ;;  %3659 = vmatprep.subr.bf16.mxu0 %v1153_v44  ;;  %v1308_v38 = vcombine.high %v4548_v33, %v4548_v33  ;;  %v1194_v44 = vunpack.c.l.s8.bf16 %v1055_v25  ;;  %v1201_v46 = vunpack.c.h.s8.bf16 %v1058_v35  ;;  %v1046_v33 = vld [vmem:[%s4314_s7 + $0x410] sm:$0xff] }
  0xff   : > { %v3389_v52 = vpop.f32.mrf.mxu1  ;;  %3681 = vmatprep.subr.bf16.mxu1 %v1169_v43  ;;  %v1054_v48 = vld [vmem:[%s4314_s7 + $0x450] sm:$0xff]  ;;  %v1176_v61 = vunpack.c.l.s8.bf16 %v1046_v33 }
 0x100   : > { %v1177_v52 = vunpack.c.h.s8.bf16 %v1046_v33 }
 0x101   : > { %3660 = vmatpush3.bf16.msra.mxu0 %v1145_v41 }
 0x102   : > { %3682 = vmatpush3.bf16.msra.mxu1 %v1161_v36  ;;  %3661 = vmatprep.subr.bf16.mxu0 %v1152_v53  ;;  %v1193_v53 = vunpack.c.h.s8.bf16 %v1054_v48 }
 0x103   : > { %3683 = vmatprep.subr.bf16.mxu1 %v1168_v54 }
 0x105   : > { %3662 = vmatpush3.bf16.msra.mxu0 %v1144_v58  ;;  %v1200_v58 = vunpack.c.l.s8.bf16 %v1058_v35  ;;  %v1306_v35 = vcombine.high %v4577_v28, %v4577_v28 }
 0x106   : > { %3684 = vmatpush3.bf16.msra.mxu1 %v1160_v59  ;;  %3663 = vmatprep.subr.bf16.mxu0 %v1151_v47  ;;  %v1049_v47 = vld [vmem:[%s4314_s7 + $0x428] sm:$0xff] }
 0x107   : > { %3685 = vmatprep.subr.bf16.mxu1 %v1167_v60  ;;  %v1057_v60 = vld [vmem:[%s4314_s7 + $0x468] sm:$0xff]  ;;  %v1183_v62 = vunpack.c.h.s8.bf16 %v1049_v47  ;;  %v1182_v3 = vunpack.c.l.s8.bf16 %v1049_v47 }
 0x109   : > { %3664 = vmatpush3.bf16.msra.mxu0 %v1143_v63  ;;  %v1199_v63 = vunpack.c.h.s8.bf16 %v1057_v60 }
 0x10a   : > { %3686 = vmatpush3.bf16.msra.mxu1 %v1159_v0  ;;  %3665 = vmatprep.subr.bf16.mxu0 %v1150_v1  ;;  %v1045_v0 = vld [vmem:[%s4314_s7 + $0x408] sm:$0xff] }
 0x10b   : > { %3687 = vmatprep.subr.bf16.mxu1 %v1166_v2  ;;  %v1053_v1 = vld [vmem:[%s4314_s7 + $0x448] sm:$0xff]  ;;  %v1175_v2 = vunpack.c.h.s8.bf16 %v1045_v0  ;;  %v1174_v8 = vunpack.c.l.s8.bf16 %v1045_v0 }
 0x10c   : > { %v1191_v55 = vunpack.c.h.s8.bf16 %v1053_v1  ;;  %v1190_v9 = vunpack.c.l.s8.bf16 %v1053_v1  ;;  %v1712_v1 = vld [vmem:[%s4314_s7 + $0x488] sm:$0xff] }
 0x10d   : > { %3666 = vmatpush3.bf16.msra.mxu0 %v1142_v4  ;;  %v1198_v4 = vunpack.c.l.s8.bf16 %v1057_v60  ;;  %v1716_v60 = vld [vmem:[%s4314_s7 + $0x4a8] sm:$0xff] }
 0x10e   : > { %3688 = vmatpush3.bf16.msra.mxu1 %v1158_v5  ;;  %3667 = vmatprep.subr.bf16.mxu0 %v1149_v6  ;;  %v1048_v5 = vld [vmem:[%s4314_s7 + $0x420] sm:$0xff] }
 0x10f   : > { %3689 = vmatprep.subr.bf16.mxu1 %v1165_v7  ;;  %v1056_v6 = vld [vmem:[%s4314_s7 + $0x460] sm:$0xff] }
 0x110   : > { %v4597_v7 = vld [vmem:[%s4309_s27 + $0x24] sm:$0xff] }
 0x111   : > { %3668 = vmatpush3.bf16.msra.mxu0 %v1141_v10  ;;  %v1181_v10 = vunpack.c.h.s8.bf16 %v1048_v5  ;;  %v4603_v16 = vrot.slane %v4597_v7, %v4330_v37 }
 0x112   : > { %3690 = vmatpush3.bf16.msra.mxu1 %v1157_v11  ;;  %3669 = vmatprep.subr.bf16.mxu0 %v1148_v12  ;;  %v1197_v11 = vunpack.c.h.s8.bf16 %v1056_v6  ;;  %v1044_v12 = vld [vmem:[%s4314_s7 + $0x400] sm:$0xff] }
 0x113   : > { %3691 = vmatprep.subr.bf16.mxu1 %v1164_v13  ;;  %v1052_v13 = vld [vmem:[%s4314_s7 + $0x440] sm:$0xff]  ;;  %v1173_v17 = vunpack.c.h.s8.bf16 %v1044_v12  ;;  %v1949_v25 = vcombine.high %v4603_v16, %v4603_v16  ;;  %v1172_v26 = vunpack.c.l.s8.bf16 %v1044_v12 }
 0x115   : > { %3670 = vmatpush3.bf16.msra.mxu0 %v1140_v18  ;;  %v1189_v18 = vunpack.c.h.s8.bf16 %v1052_v13  ;;  %v1971_v34 = vrot.slane %v1949_v25, %v4330_v37  ;;  %v1734_v25 = vld [vmem:[%s4314_s7 + $0x538] sm:$0xff] }
 0x116   : > { %3692 = vmatpush3.bf16.msra.mxu1 %v1156_v19  ;;  %3699 = vmatprep.subr.bf16.mxu0 %v1187_v20  ;;  %v1180_v19 = vunpack.c.l.s8.bf16 %v1048_v5  ;;  %v1196_v20 = vunpack.c.l.s8.bf16 %v1056_v6  ;;  %v1715_v6 = vld [vmem:[%s4314_s7 + $0x4a0] sm:$0xff] }
 0x117   : > { %3721 = vmatprep.subr.bf16.mxu1 %v1203_v21  ;;  %v1718_v21 = vld [vmem:[%s4314_s7 + $0x4b8] sm:$0xff]  ;;  %v1792_v12 = vunpack.c.h.s8.bf16 %v1715_v6 }
 0x118   : > { %v3407_v42 = vpop.f32.mrf.mxu0  ;;  %1582 = vmatmul.mubr.bf16.vlgmr.msra.gmra.mxu0 %v1305_v27  ;;  %v1188_v27 = vunpack.c.l.s8.bf16 %v1052_v13 }
 0x119   : > { %v3429_v14 = vpop.f32.mrf.mxu1  ;;  %1622 = vmatmul.mubr.bf16.vlgmr.msra.gmra.mxu1 %v4577_v28  ;;  %3700 = vmatpush3.bf16.msra.mxu0 %v1179_v30  ;;  %v1798_v30 = vunpack.c.h.s8.bf16 %v1718_v21 }
 0x11a   : > { %3722 = vmatpush3.bf16.msra.mxu1 %v1195_v32  ;;  %v3408_v43 = vpop.f32.mrf.mxu0  ;;  %3701 = vmatprep.subr.bf16.mxu0 %v1186_v29  ;;  %v1814_v32 = vunpack.c.h.s8.bf16 %v1726_v23  ;;  %v1714_v29 = vld [vmem:[%s4314_s7 + $0x498] sm:$0xff] }
 0x11b   : > { %v3430_v31 = vpop.f32.mrf.mxu1  ;;  %3723 = vmatprep.subr.bf16.mxu1 %v1202_v22  ;;  %v3409_v39 = vadd.f32 %v3408_v43, %v3407_v42  ;;  %1661 = vmatprep.mubr.bf16.mxu0 %v1308_v38  ;;  %v1722_v22 = vld [vmem:[%s4314_s7 + $0x4d8] sm:$0xff]  ;;  %v1323_v38 = vrot.slane %v4567_v15, %v4330_v37  ;;  %v1725_v43 = vld [vmem:[%s4314_s7 + $0x4f0] sm:$0xff]  ;;  %v1789_v15 = vunpack.c.l.s8.bf16 %v1714_v29 }
 0x11c   : > { %v3431_v49 = vadd.f32 %v3430_v31, %v3429_v14  ;;  %1701 = vmatprep.mubr.bf16.mxu1 %v1330_v24  ;;  %v3410_v41 = vpop.f32.mrf.mxu0  ;;  %v1790_v24 = vunpack.c.h.s8.bf16 %v1714_v29  ;;  %v1806_v42 = vunpack.c.h.s8.bf16 %v1722_v22  ;;  %v1797_v14 = vunpack.c.l.s8.bf16 %v1718_v21 }
 0x11d   : > { %v3432_v36 = vpop.f32.mrf.mxu1  ;;  %v741_v51 = vadd.f32 %v3409_v39, %v4554_v50  ;;  %3702 = vmatpush3.bf16.msra.mxu0 %v1178_v40  ;;  %v1192_v50 = vunpack.c.l.s8.bf16 %v1054_v48  ;;  %v1813_v40 = vunpack.c.l.s8.bf16 %v1726_v23  ;;  %v1981_v31 = vcombine.high %v1971_v34, %v1971_v34  ;;  %v1713_v41 = vld [vmem:[%s4314_s7 + $0x490] sm:$0xff] }
 0x11e   : > { %3724 = vmatpush3.bf16.msra.mxu1 %v1194_v44  ;;  %v3411_v54 = vpop.f32.mrf.mxu0  ;;  %3703 = vmatprep.subr.bf16.mxu0 %v1185_v45  ;;  %v1717_v44 = vld [vmem:[%s4314_s7 + $0x4b0] sm:$0xff]  ;;  %v1805_v28 = vunpack.c.l.s8.bf16 %v1722_v22  ;;  %v1811_v47 = vunpack.c.l.s8.bf16 %v1725_v43  ;;  %v1830_v22 = vunpack.c.h.s8.bf16 %v1734_v25 }
 0x11f   : > { %v3433_v56 = vpop.f32.mrf.mxu1  ;;  %3725 = vmatprep.subr.bf16.mxu1 %v1201_v46  ;;  %v4588_v59 = vadd.f32 %v3431_v49, %v741_v51  ;;  %v1796_v39 = vunpack.c.h.s8.bf16 %v1717_v44  ;;  %v1812_v49 = vunpack.c.h.s8.bf16 %v1725_v43  ;;  %v1721_v36 = vld [vmem:[%s4314_s7 + $0x4d0] sm:$0xff] }
 0x120   : > { %v1804_v54 = vunpack.c.h.s8.bf16 %v1721_v36  ;;  %v1733_v43 = vld [vmem:[%s4314_s7 + $0x530] sm:$0xff] }
 0x121   : > { %3704 = vmatpush3.bf16.msra.mxu0 %v1177_v52 }
 0x122   : > { %3726 = vmatpush3.bf16.msra.mxu1 %v1193_v53  ;;  %3705 = vmatprep.subr.bf16.mxu0 %v1184_v57  ;;  %v1788_v53 = vunpack.c.h.s8.bf16 %v1713_v41 }
 0x123   : > { %3727 = vmatprep.subr.bf16.mxu1 %v1200_v58  ;;  %v1795_v58 = vunpack.c.l.s8.bf16 %v1717_v44 }
 0x125   : > { %3706 = vmatpush3.bf16.msra.mxu0 %v1176_v61  ;;  %v1724_v61 = vld [vmem:[%s4314_s7 + $0x4e8] sm:$0xff] }
 0x126   : > { %3728 = vmatpush3.bf16.msra.mxu1 %v1192_v50  ;;  %3707 = vmatprep.subr.bf16.mxu0 %v1183_v62  ;;  %v1787_v50 = vunpack.c.l.s8.bf16 %v1713_v41  ;;  %v1803_v62 = vunpack.c.l.s8.bf16 %v1721_v36  ;;  %v1810_v0 = vunpack.c.h.s8.bf16 %v1724_v61  ;;  %v1809_v5 = vunpack.c.l.s8.bf16 %v1724_v61 }
 0x127   : > { %3729 = vmatprep.subr.bf16.mxu1 %v1199_v63  ;;  %v1794_v63 = vunpack.c.h.s8.bf16 %v1716_v60 }
 0x129   : > { %3708 = vmatpush3.bf16.msra.mxu0 %v1175_v2  ;;  %v1720_v2 = vld [vmem:[%s4314_s7 + $0x4c8] sm:$0xff] }
 0x12a   : > { %3730 = vmatpush3.bf16.msra.mxu1 %v1191_v55  ;;  %3709 = vmatprep.subr.bf16.mxu0 %v1182_v3  ;;  %v1786_v55 = vunpack.c.h.s8.bf16 %v1712_v1  ;;  %v1802_v3 = vunpack.c.h.s8.bf16 %v1720_v2 }
 0x12b   : > { %3731 = vmatprep.subr.bf16.mxu1 %v1198_v4  ;;  %v1793_v4 = vunpack.c.l.s8.bf16 %v1716_v60 }
 0x12d   : > { %3710 = vmatpush3.bf16.msra.mxu0 %v1174_v8  ;;  %v1723_v8 = vld [vmem:[%s4314_s7 + $0x4e0] sm:$0xff] }
 0x12e   : > { %3732 = vmatpush3.bf16.msra.mxu1 %v1190_v9  ;;  %3711 = vmatprep.subr.bf16.mxu0 %v1181_v10  ;;  %v1934_v9 = vcombine.high %v4597_v7, %v4597_v7  ;;  %v1785_v10 = vunpack.c.l.s8.bf16 %v1712_v1  ;;  %v1808_v13 = vunpack.c.h.s8.bf16 %v1723_v8  ;;  %v1791_v7 = vunpack.c.l.s8.bf16 %v1715_v6  ;;  %v1740_v1 = vld [vmem:[%s4314_s7 + $0x568] sm:$0xff] }
 0x12f   : > { %3733 = vmatprep.subr.bf16.mxu1 %v1197_v11  ;;  %v1801_v11 = vunpack.c.l.s8.bf16 %v1720_v2  ;;  %v1807_v23 = vunpack.c.l.s8.bf16 %v1723_v8  ;;  %v1736_v6 = vld [vmem:[%s4314_s7 + $0x548] sm:$0xff] }
 0x131   : > { %3712 = vmatpush3.bf16.msra.mxu0 %v1173_v17  ;;  %v1711_v17 = vld [vmem:[%s4314_s7 + $0x480] sm:$0xff] }
 0x132   : > { %3734 = vmatpush3.bf16.msra.mxu1 %v1189_v18  ;;  %3713 = vmatprep.subr.bf16.mxu0 %v1180_v19  ;;  %v1719_v18 = vld [vmem:[%s4314_s7 + $0x4c0] sm:$0xff]  ;;  %v4639_v19 = vrot.slane %v1934_v9, %v4330_v37  ;;  %v1834_v9 = vunpack.c.h.s8.bf16 %v1736_v6 }
 0x133   : > { %3735 = vmatprep.subr.bf16.mxu1 %v1196_v20  ;;  %v1784_v20 = vunpack.c.h.s8.bf16 %v1711_v17  ;;  %v1800_v21 = vunpack.c.h.s8.bf16 %v1719_v18  ;;  %v1799_v29 = vunpack.c.l.s8.bf16 %v1719_v18 }
 0x135   : > { %3714 = vmatpush3.bf16.msra.mxu0 %v1172_v26  ;;  %v1742_v26 = vld [vmem:[%s4314_s7 + $0x578] sm:$0xff] }
 0x136   : > { %3736 = vmatpush3.bf16.msra.mxu1 %v1188_v27  ;;  %3743 = vmatprep.subr.bf16.mxu0 %v1798_v30  ;;  %v1950_v27 = vcombine.high %v4639_v19, %v4639_v19  ;;  %v1957_v30 = vrot.slane %v4603_v16, %v4330_v37  ;;  %v1829_v16 = vunpack.c.l.s8.bf16 %v1734_v25  ;;  %v1845_v44 = vunpack.c.l.s8.bf16 %v1742_v26  ;;  %v1735_v25 = vld [vmem:[%s4314_s7 + $0x540] sm:$0xff] }
 0x137   : > { %3765 = vmatprep.subr.bf16.mxu1 %v1814_v32  ;;  %v1783_v32 = vunpack.c.l.s8.bf16 %v1711_v17  ;;  %v4669_v17 = vld [vmem:[%s4309_s27 + $0x2c] sm:$0xff] }
 0x138   : > { %v4618_v45 = vpop.f32.mrf.mxu0  ;;  %1662 = vmatmul.mubr.bf16.vlgmr.msra.gmra.mxu0 %v1306_v35  ;;  %v1730_v35 = vld [vmem:[%s4314_s7 + $0x518] sm:$0xff] }
 0x139   : > { %v4620_v46 = vpop.f32.mrf.mxu1  ;;  %1702 = vmatmul.mubr.bf16.vlgmr.msra.gmra.mxu1 %v1323_v38  ;;  %3744 = vmatpush3.bf16.msra.mxu0 %v1790_v24  ;;  %v1738_v38 = vld [vmem:[%s4314_s7 + $0x558] sm:$0xff]  ;;  %v1978_v24 = vrot.slane %v1950_v27, %v4330_v37 }
 0x13a   : > { %3766 = vmatpush3.bf16.msra.mxu1 %v1806_v42  ;;  %v4622_v33 = vpop.f32.mrf.mxu0  ;;  %3745 = vmatprep.subr.bf16.mxu0 %v1797_v14  ;;  %v1979_v42 = vcombine.high %v1957_v30, %v1957_v30  ;;  %v1822_v14 = vunpack.c.h.s8.bf16 %v1730_v35  ;;  %v1837_v41 = vunpack.c.l.s8.bf16 %v1738_v38 }
 0x13b   : > { %v4624_v48 = vpop.f32.mrf.mxu1  ;;  %3767 = vmatprep.subr.bf16.mxu1 %v1813_v40  ;;  %2104 = vmatprep.mubr.bf16.mxu0 %v1971_v34  ;;  %v1846_v34 = vunpack.c.h.s8.bf16 %v1742_v26  ;;  %v1838_v40 = vunpack.c.h.s8.bf16 %v1738_v38  ;;  %v4675_v26 = vrot.slane %v4669_v17, %v4330_v37  ;;  %v3453_v27 = vadd.f32 %v4622_v33, %v4618_v45 }
 0x13c   : > { %2144 = vmatprep.mubr.bf16.mxu1 %v1981_v31  ;;  %v3454_v51 = vpop.f32.mrf.mxu0  ;;  %v1741_v31 = vld [vmem:[%s4314_s7 + $0x570] sm:$0xff]  ;;  %v3475_v33 = vadd.f32 %v4624_v48, %v4620_v46 }
 0x13d   : > { %v3476_v52 = vpop.f32.mrf.mxu1  ;;  %3746 = vmatpush3.bf16.msra.mxu0 %v1789_v15  ;;  %v1982_v15 = vcombine.high %v1978_v24, %v1978_v24  ;;  %v1998_v38 = vcombine.high %v4675_v26, %v4675_v26  ;;  %v821_v45 = vadd.f32 %v3453_v27, %v4588_v59  ;;  %v1752_v27 = vld [vmem:[%s4314_s7 + $0x5c8] sm:$0xff] }
 0x13e   : > { %3768 = vmatpush3.bf16.msra.mxu1 %v1805_v28  ;;  %v3455_v56 = vpop.f32.mrf.mxu0  ;;  %3747 = vmatprep.subr.bf16.mxu0 %v1796_v39  ;;  %v1828_v52 = vunpack.c.h.s8.bf16 %v1733_v43 }
 0x13f   : > { %v3477_v57 = vpop.f32.mrf.mxu1  ;;  %3769 = vmatprep.subr.bf16.mxu1 %v1812_v49  ;;  %v1821_v49 = vunpack.c.l.s8.bf16 %v1730_v35  ;;  %v1737_v56 = vld [vmem:[%s4314_s7 + $0x550] sm:$0xff]  ;;  %v1758_v35 = vld [vmem:[%s4314_s7 + $0x5f8] sm:$0xff]  ;;  %v2020_v59 = vrot.slane %v1998_v38, %v4330_v37  ;;  %v1983_v38 = vcombine.high %v4669_v17, %v4669_v17 }
 0x140   : > { %v1836_v60 = vunpack.c.h.s8.bf16 %v1737_v56 }
 0x141   : > { %3748 = vmatpush3.bf16.msra.mxu0 %v1788_v53  ;;  %v1844_v53 = vunpack.c.h.s8.bf16 %v1741_v31 }
 0x142   : > { %3770 = vmatpush3.bf16.msra.mxu1 %v1804_v54  ;;  %3749 = vmatprep.subr.bf16.mxu0 %v1795_v58  ;;  %v1729_v54 = vld [vmem:[%s4314_s7 + $0x510] sm:$0xff] }
 0x143   : > { %3771 = vmatprep.subr.bf16.mxu1 %v1811_v47  ;;  %v1820_v47 = vunpack.c.h.s8.bf16 %v1729_v54  ;;  %v1819_v2 = vunpack.c.l.s8.bf16 %v1729_v54  ;;  %v1749_v54 = vld [vmem:[%s4314_s7 + $0x5b0] sm:$0xff] }
 0x145   : > { %3750 = vmatpush3.bf16.msra.mxu0 %v1787_v50 }
 0x146   : > { %3772 = vmatpush3.bf16.msra.mxu1 %v1803_v62  ;;  %3751 = vmatprep.subr.bf16.mxu0 %v1794_v63  ;;  %v1827_v62 = vunpack.c.l.s8.bf16 %v1733_v43  ;;  %v1843_v63 = vunpack.c.l.s8.bf16 %v1741_v31  ;;  %v1754_v43 = vld [vmem:[%s4314_s7 + $0x5d8] sm:$0xff] }
 0x147   : > { %3773 = vmatprep.subr.bf16.mxu1 %v1810_v0  ;;  %v1732_v0 = vld [vmem:[%s4314_s7 + $0x528] sm:$0xff]  ;;  %v1870_v48 = vunpack.c.h.s8.bf16 %v1754_v43 }
 0x149   : > { %3752 = vmatpush3.bf16.msra.mxu0 %v1786_v55  ;;  %v1835_v55 = vunpack.c.l.s8.bf16 %v1737_v56  ;;  %v1757_v56 = vld [vmem:[%s4314_s7 + $0x5f0] sm:$0xff] }
 0x14a   : > { %3774 = vmatpush3.bf16.msra.mxu1 %v1802_v3  ;;  %3753 = vmatprep.subr.bf16.mxu0 %v1793_v4  ;;  %v1826_v3 = vunpack.c.h.s8.bf16 %v1732_v0  ;;  %v1842_v4 = vunpack.c.h.s8.bf16 %v1740_v1 }
 0x14b   : > { %3775 = vmatprep.subr.bf16.mxu1 %v1809_v5  ;;  %v1728_v5 = vld [vmem:[%s4314_s7 + $0x508] sm:$0xff] }
 0x14c   : > { %v1818_v8 = vunpack.c.h.s8.bf16 %v1728_v5  ;;  %v1817_v18 = vunpack.c.l.s8.bf16 %v1728_v5 }
 0x14d   : > { %3754 = vmatpush3.bf16.msra.mxu0 %v1785_v10  ;;  %v1825_v10 = vunpack.c.l.s8.bf16 %v1732_v0 }
 0x14e   : > { %3776 = vmatpush3.bf16.msra.mxu1 %v1801_v11  ;;  %3755 = vmatprep.subr.bf16.mxu0 %v1792_v12  ;;  %v1841_v11 = vunpack.c.l.s8.bf16 %v1740_v1  ;;  %v1731_v12 = vld [vmem:[%s4314_s7 + $0x520] sm:$0xff] }
 0x14f   : > { %3777 = vmatprep.subr.bf16.mxu1 %v1808_v13  ;;  %v1739_v13 = vld [vmem:[%s4314_s7 + $0x560] sm:$0xff] }
 0x151   : > { %3756 = vmatpush3.bf16.msra.mxu0 %v1784_v20  ;;  %v1833_v20 = vunpack.c.l.s8.bf16 %v1736_v6 }
 0x152   : > { %3778 = vmatpush3.bf16.msra.mxu1 %v1800_v21  ;;  %3757 = vmatprep.subr.bf16.mxu0 %v1791_v7  ;;  %v1824_v21 = vunpack.c.h.s8.bf16 %v1731_v12  ;;  %v1840_v7 = vunpack.c.h.s8.bf16 %v1739_v13 }
 0x153   : > { %3779 = vmatprep.subr.bf16.mxu1 %v1807_v23  ;;  %v1727_v23 = vld [vmem:[%s4314_s7 + $0x500] sm:$0xff] }
 0x155   : > { %3758 = vmatpush3.bf16.msra.mxu0 %v1783_v32  ;;  %v1832_v32 = vunpack.c.h.s8.bf16 %v1735_v25 }
 0x156   : > { %3780 = vmatpush3.bf16.msra.mxu1 %v1799_v29  ;;  %3787 = vmatprep.subr.bf16.mxu0 %v1830_v22  ;;  %v1823_v29 = vunpack.c.l.s8.bf16 %v1731_v12  ;;  %v1839_v22 = vunpack.c.l.s8.bf16 %v1739_v13  ;;  %v1748_v13 = vld [vmem:[%s4314_s7 + $0x5a8] sm:$0xff] }
 0x157   : > { %3809 = vmatprep.subr.bf16.mxu1 %v1846_v34  ;;  %v1750_v34 = vld [vmem:[%s4314_s7 + $0x5b8] sm:$0xff] }
 0x158   : > { %v4652_v28 = vpop.f32.mrf.mxu0  ;;  %2105 = vmatmul.mubr.bf16.vlgmr.msra.gmra.mxu0 %v1957_v30  ;;  %v1816_v30 = vunpack.c.h.s8.bf16 %v1727_v23 }
 0x159   : > { %v4654_v39 = vpop.f32.mrf.mxu1  ;;  %2145 = vmatmul.mubr.bf16.vlgmr.msra.gmra.mxu1 %v1979_v42  ;;  %3788 = vmatpush3.bf16.msra.mxu0 %v1822_v14  ;;  %v1815_v42 = vunpack.c.l.s8.bf16 %v1727_v23  ;;  %v1831_v14 = vunpack.c.l.s8.bf16 %v1735_v25  ;;  %v1744_v25 = vld [vmem:[%s4314_s7 + $0x588] sm:$0xff] }
 0x15a   : > { %3810 = vmatpush3.bf16.msra.mxu1 %v1838_v40  ;;  %v4656_v36 = vpop.f32.mrf.mxu0  ;;  %3789 = vmatprep.subr.bf16.mxu0 %v1829_v16  ;;  %v1862_v40 = vunpack.c.h.s8.bf16 %v1750_v34  ;;  %v1878_v16 = vunpack.c.h.s8.bf16 %v1758_v35 }
 0x15b   : > { %v4658_v51 = vpop.f32.mrf.mxu1  ;;  %3811 = vmatprep.subr.bf16.mxu1 %v1845_v44  ;;  %2184 = vmatprep.mubr.bf16.mxu0 %v1978_v24  ;;  %v1964_v24 = vrot.slane %v4639_v19, %v4330_v37  ;;  %v1746_v44 = vld [vmem:[%s4314_s7 + $0x598] sm:$0xff]  ;;  %v3497_v19 = vadd.f32 %v4656_v36, %v4652_v28  ;;  %v2030_v28 = vcombine.high %v2020_v59, %v2020_v59 }
 0x15c   : > { %2224 = vmatprep.mubr.bf16.mxu1 %v1982_v15  ;;  %v3498_v57 = vpop.f32.mrf.mxu0  ;;  %v861_v15 = vadd.f32 %v3475_v33, %v821_v45  ;;  %v1854_v46 = vunpack.c.h.s8.bf16 %v1746_v44  ;;  %v1865_v45 = vunpack.c.l.s8.bf16 %v1752_v27 }
 0x15d   : > { %v3520_v58 = vpop.f32.mrf.mxu1  ;;  %3790 = vmatpush3.bf16.msra.mxu0 %v1821_v49  ;;  %v1980_v31 = vcombine.high %v1964_v24, %v1964_v24  ;;  %v1861_v49 = vunpack.c.l.s8.bf16 %v1750_v34  ;;  %v1747_v34 = vld [vmem:[%s4314_s7 + $0x5a0] sm:$0xff] }
 0x15e   : > { %3812 = vmatpush3.bf16.msra.mxu1 %v1837_v41  ;;  %v3499_v61 = vpop.f32.mrf.mxu0  ;;  %3791 = vmatprep.subr.bf16.mxu0 %v1828_v52  ;;  %v1877_v41 = vunpack.c.l.s8.bf16 %v1758_v35  ;;  %v901_v52 = vadd.f32 %v3497_v19, %v861_v15  ;;  %v1853_v58 = vunpack.c.l.s8.bf16 %v1746_v44  ;;  %v1755_v35 = vld [vmem:[%s4314_s7 + $0x5e0] sm:$0xff]  ;;  %v1856_v33 = vunpack.c.h.s8.bf16 %v1747_v34 }
 0x15f   : > { %v3521_v50 = vpop.f32.mrf.mxu1  ;;  %3813 = vmatprep.subr.bf16.mxu1 %v1844_v53  ;;  %v3519_v53 = vadd.f32 %v4658_v51, %v4654_v39  ;;  %v1745_v39 = vld [vmem:[%s4314_s7 + $0x590] sm:$0xff]  ;;  %v1855_v17 = vunpack.c.l.s8.bf16 %v1747_v34  ;;  %v1871_v19 = vunpack.c.l.s8.bf16 %v1755_v35 }
 0x160   : > { %v1860_v50 = vunpack.c.h.s8.bf16 %v1749_v54  ;;  %v1753_v51 = vld [vmem:[%s4314_s7 + $0x5d0] sm:$0xff]  ;;  %v1852_v5 = vunpack.c.h.s8.bf16 %v1745_v39 }
 0x161   : > { %3792 = vmatpush3.bf16.msra.mxu0 %v1820_v47  ;;  %v1869_v47 = vunpack.c.l.s8.bf16 %v1754_v43  ;;  %v1868_v6 = vunpack.c.h.s8.bf16 %v1753_v51 }
 0x162   : > { %3814 = vmatpush3.bf16.msra.mxu1 %v1836_v60  ;;  %3793 = vmatprep.subr.bf16.mxu0 %v1827_v62  ;;  %v1876_v62 = vunpack.c.h.s8.bf16 %v1757_v56 }
 0x163   : > { %3815 = vmatprep.subr.bf16.mxu1 %v1843_v63  ;;  %v941_v63 = vadd.f32 %v3519_v53, %v901_v52  ;;  %v1762_v53 = vld [vmem:[%s4314_s7 + $0x618] sm:$0xff] }
 0x165   : > { %3794 = vmatpush3.bf16.msra.mxu0 %v1819_v2  ;;  %v481_v2 = vld [vmem:[#allocation2] sm:$0x3] }
 0x166   : > { %3816 = vmatpush3.bf16.msra.mxu1 %v1835_v55  ;;  %3795 = vmatprep.subr.bf16.mxu0 %v1826_v3 }
 0x167   : > { %3817 = vmatprep.subr.bf16.mxu1 %v1842_v4 }
 0x169   : > { %3796 = vmatpush3.bf16.msra.mxu0 %v1818_v8 }
 0x16a   : > { %3818 = vmatpush3.bf16.msra.mxu1 %v1834_v9  ;;  %3797 = vmatprep.subr.bf16.mxu0 %v1825_v10  ;;  %v1859_v10 = vunpack.c.l.s8.bf16 %v1749_v54  ;;  %v1770_v54 = vld [vmem:[%s4314_s7 + $0x658] sm:$0xff] }
 0x16b   : > { %3819 = vmatprep.subr.bf16.mxu1 %v1841_v11  ;;  %v1875_v11 = vunpack.c.l.s8.bf16 %v1757_v56 }
 0x16d   : > { %3798 = vmatpush3.bf16.msra.mxu0 %v1817_v18  ;;  %v1756_v18 = vld [vmem:[%s4314_s7 + $0x5e8] sm:$0xff] }
 0x16e   : > { %3820 = vmatpush3.bf16.msra.mxu1 %v1833_v20  ;;  %3799 = vmatprep.subr.bf16.mxu0 %v1824_v21  ;;  %v1851_v20 = vunpack.c.l.s8.bf16 %v1745_v39  ;;  %v1867_v21 = vunpack.c.l.s8.bf16 %v1753_v51  ;;  %v1874_v23 = vunpack.c.h.s8.bf16 %v1756_v18  ;;  %v1885_v39 = vunpack.c.l.s8.bf16 %v1762_v53 }
 0x16f   : > { %3821 = vmatprep.subr.bf16.mxu1 %v1840_v7  ;;  %v1858_v7 = vunpack.c.h.s8.bf16 %v1748_v13  ;;  %v1901_v51 = vunpack.c.l.s8.bf16 %v1770_v54 }
 0x171   : > { %3800 = vmatpush3.bf16.msra.mxu0 %v1816_v30  ;;  %v1850_v30 = vunpack.c.h.s8.bf16 %v1744_v25 }
 0x172   : > { %3822 = vmatpush3.bf16.msra.mxu1 %v1832_v32  ;;  %3801 = vmatprep.subr.bf16.mxu0 %v1823_v29  ;;  %v1866_v32 = vunpack.c.h.s8.bf16 %v1752_v27  ;;  %v1857_v29 = vunpack.c.l.s8.bf16 %v1748_v13 }
 0x173   : > { %3823 = vmatprep.subr.bf16.mxu1 %v1839_v22  ;;  %v1873_v22 = vunpack.c.l.s8.bf16 %v1756_v18 }
 0x175   : > { %3802 = vmatpush3.bf16.msra.mxu0 %v1815_v42  ;;  %v1872_v42 = vunpack.c.h.s8.bf16 %v1755_v35 }
 0x176   : > { %3824 = vmatpush3.bf16.msra.mxu1 %v1831_v14  ;;  %3831 = vmatprep.subr.bf16.mxu0 %v1862_v40  ;;  %v1743_v14 = vld [vmem:[%s4314_s7 + $0x580] sm:$0xff] }
 0x177   : > { %3853 = vmatprep.subr.bf16.mxu1 %v1878_v16  ;;  %v1751_v40 = vld [vmem:[%s4314_s7 + $0x5c0] sm:$0xff]  ;;  %v4712_v16 = vrot.slane %v1983_v38, %v4330_v37  ;;  %v1848_v44 = vunpack.c.h.s8.bf16 %v1743_v14 }
 0x178   : > { %v3539_v36 = vpop.f32.mrf.mxu0  ;;  %2185 = vmatmul.mubr.bf16.vlgmr.msra.gmra.mxu0 %v1964_v24  ;;  %v1849_v24 = vunpack.c.l.s8.bf16 %v1744_v25  ;;  %v1864_v43 = vunpack.c.h.s8.bf16 %v1751_v40  ;;  %v1772_v25 = vld [vmem:[%s4314_s7 + $0x668] sm:$0xff] }
 0x179   : > { %v3561_v57 = vpop.f32.mrf.mxu1  ;;  %2225 = vmatmul.mubr.bf16.vlgmr.msra.gmra.mxu1 %v1980_v31  ;;  %3832 = vmatpush3.bf16.msra.mxu0 %v1854_v46  ;;  %v1774_v31 = vld [vmem:[%s4314_s7 + $0x678] sm:$0xff]  ;;  %v1999_v15 = vcombine.high %v4712_v16, %v4712_v16  ;;  %v2006_v46 = vrot.slane %v4675_v26, %v4330_v37 }
 0x17a   : > { %3854 = vmatpush3.bf16.msra.mxu1 %v1870_v48  ;;  %v3540_v60 = vpop.f32.mrf.mxu0  ;;  %3833 = vmatprep.subr.bf16.mxu0 %v1861_v49  ;;  %v1847_v48 = vunpack.c.l.s8.bf16 %v1743_v14  ;;  %v1863_v49 = vunpack.c.l.s8.bf16 %v1751_v40  ;;  %v1910_v52 = vunpack.c.h.s8.bf16 %v1774_v31 }
 0x17b   : > { %v3562_v61 = vpop.f32.mrf.mxu1  ;;  %3855 = vmatprep.subr.bf16.mxu1 %v1877_v41  ;;  %v3541_v0 = vadd.f32 %v3540_v60, %v3539_v36  ;;  %2264 = vmatprep.mubr.bf16.mxu0 %v2020_v59  ;;  %v1766_v59 = vld [vmem:[%s4314_s7 + $0x638] sm:$0xff]  ;;  %v2027_v56 = vrot.slane %v1999_v15, %v4330_v37  ;;  %v1886_v36 = vunpack.c.h.s8.bf16 %v1762_v53  ;;  %v1773_v60 = vld [vmem:[%s4314_s7 + $0x670] sm:$0xff] }
 0x17c   : > { %v4699_v1 = vadd.f32 %v3562_v61, %v3561_v57  ;;  %2304 = vmatprep.mubr.bf16.mxu1 %v2030_v28  ;;  %v3542_v55 = vpop.f32.mrf.mxu0  ;;  %v1894_v41 = vunpack.c.h.s8.bf16 %v1766_v59  ;;  %v2028_v28 = vcombine.high %v2006_v46, %v2006_v46  ;;  %v1902_v57 = vunpack.c.h.s8.bf16 %v1770_v54  ;;  %v4750_v53 = vld.sshfl [vmem:[%s4309_s27 + $0x34] sm:$0x11 pattern:$0x75316420] }
 0x17d   : > { %v3564_v3 = vpop.f32.mrf.mxu1  ;;  %v981_v4 = vadd.f32 %v3541_v0, %v941_v63  ;;  %3834 = vmatpush3.bf16.msra.mxu0 %v1853_v58  ;;  %v1893_v26 = vunpack.c.l.s8.bf16 %v1766_v59  ;;  %v1909_v58 = vunpack.c.l.s8.bf16 %v1774_v31  ;;  %v2031_v61 = vcombine.high %v2027_v56, %v2027_v56 }
 0x17e   : > { %3856 = vmatpush3.bf16.msra.mxu1 %v1869_v47  ;;  %v3543_v8 = vpop.f32.mrf.mxu0  ;;  %3835 = vmatprep.subr.bf16.mxu0 %v1860_v50  ;;  %v1765_v47 = vld [vmem:[%s4314_s7 + $0x630] sm:$0xff]  ;;  %v1908_v55 = vunpack.c.h.s8.bf16 %v1773_v60 }
 0x17f   : > { %v3565_v9 = vpop.f32.mrf.mxu1  ;;  %3857 = vmatprep.subr.bf16.mxu1 %v1876_v62  ;;  %v986_v12 = vadd.f32 %v981_v4, %v481_v2  ;;  %v1892_v2 = vunpack.c.h.s8.bf16 %v1765_v47  ;;  %v1761_v3 = vld [vmem:[%s4314_s7 + $0x610] sm:$0xff] }
 0x180   : > { %v1769_v4 = vld [vmem:[%s4314_s7 + $0x650] sm:$0xff]  ;;  %v1883_v27 = vunpack.c.l.s8.bf16 %v1761_v3 }
 0x181   : > { %987 = vst [vmem:[#allocation2] sm:$0x3] %v986_v12  ;;  %3836 = vmatpush3.bf16.msra.mxu0 %v1852_v5  ;;  %v1900_v12 = vunpack.c.h.s8.bf16 %v1769_v4 }
 0x182   : > { %3858 = vmatpush3.bf16.msra.mxu1 %v1868_v6  ;;  %3837 = vmatprep.subr.bf16.mxu0 %v1859_v10 }
 0x183   : > { %3859 = vmatprep.subr.bf16.mxu1 %v1875_v11  ;;  %v1884_v11 = vunpack.c.h.s8.bf16 %v1761_v3 }
 0x185   : > { %3838 = vmatpush3.bf16.msra.mxu0 %v1851_v20  ;;  %v1891_v20 = vunpack.c.l.s8.bf16 %v1765_v47 }
 0x186   : > { %3860 = vmatpush3.bf16.msra.mxu1 %v1867_v21  ;;  %3839 = vmatprep.subr.bf16.mxu0 %v1858_v7  ;;  %v1907_v21 = vunpack.c.l.s8.bf16 %v1773_v60 }
 0x187   : > { %3861 = vmatprep.subr.bf16.mxu1 %v1874_v23  ;;  %v1764_v23 = vld [vmem:[%s4314_s7 + $0x628] sm:$0xff] }
 0x188   : > { %v1889_v38 = vunpack.c.l.s8.bf16 %v1764_v23 }
 0x189   : > { %3840 = vmatpush3.bf16.msra.mxu0 %v1850_v30  ;;  %v1890_v30 = vunpack.c.h.s8.bf16 %v1764_v23 }
 0x18a   : > { %3862 = vmatpush3.bf16.msra.mxu1 %v1866_v32  ;;  %3841 = vmatprep.subr.bf16.mxu0 %v1857_v29  ;;  %v1906_v32 = vunpack.c.h.s8.bf16 %v1772_v25  ;;  %v1760_v29 = vld [vmem:[%s4314_s7 + $0x608] sm:$0xff] }
 0x18b   : > { %3863 = vmatprep.subr.bf16.mxu1 %v1873_v22  ;;  %v1768_v22 = vld [vmem:[%s4314_s7 + $0x648] sm:$0xff]  ;;  %v1882_v34 = vunpack.c.h.s8.bf16 %v1760_v29 }
 0x18c   : > { %v1898_v35 = vunpack.c.h.s8.bf16 %v1768_v22  ;;  %v1897_v14 = vunpack.c.l.s8.bf16 %v1768_v22 }
 0x18d   : > { %3842 = vmatpush3.bf16.msra.mxu0 %v1849_v24  ;;  %v1905_v24 = vunpack.c.l.s8.bf16 %v1772_v25 }
 0x18e   : > { %3864 = vmatpush3.bf16.msra.mxu1 %v1865_v45  ;;  %3843 = vmatprep.subr.bf16.mxu0 %v1856_v33  ;;  %v1763_v45 = vld [vmem:[%s4314_s7 + $0x620] sm:$0xff] }
 0x18f   : > { %3865 = vmatprep.subr.bf16.mxu1 %v1872_v42  ;;  %v1771_v33 = vld [vmem:[%s4314_s7 + $0x660] sm:$0xff]  ;;  %v1881_v42 = vunpack.c.l.s8.bf16 %v1760_v29  ;;  %v1888_v40 = vunpack.c.h.s8.bf16 %v1763_v45  ;;  %v1887_v15 = vunpack.c.l.s8.bf16 %v1763_v45 }
 0x191   : > { %3844 = vmatpush3.bf16.msra.mxu0 %v1848_v44  ;;  %v1904_v44 = vunpack.c.h.s8.bf16 %v1771_v33 }
 0x192   : > { %3866 = vmatpush3.bf16.msra.mxu1 %v1864_v43  ;;  %3845 = vmatprep.subr.bf16.mxu0 %v1855_v17  ;;  %v1759_v43 = vld [vmem:[%s4314_s7 + $0x600] sm:$0xff] }
 0x193   : > { %3867 = vmatprep.subr.bf16.mxu1 %v1871_v19  ;;  %v1767_v17 = vld [vmem:[%s4314_s7 + $0x640] sm:$0xff]  ;;  %v4739_v19 = vld [vmem:[%s4309_s27 + $0x36] sm:$0xff]  ;;  %v1880_v59 = vunpack.c.h.s8.bf16 %v1759_v43  ;;  %v1879_v54 = vunpack.c.l.s8.bf16 %v1759_v43 }
 0x194   : > { %v1896_v31 = vunpack.c.h.s8.bf16 %v1767_v17 }
 0x195   : > { %3846 = vmatpush3.bf16.msra.mxu0 %v1847_v48  ;;  %v1782_v48 = vld [vmem:[%s4314_s7 + $0x6b8] sm:$0xff] }
 0x196   : > { %3868 = vmatpush3.bf16.msra.mxu1 %v1863_v49  ;;  %3875 = vmatprep.subr.bf16.mxu0 %v1894_v41  ;;  %v2441_v49 = vld [vmem:[%s4314_s7 + $0x6f8] sm:$0xff]  ;;  %v4745_v41 = vrot.slane %v4739_v19, %v4330_v37 }
 0x197   : > { %3897 = vmatprep.subr.bf16.mxu1 %v1910_v52  ;;  %v2013_v52 = vrot.slane %v4712_v16, %v4330_v37 }
 0x198   : > { %v3583_v50 = vpop.f32.mrf.mxu0  ;;  %2265 = vmatmul.mubr.bf16.vlgmr.msra.gmra.mxu0 %v2006_v46  ;;  %v1903_v46 = vunpack.c.l.s8.bf16 %v1771_v33  ;;  %v2672_v16 = vcombine.high %v4745_v41, %v4745_v41 }
 0x199   : > { %v3605_v62 = vpop.f32.mrf.mxu1  ;;  %2305 = vmatmul.mubr.bf16.vlgmr.msra.gmra.mxu1 %v2028_v28  ;;  %3876 = vmatpush3.bf16.msra.mxu0 %v1886_v36  ;;  %v1926_v28 = vunpack.c.h.s8.bf16 %v1782_v48  ;;  %v2521_v36 = vunpack.c.h.s8.bf16 %v2441_v49  ;;  %v2029_v47 = vcombine.high %v2013_v52, %v2013_v52 }
 0x19a   : > { %3898 = vmatpush3.bf16.msra.mxu1 %v1902_v57  ;;  %v3584_v63 = vpop.f32.mrf.mxu0  ;;  %3877 = vmatprep.subr.bf16.mxu0 %v1893_v26  ;;  %v1778_v57 = vld [vmem:[%s4314_s7 + $0x698] sm:$0xff] }
 0x19b   : > { %v3606_v0 = vpop.f32.mrf.mxu1  ;;  %3899 = vmatprep.subr.bf16.mxu1 %v1909_v58  ;;  %v3585_v5 = vadd.f32 %v3584_v63, %v3583_v50  ;;  %2344 = vmatprep.mubr.bf16.mxu0 %v2027_v56  ;;  %v1895_v56 = vunpack.c.l.s8.bf16 %v1767_v17  ;;  %v2437_v26 = vld [vmem:[%s4314_s7 + $0x6d8] sm:$0xff]  ;;  %v2039_v58 = vcombine.high %v4750_v53, %v4750_v53  ;;  %v1918_v60 = vunpack.c.h.s8.bf16 %v1778_v57 }
 0x19c   : > { %v3607_v6 = vadd.f32 %v3606_v0, %v3605_v62  ;;  %2384 = vmatprep.mubr.bf16.mxu1 %v2031_v61  ;;  %v3586_v8 = vpop.f32.mrf.mxu0  ;;  %v2513_v61 = vunpack.c.h.s8.bf16 %v2437_v26  ;;  %v1925_v50 = vunpack.c.l.s8.bf16 %v1782_v48  ;;  %v2520_v62 = vunpack.c.l.s8.bf16 %v2441_v49 }
 0x19d   : > { %v3608_v9 = vpop.f32.mrf.mxu1  ;;  %v1424_v10 = vadd.f32 %v3585_v5, %v4699_v1  ;;  %3878 = vmatpush3.bf16.msra.mxu0 %v1885_v39  ;;  %v1899_v1 = vunpack.c.l.s8.bf16 %v1769_v4  ;;  %v1781_v39 = vld [vmem:[%s4314_s7 + $0x6b0] sm:$0xff]  ;;  %v2053_v63 = vrot.slane %v2039_v58, %v4330_v37  ;;  %v4762_v0 = vrot.slane %v2672_v16, %v4330_v37  ;;  %v2445_v16 = vld [vmem:[%s4314_s7 + $0x718] sm:$0xff] }
 0x19e   : > { %3900 = vmatpush3.bf16.msra.mxu1 %v1901_v51  ;;  %v3587_v13 = vpop.f32.mrf.mxu0  ;;  %3879 = vmatprep.subr.bf16.mxu0 %v1892_v2  ;;  %v2440_v51 = vld [vmem:[%s4314_s7 + $0x6f0] sm:$0xff]  ;;  %v1917_v3 = vunpack.c.l.s8.bf16 %v1778_v57  ;;  %v2512_v4 = vunpack.c.l.s8.bf16 %v2437_v26  ;;  %v1924_v8 = vunpack.c.h.s8.bf16 %v1781_v39  ;;  %v1923_v25 = vunpack.c.l.s8.bf16 %v1781_v39 }
 0x19f   : > { %v3609_v18 = vpop.f32.mrf.mxu1  ;;  %3901 = vmatprep.subr.bf16.mxu1 %v1908_v55  ;;  %v4728_v7 = vadd.f32 %v3607_v6, %v1424_v10  ;;  %v2519_v9 = vunpack.c.h.s8.bf16 %v2440_v51  ;;  %v1777_v10 = vld [vmem:[%s4314_s7 + $0x690] sm:$0xff] }
 0x1a0   : > { %v1916_v18 = vunpack.c.h.s8.bf16 %v1777_v10 }
 0x1a1   : > { %3880 = vmatpush3.bf16.msra.mxu0 %v1884_v11  ;;  %v2436_v11 = vld [vmem:[%s4314_s7 + $0x6d0] sm:$0xff] }
 0x1a2   : > { %3902 = vmatpush3.bf16.msra.mxu1 %v1900_v12  ;;  %3881 = vmatprep.subr.bf16.mxu0 %v1891_v20  ;;  %v2511_v20 = vunpack.c.h.s8.bf16 %v2436_v11  ;;  %v2510_v29 = vunpack.c.l.s8.bf16 %v2436_v11 }
 0x1a3   : > { %3903 = vmatprep.subr.bf16.mxu1 %v1907_v21 }
 0x1a5   : > { %3882 = vmatpush3.bf16.msra.mxu0 %v1883_v27  ;;  %v2518_v27 = vunpack.c.l.s8.bf16 %v2440_v51 }
 0x1a6   : > { %3904 = vmatpush3.bf16.msra.mxu1 %v1899_v1  ;;  %3883 = vmatprep.subr.bf16.mxu0 %v1890_v30  ;;  %v1780_v1 = vld [vmem:[%s4314_s7 + $0x6a8] sm:$0xff] }
 0x1a7   : > { %3905 = vmatprep.subr.bf16.mxu1 %v1906_v32  ;;  %v2439_v30 = vld [vmem:[%s4314_s7 + $0x6e8] sm:$0xff]  ;;  %v1915_v32 = vunpack.c.l.s8.bf16 %v1777_v10  ;;  %v1922_v22 = vunpack.c.h.s8.bf16 %v1780_v1  ;;  %v1921_v33 = vunpack.c.l.s8.bf16 %v1780_v1  ;;  %v2528_v10 = vunpack.c.l.s8.bf16 %v2445_v16 }
 0x1a9   : > { %3884 = vmatpush3.bf16.msra.mxu0 %v1882_v34  ;;  %v2517_v34 = vunpack.c.h.s8.bf16 %v2439_v30 }
 0x1aa   : > { %3906 = vmatpush3.bf16.msra.mxu1 %v1898_v35  ;;  %3885 = vmatprep.subr.bf16.mxu0 %v1889_v38  ;;  %v1776_v35 = vld [vmem:[%s4314_s7 + $0x688] sm:$0xff] }
 0x1ab   : > { %3907 = vmatprep.subr.bf16.mxu1 %v1905_v24  ;;  %v2435_v38 = vld [vmem:[%s4314_s7 + $0x6c8] sm:$0xff]  ;;  %v1914_v24 = vunpack.c.h.s8.bf16 %v1776_v35 }
 0x1ac   : > { %v2509_v45 = vunpack.c.h.s8.bf16 %v2435_v38  ;;  %v2508_v43 = vunpack.c.l.s8.bf16 %v2435_v38 }
 0x1ad   : > { %3886 = vmatpush3.bf16.msra.mxu0 %v1881_v42  ;;  %v2516_v42 = vunpack.c.l.s8.bf16 %v2439_v30 }
 0x1ae   : > { %3908 = vmatpush3.bf16.msra.mxu1 %v1897_v14  ;;  %3887 = vmatprep.subr.bf16.mxu0 %v1888_v40  ;;  %v1779_v14 = vld [vmem:[%s4314_s7 + $0x6a0] sm:$0xff] }
 0x1af   : > { %3909 = vmatprep.subr.bf16.mxu1 %v1904_v44  ;;  %v2438_v40 = vld [vmem:[%s4314_s7 + $0x6e0] sm:$0xff]  ;;  %v1913_v44 = vunpack.c.l.s8.bf16 %v1776_v35  ;;  %v1920_v17 = vunpack.c.h.s8.bf16 %v1779_v14  ;;  %v2455_v35 = vld [vmem:[%s4314_s7 + $0x768] sm:$0xff] }
 0x1b1   : > { %3888 = vmatpush3.bf16.msra.mxu0 %v1880_v59  ;;  %v2515_v59 = vunpack.c.h.s8.bf16 %v2438_v40 }
 0x1b2   : > { %3910 = vmatpush3.bf16.msra.mxu1 %v1896_v31  ;;  %3889 = vmatprep.subr.bf16.mxu0 %v1887_v15  ;;  %v1775_v31 = vld [vmem:[%s4314_s7 + $0x680] sm:$0xff] }
 0x1b3   : > { %3911 = vmatprep.subr.bf16.mxu1 %v1903_v46  ;;  %v2434_v15 = vld [vmem:[%s4314_s7 + $0x6c0] sm:$0xff]  ;;  %v2657_v46 = vcombine.high %v4739_v19, %v4739_v19  ;;  %v1912_v48 = vunpack.c.h.s8.bf16 %v1775_v31  ;;  %v1911_v57 = vunpack.c.l.s8.bf16 %v1775_v31 }
 0x1b4   : > { %v2507_v49 = vunpack.c.h.s8.bf16 %v2434_v15  ;;  %v2506_v26 = vunpack.c.l.s8.bf16 %v2434_v15  ;;  %v2454_v31 = vld [vmem:[%s4314_s7 + $0x760] sm:$0xff] }
 0x1b5   : > { %3890 = vmatpush3.bf16.msra.mxu0 %v1879_v54  ;;  %v2514_v54 = vunpack.c.l.s8.bf16 %v2438_v40 }
 0x1b6   : > { %3912 = vmatpush3.bf16.msra.mxu1 %v1895_v56  ;;  %3919 = vmatprep.subr.bf16.mxu0 %v1926_v28  ;;  %v2449_v56 = vld [vmem:[%s4314_s7 + $0x738] sm:$0xff] }
 0x1b7   : > { %3941 = vmatprep.subr.bf16.mxu1 %v2521_v36  ;;  %v2457_v28 = vld [vmem:[%s4314_s7 + $0x778] sm:$0xff]  ;;  %v4788_v36 = vrot.slane %v2657_v46, %v4330_v37  ;;  %v2537_v19 = vunpack.c.h.s8.bf16 %v2449_v56  ;;  %v2536_v51 = vunpack.c.l.s8.bf16 %v2449_v56 }
 0x1b8   : > { %v4764_v2 = vpop.f32.mrf.mxu0  ;;  %2345 = vmatmul.mubr.bf16.vlgmr.msra.gmra.mxu0 %v2013_v52  ;;  %v1919_v52 = vunpack.c.l.s8.bf16 %v1779_v14  ;;  %v2553_v58 = vunpack.c.h.s8.bf16 %v2457_v28  ;;  %v2451_v14 = vld [vmem:[%s4314_s7 + $0x748] sm:$0xff]  ;;  %v4828_v56 = vld [vmem:[%s4309_s27 + $0x3e] sm:$0xff] }
 0x1b9   : > { %v4766_v55 = vpop.f32.mrf.mxu1  ;;  %2385 = vmatmul.mubr.bf16.vlgmr.msra.gmra.mxu1 %v2029_v47  ;;  %3920 = vmatpush3.bf16.msra.mxu0 %v1918_v60  ;;  %v2453_v47 = vld [vmem:[%s4314_s7 + $0x758] sm:$0xff]  ;;  %v2673_v60 = vcombine.high %v4788_v36, %v4788_v36  ;;  %v2540_v46 = vunpack.c.l.s8.bf16 %v2451_v14 }
 0x1ba   : > { %3942 = vmatpush3.bf16.msra.mxu1 %v2513_v61  ;;  %v4768_v5 = vpop.f32.mrf.mxu0  ;;  %3921 = vmatprep.subr.bf16.mxu0 %v1925_v50  ;;  %v2046_v61 = vrot.slane %v4750_v53, %v4330_v37  ;;  %v4798_v50 = vrot.slane %v4745_v41, %v4330_v37  ;;  %v2545_v39 = vunpack.c.h.s8.bf16 %v2453_v47  ;;  %v2544_v11 = vunpack.c.l.s8.bf16 %v2453_v47  ;;  %v2473_v47 = vld [vmem:[%s4314_s7 + $0x7f8] sm:$0xff] }
 0x1bb   : > { %v4770_v6 = vpop.f32.mrf.mxu1  ;;  %3943 = vmatprep.subr.bf16.mxu1 %v2520_v62  ;;  %2424 = vmatprep.mubr.bf16.mxu0 %v2053_v63  ;;  %v2529_v62 = vunpack.c.h.s8.bf16 %v2445_v16  ;;  %v2552_v63 = vunpack.c.l.s8.bf16 %v2457_v28  ;;  %v4805_v53 = vrot.slane %v2673_v60, %v4330_v37  ;;  %v3629_v28 = vadd.f32 %v4768_v5, %v4764_v2  ;;  %v2465_v16 = vld [vmem:[%s4314_s7 + $0x7b8] sm:$0xff] }
 0x1bc   : > { %2827 = vmatprep.mubr.bf16.mxu1 %v4762_v0  ;;  %v3630_v12 = vpop.f32.mrf.mxu0  ;;  %v4836_v60 = vrot.slane %v4828_v56, %v4330_v37  ;;  %v3651_v2 = vadd.f32 %v4770_v6, %v4766_v55  ;;  %v2702_v55 = vcombine.high %v4798_v50, %v4798_v50  ;;  %v4851_v6 = vrot.slane %v4788_v36, %v4330_v37 }
 0x1bd   : > { %v3652_v13 = vpop.f32.mrf.mxu1  ;;  %3922 = vmatpush3.bf16.msra.mxu0 %v1917_v3  ;;  %v2448_v3 = vld [vmem:[%s4314_s7 + $0x730] sm:$0xff] }
 0x1be   : > { %3944 = vmatpush3.bf16.msra.mxu1 %v2512_v4  ;;  %v3631_v21 = vpop.f32.mrf.mxu0  ;;  %3923 = vmatprep.subr.bf16.mxu0 %v1924_v8  ;;  %v2456_v4 = vld [vmem:[%s4314_s7 + $0x770] sm:$0xff]  ;;  %v2704_v8 = vcombine.high %v4762_v0, %v4762_v0  ;;  %v2535_v0 = vunpack.c.h.s8.bf16 %v2448_v3 }
 0x1bf   : > { %v3653_v23 = vpop.f32.mrf.mxu1  ;;  %3945 = vmatprep.subr.bf16.mxu1 %v2519_v9  ;;  %v2452_v21 = vld [vmem:[%s4314_s7 + $0x750] sm:$0xff] }
 0x1c0   : > { %v2543_v1 = vunpack.c.h.s8.bf16 %v2452_v21 }
 0x1c1   : > { %3924 = vmatpush3.bf16.msra.mxu0 %v1916_v18  ;;  %v2551_v18 = vunpack.c.h.s8.bf16 %v2456_v4 }
 0x1c2   : > { %3946 = vmatpush3.bf16.msra.mxu1 %v2511_v20  ;;  %3925 = vmatprep.subr.bf16.mxu0 %v1923_v25  ;;  %v2444_v20 = vld [vmem:[%s4314_s7 + $0x710] sm:$0xff] }
 0x1c3   : > { %3947 = vmatprep.subr.bf16.mxu1 %v2518_v27  ;;  %v2527_v27 = vunpack.c.h.s8.bf16 %v2444_v20  ;;  %v2526_v38 = vunpack.c.l.s8.bf16 %v2444_v20  ;;  %v2464_v20 = vld [vmem:[%s4314_s7 + $0x7b0] sm:$0xff] }
 0x1c5   : > { %3926 = vmatpush3.bf16.msra.mxu0 %v1915_v32 }
 0x1c6   : > { %3948 = vmatpush3.bf16.msra.mxu1 %v2510_v29  ;;  %3927 = vmatprep.subr.bf16.mxu0 %v1922_v22  ;;  %v2534_v29 = vunpack.c.l.s8.bf16 %v2448_v3  ;;  %v2550_v22 = vunpack.c.l.s8.bf16 %v2456_v4  ;;  %v2469_v3 = vld [vmem:[%s4314_s7 + $0x7d8] sm:$0xff] }
 0x1c7   : > { %3949 = vmatprep.subr.bf16.mxu1 %v2517_v34  ;;  %v2447_v34 = vld [vmem:[%s4314_s7 + $0x728] sm:$0xff] }
 0x1c9   : > { %3928 = vmatpush3.bf16.msra.mxu0 %v1914_v24  ;;  %v2542_v24 = vunpack.c.l.s8.bf16 %v2452_v21  ;;  %v2472_v21 = vld [vmem:[%s4314_s7 + $0x7f0] sm:$0xff] }
 0x1ca   : > { %3950 = vmatpush3.bf16.msra.mxu1 %v2509_v45  ;;  %3929 = vmatprep.subr.bf16.mxu0 %v1921_v33  ;;  %v2533_v45 = vunpack.c.h.s8.bf16 %v2447_v34  ;;  %v2549_v33 = vunpack.c.h.s8.bf16 %v2455_v35 }
 0x1cb   : > { %3951 = vmatprep.subr.bf16.mxu1 %v2516_v42  ;;  %v2443_v42 = vld [vmem:[%s4314_s7 + $0x708] sm:$0xff] }
 0x1cc   : > { %v2525_v40 = vunpack.c.h.s8.bf16 %v2443_v42  ;;  %v2524_v15 = vunpack.c.l.s8.bf16 %v2443_v42 }
 0x1cd   : > { %3930 = vmatpush3.bf16.msra.mxu0 %v1913_v44  ;;  %v2541_v44 = vunpack.c.h.s8.bf16 %v2451_v14 }
 0x1ce   : > { %3952 = vmatpush3.bf16.msra.mxu1 %v2508_v43  ;;  %3931 = vmatprep.subr.bf16.mxu0 %v1920_v17  ;;  %v2532_v43 = vunpack.c.l.s8.bf16 %v2447_v34  ;;  %v2548_v17 = vunpack.c.l.s8.bf16 %v2455_v35 }
 0x1cf   : > { %3953 = vmatprep.subr.bf16.mxu1 %v2515_v59  ;;  %v2446_v59 = vld [vmem:[%s4314_s7 + $0x720] sm:$0xff] }
 0x1d1   : > { %3932 = vmatpush3.bf16.msra.mxu0 %v1912_v48  ;;  %v2531_v48 = vunpack.c.h.s8.bf16 %v2446_v59 }
 0x1d2   : > { %3954 = vmatpush3.bf16.msra.mxu1 %v2507_v49  ;;  %3933 = vmatprep.subr.bf16.mxu0 %v1919_v52  ;;  %v2547_v49 = vunpack.c.h.s8.bf16 %v2454_v31  ;;  %v2442_v52 = vld [vmem:[%s4314_s7 + $0x700] sm:$0xff] }
 0x1d3   : > { %3955 = vmatprep.subr.bf16.mxu1 %v2514_v54  ;;  %v2450_v54 = vld [vmem:[%s4314_s7 + $0x740] sm:$0xff]  ;;  %v2522_v5 = vunpack.c.l.s8.bf16 %v2442_v52 }
 0x1d5   : > { %3934 = vmatpush3.bf16.msra.mxu0 %v1911_v57  ;;  %v2523_v57 = vunpack.c.h.s8.bf16 %v2442_v52 }
 0x1d6   : > { %3956 = vmatpush3.bf16.msra.mxu1 %v2506_v26  ;;  %3963 = vmatprep.subr.bf16.mxu0 %v2537_v19  ;;  %v2539_v26 = vunpack.c.h.s8.bf16 %v2450_v54  ;;  %v2530_v19 = vunpack.c.l.s8.bf16 %v2446_v59  ;;  %v2463_v59 = vld [vmem:[%s4314_s7 + $0x7a8] sm:$0xff] }
 0x1d7   : > { %3985 = vmatprep.subr.bf16.mxu1 %v2553_v58  ;;  %v2546_v58 = vunpack.c.l.s8.bf16 %v2454_v31  ;;  %v2471_v31 = vld [vmem:[%s4314_s7 + $0x7e8] sm:$0xff]  ;;  %v2565_v52 = vunpack.c.h.s8.bf16 %v2463_v59 }
 0x1d8   : > { %v4807_v41 = vpop.f32.mrf.mxu0  ;;  %2425 = vmatmul.mubr.bf16.vlgmr.msra.gmra.mxu0 %v2046_v61  ;;  %v1504_v61 = vadd.f32 %v3629_v28, %v4728_v7  ;;  %v2721_v7 = vcombine.high %v4836_v60, %v4836_v60  ;;  %v2459_v28 = vld [vmem:[%s4314_s7 + $0x788] sm:$0xff] }
 0x1d9   : > { %v4809_v9 = vpop.f32.mrf.mxu1  ;;  %2828 = vmatmul.mubr.bf16.vlgmr.msra.gmra.mxu1 %v4798_v50  ;;  %3964 = vmatpush3.bf16.msra.mxu0 %v2529_v62  ;;  %v2538_v62 = vunpack.c.l.s8.bf16 %v2450_v54  ;;  %v2705_v50 = vcombine.high %v4805_v53, %v4805_v53  ;;  %v2581_v54 = vunpack.c.h.s8.bf16 %v2471_v31 }
 0x1da   : > { %3986 = vmatpush3.bf16.msra.mxu1 %v2545_v39  ;;  %v4812_v12 = vpop.f32.mrf.mxu0  ;;  %3965 = vmatprep.subr.bf16.mxu0 %v2536_v51  ;;  %v2569_v39 = vunpack.c.h.s8.bf16 %v2465_v16  ;;  %v2585_v51 = vunpack.c.h.s8.bf16 %v2473_v47  ;;  %v4860_v36 = vrot.slane %v2721_v7, %v4330_v37 }
 0x1db   : > { %v4814_v13 = vpop.f32.mrf.mxu1  ;;  %3987 = vmatprep.subr.bf16.mxu1 %v2552_v63  ;;  %2867 = vmatprep.mubr.bf16.mxu0 %v2704_v8  ;;  %v2461_v63 = vld [vmem:[%s4314_s7 + $0x798] sm:$0xff]  ;;  %v3673_v4 = vadd.f32 %v4812_v12, %v4807_v41  ;;  %v1544_v8 = vadd.f32 %v3651_v2, %v1504_v61  ;;  %v2584_v41 = vunpack.c.l.s8.bf16 %v2473_v47  ;;  %v2462_v47 = vld [vmem:[%s4314_s7 + $0x7a0] sm:$0xff]  ;;  %v2556_v2 = vunpack.c.l.s8.bf16 %v2459_v28 }
 0x1dc   : > { %2907 = vmatprep.mubr.bf16.mxu1 %v4805_v53  ;;  %v3674_v23 = vpop.f32.mrf.mxu0  ;;  %v2583_v53 = vunpack.c.h.s8.bf16 %v2472_v21  ;;  %v2470_v61 = vld [vmem:[%s4314_s7 + $0x7e0] sm:$0xff] }
 0x1dd   : > { %v3696_v25 = vpop.f32.mrf.mxu1  ;;  %3966 = vmatpush3.bf16.msra.mxu0 %v2528_v10  ;;  %v2561_v10 = vunpack.c.h.s8.bf16 %v2461_v63  ;;  %v1584_v12 = vadd.f32 %v3673_v4, %v1544_v8  ;;  %v2578_v8 = vunpack.c.l.s8.bf16 %v2470_v61 }
 0x1de   : > { %3988 = vmatpush3.bf16.msra.mxu1 %v2544_v11  ;;  %v3675_v30 = vpop.f32.mrf.mxu0  ;;  %3967 = vmatprep.subr.bf16.mxu0 %v2535_v0  ;;  %v2577_v11 = vunpack.c.h.s8.bf16 %v2469_v3  ;;  %v2568_v0 = vunpack.c.l.s8.bf16 %v2465_v16  ;;  %v2580_v16 = vunpack.c.l.s8.bf16 %v2471_v31 }
 0x1df   : > { %v3697_v32 = vpop.f32.mrf.mxu1  ;;  %3989 = vmatprep.subr.bf16.mxu1 %v2551_v18  ;;  %v3695_v18 = vadd.f32 %v4814_v13, %v4809_v9  ;;  %v2567_v30 = vunpack.c.h.s8.bf16 %v2464_v20 }
 0x1e0   : > { %v2460_v32 = vld [vmem:[%s4314_s7 + $0x790] sm:$0xff] }
 0x1e1   : > { %3968 = vmatpush3.bf16.msra.mxu0 %v2527_v27  ;;  %v2560_v27 = vunpack.c.l.s8.bf16 %v2461_v63  ;;  %v2466_v63 = vld [vmem:[%s4314_s7 + $0x7c0] sm:$0xff] }
 0x1e2   : > { %3990 = vmatpush3.bf16.msra.mxu1 %v2543_v1  ;;  %3969 = vmatprep.subr.bf16.mxu0 %v2534_v29  ;;  %v2576_v1 = vunpack.c.l.s8.bf16 %v2469_v3  ;;  %v2468_v29 = vld [vmem:[%s4314_s7 + $0x7d0] sm:$0xff]  ;;  %v2706_v3 = vcombine.high %v4828_v56, %v4828_v56  ;;  %v2571_v7 = vunpack.c.h.s8.bf16 %v2466_v63 }
 0x1e3   : > { %3991 = vmatprep.subr.bf16.mxu1 %v2550_v22  ;;  %v1624_v22 = vadd.f32 %v3695_v18, %v1584_v12  ;;  %v2575_v42 = vunpack.c.h.s8.bf16 %v2468_v29  ;;  %v2570_v12 = vunpack.c.l.s8.bf16 %v2466_v63 }
 0x1e5   : > { %3970 = vmatpush3.bf16.msra.mxu0 %v2526_v38 }
 0x1e6   : > { %3992 = vmatpush3.bf16.msra.mxu1 %v2542_v24  ;;  %3971 = vmatprep.subr.bf16.mxu0 %v2533_v45 }
 0x1e7   : > { %3993 = vmatprep.subr.bf16.mxu1 %v2549_v33  ;;  %v2559_v33 = vunpack.c.h.s8.bf16 %v2460_v32 }
 0x1e9   : > { %3972 = vmatpush3.bf16.msra.mxu0 %v2525_v40 }
 0x1ea   : > { %3994 = vmatpush3.bf16.msra.mxu1 %v2541_v44  ;;  %3973 = vmatprep.subr.bf16.mxu0 %v2532_v43  ;;  %v2566_v44 = vunpack.c.l.s8.bf16 %v2464_v20  ;;  %v2582_v43 = vunpack.c.l.s8.bf16 %v2472_v21  ;;  %v2477_v20 = vld [vmem:[%s4314_s7 + $0x818] sm:$0xff] }
 0x1eb   : > { %3995 = vmatprep.subr.bf16.mxu1 %v2548_v17  ;;  %v2485_v21 = vld [vmem:[%s4314_s7 + $0x858] sm:$0xff] }
 0x1ed   : > { %3974 = vmatpush3.bf16.msra.mxu0 %v2524_v15  ;;  %v1204_v15 = vld [vmem:[#allocation2] sm:$0x3] }
 0x1ee   : > { %3996 = vmatpush3.bf16.msra.mxu1 %v2540_v46  ;;  %3975 = vmatprep.subr.bf16.mxu0 %v2531_v48  ;;  %v2558_v48 = vunpack.c.l.s8.bf16 %v2460_v32  ;;  %v2753_v32 = vcombine.high %v4860_v36, %v4860_v36 }
 0x1ef   : > { %3997 = vmatprep.subr.bf16.mxu1 %v2547_v49  ;;  %v2574_v49 = vunpack.c.l.s8.bf16 %v2468_v29 }
 0x1f1   : > { %3976 = vmatpush3.bf16.msra.mxu0 %v2523_v57  ;;  %v2467_v57 = vld [vmem:[%s4314_s7 + $0x7c8] sm:$0xff] }
 0x1f2   : > { %3998 = vmatpush3.bf16.msra.mxu1 %v2539_v26  ;;  %3977 = vmatprep.subr.bf16.mxu0 %v2530_v19  ;;  %v2557_v26 = vunpack.c.h.s8.bf16 %v2459_v28  ;;  %v2573_v19 = vunpack.c.h.s8.bf16 %v2467_v57 }
 0x1f3   : > { %3999 = vmatprep.subr.bf16.mxu1 %v2546_v58  ;;  %v2564_v58 = vunpack.c.l.s8.bf16 %v2463_v59 }
 0x1f5   : > { %3978 = vmatpush3.bf16.msra.mxu0 %v2522_v5  ;;  %v2572_v5 = vunpack.c.l.s8.bf16 %v2467_v57 }
 0x1f6   : > { %4000 = vmatpush3.bf16.msra.mxu1 %v2538_v62  ;;  %4007 = vmatprep.subr.bf16.mxu0 %v2569_v39  ;;  %v2563_v62 = vunpack.c.h.s8.bf16 %v2462_v47  ;;  %v2579_v39 = vunpack.c.h.s8.bf16 %v2470_v61 }
 0x1f7   : > { %4029 = vmatprep.subr.bf16.mxu1 %v2585_v51  ;;  %v2458_v51 = vld [vmem:[%s4314_s7 + $0x780] sm:$0xff] }
 0x1f8   : > { %v3715_v23 = vpop.f32.mrf.mxu0  ;;  %2868 = vmatmul.mubr.bf16.vlgmr.msra.gmra.mxu0 %v2702_v55  ;;  %v2555_v4 = vunpack.c.h.s8.bf16 %v2458_v51  ;;  %v2562_v55 = vunpack.c.l.s8.bf16 %v2462_v47 }
 0x1f9   : > { %v3737_v25 = vpop.f32.mrf.mxu1  ;;  %2908 = vmatmul.mubr.bf16.vlgmr.msra.gmra.mxu1 %v4851_v6  ;;  %4008 = vmatpush3.bf16.msra.mxu0 %v2561_v10  ;;  %v2481_v10 = vld [vmem:[%s4314_s7 + $0x838] sm:$0xff] }
 0x1fa   : > { %4030 = vmatpush3.bf16.msra.mxu1 %v2577_v11  ;;  %v3716_v9 = vpop.f32.mrf.mxu0  ;;  %4009 = vmatprep.subr.bf16.mxu0 %v2568_v0  ;;  %v2489_v11 = vld [vmem:[%s4314_s7 + $0x878] sm:$0xff]  ;;  %v4879_v0 = vrot.slane %v2706_v3, %v4330_v37  ;;  %v2601_v56 = vunpack.c.h.s8.bf16 %v2481_v10 }
 0x1fb   : > { %v3738_v13 = vpop.f32.mrf.mxu1  ;;  %4031 = vmatprep.subr.bf16.mxu1 %v2584_v41  ;;  %v3717_v34 = vadd.f32 %v3716_v9, %v3715_v23  ;;  %2947 = vmatprep.mubr.bf16.mxu0 %v2705_v50  ;;  %v2554_v41 = vunpack.c.l.s8.bf16 %v2458_v51  ;;  %v2617_v18 = vunpack.c.h.s8.bf16 %v2489_v11  ;;  %v2703_v23 = vcombine.high %v4851_v6, %v4851_v6 }
 0x1fc   : > { %v3739_v35 = vadd.f32 %v3738_v13, %v3737_v25  ;;  %2987 = vmatprep.mubr.bf16.mxu1 %v4860_v36  ;;  %v3718_v38 = vpop.f32.mrf.mxu0  ;;  %v2722_v50 = vcombine.high %v4879_v0, %v4879_v0  ;;  %v4889_v25 = vrot.slane %v4836_v60, %v4330_v37  ;;  %v2600_v9 = vunpack.c.l.s8.bf16 %v2481_v10 }
 0x1fd   : > { %v3740_v24 = vpop.f32.mrf.mxu1  ;;  %v1664_v45 = vadd.f32 %v3717_v34, %v1624_v22  ;;  %4010 = vmatpush3.bf16.msra.mxu0 %v2560_v27  ;;  %v2593_v27 = vunpack.c.h.s8.bf16 %v2477_v20  ;;  %v2616_v13 = vunpack.c.l.s8.bf16 %v2489_v11  ;;  %v2592_v22 = vunpack.c.l.s8.bf16 %v2477_v20 }
 0x1fe   : > { %4032 = vmatpush3.bf16.msra.mxu1 %v2576_v1  ;;  %v3719_v14 = vpop.f32.mrf.mxu0  ;;  %4011 = vmatprep.subr.bf16.mxu0 %v2567_v30  ;;  %v2609_v1 = vunpack.c.h.s8.bf16 %v2485_v21  ;;  %v2480_v30 = vld [vmem:[%s4314_s7 + $0x830] sm:$0xff]  ;;  %v4896_v6 = vrot.slane %v2722_v50, %v4330_v37  ;;  %v2608_v34 = vunpack.c.l.s8.bf16 %v2485_v21 }
 0x1ff   : > { %v3741_v40 = vpop.f32.mrf.mxu1  ;;  %4033 = vmatprep.subr.bf16.mxu1 %v2583_v53  ;;  %v1704_v17 = vadd.f32 %v3739_v35, %v1664_v45  ;;  %v2488_v53 = vld [vmem:[%s4314_s7 + $0x870] sm:$0xff]  ;;  %v2599_v24 = vunpack.c.h.s8.bf16 %v2480_v30 }
 0x200   : > { %v2615_v36 = vunpack.c.h.s8.bf16 %v2488_v53  ;;  %v2476_v45 = vld [vmem:[%s4314_s7 + $0x810] sm:$0xff] }
 0x201   : > { %v1709_v46 = vadd.f32 %v1704_v17, %v1204_v15  ;;  %4012 = vmatpush3.bf16.msra.mxu0 %v2559_v33  ;;  %v2484_v33 = vld [vmem:[%s4314_s7 + $0x850] sm:$0xff]  ;;  %v2591_v17 = vunpack.c.h.s8.bf16 %v2476_v45 }
 0x202   : > { %4034 = vmatpush3.bf16.msra.mxu1 %v2575_v42  ;;  %4013 = vmatprep.subr.bf16.mxu0 %v2566_v44  ;;  %v2607_v59 = vunpack.c.h.s8.bf16 %v2484_v33  ;;  %v2606_v28 = vunpack.c.l.s8.bf16 %v2484_v33 }
 0x203   : > { %4035 = vmatprep.subr.bf16.mxu1 %v2582_v43  ;;  %1710 = vst [vmem:[#allocation2] sm:$0x3] %v1709_v46  ;;  %v2598_v46 = vunpack.c.l.s8.bf16 %v2480_v30 }
 0x205   : > { %4014 = vmatpush3.bf16.msra.mxu0 %v2558_v48  ;;  %v2614_v48 = vunpack.c.l.s8.bf16 %v2488_v53 }
 0x206   : > { %4036 = vmatpush3.bf16.msra.mxu1 %v2574_v49  ;;  %4015 = vmatprep.subr.bf16.mxu0 %v2565_v52  ;;  %v2479_v49 = vld [vmem:[%s4314_s7 + $0x828] sm:$0xff] }
 0x207   : > { %4037 = vmatprep.subr.bf16.mxu1 %v2581_v54  ;;  %v2487_v52 = vld [vmem:[%s4314_s7 + $0x868] sm:$0xff]  ;;  %v2590_v54 = vunpack.c.l.s8.bf16 %v2476_v45  ;;  %v2597_v57 = vunpack.c.h.s8.bf16 %v2479_v49  ;;  %v2596_v61 = vunpack.c.l.s8.bf16 %v2479_v49 }
 0x209   : > { %4016 = vmatpush3.bf16.msra.mxu0 %v2557_v26  ;;  %v2613_v26 = vunpack.c.h.s8.bf16 %v2487_v52 }
 0x20a   : > { %4038 = vmatpush3.bf16.msra.mxu1 %v2573_v19  ;;  %4017 = vmatprep.subr.bf16.mxu0 %v2564_v58  ;;  %v2475_v19 = vld [vmem:[%s4314_s7 + $0x808] sm:$0xff] }
 0x20b   : > { %4039 = vmatprep.subr.bf16.mxu1 %v2580_v16  ;;  %v2483_v58 = vld [vmem:[%s4314_s7 + $0x848] sm:$0xff]  ;;  %v2589_v16 = vunpack.c.h.s8.bf16 %v2475_v19 }
 0x20c   : > { %v2605_v47 = vunpack.c.h.s8.bf16 %v2483_v58  ;;  %v2604_v51 = vunpack.c.l.s8.bf16 %v2483_v58 }
 0x20d   : > { %4018 = vmatpush3.bf16.msra.mxu0 %v2556_v2  ;;  %v2612_v2 = vunpack.c.l.s8.bf16 %v2487_v52 }
 0x20e   : > { %4040 = vmatpush3.bf16.msra.mxu1 %v2572_v5  ;;  %4019 = vmatprep.subr.bf16.mxu0 %v2563_v62  ;;  %v2478_v5 = vld [vmem:[%s4314_s7 + $0x820] sm:$0xff] }
 0x20f   : > { %4041 = vmatprep.subr.bf16.mxu1 %v2579_v39  ;;  %v2486_v62 = vld [vmem:[%s4314_s7 + $0x860] sm:$0xff]  ;;  %v2588_v39 = vunpack.c.l.s8.bf16 %v2475_v19  ;;  %v2595_v63 = vunpack.c.h.s8.bf16 %v2478_v5  ;;  %v2594_v10 = vunpack.c.l.s8.bf16 %v2478_v5 }
 0x210   : > { %v2611_v3 = vunpack.c.h.s8.bf16 %v2486_v62  ;;  %v2610_v11 = vunpack.c.l.s8.bf16 %v2486_v62 }
 0x211   : > { %4020 = vmatpush3.bf16.msra.mxu0 %v2555_v4  ;;  %v2474_v4 = vld [vmem:[%s4314_s7 + $0x800] sm:$0xff] }
 0x212   : > { %4042 = vmatpush3.bf16.msra.mxu1 %v2571_v7  ;;  %4021 = vmatprep.subr.bf16.mxu0 %v2562_v55  ;;  %v2482_v7 = vld [vmem:[%s4314_s7 + $0x840] sm:$0xff]  ;;  %v2587_v55 = vunpack.c.h.s8.bf16 %v2474_v4 }
 0x213   : > { %4043 = vmatprep.subr.bf16.mxu1 %v2578_v8  ;;  %v2603_v8 = vunpack.c.h.s8.bf16 %v2482_v7  ;;  %v2602_v20 = vunpack.c.l.s8.bf16 %v2482_v7 }
 0x215   : > { %4022 = vmatpush3.bf16.msra.mxu0 %v2554_v41  ;;  %v2497_v41 = vld [vmem:[%s4314_s7 + $0x8b8] sm:$0xff] }
 0x216   : > { %4044 = vmatpush3.bf16.msra.mxu1 %v2570_v12  ;;  %4051 = vmatprep.subr.bf16.mxu0 %v2601_v56  ;;  %v2505_v12 = vld [vmem:[%s4314_s7 + $0x8f8] sm:$0xff]  ;;  %v4915_v56 = vld.sshfl [vmem:[%s4309_s27 + $0x46] sm:$0x11 pattern:$0x75316420]  ;;  %v2633_v21 = vunpack.c.h.s8.bf16 %v2497_v41 }
 0x217   : > { %4073 = vmatprep.subr.bf16.mxu1 %v2617_v18  ;;  %v2586_v18 = vunpack.c.l.s8.bf16 %v2474_v4  ;;  %v2649_v50 = vunpack.c.h.s8.bf16 %v2505_v12 }
 0x218   : > { %v3759_v60 = vpop.f32.mrf.mxu0  ;;  %2948 = vmatmul.mubr.bf16.vlgmr.msra.gmra.mxu0 %v2703_v23  ;;  %v2493_v23 = vld [vmem:[%s4314_s7 + $0x898] sm:$0xff] }
 0x219   : > { %v3781_v29 = vpop.f32.mrf.mxu1  ;;  %2988 = vmatmul.mubr.bf16.vlgmr.msra.gmra.mxu1 %v4889_v25  ;;  %4052 = vmatpush3.bf16.msra.mxu0 %v2593_v27  ;;  %v2501_v27 = vld [vmem:[%s4314_s7 + $0x8d8] sm:$0xff]  ;;  %v2625_v30 = vunpack.c.h.s8.bf16 %v2493_v23 }
 0x21a   : > { %4074 = vmatpush3.bf16.msra.mxu1 %v2609_v1  ;;  %v3760_v35 = vpop.f32.mrf.mxu0  ;;  %4053 = vmatprep.subr.bf16.mxu0 %v2600_v9  ;;  %v2762_v1 = vcombine.high %v4915_v56, %v4915_v56  ;;  %v2751_v9 = vcombine.high %v4889_v25, %v4889_v25  ;;  %v2641_v53 = vunpack.c.h.s8.bf16 %v2501_v27 }
 0x21b   : > { %v3782_v38 = vpop.f32.mrf.mxu1  ;;  %4075 = vmatprep.subr.bf16.mxu1 %v2616_v13  ;;  %v3761_v42 = vadd.f32 %v3760_v35, %v3759_v60  ;;  %3027 = vmatprep.mubr.bf16.mxu0 %v2753_v32  ;;  %v4925_v13 = vrot.slane %v4879_v0, %v4330_v37  ;;  %v2632_v32 = vunpack.c.l.s8.bf16 %v2497_v41  ;;  %v2648_v60 = vunpack.c.l.s8.bf16 %v2505_v12 }
 0x21c   : > { %v3783_v14 = vadd.f32 %v3782_v38, %v3781_v29  ;;  %3067 = vmatprep.mubr.bf16.mxu1 %v4896_v6  ;;  %v3762_v40 = vpop.f32.mrf.mxu0  ;;  %v2496_v29 = vld [vmem:[%s4314_s7 + $0x8b0] sm:$0xff]  ;;  %v2776_v25 = vrot.slane %v2762_v1, %v4330_v37  ;;  %v2624_v38 = vunpack.c.l.s8.bf16 %v2493_v23  ;;  %v2769_v23 = vrot.slane %v4915_v56, %v4330_v37 }
 0x21d   : > { %v3784_v44 = vpop.f32.mrf.mxu1  ;;  %4054 = vmatpush3.bf16.msra.mxu0 %v2592_v22  ;;  %v2504_v22 = vld [vmem:[%s4314_s7 + $0x8f0] sm:$0xff]  ;;  %v2631_v33 = vunpack.c.h.s8.bf16 %v2496_v29  ;;  %v2630_v52 = vunpack.c.l.s8.bf16 %v2496_v29 }
 0x21e   : > { %v4902_v43 = vadd.f32 %v3783_v14, %v3761_v42  ;;  %4076 = vmatpush3.bf16.msra.mxu1 %v2608_v34  ;;  %v3763_v31 = vpop.f32.mrf.mxu0  ;;  %4055 = vmatprep.subr.bf16.mxu0 %v2599_v24  ;;  %v2754_v34 = vcombine.high %v4896_v6, %v4896_v6  ;;  %v2640_v24 = vunpack.c.l.s8.bf16 %v2501_v27  ;;  %v2647_v42 = vunpack.c.h.s8.bf16 %v2504_v22  ;;  %v2492_v6 = vld [vmem:[%s4314_s7 + $0x890] sm:$0xff] }
 0x21f   : > { %v3785_v15 = vpop.f32.mrf.mxu1  ;;  %4077 = vmatprep.subr.bf16.mxu1 %v2615_v36  ;;  %v2500_v14 = vld [vmem:[%s4314_s7 + $0x8d0] sm:$0xff]  ;;  %v2622_v19 = vunpack.c.l.s8.bf16 %v2492_v6 }
 0x220   : > { %v2623_v15 = vunpack.c.h.s8.bf16 %v2492_v6 }
 0x221   : > { %4056 = vmatpush3.bf16.msra.mxu0 %v2591_v17 }
 0x222   : > { %4078 = vmatpush3.bf16.msra.mxu1 %v2607_v59  ;;  %4057 = vmatprep.subr.bf16.mxu0 %v2598_v46  ;;  %v2639_v46 = vunpack.c.h.s8.bf16 %v2500_v14 }
 0x223   : > { %4079 = vmatprep.subr.bf16.mxu1 %v2614_v48 }
 0x225   : > { %4058 = vmatpush3.bf16.msra.mxu0 %v2590_v54  ;;  %v2646_v54 = vunpack.c.l.s8.bf16 %v2504_v22 }
 0x226   : > { %4080 = vmatpush3.bf16.msra.mxu1 %v2606_v28  ;;  %4059 = vmatprep.subr.bf16.mxu0 %v2597_v57  ;;  %v2495_v57 = vld [vmem:[%s4314_s7 + $0x8a8] sm:$0xff] }
 0x227   : > { %4081 = vmatprep.subr.bf16.mxu1 %v2613_v26  ;;  %v2503_v26 = vld [vmem:[%s4314_s7 + $0x8e8] sm:$0xff]  ;;  %v2629_v58 = vunpack.c.h.s8.bf16 %v2495_v57  ;;  %v2628_v62 = vunpack.c.l.s8.bf16 %v2495_v57 }
 0x229   : > { %4060 = vmatpush3.bf16.msra.mxu0 %v2589_v16  ;;  %v2645_v16 = vunpack.c.h.s8.bf16 %v2503_v26 }
 0x22a   : > { %4082 = vmatpush3.bf16.msra.mxu1 %v2605_v47  ;;  %4061 = vmatprep.subr.bf16.mxu0 %v2596_v61  ;;  %v2491_v47 = vld [vmem:[%s4314_s7 + $0x888] sm:$0xff] }
 0x22b   : > { %4083 = vmatprep.subr.bf16.mxu1 %v2612_v2  ;;  %v2499_v61 = vld [vmem:[%s4314_s7 + $0x8c8] sm:$0xff]  ;;  %v2621_v2 = vunpack.c.h.s8.bf16 %v2491_v47 }
 0x22c   : > { %v2637_v5 = vunpack.c.h.s8.bf16 %v2499_v61  ;;  %v2636_v4 = vunpack.c.l.s8.bf16 %v2499_v61 }
 0x22d   : > { %4062 = vmatpush3.bf16.msra.mxu0 %v2588_v39  ;;  %v2644_v39 = vunpack.c.l.s8.bf16 %v2503_v26 }
 0x22e   : > { %4084 = vmatpush3.bf16.msra.mxu1 %v2604_v51  ;;  %4063 = vmatprep.subr.bf16.mxu0 %v2595_v63  ;;  %v2494_v51 = vld [vmem:[%s4314_s7 + $0x8a0] sm:$0xff] }
 0x22f   : > { %4085 = vmatprep.subr.bf16.mxu1 %v2611_v3  ;;  %v2502_v63 = vld [vmem:[%s4314_s7 + $0x8e0] sm:$0xff]  ;;  %v2620_v3 = vunpack.c.l.s8.bf16 %v2491_v47  ;;  %v2627_v7 = vunpack.c.h.s8.bf16 %v2494_v51  ;;  %v2626_v12 = vunpack.c.l.s8.bf16 %v2494_v51 }
 0x231   : > { %4064 = vmatpush3.bf16.msra.mxu0 %v2587_v55  ;;  %v2643_v55 = vunpack.c.h.s8.bf16 %v2502_v63 }
 0x232   : > { %4086 = vmatpush3.bf16.msra.mxu1 %v2603_v8  ;;  %4065 = vmatprep.subr.bf16.mxu0 %v2594_v10  ;;  %v2490_v8 = vld [vmem:[%s4314_s7 + $0x880] sm:$0xff] }
 0x233   : > { %4087 = vmatprep.subr.bf16.mxu1 %v2610_v11  ;;  %v2498_v10 = vld [vmem:[%s4314_s7 + $0x8c0] sm:$0xff]  ;;  %v2619_v11 = vunpack.c.h.s8.bf16 %v2490_v8 }
 0x234   : > { %v2635_v41 = vunpack.c.h.s8.bf16 %v2498_v10 }
 0x235   : > { %4066 = vmatpush3.bf16.msra.mxu0 %v2586_v18  ;;  %v2642_v18 = vunpack.c.l.s8.bf16 %v2502_v63 }
 0x236   : > { %4088 = vmatpush3.bf16.msra.mxu1 %v2602_v20  ;;  %4095 = vmatprep.subr.bf16.mxu0 %v2633_v21  ;;  %v2618_v20 = vunpack.c.l.s8.bf16 %v2490_v8  ;;  %v2634_v21 = vunpack.c.l.s8.bf16 %v2498_v10 }
 0x237   : > { %4117 = vmatprep.subr.bf16.mxu1 %v2649_v50  ;;  %v2752_v50 = vcombine.high %v4925_v13, %v4925_v13 }
 0x238   : > { %v3803_v35 = vpop.f32.mrf.mxu0  ;;  %3028 = vmatmul.mubr.bf16.vlgmr.msra.gmra.mxu0 %v2751_v9 }
 0x239   : > { %v3825_v0 = vpop.f32.mrf.mxu1  ;;  %3068 = vmatmul.mubr.bf16.vlgmr.msra.gmra.mxu1 %v4925_v13  ;;  %4096 = vmatpush3.bf16.msra.mxu0 %v2625_v30 }
 0x23a   : > { %4118 = vmatpush3.bf16.msra.mxu1 %v2641_v53  ;;  %v3804_v36 = vpop.f32.mrf.mxu0  ;;  %4097 = vmatprep.subr.bf16.mxu0 %v2632_v32 }
 0x23b   : > { %v3826_v45 = vpop.f32.mrf.mxu1  ;;  %4119 = vmatprep.subr.bf16.mxu1 %v2648_v60  ;;  %v3805_v40 = vadd.f32 %v3804_v36, %v3803_v35  ;;  %3107 = vmatprep.mubr.bf16.mxu0 %v2754_v34 }
 0x23c   : > { %v3827_v44 = vadd.f32 %v3826_v45, %v3825_v0  ;;  %3147 = vmatprep.mubr.bf16.mxu1 %v2776_v25  ;;  %v3806_v17 = vpop.f32.mrf.mxu0 }
 0x23d   : > { %v3828_v59 = vpop.f32.mrf.mxu1  ;;  %v2187_v31 = vadd.f32 %v3805_v40, %v4902_v43  ;;  %4098 = vmatpush3.bf16.msra.mxu0 %v2624_v38  ;;  %v2638_v43 = vunpack.c.l.s8.bf16 %v2500_v14 }
 0x23e   : > { %4120 = vmatpush3.bf16.msra.mxu1 %v2640_v24  ;;  %v3807_v48 = vpop.f32.mrf.mxu0  ;;  %4099 = vmatprep.subr.bf16.mxu0 %v2631_v33 }
 0x23f   : > { %v3829_v49 = vpop.f32.mrf.mxu1  ;;  %4121 = vmatprep.subr.bf16.mxu1 %v2647_v42  ;;  %v4936_v28 = vadd.f32 %v3827_v44, %v2187_v31 }
 0x241   : > { %4100 = vmatpush3.bf16.msra.mxu0 %v2623_v15 }
 0x242   : > { %4122 = vmatpush3.bf16.msra.mxu1 %v2639_v46  ;;  %4101 = vmatprep.subr.bf16.mxu0 %v2630_v52  ;;  %v1927_v52 = vld [vmem:[#allocation2] sm:$0x3] }
 0x243   : > { %4123 = vmatprep.subr.bf16.mxu1 %v2646_v54 }
 0x245   : > { %4102 = vmatpush3.bf16.msra.mxu0 %v2622_v19 }
 0x246   : > { %4124 = vmatpush3.bf16.msra.mxu1 %v2638_v43  ;;  %4103 = vmatprep.subr.bf16.mxu0 %v2629_v58 }
 0x247   : > { %4125 = vmatprep.subr.bf16.mxu1 %v2645_v16 }
 0x249   : > { %4104 = vmatpush3.bf16.msra.mxu0 %v2621_v2 }
 0x24a   : > { %4126 = vmatpush3.bf16.msra.mxu1 %v2637_v5  ;;  %4105 = vmatprep.subr.bf16.mxu0 %v2628_v62 }
 0x24b   : > { %4127 = vmatprep.subr.bf16.mxu1 %v2644_v39 }
 0x24d   : > { %4106 = vmatpush3.bf16.msra.mxu0 %v2620_v3 }
 0x24e   : > { %4128 = vmatpush3.bf16.msra.mxu1 %v2636_v4  ;;  %4107 = vmatprep.subr.bf16.mxu0 %v2627_v7 }
 0x24f   : > { %4129 = vmatprep.subr.bf16.mxu1 %v2643_v55 }
 0x251   : > { %4108 = vmatpush3.bf16.msra.mxu0 %v2619_v11 }
 0x252   : > { %4130 = vmatpush3.bf16.msra.mxu1 %v2635_v41  ;;  %4109 = vmatprep.subr.bf16.mxu0 %v2626_v12 }
 0x253   : > { %4131 = vmatprep.subr.bf16.mxu1 %v2642_v18 }
 0x255   : > { %4110 = vmatpush3.bf16.msra.mxu0 %v2618_v20 }
 0x256   : > { %4132 = vmatpush3.bf16.msra.mxu1 %v2634_v21 }
 0x258   : > { %v3847_v27 = vpop.f32.mrf.mxu0  ;;  %3108 = vmatmul.mubr.bf16.vlgmr.msra.gmra.mxu0 %v2752_v50 }
 0x259   : > { %v3869_v1 = vpop.f32.mrf.mxu1  ;;  %3148 = vmatmul.mubr.bf16.vlgmr.msra.gmra.mxu1 %v2769_v23 }
 0x25a   : > { %v3848_v9 = vpop.f32.mrf.mxu0 }
 0x25b   : > { %v3870_v30 = vpop.f32.mrf.mxu1  ;;  %v3849_v56 = vadd.f32 %v3848_v9, %v3847_v27 }
 0x25c   : > { %v3850_v53 = vpop.f32.mrf.mxu0  ;;  %v3871_v36 = vadd.f32 %v3870_v30, %v3869_v1 }
 0x25d   : > { %v3872_v32 = vpop.f32.mrf.mxu1  ;;  %v2267_v24 = vadd.f32 %v3849_v56, %v4936_v28 }
 0x25e   : > { %v3851_v60 = vpop.f32.mrf.mxu0 }
 0x25f   : > { %v3873_v29 = vpop.f32.mrf.mxu1  ;;  %v2307_v33 = vadd.f32 %v3871_v36, %v2267_v24 }
 0x278   : > { %v3891_v22 = vpop.f32.mrf.mxu0 }
 0x279   : > { %v3913_v34 = vpop.f32.mrf.mxu1 }
 0x27a   : > { %v3892_v25 = vpop.f32.mrf.mxu0 }
 0x27b   : > { %v3914_v35 = vpop.f32.mrf.mxu1  ;;  %v3893_v45 = vadd.f32 %v3892_v25, %v3891_v22 }
 0x27c   : > { %v3894_v13 = vpop.f32.mrf.mxu0  ;;  %v3915_v6 = vadd.f32 %v3914_v35, %v3913_v34 }
 0x27d   : > { %v3916_v0 = vpop.f32.mrf.mxu1  ;;  %v2347_v42 = vadd.f32 %v3893_v45, %v2307_v33 }
 0x27e   : > { %v3895_v38 = vpop.f32.mrf.mxu0 }
 0x27f   : > { %v3917_v37 = vpop.f32.mrf.mxu1  ;;  %v2387_v59 = vadd.f32 %v3915_v6, %v2347_v42 }
 0x298   : > { %v3935_v14 = vpop.f32.mrf.mxu0 }
 0x299   : > { %v3957_v40 = vpop.f32.mrf.mxu1 }
 0x29a   : > { %v3936_v44 = vpop.f32.mrf.mxu0 }
 0x29b   : > { %v3958_v17 = vpop.f32.mrf.mxu1  ;;  %v3937_v31 = vadd.f32 %v3936_v44, %v3935_v14 }
 0x29c   : > { %v3959_v15 = vadd.f32 %v3958_v17, %v3957_v40  ;;  %v3938_v46 = vpop.f32.mrf.mxu0 }
 0x29d   : > { %v3960_v48 = vpop.f32.mrf.mxu1  ;;  %v2427_v49 = vadd.f32 %v3937_v31, %v2387_v59 }
 0x29e   : > { %v3939_v54 = vpop.f32.mrf.mxu0 }
 0x29f   : > { %v3961_v57 = vpop.f32.mrf.mxu1  ;;  %v2432_v26 = vadd.f32 %v2427_v49, %v1927_v52 }
 0x2a1   : > { %2433 = vst [vmem:[#allocation2] sm:$0x3] %v2432_v26 }
 0x2a8   : > { %v2650_v42 = vld [vmem:[#allocation2] sm:$0x3] }
 0x2b8   : > { %v3979_v28 = vpop.f32.mrf.mxu0 }
 0x2b9   : > { %v4001_v19 = vpop.f32.mrf.mxu1 }
 0x2ba   : > { %v3980_v43 = vpop.f32.mrf.mxu0 }
 0x2bb   : > { %v4002_v58 = vpop.f32.mrf.mxu1  ;;  %v3981_v16 = vadd.f32 %v3980_v43, %v3979_v28 }
 0x2bc   : > { %v4003_v47 = vadd.f32 %v4002_v58, %v4001_v19  ;;  %v3982_v61 = vpop.f32.mrf.mxu0 }
 0x2bd   : > { %v4004_v2 = vpop.f32.mrf.mxu1  ;;  %v2870_v5 = vadd.f32 %v3981_v16, %v3959_v15 }
 0x2be   : > { %v3983_v62 = vpop.f32.mrf.mxu0 }
 0x2bf   : > { %v4005_v39 = vpop.f32.mrf.mxu1  ;;  %v2910_v51 = vadd.f32 %v4003_v47, %v2870_v5 }
 0x2d8   : > { %v4023_v63 = vpop.f32.mrf.mxu0 }
 0x2d9   : > { %v4045_v3 = vpop.f32.mrf.mxu1 }
 0x2da   : > { %v4024_v4 = vpop.f32.mrf.mxu0 }
 0x2db   : > { %v4046_v7 = vpop.f32.mrf.mxu1  ;;  %v4025_v1 = vadd.f32 %v4024_v4, %v4023_v63 }
 0x2dc   : > { %v4026_v55 = vpop.f32.mrf.mxu0  ;;  %v4047_v30 = vadd.f32 %v4046_v7, %v4045_v3 }
 0x2dd   : > { %v4048_v8 = vpop.f32.mrf.mxu1  ;;  %v2950_v9 = vadd.f32 %v4025_v1, %v2910_v51 }
 0x2de   : > { %v4027_v10 = vpop.f32.mrf.mxu0 }
 0x2df   : > { %v4049_v11 = vpop.f32.mrf.mxu1  ;;  %v2990_v32 = vadd.f32 %v4047_v30, %v2950_v9 }
 0x2f8   : > { %v4067_v41 = vpop.f32.mrf.mxu0 }
 0x2f9   : > { %v4089_v12 = vpop.f32.mrf.mxu1 }
 0x2fa   : > { %v4068_v18 = vpop.f32.mrf.mxu0 }
 0x2fb   : > { %v4090_v20 = vpop.f32.mrf.mxu1  ;;  %v4069_v53 = vadd.f32 %v4068_v18, %v4067_v41 }
 0x2fc   : > { %v4070_v21 = vpop.f32.mrf.mxu0  ;;  %v4091_v29 = vadd.f32 %v4090_v20, %v4089_v12 }
 0x2fd   : > { %v4092_v50 = vpop.f32.mrf.mxu1  ;;  %v3030_v60 = vadd.f32 %v4069_v53, %v2990_v32 }
 0x2fe   : > { %v4071_v23 = vpop.f32.mrf.mxu0 }
 0x2ff   : > { %v4093_v27 = vpop.f32.mrf.mxu1  ;;  %v3070_v13 = vadd.f32 %v4091_v29, %v3030_v60 }
 0x318   : > { %v4111_v22 = vpop.f32.mrf.mxu0 }
 0x319   : > { %v4133_v34 = vpop.f32.mrf.mxu1 }
 0x31a   : > { %v4112_v25 = vpop.f32.mrf.mxu0 }
 0x31b   : > { %v4134_v35 = vpop.f32.mrf.mxu1  ;;  %v4113_v0 = vadd.f32 %v4112_v25, %v4111_v22 }
 0x31c   : > { %v4114_v38 = vpop.f32.mrf.mxu0  ;;  %v4135_v24 = vadd.f32 %v4134_v35, %v4133_v34 }
 0x31d   : > { %v4136_v37 = vpop.f32.mrf.mxu1  ;;  %v3110_v56 = vadd.f32 %v4113_v0, %v3070_v13 }
 0x31e   : > { %v4115_v36 = vpop.f32.mrf.mxu0 }
 0x31f   : > { %v4137_v45 = vpop.f32.mrf.mxu1  ;;  %v3150_v33 = vadd.f32 %v4135_v24, %v3110_v56  ;;  %3160 = sbr.rel (%p3339_p6) target bundleno = 1033 (0x409), region = 52 }
 0x321   : > { %v3155_v6 = vadd.f32 %v3150_v33, %v2650_v42 }
 0x323   : > { %3156 = vst [vmem:[#allocation2] sm:$0x3] %v3155_v6 }
 0x324   : > { %v3194_v14 = vld [vmem:[%s5028_s4 + $0x78] sm:$0xff]  ;;  %v4256_v40 = vmov 0.0   ;;  %v3193_v44 = vld [vmem:[%s5028_s4 + $0x70] sm:$0xff]  ;;  %vm4257_vm0 = vmmov 0   ;;  %v3192_v17 = vld [vmem:[%s5028_s4 + $0x68] sm:$0xff]  ;;  %vm3272_vm1 = vcmask 74752  }
 0x325   : > { %4156 = vmatprep.subr.mxu0 %v4256_v40  ;;  %4188 = vmatprep.mubr.msk.f32.mxu0 %vm4257_vm0, %v4256_v40  ;;  %v3191_v59 = vld [vmem:[%s5028_s4 + $0x60] sm:$0xff]  ;;  %v3190_v31 = vld [vmem:[%s5028_s4 + $0x58] sm:$0xff]  ;;  %v3189_v15 = vld [vmem:[%s5028_s4 + $0x50] sm:$0xff] }
 0x326   : > { %4157 = vmatpush3.msra.mxu0 %v3194_v14  ;;  %v3188_v46 = vld [vmem:[%s5028_s4 + $0x48] sm:$0xff]  ;;  %v3187_v48 = vld [vmem:[%s5028_s4 + $0x40] sm:$0xff]  ;;  %v3186_v49 = vld [vmem:[%s5028_s4 + $0x38] sm:$0xff] }
 0x327   : > { %4158 = vmatprep.subr.mxu0 %v4256_v40  ;;  %v3185_v52 = vld [vmem:[%s5028_s4 + $0x30] sm:$0xff]  ;;  %v3340_v57 = vld [vmem:[%s5026_s2] ss:$0 sm:$0xff]  ;;  %v3184_v26 = vld [vmem:[%s5028_s4 + $0x28] sm:$0xff] }
 0x328   : > { %4159 = vmatpush3.msra.mxu0 %v3193_v44  ;;  %v3183_v28 = vld [vmem:[%s5028_s4 + $0x20] sm:$0xff]  ;;  %v3182_v58 = vld [vmem:[%s5028_s4 + $0x18] sm:$0xff]  ;;  %v3181_v16 = vld [vmem:[%s5028_s4 + $0x10] sm:$0xff] }
 0x329   : > { %4160 = vmatprep.subr.mxu0 %v4256_v40  ;;  %v3341_v43 = vld [vmem:[%s5027_s3] ss:$0 sm:$0xff]  ;;  %v3180_v61 = vld [vmem:[%s5028_s4 + $0x8] sm:$0xff] }
 0x32a   : > { %4161 = vmatpush3.msra.mxu0 %v3192_v17  ;;  %v3161_v54 = vld [vmem:[#allocation2] sm:$0x3] }
 0x32b   : > { %4162 = vmatprep.subr.mxu0 %v4256_v40  ;;  %v3169_v19 = vmul.f32 %v3340_v57, %v3161_v54  ;;  %v3179_v2 = vld [vmem:[%s5028_s4] sm:$0xff] }
 0x32c   : > { %4163 = vmatpush3.msra.mxu0 %v3191_v59  ;;  %v3342_v62 = vld [vmem:[%s5029_s5] ss:$0 sm:$0xff] }
 0x32d   : > { %4164 = vmatprep.subr.mxu0 %v4256_v40  ;;  %v3177_v47 = vadd.f32 %v3341_v43, %v3169_v19 }
 0x32e   : > { %4165 = vmatpush3.msra.mxu0 %v3190_v31 }
 0x32f   : > { %4166 = vmatprep.subr.mxu0 %v4256_v40  ;;  %v3178_v5 = vmax.f32 %v3177_v47, 0.0 }
 0x330   : > { %4167 = vmatpush3.msra.mxu0 %v3189_v15 }
 0x331   : > { %4168 = vmatprep.subr.mxu0 %v4256_v40 }
 0x332   : > { %4169 = vmatpush3.msra.mxu0 %v3188_v46 }
 0x333   : > { %4170 = vmatprep.subr.mxu0 %v4256_v40 }
 0x334   : > { %4171 = vmatpush3.msra.mxu0 %v3187_v48 }
 0x335   : > { %4172 = vmatprep.subr.mxu0 %v4256_v40 }
 0x336   : > { %4173 = vmatpush3.msra.mxu0 %v3186_v49 }
 0x337   : > { %4174 = vmatprep.subr.mxu0 %v4256_v40 }
 0x338   : > { %4175 = vmatpush3.msra.mxu0 %v3185_v52 }
 0x339   : > { %4176 = vmatprep.subr.mxu0 %v4256_v40 }
 0x33a   : > { %4177 = vmatpush3.msra.mxu0 %v3184_v26 }
 0x33b   : > { %4178 = vmatprep.subr.mxu0 %v4256_v40 }
 0x33c   : > { %4179 = vmatpush3.msra.mxu0 %v3183_v28 }
 0x33d   : > { %4180 = vmatprep.subr.mxu0 %v4256_v40 }
 0x33e   : > { %4181 = vmatpush3.msra.mxu0 %v3182_v58 }
 0x33f   : > { %4182 = vmatprep.subr.mxu0 %v4256_v40 }
 0x340   : > { %4183 = vmatpush3.msra.mxu0 %v3181_v16 }
 0x341   : > { %4184 = vmatprep.subr.mxu0 %v4256_v40 }
 0x342   : > { %4185 = vmatpush3.msra.mxu0 %v3180_v61 }
 0x343   : > { %4186 = vmatprep.subr.mxu0 %v4256_v40 }
 0x344   : > { %4187 = vmatpush3.msra.mxu0 %v3179_v2 }
 0x345   : > { %4189 = vmatmul.mubr.f32.vlgmr.msra.gmra.mxu0 %v3178_v5 }
 0x405   : > { %v3268_v39 = vpop.f32.mrf.mxu0 }
 0x406   : > { %v3269_v51 = vadd.f32 %v3342_v62, %v3268_v39 }
 0x407   : > { %v4190_v63 = vpop.f32.mrf.mxu0 }
 0x408   : > { %3273 = vst.msk [vmem:[#allocation3] sm:$0x3] %vm3272_vm1, %v3269_v51 }
 0x409 PF: > { %p4195_p7 = scmp.eq.s32.totalorder %s4300_s22, 3  ;;  %s4258_s26 = smov [#allocation3]  }
 0x40a   : > { %s3281_s27 = sshll.u32 %s4258_s26, 4  ;;  %s3282_s27 = int_to_ptr.vmem [resolvable:$true] %s3281_s27 }
 0x40b   : > { %s4218_s28 = scalar_lea.vmem %s3282_s27, 32  ;;  %p4225_p11 = scmp.lt.s32.totalorder %s3282_s27, %s3282_s27 }
 0x40c   : > { %p4219_p8 = scmp.ne.s32.totalorder %s3282_s27, %s4218_s28  ;;  %p4226_p12 = scmp.lt.s32.totalorder %s4218_s28, %s4218_s28 }
 0x40e   : > { %p4220_p9 = pnand %p4219_p8, %p4195_p7  ;;  %p4227_p13 = por %p4226_p12, %p4225_p11 }
 0x410   : > { %p4221_p10 = pneg %p4220_p9 }
 0x412   : > { %p4228_p0 = pnand %p4227_p13, %p4221_p10 }
 0x414   : > { %4231 = shalt.err (!%p4228_p0)
}
 0x415   : > { %4192 = dma.vmem_to_hbm [thread:$0]  (%p4195_p7), %s3282_s27, 32, %s5030_s6, [#allocation4]  }
 0x416   : > { %4247 = dma.done.wait (%p4195_p7), [#allocation4], 32  }
 0x417   : > { %4249 = vsyncadd (%p4195_p7), [#allocation4], 4294967264 }
 0x418 PF: > { %s17_s21 = sadd.s32 1, %s4252_s21  }
 0x419   : > { %p14_p1 = scmp.ge.s32.totalorder %s17_s21, 6  }
 0x41b   :  { %16 = sbr.rel (!%p14_p1) target bundleno = 1 (0x1), region = 82 }
 0x420   :  { %3294 = vsyncpa [#allocation4], 1 }
 0x421   :  { %3296 = vsyncpa [#allocation4 + $0x1], 1 }

// kernel: net3_forward.2
= control target key start
LH: loop header
LB: loop body
LE: loop exit
PB: predicated region body
PF: predicated region fallthrough
CT: control target
= control target key end

     0   :  { %s7076_s18 = smov 0   ;;  %s9411_s0 = inlined_call_operand.vmem [shape: bf16[2,368,32], index: 0, kind: input, shape index: {}]   ;;  %s9412_s1 = inlined_call_operand.vmem [shape: bf16[32,256], index: 1, kind: input, shape index: {}]   ;;  %s9413_s2 = inlined_call_operand.vmem [shape: f32[1,256], index: 2, kind: input, shape index: {}]   ;;  %s9414_s3 = inlined_call_operand.vmem [shape: bf16[6,256,128], index: 3, kind: input, shape index: {}]   ;;  %s9415_s4 = inlined_call_operand.vmem [shape: f32[1,128], index: 4, kind: input, shape index: {}]   ;;  %s9416_s5 = inlined_call_operand.vmem [shape: bf16[2,336,128], index: 5, kind: output, shape index: {}]  }
   0x1 LB: > { %s6372_s19 = sadd.s32 4294967295, %s7043_s18   ;;  %p6376_p0 = scmp.ge.s32.totalorder %s7043_s18, 1  ;;  %s7043_s18 = sphi %s7076_s18, %s15_s18  }
   0x2   : > { %p187_p1 = scmp.lt.s32.totalorder %s7043_s18, 3 }
   0x4   : > { %p188_p2 = pnand %p6376_p0, %p187_p1 }
   0x6   : > { %191 = sbr.rel (%p188_p2) target bundleno = 946 (0x3b2), region = 40 }
   0xb   : > { %v6912_v0 = vld [vmem:[%s9412_s1 + $0x14] ss:$8 sps:$4 sm:$0xff]   ;;  %p215_p3 = scmp.lt.s32.totalorder %s6372_s19, 1  ;;  %v6914_v1 = vld [vmem:[%s9412_s1 + $0x10] ss:$8 sps:$4 sm:$0xff]   ;;  %v9433_v2 = vmov 0   ;;  %v278_v60 = vlaneseq }
   0xc   : > { %525 = vmatprep.mubr.bf16.mxu0 %v9433_v2  ;;  %645 = vmatprep.mubr.bf16.mxu1 %v9433_v2  ;;  %v6915_v3 = vld [vmem:[%s9412_s1 + $0x4] ss:$8 sps:$4 sm:$0xff]   ;;  %v6917_v4 = vld [vmem:[%s9412_s1] ss:$8 sps:$4 sm:$0xff]   ;;  %v6937_v5 = vld [vmem:[%s9414_s3 + $0xb8] sm:$0xff]   ;;  %vm423_vm0 = vcmask 261120  }
   0xd   : > { %505 = vmatprep.subr.bf16.mxu0 %v6912_v0  ;;  %s9509_s19 = smov (!%p215_p3, %s6372_s19), 1  ;;  %6897 = vmatprep.subr.bf16.mxu1 %v6912_v0  ;;  %v6940_v7 = vld [vmem:[%s9414_s3 + $0xb0] sm:$0xff]   ;;  %v6939_v9 = vld [vmem:[%s9414_s3 + $0x38] sm:$0xff]   ;;  %v6943_v14 = vld [vmem:[%s9414_s3 + $0xa8] sm:$0xff]   ;;  %v279_v61 = vshrl.u32 %v278_v60, 7  ;;  %vm2617_vm2 = vcmask 1044480  }
   0xe   : > { %506 = vmatpush1.bf16.msra.mxu0 %v6914_v1  ;;  %6899 = vmatpush1.bf16.msra.mxu1 %v6914_v1  ;;  %s6901_s28 = smul.u32 184, %s9509_s19  ;;  %v6942_v11 = vld [vmem:[%s9414_s3 + $0x30] sm:$0xff]   ;;  %v6944_v15 = vld [vmem:[%s9414_s3 + $0x28] sm:$0xff]   ;;  %v6945_v18 = vld [vmem:[%s9414_s3 + $0xa0] sm:$0xff]   ;;  %vm1600_vm1 = vsmask.f32 7424 }
   0xf   : > { %507 = vmatprep.subr.bf16.mxu0 %v6915_v3  ;;  %6898 = vmatprep.subr.bf16.mxu1 %v6915_v3  ;;  %v6947_v19 = vld [vmem:[%s9414_s3 + $0x20] sm:$0xff]   ;;  %v6948_v20 = vld [vmem:[%s9414_s3 + $0x98] sm:$0xff]   ;;  %v6951_v24 = vld [vmem:[%s9414_s3 + $0x90] sm:$0xff]   ;;  %v280_v62 = vsub.s32 0, %v279_v61  ;;  %v284_v0 = vsub.s32 1, %v279_v61  ;;  %vm4399_vm4 = vcmask 1045504  }
  0x10   : > { %s7104_s6 = scalar_lea.vmem %s9411_s0, %s6901_s28  ;;  %v6950_v21 = vld [vmem:[%s9414_s3 + $0x18] sm:$0xff]   ;;  %v6952_v25 = vld [vmem:[%s9414_s3 + $0x10] sm:$0xff]   ;;  %v6953_v27 = vld [vmem:[%s9414_s3 + $0x88] sm:$0xff]   ;;  %vm3332_vm3 = vsmask.f32 4352  ;;  %s6902_s23 = smul.u32 168, %s9509_s19 }
  0x11   : > { %v6918_v6 = vld [vmem:[%s7104_s6] sm:$0xff]   ;;  %v6919_v8 = vld [vmem:[%s7104_s6 + $0x8] sm:$0xff]   ;;  %v6920_v12 = vld [vmem:[%s7104_s6 + $0x10] sm:$0xff]   ;;  %vm5114_vm5 = vsmask.f32 5376 }
  0x12   : > { %508 = vmatpush1.bf16.msra.mxu0 %v6917_v4  ;;  %6900 = vmatpush1.bf16.msra.mxu1 %v6917_v4  ;;  %v6928_v10 = vld [vmem:[%s7104_s6 + $0x60] sm:$0xff]   ;;  %v6930_v13 = vld [vmem:[%s7104_s6 + $0x68] sm:$0xff]   ;;  %v6921_v16 = vld [vmem:[%s7104_s6 + $0x18] sm:$0xff]   ;;  %s9306_s26 = scalar_lea.vmem %s9416_s5, %s6902_s23 }
  0x13   : > { %2083 = vmatprep.subr.bf16.mxu0 %v9433_v2  ;;  %1194 = vmatprep.subr.bf16.mxu1 %v9433_v2  ;;  %v6932_v17 = vld [vmem:[%s7104_s6 + $0x70] sm:$0xff]   ;;  %v6922_v22 = vld [vmem:[%s7104_s6 + $0x20] sm:$0xff]   ;;  %v6933_v23 = vld [vmem:[%s7104_s6 + $0x78] sm:$0xff]  }
  0x14   : > { %v6923_v26 = vld [vmem:[%s7104_s6 + $0x28] sm:$0xff]   ;;  %v6934_v29 = vld [vmem:[%s7104_s6 + $0x80] sm:$0xff]   ;;  %v6957_v32 = vld [vmem:[%s9414_s3 + $0xf8] sm:$0xff]  }
  0x15   : > { %6406 = vmatmul.mubr.msk.bf16.vlgmr.msra.gmra.mxu0 %vm423_vm0, %v6918_v6  ;;  %6418 = vmatmul.mubr.msk.bf16.vlgmr.msra.gmra.mxu1 %vm423_vm0, %v6928_v10  ;;  %v6954_v28 = vld [vmem:[%s9414_s3 + $0x8] sm:$0xff]   ;;  %v6955_v30 = vld [vmem:[%s9414_s3 + $0x80] sm:$0xff]   ;;  %v6958_v33 = vld [vmem:[%s9414_s3 + $0x78] sm:$0xff]  }
  0x16   : > { %535 = vmatprep.mubr.bf16.mxu0 %v9433_v2  ;;  %2084 = vmatpush1.bf16.msra.mxu0 %v6937_v5  ;;  %v6956_v31 = vld [vmem:[%s9414_s3] sm:$0xff]   ;;  %v6924_v34 = vld [vmem:[%s7104_s6 + $0x30] sm:$0xff]   ;;  %v6935_v35 = vld [vmem:[%s7104_s6 + $0x88] sm:$0xff]  }
  0x17   : > { %2085 = vmatprep.subr.bf16.mxu0 %v9433_v2  ;;  %655 = vmatprep.mubr.bf16.mxu1 %v9433_v2  ;;  %v6959_v36 = vld [vmem:[%s9414_s3 + $0xf0] sm:$0xff]   ;;  %v6962_v38 = vld [vmem:[%s9414_s3 + $0xe8] sm:$0xff]   ;;  %v6925_v40 = vld [vmem:[%s7104_s6 + $0x38] sm:$0xff]  }
  0x18   : > { %1195 = vmatpush1.bf16.msra.mxu1 %v6939_v9  ;;  %v6960_v37 = vld [vmem:[%s9414_s3 + $0x70] sm:$0xff]   ;;  %v6961_v39 = vld [vmem:[%s9414_s3 + $0x68] sm:$0xff]   ;;  %v6963_v42 = vld [vmem:[%s9414_s3 + $0x60] sm:$0xff]  }
  0x19   : > { %1196 = vmatprep.subr.bf16.mxu1 %v9433_v2  ;;  %v6936_v41 = vld [vmem:[%s7104_s6 + $0x90] sm:$0xff]   ;;  %v6926_v43 = vld [vmem:[%s7104_s6 + $0x40] sm:$0xff]   ;;  %v6938_v44 = vld [vmem:[%s7104_s6 + $0x98] sm:$0xff]  }
  0x1a   : > { %2086 = vmatpush1.bf16.msra.mxu0 %v6940_v7  ;;  %v6965_v45 = vld [vmem:[%s9414_s3 + $0x58] sm:$0xff]   ;;  %v6966_v46 = vld [vmem:[%s9414_s3 + $0x50] sm:$0xff]   ;;  %v6927_v47 = vld [vmem:[%s7104_s6 + $0x48] sm:$0xff]  }
  0x1b   : > { %2087 = vmatprep.subr.bf16.mxu0 %v9433_v2  ;;  %v6941_v48 = vld [vmem:[%s7104_s6 + $0xa0] sm:$0xff]   ;;  %v6968_v49 = vld [vmem:[%s9414_s3 + $0x48] sm:$0xff]   ;;  %v6929_v52 = vld [vmem:[%s7104_s6 + $0x50] sm:$0xff]  }
  0x1c   : > { %1197 = vmatpush1.bf16.msra.mxu1 %v6942_v11  ;;  %v6964_v50 = vld [vmem:[%s9414_s3 + $0xe0] sm:$0xff]   ;;  %v6967_v53 = vld [vmem:[%s9414_s3 + $0xd8] sm:$0xff]   ;;  %v6946_v54 = vld [vmem:[%s7104_s6 + $0xa8] sm:$0xff]  }
  0x1d   : > { %6407 = vmatmul.mubr.msk.bf16.gmra.mxu0 %vm423_vm0, %v6919_v8  ;;  %1198 = vmatprep.subr.bf16.mxu1 %v9433_v2  ;;  %v6970_v51 = vld [vmem:[%s9414_s3 + $0x40] sm:$0xff]   ;;  %v6969_v55 = vld [vmem:[%s9414_s3 + $0xd0] sm:$0xff]   ;;  %v6931_v56 = vld [vmem:[%s7104_s6 + $0x58] sm:$0xff]  }
  0x1e   : > { %545 = vmatprep.mubr.bf16.mxu0 %v9433_v2  ;;  %6419 = vmatmul.mubr.msk.bf16.gmra.mxu1 %vm423_vm0, %v6930_v13  ;;  %v6971_v57 = vld [vmem:[%s9414_s3 + $0xc8] sm:$0xff]   ;;  %v6949_v58 = vld [vmem:[%s7104_s6 + $0xb0] sm:$0xff]   ;;  %v6972_v59 = vld [vmem:[%s9414_s3 + $0xc0] sm:$0xff]  }
  0x1f   : > { %665 = vmatprep.mubr.bf16.mxu1 %v9433_v2  ;;  %2088 = vmatpush1.bf16.msra.mxu0 %v6943_v14  ;;  %v276_v63 = vld [vmem:[%s9413_s2] sm:$0x3] }
  0x20   : > { %1199 = vmatpush1.bf16.msra.mxu1 %v6944_v15  ;;  %2089 = vmatprep.subr.bf16.mxu0 %v9433_v2  ;;  %v7306_v1 = vrot.slane %v276_v63, %v280_v62  ;;  %v7308_v3 = vrot.slane %v276_v63, %v284_v0  ;;  %v6977_v62 = vld [vmem:[%s9414_s3 + $0x128] sm:$0xff]  }
  0x21   : > { %1200 = vmatprep.subr.bf16.mxu1 %v9433_v2 }
  0x23   : > { %2090 = vmatpush1.bf16.msra.mxu0 %v6945_v18 }
  0x24   : > { %1201 = vmatpush1.bf16.msra.mxu1 %v6947_v19  ;;  %2091 = vmatprep.subr.bf16.mxu0 %v9433_v2 }
  0x25   : > { %6408 = vmatmul.mubr.msk.bf16.gmra.mxu0 %vm423_vm0, %v6920_v12  ;;  %1202 = vmatprep.subr.bf16.mxu1 %v9433_v2 }
  0x26   : > { %555 = vmatprep.mubr.bf16.mxu0 %v9433_v2  ;;  %6420 = vmatmul.mubr.msk.bf16.gmra.mxu1 %vm423_vm0, %v6932_v17 }
  0x27   : > { %675 = vmatprep.mubr.bf16.mxu1 %v9433_v2  ;;  %2092 = vmatpush1.bf16.msra.mxu0 %v6948_v20 }
  0x28   : > { %1203 = vmatpush1.bf16.msra.mxu1 %v6950_v21  ;;  %2093 = vmatprep.subr.bf16.mxu0 %v9433_v2 }
  0x29   : > { %1204 = vmatprep.subr.bf16.mxu1 %v9433_v2 }
  0x2b   : > { %2094 = vmatpush1.bf16.msra.mxu0 %v6951_v24  ;;  %v6973_v24 = vld [vmem:[%s9414_s3 + $0x138] sm:$0xff]  }
  0x2c   : > { %1205 = vmatpush1.bf16.msra.mxu1 %v6952_v25  ;;  %2095 = vmatprep.subr.bf16.mxu0 %v9433_v2 }
  0x2d   : > { %6409 = vmatmul.mubr.msk.bf16.gmra.mxu0 %vm423_vm0, %v6921_v16  ;;  %1206 = vmatprep.subr.bf16.mxu1 %v9433_v2 }
  0x2e   : > { %565 = vmatprep.mubr.bf16.mxu0 %v9433_v2  ;;  %6421 = vmatmul.mubr.msk.bf16.gmra.mxu1 %vm423_vm0, %v6933_v23 }
  0x2f   : > { %685 = vmatprep.mubr.bf16.mxu1 %v9433_v2  ;;  %2096 = vmatpush1.bf16.msra.mxu0 %v6953_v27 }
  0x30   : > { %1207 = vmatpush1.bf16.msra.mxu1 %v6954_v28  ;;  %2097 = vmatprep.subr.bf16.mxu0 %v9433_v2 }
  0x31   : > { %1208 = vmatprep.subr.bf16.mxu1 %v9433_v2 }
  0x33   : > { %2098 = vmatpush1.bf16.msra.mxu0 %v6955_v30 }
  0x34   : > { %1209 = vmatpush1.bf16.msra.mxu1 %v6956_v31  ;;  %2099 = vmatprep.subr.bf16.mxu0 %v9433_v2 }
  0x35   : > { %6410 = vmatmul.mubr.msk.bf16.gmra.mxu0 %vm423_vm0, %v6922_v22  ;;  %1210 = vmatprep.subr.bf16.mxu1 %v9433_v2 }
  0x36   : > { %575 = vmatprep.mubr.bf16.mxu0 %v9433_v2  ;;  %6422 = vmatmul.mubr.msk.bf16.gmra.mxu1 %vm423_vm0, %v6934_v29 }
  0x37   : > { %695 = vmatprep.mubr.bf16.mxu1 %v9433_v2  ;;  %2100 = vmatpush2.bf16.msra.mxu0 %v6957_v32 }
  0x38   : > { %1211 = vmatpush2.bf16.msra.mxu1 %v6958_v33  ;;  %2101 = vmatprep.subr.bf16.mxu0 %v9433_v2 }
  0x39   : > { %1212 = vmatprep.subr.bf16.mxu1 %v9433_v2 }
  0x3b   : > { %2102 = vmatpush2.bf16.msra.mxu0 %v6959_v36 }
  0x3c   : > { %1213 = vmatpush2.bf16.msra.mxu1 %v6960_v37  ;;  %2103 = vmatprep.subr.bf16.mxu0 %v9433_v2 }
  0x3d   : > { %6411 = vmatmul.mubr.msk.bf16.gmra.mxu0 %vm423_vm0, %v6923_v26  ;;  %1214 = vmatprep.subr.bf16.mxu1 %v9433_v2 }
  0x3e   : > { %585 = vmatprep.mubr.bf16.mxu0 %v9433_v2  ;;  %6423 = vmatmul.mubr.msk.bf16.gmra.mxu1 %vm423_vm0, %v6935_v35 }
  0x3f   : > { %705 = vmatprep.mubr.bf16.mxu1 %v9433_v2  ;;  %2104 = vmatpush2.bf16.msra.mxu0 %v6962_v38 }
  0x40   : > { %1215 = vmatpush2.bf16.msra.mxu1 %v6961_v39  ;;  %2105 = vmatprep.subr.bf16.mxu0 %v9433_v2 }
  0x41   : > { %1216 = vmatprep.subr.bf16.mxu1 %v9433_v2 }
  0x43   : > { %2106 = vmatpush2.bf16.msra.mxu0 %v6964_v50 }
  0x44   : > { %1217 = vmatpush2.bf16.msra.mxu1 %v6963_v42  ;;  %2107 = vmatprep.subr.bf16.mxu0 %v9433_v2  ;;  %v6975_v42 = vld [vmem:[%s9414_s3 + $0x130] sm:$0xff]  }
  0x45   : > { %6412 = vmatmul.mubr.msk.bf16.gmra.mxu0 %vm423_vm0, %v6924_v34  ;;  %1218 = vmatprep.subr.bf16.mxu1 %v9433_v2 }
  0x46   : > { %595 = vmatprep.mubr.bf16.mxu0 %v9433_v2  ;;  %6424 = vmatmul.mubr.msk.bf16.gmra.mxu1 %vm423_vm0, %v6936_v41 }
  0x47   : > { %715 = vmatprep.mubr.bf16.mxu1 %v9433_v2  ;;  %2108 = vmatpush2.bf16.msra.mxu0 %v6967_v53 }
  0x48   : > { %1219 = vmatpush2.bf16.msra.mxu1 %v6965_v45  ;;  %2109 = vmatprep.subr.bf16.mxu0 %v9433_v2 }
  0x49   : > { %1220 = vmatprep.subr.bf16.mxu1 %v9433_v2 }
  0x4b   : > { %2110 = vmatpush2.bf16.msra.mxu0 %v6969_v55 }
  0x4c   : > { %1221 = vmatpush2.bf16.msra.mxu1 %v6966_v46  ;;  %2111 = vmatprep.subr.bf16.mxu0 %v9433_v2 }
  0x4d   : > { %6413 = vmatmul.mubr.msk.bf16.gmra.mxu0 %vm423_vm0, %v6925_v40  ;;  %1222 = vmatprep.subr.bf16.mxu1 %v9433_v2 }
  0x4e   : > { %605 = vmatprep.mubr.bf16.mxu0 %v9433_v2  ;;  %6425 = vmatmul.mubr.msk.bf16.gmra.mxu1 %vm423_vm0, %v6938_v44 }
  0x4f   : > { %725 = vmatprep.mubr.bf16.mxu1 %v9433_v2  ;;  %2112 = vmatpush2.bf16.msra.mxu0 %v6971_v57 }
  0x50   : > { %1223 = vmatpush2.bf16.msra.mxu1 %v6968_v49  ;;  %2113 = vmatprep.subr.bf16.mxu0 %v9433_v2 }
  0x51   : > { %1224 = vmatprep.subr.bf16.mxu1 %v9433_v2 }
  0x53   : > { %2114 = vmatpush2.bf16.msra.mxu0 %v6972_v59 }
  0x54   : > { %1225 = vmatpush2.bf16.msra.mxu1 %v6970_v51  ;;  %3865 = vmatprep.subr.bf16.mxu0 %v9433_v2 }
  0x55   : > { %6414 = vmatmul.mubr.msk.bf16.gmra.mxu0 %vm423_vm0, %v6926_v43  ;;  %2842 = vmatprep.subr.bf16.mxu1 %v9433_v2 }
  0x56   : > { %615 = vmatprep.mubr.bf16.mxu0 %v9433_v2  ;;  %6426 = vmatmul.mubr.msk.bf16.gmra.mxu1 %vm423_vm0, %v6941_v48 }
  0x57   : > { %735 = vmatprep.mubr.bf16.mxu1 %v9433_v2 }
  0x5d   : > { %6415 = vmatmul.mubr.msk.bf16.gmra.mxu0 %vm423_vm0, %v6927_v47 }
  0x5e   : > { %625 = vmatprep.mubr.bf16.mxu0 %v9433_v2  ;;  %6427 = vmatmul.mubr.msk.bf16.gmra.mxu1 %vm423_vm0, %v6946_v54 }
  0x5f   : > { %745 = vmatprep.mubr.bf16.mxu1 %v9433_v2 }
  0x65   : > { %6416 = vmatmul.mubr.msk.bf16.gmra.mxu0 %vm423_vm0, %v6929_v52 }
  0x66   : > { %635 = vmatprep.mubr.bf16.mxu0 %v9433_v2  ;;  %6428 = vmatmul.mubr.msk.bf16.gmra.mxu1 %vm423_vm0, %v6949_v58 }
  0x6d   : > { %6417 = vmatmul.mubr.msk.bf16.gmra.mxu0 %vm423_vm0, %v6931_v56 }
  0xd5   : > { %v527_v4 = vpop.f32.mrf.mxu0  ;;  %v647_v18 = vpop.f32.mrf.mxu1 }
  0xd6   : > { %v528_v5 = vadd.f32 %v527_v4, %v7306_v1  ;;  %v7316_v20 = vadd.f32 %v647_v18, %v7306_v1 }
  0xd7   : > { %v529_v6 = vpop.f32.mrf.mxu0  ;;  %v649_v25 = vpop.f32.mrf.mxu1 }
  0xd8   : > { %v756_v7 = vmax.f32 %v528_v5, 0.0  ;;  %v530_v8 = vadd.f32 %v529_v6, %v7308_v3  ;;  %v804_v29 = vmax.f32 %v7316_v20, 0.0  ;;  %v7324_v30 = vadd.f32 %v649_v25, %v7308_v3 }
  0xd9   : > { %v531_v9 = vpop.f32.mrf.mxu0  ;;  %v651_v34 = vpop.f32.mrf.mxu1 }
  0xda   : > { %848 = vst [vmem:[#allocation2 + $0x2b0] sm:$0xff] %v756_v7  ;;  %v757_v10 = vmax.f32 %v530_v8, 0.0  ;;  %v532_v11 = vadd.f32 %v531_v9, %v7306_v1  ;;  %896 = vst [vmem:[#allocation2 + $0x2c8] sm:$0xff] %v804_v29  ;;  %v805_v37 = vmax.f32 %v7324_v30, 0.0  ;;  %v7331_v38 = vadd.f32 %v651_v34, %v7306_v1 }
  0xdb   : > { %v533_v12 = vpop.f32.mrf.mxu0  ;;  %v653_v43 = vpop.f32.mrf.mxu1 }
  0xdc   : > { %849 = vst [vmem:[#allocation2 + $0xd0] sm:$0xff] %v757_v10  ;;  %v758_v13 = vmax.f32 %v532_v11, 0.0  ;;  %v534_v14 = vadd.f32 %v533_v12, %v7308_v3  ;;  %897 = vst [vmem:[#allocation2 + $0x1e8] sm:$0xff] %v805_v37  ;;  %v806_v46 = vmax.f32 %v7331_v38, 0.0  ;;  %v7342_v47 = vadd.f32 %v653_v43, %v7308_v3 }
  0xdd   : > { %v537_v15 = vpop.f32.mrf.mxu0 }
  0xde   : > { %850 = vst [vmem:[#allocation2 + $0x10] sm:$0xff] %v758_v13  ;;  %v759_v16 = vmax.f32 %v534_v14, 0.0  ;;  %v538_v17 = vadd.f32 %v537_v15, %v7306_v1  ;;  %v1024_v27 = vpack.c.bf16 %v758_v13, %v756_v7  ;;  %v657_v52 = vpop.f32.mrf.mxu1  ;;  %898 = vst [vmem:[#allocation2 + $0xe8] sm:$0xff] %v806_v46  ;;  %v807_v56 = vmax.f32 %v7342_v47, 0.0 }
  0xdf   : > { %v539_v19 = vpop.f32.mrf.mxu0  ;;  %v7349_v57 = vadd.f32 %v657_v52, %v7306_v1  ;;  %v6976_v52 = vld [vmem:[%s9414_s3 + $0x1b0] sm:$0xff]  }
  0xe0   : > { %851 = vst [vmem:[#allocation2 + $0x48] sm:$0xff] %v759_v16  ;;  %v760_v21 = vmax.f32 %v538_v17, 0.0  ;;  %v540_v22 = vadd.f32 %v539_v19, %v7308_v3  ;;  %v1025_v23 = vpack.c.bf16 %v759_v16, %v757_v10  ;;  %v659_v63 = vpop.f32.mrf.mxu1  ;;  %899 = vst [vmem:[#allocation2 + $0x248] sm:$0xff] %v807_v56 }
  0xe1   : > { %v541_v26 = vpop.f32.mrf.mxu0  ;;  %v1437_v28 = vld [vmem:[#allocation2 + $0x2b0] sm:$0xfe]  ;;  %v808_v7 = vmax.f32 %v7349_v57, 0.0  ;;  %v6993_v57 = vld [vmem:[%s9414_s3 + $0x168] sm:$0xff]  }
  0xe2   : > { %852 = vst [vmem:[#allocation2 + $0x30] sm:$0xff] %v760_v21  ;;  %v761_v31 = vmax.f32 %v540_v22, 0.0  ;;  %v542_v32 = vadd.f32 %v541_v26, %v7306_v1  ;;  %1226 = vmatprep.mubr.bf16.mxu1 %v1025_v23  ;;  %v1523_v33 = vpack.c.bf16 %v758_v13, %v1437_v28  ;;  %v661_v12 = vpop.f32.mrf.mxu1  ;;  %v6979_v23 = vld [vmem:[%s9414_s3 + $0x120] sm:$0xff]  }
  0xe3   : > { %v543_v35 = vpop.f32.mrf.mxu0  ;;  %1227 = vmatmul.mubr.bf16.vlgmr.msra.gmra.mxu1 %v1024_v27  ;;  %v1438_v36 = vld [vmem:[#allocation2 + $0xd0] sm:$0xfe]  ;;  %900 = vst [vmem:[#allocation2 + $0x138] sm:$0xff] %v808_v7  ;;  %v7368_v17 = vadd.f32 %v661_v12, %v7306_v1  ;;  %v6974_v27 = vld [vmem:[%s9414_s3 + $0x1b8] sm:$0xff]  }
  0xe4   : > { %853 = vst [vmem:[#allocation2 + $0xf0] sm:$0xff] %v761_v31  ;;  %v762_v39 = vmax.f32 %v542_v32, 0.0  ;;  %v544_v40 = vadd.f32 %v543_v35, %v7308_v3  ;;  %2843 = vmatpush1.bf16.msra.mxu1 %v6973_v24  ;;  %v1524_v41 = vpack.c.bf16 %v759_v16, %v1438_v36  ;;  %v1604_v45 = vshll.u32 %v1523_v33, 16  ;;  %v663_v24 = vpop.f32.mrf.mxu1 }
  0xe5   : > { %v547_v44 = vpop.f32.mrf.mxu0  ;;  %2844 = vmatprep.subr.bf16.mxu1 %v9433_v2  ;;  %v1602_v51 = vshrl.u32 %v1523_v33, 16  ;;  %v7365_v16 = vadd.f32 %v659_v63, %v7308_v3  ;;  %v7383_v32 = vadd.f32 %v663_v24, %v7308_v3 }
  0xe6   : > { %854 = vst [vmem:[#allocation2 + $0xf8] sm:$0xff] %v762_v39  ;;  %v763_v48 = vmax.f32 %v544_v40, 0.0  ;;  %v548_v49 = vadd.f32 %v547_v44, %v7306_v1  ;;  %v1026_v50 = vpack.c.bf16 %v762_v39, %v760_v21  ;;  %v1616_v54 = vshll.u32 %v1524_v41, 16  ;;  %v667_v39 = vpop.f32.mrf.mxu1 }
  0xe7   : > { %v549_v53 = vpop.f32.mrf.mxu0  ;;  %v1606_v55 = vrot.slane %v1604_v45, 1  ;;  %v1614_v4 = vshrl.u32 %v1524_v41, 16  ;;  %v809_v28 = vmax.f32 %v7365_v16, 0.0  ;;  %v7397_v43 = vadd.f32 %v667_v39, %v7306_v1  ;;  %v6985_v39 = vld [vmem:[%s9414_s3 + $0x108] sm:$0xff]  }
  0xe8   : > { %855 = vst [vmem:[#allocation2 + $0x78] sm:$0xff] %v763_v48  ;;  %v764_v58 = vmax.f32 %v548_v49, 0.0  ;;  %v550_v59 = vadd.f32 %v549_v53, %v7308_v3  ;;  %v7352_v60 = vpack.c.bf16 %v763_v48, %v761_v31  ;;  %v1609_v61 = vshll.u32 %v1026_v50, 16  ;;  %2845 = vmatpush1.bf16.msra.mxu1 %v6975_v42 }
  0xe9   : > { %v551_v0 = vpop.f32.mrf.mxu0  ;;  %v1618_v5 = vrot.slane %v1616_v54, 1  ;;  %v1607_v6 = vor.u32 %v1606_v55, %v1602_v51  ;;  %2846 = vmatprep.subr.bf16.mxu1 %v9433_v2  ;;  %v1625_v15 = vshrl.u32 %v1026_v50, 16  ;;  %v810_v31 = vmax.f32 %v7368_v17, 0.0  ;;  %901 = vst [vmem:[#allocation2 + $0x108] sm:$0xff] %v809_v28  ;;  %v669_v51 = vpop.f32.mrf.mxu1 }
  0xea   : > { %856 = vst [vmem:[#allocation2 + $0x128] sm:$0xff] %v764_v58  ;;  %v765_v8 = vmax.f32 %v550_v59, 0.0  ;;  %v552_v9 = vadd.f32 %v551_v0, %v7306_v1  ;;  %1234 = vmatprep.mubr.bf16.mxu1 %v7352_v60  ;;  %v1621_v10 = vshll.u32 %v7352_v60, 16  ;;  %v1611_v11 = vrot.slane %v1609_v61, 1 }
  0xeb   : > { %v553_v13 = vpop.f32.mrf.mxu0  ;;  %1235 = vmatmul.mubr.bf16.gmra.mxu1 %v1026_v50  ;;  %v1619_v14 = vor.u32 %v1618_v5, %v1614_v4  ;;  %v1633_v22 = vshrl.u32 %v7352_v60, 16  ;;  %902 = vst [vmem:[#allocation2 + $0xd8] sm:$0xff] %v810_v31  ;;  %v811_v42 = vmax.f32 %v7383_v32, 0.0  ;;  %v7401_v44 = vpack.c.bf16 %v807_v56, %v805_v37  ;;  %v6981_v50 = vld [vmem:[%s9414_s3 + $0x118] sm:$0xff]   ;;  %v671_v61 = vpop.f32.mrf.mxu1 }
  0xec   : > { %857 = vst [vmem:[#allocation2 + $0xe0] sm:$0xff] %v765_v8  ;;  %v766_v18 = vmax.f32 %v552_v9, 0.0  ;;  %v554_v19 = vadd.f32 %v553_v13, %v7308_v3  ;;  %v1623_v21 = vrot.slane %v1621_v10, 1  ;;  %2847 = vmatpush1.bf16.msra.mxu1 %v6977_v62  ;;  %v1612_v26 = vsel %vm1600_vm1, %v1607_v6, %v1611_v11  ;;  %v6983_v10 = vld [vmem:[%s9414_s3 + $0x110] sm:$0xff]  }
  0xed   : > { %v557_v25 = vpop.f32.mrf.mxu0  ;;  %2848 = vmatprep.subr.bf16.mxu1 %v9433_v2  ;;  %v1627_v41 = vor.u32 %v1625_v15, %v1611_v11  ;;  %903 = vst [vmem:[#allocation2 + $0x290] sm:$0xff] %v811_v42  ;;  %v812_v53 = vmax.f32 %v7397_v43, 0.0  ;;  %v7421_v54 = vadd.f32 %v669_v51, %v7308_v3  ;;  %v1797_v55 = vshll.u32 %v7401_v44, 16  ;;  %v673_v11 = vpop.f32.mrf.mxu1  ;;  %v6978_v15 = vld [vmem:[%s9414_s3 + $0x1a8] sm:$0xff]  }
  0xee   : > { %858 = vst [vmem:[#allocation2] sm:$0xff] %v766_v18  ;;  %v767_v33 = vmax.f32 %v554_v19, 0.0  ;;  %v7386_v34 = vadd.f32 %v557_v25, %v7306_v1  ;;  %v1624_v35 = vsel %vm1600_vm1, %v1619_v14, %v1623_v21  ;;  %v7389_v36 = vpack.c.bf16 %v766_v18, %v764_v58 }
  0xef   : > { %v559_v40 = vpop.f32.mrf.mxu0  ;;  %2115 = vmatprep.mubr.bf16.mxu0 %v1624_v35  ;;  %v1635_v37 = vor.u32 %v1633_v22, %v1623_v21  ;;  %904 = vst [vmem:[#allocation2 + $0x38] sm:$0xff] %v812_v53  ;;  %v813_v4 = vmax.f32 %v7421_v54, 0.0  ;;  %v7436_v5 = vadd.f32 %v671_v61, %v7306_v1  ;;  %v7442_v12 = vrot.slane %v1797_v55, 1  ;;  %v6987_v61 = vld [vmem:[%s9414_s3 + $0x100] sm:$0xff]  }
  0xf0   : > { %859 = vst [vmem:[#allocation2 + $0x298] sm:$0xff] %v767_v33  ;;  %v768_v45 = vmax.f32 %v7386_v34, 0.0  ;;  %v7405_v47 = vadd.f32 %v559_v40, %v7308_v3  ;;  %2116 = vmatmul.mubr.bf16.vlgmr.msra.gmra.mxu0 %v1612_v26  ;;  %v7407_v48 = vpack.c.bf16 %v767_v33, %v765_v8  ;;  %v1629_v49 = vshll.u32 %v7389_v36, 16  ;;  %2849 = vmatpush1.bf16.msra.mxu1 %v6979_v23  ;;  %v677_v26 = vpop.f32.mrf.mxu1 }
  0xf1   : > { %v561_v30 = vpop.f32.mrf.mxu0  ;;  %3866 = vmatpush1.bf16.msra.mxu0 %v6974_v27  ;;  %2850 = vmatprep.subr.bf16.mxu1 %v9433_v2  ;;  %v1641_v0 = vshrl.u32 %v7389_v36, 16  ;;  %905 = vst [vmem:[#allocation2 + $0x178] sm:$0xff] %v813_v4  ;;  %v814_v18 = vmax.f32 %v7436_v5, 0.0  ;;  %v7453_v19 = vadd.f32 %v673_v11, %v7308_v3  ;;  %v7459_v21 = vpack.c.bf16 %v806_v46, %v804_v29 }
  0xf2   : > { %860 = vst [vmem:[#allocation2 + $0x160] sm:$0xff] %v768_v45  ;;  %v769_v56 = vmax.f32 %v7405_v47, 0.0  ;;  %v562_v58 = vadd.f32 %v561_v30, %v7306_v1  ;;  %1242 = vmatprep.mubr.bf16.mxu1 %v7407_v48  ;;  %v1637_v59 = vshll.u32 %v7407_v48, 16  ;;  %v1631_v60 = vrot.slane %v1629_v49, 1  ;;  %3867 = vmatprep.subr.bf16.mxu0 %v9433_v2  ;;  %v679_v16 = vpop.f32.mrf.mxu1 }
  0xf3   : > { %v563_v62 = vpop.f32.mrf.mxu0  ;;  %1243 = vmatmul.mubr.bf16.gmra.mxu1 %v7389_v36  ;;  %v1649_v63 = vshrl.u32 %v7407_v48, 16  ;;  %906 = vst [vmem:[#allocation2 + $0xc8] sm:$0xff] %v814_v18  ;;  %v815_v20 = vmax.f32 %v7453_v19, 0.0  ;;  %v7472_v29 = vadd.f32 %v677_v26, %v7306_v1  ;;  %v7478_v38 = vpack.c.bf16 %v811_v42, %v809_v28  ;;  %v6980_v28 = vld [vmem:[%s9414_s3 + $0x1a0] sm:$0xff]  }
  0xf4   : > { %861 = vst [vmem:[#allocation2 + $0x170] sm:$0xff] %v769_v56  ;;  %v770_v6 = vmax.f32 %v562_v58, 0.0  ;;  %v564_v8 = vadd.f32 %v563_v62, %v7308_v3  ;;  %v1639_v9 = vrot.slane %v1637_v59, 1  ;;  %2851 = vmatpush1.bf16.msra.mxu1 %v6981_v50  ;;  %v1632_v14 = vsel %vm1600_vm1, %v1627_v41, %v1631_v60  ;;  %v681_v51 = vpop.f32.mrf.mxu1 }
  0xf5   : > { %v567_v13 = vpop.f32.mrf.mxu0  ;;  %3868 = vmatpush1.bf16.msra.mxu0 %v6976_v52  ;;  %2852 = vmatprep.subr.bf16.mxu1 %v9433_v2  ;;  %v1643_v33 = vor.u32 %v1641_v0, %v1631_v60  ;;  %907 = vst [vmem:[#allocation2 + $0x1d8] sm:$0xff] %v815_v20  ;;  %v816_v41 = vmax.f32 %v7472_v29, 0.0  ;;  %v7496_v42 = vadd.f32 %v679_v16, %v7308_v3  ;;  %v1809_v11 = vshrl.u32 %v7401_v44, 16  ;;  %v6989_v16 = vld [vmem:[%s9414_s3 + $0x178] sm:$0xff]  }
  0xf6   : > { %862 = vst [vmem:[#allocation2 + $0x120] sm:$0xff] %v770_v6  ;;  %v771_v22 = vmax.f32 %v564_v8, 0.0  ;;  %v7462_v23 = vadd.f32 %v567_v13, %v7306_v1  ;;  %v1640_v24 = vsel %vm1600_vm1, %v1635_v37, %v1639_v9  ;;  %v7465_v25 = vpack.c.bf16 %v770_v6, %v768_v45  ;;  %3869 = vmatprep.subr.bf16.mxu0 %v9433_v2  ;;  %v683_v62 = vpop.f32.mrf.mxu1  ;;  %v6982_v8 = vld [vmem:[%s9414_s3 + $0x198] sm:$0xff]  }
  0xf7   : > { %v569_v27 = vpop.f32.mrf.mxu0  ;;  %2123 = vmatprep.mubr.bf16.mxu0 %v1640_v24  ;;  %v1651_v32 = vor.u32 %v1649_v63, %v1639_v9  ;;  %v1789_v45 = vshll.u32 %v7459_v21, 16  ;;  %908 = vst [vmem:[#allocation2 + $0x1f8] sm:$0xff] %v816_v41  ;;  %v817_v55 = vmax.f32 %v7496_v42, 0.0 }
  0xf8   : > { %863 = vst [vmem:[#allocation2 + $0x2a8] sm:$0xff] %v771_v22  ;;  %v772_v46 = vmax.f32 %v7462_v23, 0.0  ;;  %v7482_v34 = vadd.f32 %v569_v27, %v7308_v3  ;;  %2124 = vmatmul.mubr.bf16.gmra.mxu0 %v1632_v14  ;;  %v1031_v35 = vpack.c.bf16 %v771_v22, %v769_v56  ;;  %v1645_v36 = vshll.u32 %v7465_v25, 16  ;;  %2853 = vmatpush1.bf16.msra.mxu1 %v6983_v10  ;;  %v687_v23 = vpop.f32.mrf.mxu1 }
  0xf9   : > { %v571_v40 = vpop.f32.mrf.mxu0  ;;  %3870 = vmatpush1.bf16.msra.mxu0 %v6978_v15  ;;  %2854 = vmatprep.subr.bf16.mxu1 %v9433_v2  ;;  %v1657_v52 = vshrl.u32 %v7465_v25, 16  ;;  %v7508_v56 = vadd.f32 %v681_v51, %v7306_v1  ;;  %v7514_v63 = vrot.slane %v1789_v45, 1  ;;  %909 = vst [vmem:[#allocation2 + $0x148] sm:$0xff] %v817_v55  ;;  %v7525_v10 = vadd.f32 %v683_v62, %v7308_v3 }
  0xfa   : > { %864 = vst [vmem:[#allocation2 + $0x240] sm:$0xff] %v772_v46  ;;  %v773_v47 = vmax.f32 %v7482_v34, 0.0  ;;  %v572_v48 = vadd.f32 %v571_v40, %v7306_v1  ;;  %1250 = vmatprep.mubr.bf16.mxu1 %v1031_v35  ;;  %v1653_v49 = vshll.u32 %v1031_v35, 16  ;;  %v1647_v50 = vrot.slane %v1645_v36, 1  ;;  %3871 = vmatprep.subr.bf16.mxu0 %v9433_v2 }
  0xfb   : > { %v573_v30 = vpop.f32.mrf.mxu0  ;;  %1251 = vmatmul.mubr.bf16.gmra.mxu1 %v7465_v25  ;;  %v1665_v37 = vshrl.u32 %v1031_v35, 16  ;;  %v818_v9 = vmax.f32 %v7508_v56, 0.0  ;;  %v819_v27 = vmax.f32 %v7525_v10, 0.0 }
  0xfc   : > { %865 = vst [vmem:[#allocation2 + $0x18] sm:$0xff] %v773_v47  ;;  %v774_v58 = vmax.f32 %v572_v48, 0.0  ;;  %v574_v59 = vadd.f32 %v573_v30, %v7308_v3  ;;  %v1655_v60 = vrot.slane %v1653_v49, 1  ;;  %2855 = vmatpush1.bf16.msra.mxu1 %v6985_v39  ;;  %v1648_v6 = vsel %vm1600_vm1, %v1643_v33, %v1647_v50  ;;  %v689_v39 = vpop.f32.mrf.mxu1 }
  0xfd   : > { %v577_v0 = vpop.f32.mrf.mxu0  ;;  %3872 = vmatpush1.bf16.msra.mxu0 %v6980_v28  ;;  %2856 = vmatprep.subr.bf16.mxu1 %v9433_v2  ;;  %v1659_v26 = vor.u32 %v1657_v52, %v1647_v50  ;;  %910 = vst [vmem:[#allocation2 + $0x260] sm:$0xff] %v818_v9  ;;  %v7539_v33 = vadd.f32 %v687_v23, %v7306_v1  ;;  %911 = vst [vmem:[#allocation2 + $0x268] sm:$0xff] %v819_v27  ;;  %v1813_v48 = vshll.u32 %v7478_v38, 16 }
  0xfe   : > { %866 = vst [vmem:[#allocation2 + $0x60] sm:$0xff] %v774_v58  ;;  %v775_v13 = vmax.f32 %v574_v59, 0.0  ;;  %v7529_v14 = vadd.f32 %v577_v0, %v7306_v1  ;;  %v1656_v15 = vsel %vm1600_vm1, %v1651_v32, %v1655_v60  ;;  %v7532_v22 = vpack.c.bf16 %v774_v58, %v772_v46  ;;  %3873 = vmatprep.subr.bf16.mxu0 %v9433_v2  ;;  %v6984_v32 = vld [vmem:[%s9414_s3 + $0x190] sm:$0xff]  }
  0xff   : > { %v579_v24 = vpop.f32.mrf.mxu0  ;;  %2131 = vmatprep.mubr.bf16.mxu0 %v1656_v15  ;;  %v1667_v25 = vor.u32 %v1665_v37, %v1655_v60  ;;  %v9427_v28 = vmax.f32 %v7539_v33, 0.0  ;;  %v7558_v45 = vadd.f32 %v689_v39, %v7308_v3  ;;  %v691_v37 = vpop.f32.mrf.mxu1 }
 0x100   : > { %867 = vst [vmem:[#allocation2 + $0x220] sm:$0xff] %v775_v13  ;;  %v776_v34 = vmax.f32 %v7529_v14, 0.0  ;;  %v7543_v46 = vadd.f32 %v579_v24, %v7308_v3  ;;  %2132 = vmatmul.mubr.bf16.gmra.mxu0 %v1648_v6  ;;  %v7545_v35 = vpack.c.bf16 %v775_v13, %v773_v47  ;;  %v1661_v36 = vshll.u32 %v7532_v22, 16  ;;  %2857 = vmatpush1.bf16.msra.mxu1 %v6987_v61  ;;  %v6991_v13 = vld [vmem:[%s9414_s3 + $0x170] sm:$0xff]  }
 0x101   : > { %v581_v40 = vpop.f32.mrf.mxu0  ;;  %3874 = vmatpush1.bf16.msra.mxu0 %v6982_v8  ;;  %2858 = vmatprep.subr.bf16.mxu1 %v9433_v2  ;;  %v1811_v47 = vor.u32 %v1809_v11, %v7442_v12  ;;  %v1673_v58 = vshrl.u32 %v7532_v22, 16  ;;  %912 = vst [vmem:[#allocation2 + $0x118] sm:$0xff] %v9427_v28  ;;  %v9431_v59 = vmax.f32 %v7558_v45, 0.0  ;;  %v7574_v60 = vadd.f32 %v691_v37, %v7306_v1  ;;  %v693_v11 = vpop.f32.mrf.mxu1 }
 0x102   : > { %868 = vst [vmem:[#allocation2 + $0xa0] sm:$0xff] %v776_v34  ;;  %v777_v49 = vmax.f32 %v7543_v46, 0.0  ;;  %v582_v50 = vadd.f32 %v581_v40, %v7306_v1  ;;  %1258 = vmatprep.mubr.bf16.mxu1 %v7545_v35  ;;  %v1669_v51 = vshll.u32 %v7545_v35, 16  ;;  %v1663_v30 = vrot.slane %v1661_v36, 1  ;;  %3875 = vmatprep.subr.bf16.mxu0 %v9433_v2 }
 0x103   : > { %v583_v52 = vpop.f32.mrf.mxu0  ;;  %1259 = vmatmul.mubr.bf16.gmra.mxu1 %v7532_v22  ;;  %v7576_v61 = vrot.slane %v1813_v48, 1  ;;  %v1681_v8 = vshrl.u32 %v7545_v35, 16  ;;  %v6986_v22 = vld [vmem:[%s9414_s3 + $0x188] sm:$0xff]   ;;  %913 = vst [vmem:[#allocation2 + $0x228] sm:$0xff] %v9431_v59  ;;  %v9423_v23 = vmax.f32 %v7574_v60, 0.0  ;;  %v7591_v24 = vadd.f32 %v693_v11, %v7308_v3 }
 0x104   : > { %869 = vst [vmem:[#allocation2 + $0x28] sm:$0xff] %v777_v49  ;;  %v778_v62 = vmax.f32 %v582_v50, 0.0  ;;  %v584_v0 = vadd.f32 %v583_v52, %v7308_v3  ;;  %v1671_v6 = vrot.slane %v1669_v51, 1  ;;  %2859 = vmatpush2.bf16.msra.mxu1 %v6989_v16  ;;  %v1664_v15 = vsel %vm1600_vm1, %v1659_v26, %v1663_v30  ;;  %v697_v16 = vpop.f32.mrf.mxu1 }
 0x105   : > { %v587_v14 = vpop.f32.mrf.mxu0  ;;  %3876 = vmatpush1.bf16.msra.mxu0 %v6984_v32  ;;  %v7595_v46 = vsel %vm1600_vm1, %v1811_v47, %v7576_v61  ;;  %2860 = vmatprep.subr.bf16.mxu1 %v9433_v2  ;;  %v1675_v32 = vor.u32 %v1673_v58, %v1663_v30  ;;  %914 = vst [vmem:[#allocation2 + $0x198] sm:$0xff] %v9423_v23  ;;  %v9430_v47 = vmax.f32 %v7591_v24, 0.0  ;;  %v9448_v29 = vmax.f32 %v7558_v45, 0.0 }
 0x106   : > { %870 = vst [vmem:[#allocation2 + $0x1a8] sm:$0xff] %v778_v62  ;;  %v779_v26 = vmax.f32 %v584_v0, 0.0  ;;  %v7599_v35 = vadd.f32 %v587_v14, %v7306_v1  ;;  %v1672_v36 = vsel %vm1600_vm1, %v1667_v25, %v1671_v6  ;;  %v1034_v39 = vpack.c.bf16 %v778_v62, %v776_v34  ;;  %3877 = vmatprep.subr.bf16.mxu0 %v9433_v2  ;;  %v699_v37 = vpop.f32.mrf.mxu1 }
 0x107   : > { %v589_v40 = vpop.f32.mrf.mxu0  ;;  %2139 = vmatprep.mubr.bf16.mxu0 %v1672_v36  ;;  %v7607_v48 = vadd.f32 %v697_v16, %v7306_v1  ;;  %v7613_v25 = vpack.c.bf16 %v810_v31, %v808_v7  ;;  %v1683_v17 = vor.u32 %v1681_v8, %v1671_v6  ;;  %v6988_v7 = vld [vmem:[%s9414_s3 + $0x180] sm:$0xff]   ;;  %915 = vst [vmem:[#allocation2 + $0x110] sm:$0xff] %v9430_v47 }
 0x108   : > { %871 = vst [vmem:[#allocation2 + $0x218] sm:$0xff] %v779_v26  ;;  %v780_v34 = vmax.f32 %v7599_v35, 0.0  ;;  %v7617_v50 = vadd.f32 %v589_v40, %v7308_v3  ;;  %2140 = vmatmul.mubr.bf16.gmra.mxu0 %v1664_v15  ;;  %v7619_v51 = vpack.c.bf16 %v779_v26, %v777_v49  ;;  %v1677_v30 = vshll.u32 %v1034_v39, 16  ;;  %2861 = vmatpush2.bf16.msra.mxu1 %v6991_v13  ;;  %v701_v11 = vpop.f32.mrf.mxu1  ;;  %v6995_v36 = vld [vmem:[%s9414_s3 + $0x160] sm:$0xff]  }
 0x109   : > { %v591_v52 = vpop.f32.mrf.mxu0  ;;  %3878 = vmatpush1.bf16.msra.mxu0 %v6986_v22  ;;  %v9418_v31 = vmax.f32 %v7607_v48, 0.0  ;;  %v7631_v49 = vadd.f32 %v699_v37, %v7308_v3  ;;  %v7637_v58 = vpack.c.bf16 %v815_v20, %v813_v4  ;;  %2862 = vmatprep.subr.bf16.mxu1 %v9433_v2  ;;  %v1689_v19 = vshrl.u32 %v1034_v39, 16 }
 0x10a   : > { %872 = vst [vmem:[#allocation2 + $0x250] sm:$0xff] %v780_v34  ;;  %v781_v62 = vmax.f32 %v7617_v50, 0.0  ;;  %v592_v0 = vadd.f32 %v591_v52, %v7306_v1  ;;  %1266 = vmatprep.mubr.bf16.mxu1 %v7619_v51  ;;  %v1685_v6 = vshll.u32 %v7619_v51, 16  ;;  %v1679_v8 = vrot.slane %v1677_v30, 1  ;;  %3879 = vmatprep.subr.bf16.mxu0 %v9433_v2  ;;  %v703_v35 = vpop.f32.mrf.mxu1  ;;  %v6990_v50 = vld [vmem:[%s9414_s3 + $0x1f8] sm:$0xff]  }
 0x10b   : > { %v593_v54 = vpop.f32.mrf.mxu0  ;;  %1267 = vmatmul.mubr.bf16.gmra.mxu1 %v1034_v39  ;;  %916 = vst [vmem:[#allocation2 + $0x278] sm:$0xff] %v9418_v31  ;;  %v9422_v4 = vmax.f32 %v7631_v49, 0.0  ;;  %v7649_v20 = vadd.f32 %v701_v11, %v7306_v1  ;;  %v1801_v13 = vshrl.u32 %v7459_v21, 16  ;;  %v1697_v26 = vshrl.u32 %v7619_v51, 16 }
 0x10c   : > { %873 = vst [vmem:[#allocation2 + $0x230] sm:$0xff] %v781_v62  ;;  %v782_v14 = vmax.f32 %v592_v0, 0.0  ;;  %v594_v15 = vadd.f32 %v593_v54, %v7308_v3  ;;  %v1687_v22 = vrot.slane %v1685_v6, 1  ;;  %2863 = vmatpush2.bf16.msra.mxu1 %v6993_v57  ;;  %v1680_v16 = vsel %vm1600_vm1, %v1675_v32, %v1679_v8 }
 0x10d   : > { %v597_v39 = vpop.f32.mrf.mxu0  ;;  %v7658_v40 = vor.u32 %v1689_v19, %v1679_v8  ;;  %3880 = vmatpush1.bf16.msra.mxu0 %v6988_v7  ;;  %917 = vst [vmem:[#allocation2 + $0x1a0] sm:$0xff] %v9422_v4  ;;  %v9417_v51 = vmax.f32 %v7649_v20, 0.0  ;;  %v7667_v30 = vadd.f32 %v703_v35, %v7308_v3  ;;  %2864 = vmatprep.subr.bf16.mxu1 %v9433_v2  ;;  %v707_v7 = vpop.f32.mrf.mxu1  ;;  %v1805_v54 = vshll.u32 %v7613_v25, 16  ;;  %v6997_v35 = vld [vmem:[%s9414_s3 + $0x158] sm:$0xff]  }
 0x10e   : > { %874 = vst [vmem:[#allocation2 + $0x40] sm:$0xff] %v782_v14  ;;  %v783_v37 = vmax.f32 %v594_v15, 0.0  ;;  %v7671_v32 = vadd.f32 %v597_v39, %v7306_v1  ;;  %v1688_v57 = vsel %vm1600_vm1, %v1683_v17, %v1687_v22  ;;  %v7674_v52 = vpack.c.bf16 %v782_v14, %v780_v34  ;;  %3881 = vmatprep.subr.bf16.mxu0 %v9433_v2 }
 0x10f   : > { %v599_v0 = vpop.f32.mrf.mxu0  ;;  %2147 = vmatprep.mubr.bf16.mxu0 %v1688_v57  ;;  %918 = vst [vmem:[#allocation2 + $0x168] sm:$0xff] %v9417_v51  ;;  %v9420_v6 = vmax.f32 %v7667_v30, 0.0  ;;  %v7681_v8 = vadd.f32 %v707_v7, %v7306_v1  ;;  %v1803_v11 = vor.u32 %v1801_v13, %v7514_v63  ;;  %v709_v15 = vpop.f32.mrf.mxu1  ;;  %v1699_v39 = vor.u32 %v1697_v26, %v1687_v22 }
 0x110   : > { %875 = vst [vmem:[#allocation2 + $0x150] sm:$0xff] %v783_v37  ;;  %v784_v34 = vmax.f32 %v7671_v32, 0.0  ;;  %v7687_v17 = vadd.f32 %v599_v0, %v7308_v3  ;;  %2148 = vmatmul.mubr.bf16.gmra.mxu0 %v1680_v16  ;;  %v7689_v19 = vpack.c.bf16 %v783_v37, %v781_v62  ;;  %v1693_v14 = vshll.u32 %v7674_v52, 16  ;;  %2865 = vmatpush2.bf16.msra.mxu1 %v6995_v36  ;;  %v6992_v62 = vld [vmem:[%s9414_s3 + $0x1f0] sm:$0xff]  }
 0x111   : > { %v601_v13 = vpop.f32.mrf.mxu0  ;;  %3882 = vmatpush2.bf16.msra.mxu0 %v6990_v50  ;;  %919 = vst [vmem:[#allocation2 + $0x1f0] sm:$0xff] %v9420_v6  ;;  %v9419_v32 = vmax.f32 %v7681_v8, 0.0  ;;  %v7699_v16 = vadd.f32 %v709_v15, %v7308_v3  ;;  %v7704_v36 = vrot.slane %v1805_v54, 1  ;;  %2866 = vmatprep.subr.bf16.mxu1 %v9433_v2  ;;  %v711_v57 = vpop.f32.mrf.mxu1  ;;  %v1705_v0 = vshrl.u32 %v7674_v52, 16 }
 0x112   : > { %876 = vst [vmem:[#allocation2 + $0x90] sm:$0xff] %v784_v34  ;;  %v785_v22 = vmax.f32 %v7687_v17, 0.0  ;;  %v602_v26 = vadd.f32 %v601_v13, %v7306_v1  ;;  %1274 = vmatprep.mubr.bf16.mxu1 %v7689_v19  ;;  %v1701_v50 = vshll.u32 %v7689_v19, 16  ;;  %v1695_v37 = vrot.slane %v1693_v14, 1  ;;  %3883 = vmatprep.subr.bf16.mxu0 %v9433_v2 }
 0x113   : > { %v603_v7 = vpop.f32.mrf.mxu0  ;;  %1275 = vmatmul.mubr.bf16.gmra.mxu1 %v7674_v52  ;;  %920 = vst [vmem:[#allocation2 + $0x158] sm:$0xff] %v9419_v32  ;;  %v9421_v54 = vmax.f32 %v7699_v16, 0.0  ;;  %v7718_v17 = vadd.f32 %v711_v57, %v7306_v1  ;;  %v7722_v15 = vsel %vm1600_vm1, %v1803_v11, %v7704_v36  ;;  %v1713_v31 = vshrl.u32 %v7689_v19, 16  ;;  %v713_v52 = vpop.f32.mrf.mxu1  ;;  %v6999_v32 = vld [vmem:[%s9414_s3 + $0x150] sm:$0xff]  }
 0x114   : > { %877 = vst [vmem:[#allocation2 + $0x2d8] sm:$0xff] %v785_v22  ;;  %v786_v14 = vmax.f32 %v602_v26, 0.0  ;;  %v604_v13 = vadd.f32 %v603_v7, %v7308_v3  ;;  %v1703_v51 = vrot.slane %v1701_v50, 1  ;;  %2867 = vmatpush2.bf16.msra.mxu1 %v6997_v35  ;;  %v1696_v57 = vsel %vm1600_vm1, %v7658_v40, %v1695_v37  ;;  %v6994_v35 = vld [vmem:[%s9414_s3 + $0x1e8] sm:$0xff]  }
 0x115   : > { %v607_v6 = vpop.f32.mrf.mxu0  ;;  %921 = vst [vmem:[#allocation2 + $0x20] sm:$0xff] %v9421_v54  ;;  %v9424_v11 = vmax.f32 %v7718_v17, 0.0  ;;  %3884 = vmatpush2.bf16.msra.mxu0 %v6992_v62  ;;  %v7735_v26 = vadd.f32 %v713_v52, %v7308_v3  ;;  %v1825_v19 = vshrl.u32 %v7478_v38, 16  ;;  %2868 = vmatprep.subr.bf16.mxu1 %v9433_v2  ;;  %v717_v62 = vpop.f32.mrf.mxu1  ;;  %v1707_v4 = vor.u32 %v1705_v0, %v1695_v37  ;;  %v7001_v0 = vld [vmem:[%s9414_s3 + $0x148] sm:$0xff]  }
 0x116   : > { %878 = vst [vmem:[#allocation2 + $0x288] sm:$0xff] %v786_v14  ;;  %v787_v50 = vmax.f32 %v604_v13, 0.0  ;;  %v7743_v40 = vadd.f32 %v607_v6, %v7306_v1  ;;  %v1704_v7 = vsel %vm1600_vm1, %v1699_v39, %v1703_v51  ;;  %v7746_v54 = vpack.c.bf16 %v786_v14, %v784_v34  ;;  %3885 = vmatprep.subr.bf16.mxu0 %v9433_v2 }
 0x117   : > { %v609_v52 = vpop.f32.mrf.mxu0  ;;  %2155 = vmatprep.mubr.bf16.mxu0 %v1704_v7  ;;  %922 = vst [vmem:[#allocation2 + $0x180] sm:$0xff] %v9424_v11  ;;  %v9425_v23 = vmax.f32 %v7735_v26, 0.0  ;;  %v1827_v13 = vor.u32 %v1825_v19, %v7576_v61  ;;  %v1829_v6 = vshll.u32 %v7637_v58, 16  ;;  %v719_v37 = vpop.f32.mrf.mxu1  ;;  %v1715_v61 = vor.u32 %v1713_v31, %v1703_v51 }
 0x118   : > { %879 = vst [vmem:[#allocation2 + $0xb0] sm:$0xff] %v787_v50  ;;  %v788_v39 = vmax.f32 %v7743_v40, 0.0  ;;  %v7756_v34 = vadd.f32 %v609_v52, %v7308_v3  ;;  %2156 = vmatmul.mubr.bf16.gmra.mxu0 %v1696_v57  ;;  %v1039_v14 = vpack.c.bf16 %v787_v50, %v785_v22  ;;  %v1709_v7 = vshll.u32 %v7746_v54, 16  ;;  %2869 = vmatpush2.bf16.msra.mxu1 %v6999_v32  ;;  %v6996_v32 = vld [vmem:[%s9414_s3 + $0x1e0] sm:$0xff]  }
 0x119   : > { %v611_v11 = vpop.f32.mrf.mxu0  ;;  %923 = vst [vmem:[#allocation2 + $0x258] sm:$0xff] %v9425_v23  ;;  %v7764_v19 = vrot.slane %v1829_v6, 1  ;;  %v7767_v40 = vadd.f32 %v717_v62, %v7306_v1  ;;  %v7773_v22 = vpack.c.bf16 %v814_v18, %v812_v53  ;;  %3886 = vmatpush2.bf16.msra.mxu0 %v6994_v35  ;;  %2870 = vmatprep.subr.bf16.mxu1 %v9433_v2  ;;  %v721_v43 = vpop.f32.mrf.mxu1  ;;  %v1721_v5 = vshrl.u32 %v7746_v54, 16 }
 0x11a   : > { %880 = vst [vmem:[#allocation2 + $0x1b8] sm:$0xff] %v788_v39  ;;  %v789_v31 = vmax.f32 %v7756_v34, 0.0  ;;  %v612_v51 = vadd.f32 %v611_v11, %v7306_v1  ;;  %1282 = vmatprep.mubr.bf16.mxu1 %v1039_v14  ;;  %v1717_v57 = vshll.u32 %v1039_v14, 16  ;;  %v1711_v50 = vrot.slane %v1709_v7, 1  ;;  %3887 = vmatprep.subr.bf16.mxu0 %v9433_v2 }
 0x11b   : > { %v613_v53 = vpop.f32.mrf.mxu0  ;;  %1283 = vmatmul.mubr.bf16.gmra.mxu1 %v7746_v54  ;;  %v7786_v18 = vsel %vm1600_vm1, %v1827_v13, %v7764_v19  ;;  %v9426_v35 = vmax.f32 %v7767_v40, 0.0  ;;  %v7793_v11 = vpack.c.bf16 %v819_v27, %v817_v55  ;;  %v1729_v34 = vshrl.u32 %v1039_v14, 16  ;;  %v723_v7 = vpop.f32.mrf.mxu1  ;;  %v7003_v54 = vld [vmem:[%s9414_s3 + $0x140] sm:$0xff]   ;;  %v6998_v27 = vld [vmem:[%s9414_s3 + $0x1d8] sm:$0xff]  }
 0x11c   : > { %881 = vst [vmem:[#allocation2 + $0x50] sm:$0xff] %v789_v31  ;;  %v790_v62 = vmax.f32 %v612_v51, 0.0  ;;  %v614_v52 = vadd.f32 %v613_v53, %v7308_v3  ;;  %v1719_v6 = vrot.slane %v1717_v57, 1  ;;  %2871 = vmatpush2.bf16.msra.mxu1 %v7001_v0  ;;  %v1712_v23 = vsel %vm1600_vm1, %v1707_v4, %v1711_v50 }
 0x11d   : > { %v617_v13 = vpop.f32.mrf.mxu0  ;;  %924 = vst [vmem:[#allocation2 + $0x68] sm:$0xff] %v9426_v35  ;;  %v7803_v42 = vadd.f32 %v719_v37, %v7308_v3  ;;  %v7806_v55 = vadd.f32 %v721_v43, %v7306_v1  ;;  %v1817_v10 = vshrl.u32 %v7613_v25, 16  ;;  %3888 = vmatpush2.bf16.msra.mxu0 %v6996_v32  ;;  %2872 = vmatprep.subr.bf16.mxu1 %v9433_v2  ;;  %v727_v51 = vpop.f32.mrf.mxu1 }
 0x11e   : > { %882 = vst [vmem:[#allocation2 + $0x188] sm:$0xff] %v790_v62  ;;  %v791_v4 = vmax.f32 %v614_v52, 0.0  ;;  %v618_v14 = vadd.f32 %v617_v13, %v7306_v1  ;;  %v1720_v0 = vsel %vm1600_vm1, %v1715_v61, %v1719_v6  ;;  %v7815_v37 = vpack.c.bf16 %v790_v62, %v788_v39  ;;  %3889 = vmatprep.subr.bf16.mxu0 %v9433_v2 }
 0x11f   : > { %v619_v57 = vpop.f32.mrf.mxu0  ;;  %2163 = vmatprep.mubr.bf16.mxu0 %v1720_v0  ;;  %v1731_v32 = vor.u32 %v1729_v34, %v1719_v6  ;;  %v1723_v43 = vor.u32 %v1721_v5, %v1711_v50  ;;  %v9429_v53 = vmax.f32 %v7803_v42, 0.0  ;;  %v9428_v35 = vmax.f32 %v7806_v55, 0.0  ;;  %v7824_v61 = vpop.f32.mrf.mxu1  ;;  %v7000_v6 = vld [vmem:[%s9414_s3 + $0x1d0] sm:$0xff]  }
 0x120   : > { %883 = vst [vmem:[#allocation2 + $0x208] sm:$0xff] %v791_v4  ;;  %v792_v28 = vmax.f32 %v618_v14, 0.0  ;;  %v620_v52 = vadd.f32 %v619_v57, %v7308_v3  ;;  %2164 = vmatmul.mubr.bf16.gmra.mxu0 %v1712_v23  ;;  %v7821_v13 = vpack.c.bf16 %v791_v4, %v789_v31  ;;  %v1725_v39 = vshll.u32 %v7815_v37, 16  ;;  %2873 = vmatpush2.bf16.msra.mxu1 %v7003_v54 }
 0x121   : > { %v621_v62 = vpop.f32.mrf.mxu0  ;;  %925 = vst [vmem:[#allocation2 + $0x200] sm:$0xff] %v9429_v53  ;;  %926 = vst [vmem:[#allocation2 + $0x140] sm:$0xff] %v9428_v35  ;;  %v1819_v50 = vor.u32 %v1817_v10, %v7704_v36  ;;  %v1821_v5 = vshll.u32 %v7773_v22, 16  ;;  %v7833_v23 = vadd.f32 %v723_v7, %v7308_v3  ;;  %v1841_v31 = vshrl.u32 %v7637_v58, 16  ;;  %3890 = vmatpush2.bf16.msra.mxu0 %v6998_v27  ;;  %v731_v7 = vpop.f32.mrf.mxu1 }
 0x122   : > { %4624 = vmatprep.subr.bf16.mxu1 %v9433_v2  ;;  %884 = vst [vmem:[#allocation2 + $0x8] sm:$0xff] %v792_v28  ;;  %v793_v34 = vmax.f32 %v620_v52, 0.0  ;;  %v622_v54 = vadd.f32 %v621_v62, %v7306_v1  ;;  %1290 = vmatprep.mubr.bf16.mxu1 %v7821_v13  ;;  %v1733_v36 = vshll.u32 %v7821_v13, 16  ;;  %v1727_v10 = vrot.slane %v1725_v39, 1 }
 0x123   : > { %3891 = vmatprep.subr.bf16.mxu0 %v9433_v2  ;;  %v623_v4 = vpop.f32.mrf.mxu0  ;;  %1291 = vmatmul.mubr.bf16.gmra.mxu1 %v7815_v37  ;;  %v1745_v27 = vshrl.u32 %v7821_v13, 16  ;;  %v1737_v14 = vshrl.u32 %v7815_v37, 16  ;;  %v7847_v0 = vrot.slane %v1821_v5, 1  ;;  %v9432_v57 = vmax.f32 %v7833_v23, 0.0  ;;  %v7852_v53 = vpop.f32.mrf.mxu1 }
 0x124   : > { %885 = vst [vmem:[#allocation2 + $0x190] sm:$0xff] %v793_v34  ;;  %v794_v52 = vmax.f32 %v622_v54, 0.0  ;;  %v624_v62 = vadd.f32 %v623_v4, %v7308_v3  ;;  %v1735_v35 = vrot.slane %v1733_v36, 1  ;;  %v1843_v39 = vor.u32 %v1841_v31, %v7764_v19  ;;  %v7002_v19 = vld [vmem:[%s9414_s3 + $0x1c8] sm:$0xff]  }
 0x125   : > { %v627_v47 = vpop.f32.mrf.mxu0  ;;  %v1728_v59 = vsel %vm1600_vm1, %v1723_v43, %v1727_v10  ;;  %v7857_v13 = vsel %vm1600_vm1, %v1819_v50, %v7847_v0  ;;  %927 = vst [vmem:[#allocation2 + $0x80] sm:$0xff] %v9432_v57  ;;  %v1845_v37 = vshll.u32 %v7793_v11, 16  ;;  %v7863_v5 = vadd.f32 %v727_v51, %v7306_v1  ;;  %3892 = vmatpush2.bf16.msra.mxu0 %v7000_v6  ;;  %v7870_v36 = vpop.f32.mrf.mxu1 }
 0x126   : > { %9446 = vst [vmem:[#allocation4_spill] sm:$0xff] %v7857_v13  ;;  %886 = vst [vmem:[#allocation2 + $0xb8] sm:$0xff] %v794_v52  ;;  %v795_v31 = vmax.f32 %v624_v62, 0.0  ;;  %v628_v43 = vadd.f32 %v627_v47, %v7306_v1  ;;  %v1736_v50 = vsel %vm1600_vm1, %v1731_v32, %v1735_v35  ;;  %v1042_v54 = vpack.c.bf16 %v794_v52, %v792_v28 }
 0x127   : > { %3893 = vmatprep.subr.bf16.mxu0 %v9433_v2  ;;  %v629_v4 = vpop.f32.mrf.mxu0  ;;  %2171 = vmatprep.mubr.bf16.mxu0 %v1736_v50  ;;  %v1739_v51 = vor.u32 %v1737_v14, %v1727_v10  ;;  %v7873_v57 = vrot.slane %v1845_v37, 1  ;;  %v9435_v6 = vmax.f32 %v7863_v5, 0.0  ;;  %v7880_v62 = vpack.c.bf16 %v818_v9, %v816_v41  ;;  %v7903_v14 = vpop.f32.mrf.mxu1 }
 0x128   : > { %887 = vst [vmem:[#allocation2 + $0xc0] sm:$0xff] %v795_v31  ;;  %v796_v47 = vmax.f32 %v628_v43, 0.0  ;;  %v630_v28 = vadd.f32 %v629_v4, %v7308_v3  ;;  %2172 = vmatmul.mubr.bf16.gmra.mxu0 %v1728_v59  ;;  %v1043_v32 = vpack.c.bf16 %v795_v31, %v793_v34  ;;  %v1741_v52 = vshll.u32 %v1042_v54, 16  ;;  %v7004_v59 = vld [vmem:[%s9414_s3 + $0x1c0] sm:$0xff]  }
 0x129   : > { %v631_v2 = vpop.f32.mrf.mxu0  ;;  %v1747_v50 = vor.u32 %v1745_v27, %v1735_v35  ;;  %v7885_v10 = vsel %vm1600_vm1, %v1843_v39, %v7873_v57  ;;  %928 = vst [vmem:[#allocation2 + $0x2c0] sm:$0xff] %v9435_v6  ;;  %v9449_v41 = vmax.f32 %v7591_v24, 0.0  ;;  %v7897_v9 = vadd.f32 %v7824_v61, %v7308_v3  ;;  %3894 = vmatpush2.bf16.msra.mxu0 %v7002_v19 }
 0x12a   : > { %9447 = vst [vmem:[#allocation5_spill] sm:$0xff] %v7885_v10  ;;  %888 = vst [vmem:[#allocation2 + $0x1c8] sm:$0xff] %v796_v47  ;;  %v797_v35 = vmax.f32 %v630_v28, 0.0  ;;  %v632_v34 = vadd.f32 %v631_v2, %v7306_v1  ;;  %1298 = vmatprep.mubr.bf16.mxu1 %v1043_v32  ;;  %v1749_v27 = vshll.u32 %v1043_v32, 16  ;;  %v1743_v45 = vrot.slane %v1741_v52, 1 }
 0x12b   : > { %v7893_v56 = vpack.c.bf16 %v9449_v41, %v9448_v29  ;;  %v9450_v24 = vmov 0   ;;  %v633_v39 = vpop.f32.mrf.mxu0  ;;  %1299 = vmatmul.mubr.bf16.gmra.mxu1 %v1042_v54  ;;  %v1753_v61 = vshrl.u32 %v1042_v54, 16  ;;  %v9436_v37 = vmax.f32 %v7897_v9, 0.0 }
 0x12c   : > { %3895 = vmatprep.subr.bf16.mxu0 %v9450_v24  ;;  %v7908_v19 = vadd.f32 %v731_v7, %v7306_v1  ;;  %v1833_v31 = vshrl.u32 %v7773_v22, 16  ;;  %889 = vst [vmem:[#allocation2 + $0x280] sm:$0xff] %v797_v35  ;;  %v798_v43 = vmax.f32 %v632_v34, 0.0  ;;  %v634_v2 = vadd.f32 %v633_v39, %v7308_v3  ;;  %v741_v39 = vpop.f32.mrf.mxu1 }
 0x12d   : > { %v1751_v4 = vrot.slane %v1749_v27, 1  ;;  %v1761_v28 = vshrl.u32 %v1043_v32, 16  ;;  %v637_v52 = vpop.f32.mrf.mxu0  ;;  %v1744_v29 = vsel %vm1600_vm1, %v1739_v51, %v1743_v45  ;;  %929 = vst [vmem:[#allocation2 + $0x2b8] sm:$0xff] %v9436_v37  ;;  %v1837_v7 = vshll.u32 %v7880_v62, 16  ;;  %3896 = vmatpush2.bf16.msra.mxu0 %v7004_v59 }
 0x12e   : > { %v9437_v54 = vmax.f32 %v7908_v19, 0.0  ;;  %v1835_v41 = vor.u32 %v1833_v31, %v7847_v0  ;;  %890 = vst [vmem:[#allocation2 + $0x100] sm:$0xff] %v798_v43  ;;  %v799_v6 = vmax.f32 %v634_v2, 0.0  ;;  %v638_v34 = vadd.f32 %v637_v52, %v7306_v1  ;;  %5647 = vmatprep.subr.bf16.mxu0 %v9450_v24  ;;  %v743_v10 = vpop.f32.mrf.mxu1 }
 0x12f   : > { %v1752_v27 = vsel %vm1600_vm1, %v1747_v50, %v1751_v4  ;;  %v1044_v32 = vpack.c.bf16 %v798_v43, %v796_v47  ;;  %v639_v51 = vpop.f32.mrf.mxu0  ;;  %v1755_v37 = vor.u32 %v1753_v61, %v1743_v45  ;;  %v1839_v0 = vrot.slane %v1837_v7, 1 }
 0x130   : > { %2179 = vmatprep.mubr.bf16.mxu0 %v1752_v27  ;;  %930 = vst [vmem:[#allocation2 + $0x70] sm:$0xff] %v9437_v54  ;;  %v7925_v59 = vadd.f32 %v7852_v53, %v7308_v3  ;;  %v1857_v31 = vshrl.u32 %v7793_v11, 16  ;;  %891 = vst [vmem:[#allocation2 + $0x1b0] sm:$0xff] %v799_v6  ;;  %v800_v2 = vmax.f32 %v638_v34, 0.0  ;;  %v640_v47 = vadd.f32 %v639_v51, %v7308_v3 }
 0x131   : > { %2180 = vmatmul.mubr.bf16.gmra.mxu0 %v1744_v29  ;;  %v1045_v50 = vpack.c.bf16 %v799_v6, %v797_v35  ;;  %v1757_v43 = vshll.u32 %v1044_v32, 16  ;;  %v641_v52 = vpop.f32.mrf.mxu0  ;;  %v1763_v27 = vor.u32 %v1761_v28, %v1751_v4  ;;  %v1769_v45 = vshrl.u32 %v1044_v32, 16 }
 0x132   : > { %v7930_v61 = vsel %vm1600_vm1, %v1835_v41, %v1839_v0  ;;  %v9439_v7 = vmax.f32 %v7925_v59, 0.0  ;;  %892 = vst [vmem:[#allocation2 + $0xa8] sm:$0xff] %v800_v2  ;;  %v801_v53 = vmax.f32 %v640_v47, 0.0  ;;  %v642_v54 = vadd.f32 %v641_v52, %v7306_v1 }
 0x133   : > { %9451 = vst [vmem:[#allocation6_spill] sm:$0xff] %v7930_v61  ;;  %1306 = vmatprep.mubr.bf16.mxu1 %v1045_v50  ;;  %v1765_v24 = vshll.u32 %v1045_v50, 16  ;;  %v1759_v34 = vrot.slane %v1757_v43, 1  ;;  %v643_v51 = vpop.f32.mrf.mxu0  ;;  %v1859_v6 = vor.u32 %v1857_v31, %v7873_v57  ;;  %v1861_v35 = vshll.u32 %v7893_v56, 16 }
 0x134   : > { %1307 = vmatmul.mubr.bf16.gmra.mxu1 %v1044_v32  ;;  %931 = vst [vmem:[#allocation2 + $0x238] sm:$0xff] %v9439_v7  ;;  %v738_v4 = vadd.f32 %v7870_v36, %v7306_v1  ;;  %v9452_v28 = vmax.f32 %v7539_v33, 0.0  ;;  %v9453_v29 = vmax.f32 %v7574_v60, 0.0  ;;  %893 = vst [vmem:[#allocation2 + $0x2a0] sm:$0xff] %v801_v53  ;;  %v802_v47 = vmax.f32 %v642_v54, 0.0 }
 0x135   : > { %v644_v32 = vadd.f32 %v643_v51, %v7308_v3  ;;  %v1767_v43 = vrot.slane %v1765_v24, 1  ;;  %v1777_v52 = vshrl.u32 %v1045_v50, 16  ;;  %v1760_v7 = vsel %vm1600_vm1, %v1755_v37, %v1759_v34 }
 0x136   : > { %v7944_v41 = vpack.c.bf16 %v9453_v29, %v9452_v28  ;;  %v1863_v57 = vrot.slane %v1861_v35, 1  ;;  %v840_v31 = vmax.f32 %v738_v4, 0.0  ;;  %v9454_v61 = vmax.f32 %v7631_v49, 0.0  ;;  %894 = vst [vmem:[#allocation2 + $0x210] sm:$0xff] %v802_v47  ;;  %v747_v29 = vpop.f32.mrf.mxu1 }
 0x137   : > { %v9455_v36 = vmax.f32 %v7667_v30, 0.0  ;;  %v803_v33 = vmax.f32 %v644_v32, 0.0  ;;  %v1768_v60 = vsel %vm1600_vm1, %v1763_v27, %v1767_v43  ;;  %v1046_v28 = vpack.c.bf16 %v802_v47, %v800_v2 }
 0x138   : > { %v1771_v54 = vor.u32 %v1769_v45, %v1759_v34  ;;  %2187 = vmatprep.mubr.bf16.mxu0 %v1768_v60  ;;  %v7956_v24 = vsel %vm1600_vm1, %v1859_v6, %v1863_v57  ;;  %932 = vst [vmem:[#allocation2 + $0x130] sm:$0xff] %v840_v31  ;;  %v740_v37 = vadd.f32 %v7903_v14, %v7308_v3  ;;  %v1849_v30 = vshrl.u32 %v7880_v62, 16 }
 0x139   : > { %v7952_v13 = vpack.c.bf16 %v9455_v36, %v9454_v61  ;;  %v742_v49 = vadd.f32 %v741_v39, %v7306_v1  ;;  %895 = vst [vmem:[#allocation2 + $0x1e0] sm:$0xff] %v803_v33  ;;  %2188 = vmatmul.mubr.bf16.gmra.mxu0 %v1760_v7  ;;  %v1047_v50 = vpack.c.bf16 %v803_v33, %v801_v53  ;;  %v1773_v27 = vshll.u32 %v1046_v28, 16  ;;  %v749_v39 = vpop.f32.mrf.mxu1 }
 0x13a   : > { %v1779_v61 = vor.u32 %v1777_v52, %v1767_v43  ;;  %v1853_v2 = vshll.u32 %v7944_v41, 16  ;;  %v841_v45 = vmax.f32 %v740_v37, 0.0  ;;  %v1851_v51 = vor.u32 %v1849_v30, %v1839_v0 }
 0x13b   : > { %v842_v34 = vmax.f32 %v742_v49, 0.0  ;;  %v744_v6 = vadd.f32 %v743_v10, %v7308_v3  ;;  %1314 = vmatprep.mubr.bf16.mxu1 %v1047_v50  ;;  %v1781_v35 = vshll.u32 %v1047_v50, 16  ;;  %v1775_v4 = vrot.slane %v1773_v27, 1  ;;  %v751_v36 = vpop.f32.mrf.mxu1 }
 0x13c   : > { %v1785_v14 = vshrl.u32 %v1046_v28, 16  ;;  %v1855_v47 = vrot.slane %v1853_v2, 1  ;;  %1315 = vmatmul.mubr.bf16.gmra.mxu1 %v1046_v28  ;;  %933 = vst [vmem:[#allocation2 + $0x58] sm:$0xff] %v841_v45  ;;  %v1873_v53 = vshrl.u32 %v7893_v56, 16  ;;  %v1877_v32 = vshll.u32 %v7952_v13, 16 }
 0x13d   : > { %934 = vst [vmem:[#allocation2 + $0x98] sm:$0xff] %v842_v34  ;;  %v843_v7 = vmax.f32 %v744_v6, 0.0  ;;  %v748_v43 = vadd.f32 %v747_v29, %v7306_v1  ;;  %1322 = vmatprep.mubr.bf16.mxu1 %v7401_v44  ;;  %v1783_v0 = vrot.slane %v1781_v35, 1  ;;  %v1776_v10 = vsel %vm1600_vm1, %v1771_v54, %v1775_v4  ;;  %v753_v35 = vpop.f32.mrf.mxu1 }
 0x13e   : > { %v1793_v52 = vshrl.u32 %v1047_v50, 16  ;;  %v7970_v31 = vsel %vm1600_vm1, %v1851_v51, %v1855_v47  ;;  %v1875_v33 = vor.u32 %v1873_v53, %v1863_v57  ;;  %v1879_v60 = vrot.slane %v1877_v32, 1 }
 0x13f   : > { %935 = vst [vmem:[#allocation2 + $0x270] sm:$0xff] %v843_v7  ;;  %v844_v28 = vmax.f32 %v748_v43, 0.0  ;;  %v9456_v37 = vmax.f32 %v7607_v48, 0.0  ;;  %v9457_v49 = vmax.f32 %v7649_v20, 0.0  ;;  %v1784_v44 = vsel %vm1600_vm1, %v1779_v61, %v1783_v0 }
 0x140   : > { %v1795_v29 = vor.u32 %v1793_v52, %v1783_v0  ;;  %v1787_v27 = vor.u32 %v1785_v14, %v1775_v4  ;;  %v9458_v54 = vmax.f32 %v7699_v16, 0.0  ;;  %v9459_v50 = vmax.f32 %v7735_v26, 0.0  ;;  %2195 = vmatprep.mubr.bf16.mxu0 %v1784_v44 }
 0x141   : > { %v7976_v30 = vpack.c.bf16 %v9457_v49, %v9456_v37  ;;  %v7986_v57 = vsel %vm1600_vm1, %v1875_v33, %v1879_v60  ;;  %936 = vst [vmem:[#allocation2 + $0x1d0] sm:$0xff] %v844_v28  ;;  %v750_v48 = vadd.f32 %v749_v39, %v7308_v3  ;;  %v1865_v20 = vshrl.u32 %v7944_v41, 16  ;;  %2196 = vmatmul.mubr.bf16.gmra.mxu0 %v1776_v10 }
 0x142   : > { %v7983_v2 = vpack.c.bf16 %v9459_v50, %v9458_v54  ;;  %v1800_v61 = vsel %vm1600_vm1, %v1795_v29, %v7442_v12  ;;  %v1889_v16 = vshrl.u32 %v7952_v13, 16  ;;  %v9460_v34 = vmax.f32 %v7681_v8, 0.0 }
 0x143   : > { %v1869_v45 = vshll.u32 %v7976_v30, 16  ;;  %v9461_v51 = vmax.f32 %v7718_v17, 0.0  ;;  %2203 = vmatprep.mubr.bf16.mxu0 %v1800_v61  ;;  %v845_v4 = vmax.f32 %v750_v48, 0.0  ;;  %v1867_v14 = vor.u32 %v1865_v20, %v1855_v47 }
 0x144   : > { %v1893_v26 = vshll.u32 %v7983_v2, 16  ;;  %v9462_v7 = vmax.f32 %v7803_v42, 0.0  ;;  %v9463_v53 = vmax.f32 %v7833_v23, 0.0  ;;  %v1891_v32 = vor.u32 %v1889_v16, %v1879_v60  ;;  %1323 = vmatmul.mubr.bf16.gmra.mxu1 %v7459_v21 }
 0x145   : > { %v7999_v6 = vpack.c.bf16 %v9461_v51, %v9460_v34  ;;  %v1871_v39 = vrot.slane %v1869_v45, 1  ;;  %v752_v0 = vadd.f32 %v751_v36, %v7306_v1  ;;  %v1881_v8 = vshrl.u32 %v7976_v30, 16  ;;  %937 = vst [vmem:[#allocation2 + $0x88] sm:$0xff] %v845_v4  ;;  %1330 = vmatprep.mubr.bf16.mxu1 %v7478_v38 }
 0x146   : > { %v8005_v12 = vpack.c.bf16 %v9463_v53, %v9462_v7  ;;  %v1895_v43 = vrot.slane %v1893_v26, 1  ;;  %v754_v10 = vadd.f32 %v753_v35, %v7308_v3  ;;  %v1905_v42 = vshrl.u32 %v7983_v2, 16  ;;  %v1521_v7 = vld [vmem:[#allocation2 + $0x130] sm:$0x1] }
 0x147   : > { %v1872_v17 = vsel %vm1600_vm1, %v1867_v14, %v1871_v39  ;;  %v1885_v47 = vshll.u32 %v7999_v6, 16  ;;  %v846_v52 = vmax.f32 %v752_v0, 0.0  ;;  %v1883_v33 = vor.u32 %v1881_v8, %v1871_v39  ;;  %v9472_v14 = vld [vmem:[#allocation6_spill] sm:$0xff]  ;;  %v2414_v39 = vld [vmem:[#allocation2 + $0xf8] sm:$0xff] }
 0x148   : > { %v1896_v23 = vsel %vm1600_vm1, %v1891_v32, %v1895_v43  ;;  %v1909_v1 = vshll.u32 %v8005_v12, 16  ;;  %v847_v60 = vmax.f32 %v754_v10, 0.0  ;;  %v1907_v21 = vor.u32 %v1905_v42, %v1895_v43  ;;  %v2419_v32 = vld [vmem:[#allocation2 + $0x298] sm:$0xff]  ;;  %v3170_v43 = vld [vmem:[#allocation2 + $0x48] sm:$0x80] }
 0x149   : > { %v1887_v36 = vrot.slane %v1885_v47, 1  ;;  %v9464_v28 = vmax.f32 %v7767_v40, 0.0  ;;  %v9465_v37 = vmax.f32 %v7806_v55, 0.0  ;;  %938 = vst [vmem:[#allocation2 + $0x1c0] sm:$0xff] %v846_v52  ;;  %v9466_v44 = vmax.f32 %v7897_v9, 0.0 }
 0x14a   : > { %v1911_v3 = vrot.slane %v1909_v1, 1  ;;  %v9467_v38 = vmax.f32 %v7925_v59, 0.0  ;;  %v1897_v54 = vshrl.u32 %v7999_v6, 16  ;;  %v1921_v50 = vshrl.u32 %v8005_v12, 16  ;;  %939 = vst [vmem:[#allocation2 + $0x2d0] sm:$0xff] %v847_v60 }
 0x14b   : > { %v1062_v49 = vpack.c.bf16 %v9465_v37, %v9464_v28  ;;  %v1792_v48 = vsel %vm1600_vm1, %v1787_v27, %v7514_v63  ;;  %v1888_v40 = vsel %vm1600_vm1, %v1883_v33, %v1887_v36  ;;  %v9468_v20 = vmax.f32 %v7863_v5, 0.0  ;;  %v2410_v0 = vld [vmem:[#allocation2 + $0x10] sm:$0xc0] }
 0x14c   : > { %v8025_v29 = vpack.c.bf16 %v9467_v38, %v9466_v44  ;;  %v9469_v45 = vmax.f32 %v7908_v19, 0.0  ;;  %2204 = vmatmul.mubr.bf16.gmra.mxu0 %v1792_v48  ;;  %v1912_v59 = vsel %vm1600_vm1, %v1907_v21, %v1911_v3  ;;  %v1899_v61 = vor.u32 %v1897_v54, %v1887_v36  ;;  %1331 = vmatmul.mubr.bf16.gmra.mxu1 %v7613_v25  ;;  %v9470_v25 = vld [vmem:[#allocation4_spill] sm:$0xff]  ;;  %v7005_v48 = vld [vmem:[%s9414_s3 + $0x238] sm:$0xff]  }
 0x14d   : > { %v1901_v55 = vshll.u32 %v1062_v49, 16  ;;  %v1923_v16 = vor.u32 %v1921_v50, %v1911_v3  ;;  %2211 = vmatprep.mubr.bf16.mxu0 %v7595_v46  ;;  %v1913_v27 = vshrl.u32 %v1062_v49, 16  ;;  %1338 = vmatprep.mubr.bf16.mxu1 %v7637_v58  ;;  %v9471_v58 = vld [vmem:[#allocation5_spill] sm:$0xff]  ;;  %v1565_v42 = vpack.c.bf16 %v1521_v7, %v1521_v7  ;;  %v2420_v44 = vld [vmem:[#allocation2 + $0x160] sm:$0xff]  ;;  %v2425_v50 = vld [vmem:[#allocation2 + $0x18] sm:$0xff] }
 0x14e   : > { %v8036_v9 = vpack.c.bf16 %v9469_v45, %v9468_v20  ;;  %v1925_v26 = vshll.u32 %v8025_v29, 16  ;;  %v2418_v45 = vld [vmem:[#allocation2] sm:$0xff] }
 0x14f   : > { %v1903_v63 = vrot.slane %v1901_v55, 1  ;;  %v1933_v3 = vshll.u32 %v1565_v42, 16  ;;  %v2427_v7 = vld [vmem:[#allocation2 + $0x220] sm:$0xff] }
 0x150   : > { %v8041_v34 = vrot.slane %v1925_v26, 1  ;;  %v1917_v51 = vshll.u32 %v8036_v9, 16  ;;  %v1929_v60 = vshrl.u32 %v8036_v9, 16  ;;  %v8095_v26 = vpack.c.bf16 %v2420_v44, %v2418_v45 }
 0x151   : > { %v1904_v5 = vsel %vm1600_vm1, %v1899_v61, %v1903_v63  ;;  %v1915_v19 = vor.u32 %v1913_v27, %v1903_v63  ;;  %v2423_v63 = vld [vmem:[#allocation2 + $0x2a8] sm:$0xff]  ;;  %v1935_v27 = vrot.slane %v1933_v3, 1 }
 0x152   : > { %v1928_v35 = vsel %vm1600_vm1, %v1923_v16, %v8041_v34  ;;  %v8049_v4 = vrot.slane %v1917_v51, 1 }
 0x154   : > { %v8053_v46 = vsel %vm1600_vm1, %v1915_v19, %v8049_v4  ;;  %2212 = vmatmul.mubr.bf16.gmra.mxu0 %v7722_v15  ;;  %1339 = vmatmul.mubr.bf16.gmra.mxu1 %v7773_v22  ;;  %v2417_v15 = vld [vmem:[#allocation2 + $0xe0] sm:$0xff]  ;;  %v1522_v22 = vld [vmem:[#allocation2 + $0x58] sm:$0x1]  ;;  %v1931_v20 = vor.u32 %v1929_v60, %v8049_v4 }
 0x155   : > { %2219 = vmatprep.mubr.bf16.mxu0 %v7786_v18  ;;  %1346 = vmatprep.mubr.bf16.mxu1 %v7793_v11  ;;  %v2413_v18 = vld [vmem:[#allocation2 + $0xf0] sm:$0xff]  ;;  %v2415_v11 = vld [vmem:[#allocation2 + $0x78] sm:$0xff] }
 0x15c   : > { %2220 = vmatmul.mubr.bf16.gmra.mxu0 %v9470_v25  ;;  %1347 = vmatmul.mubr.bf16.gmra.mxu1 %v7880_v62  ;;  %v2411_v62 = vld [vmem:[#allocation2 + $0x48] sm:$0xc0] }
 0x15d   : > { %2227 = vmatprep.mubr.bf16.mxu0 %v9471_v58  ;;  %1354 = vmatprep.mubr.bf16.mxu1 %v7893_v56  ;;  %v1566_v56 = vpack.c.bf16 %v1522_v22, %v1522_v22  ;;  %v2624_v22 = vrot.slane %v8095_v26, 3 }
 0x164   : > { %2228 = vmatmul.mubr.bf16.gmra.mxu0 %v9472_v14  ;;  %1355 = vmatmul.mubr.bf16.gmra.mxu1 %v7944_v41  ;;  %v2497_v41 = vpack.c.bf16 %v2413_v18, %v2411_v62  ;;  %v9473_v14 = vmov 0  }
 0x165   : > { %2235 = vmatprep.mubr.bf16.mxu0 %v7956_v24  ;;  %1362 = vmatprep.mubr.bf16.mxu1 %v7952_v13  ;;  %v2499_v13 = vpack.c.bf16 %v2417_v15, %v2415_v11  ;;  %v2416_v24 = vld [vmem:[#allocation2 + $0x128] sm:$0xff] }
 0x166   : > { %v2621_v53 = vrot.slane %v2497_v41, 3  ;;  %v2429_v41 = vld [vmem:[#allocation2 + $0x28] sm:$0xff] }
 0x167   : > { %v3359_v33 = vshrl.u32 %v2499_v13, 16  ;;  %v3362_v1 = vshll.u32 %v2499_v13, 16 }
 0x169   : > { %v3364_v54 = vrot.slane %v3362_v1, 4 }
 0x16c   : > { %2236 = vmatmul.mubr.bf16.gmra.mxu0 %v7970_v31  ;;  %1363 = vmatmul.mubr.bf16.gmra.mxu1 %v7976_v30  ;;  %v2622_v31 = vrot.slane %v2499_v13, 3  ;;  %v2421_v30 = vld [vmem:[#allocation2 + $0x170] sm:$0xff] }
 0x16d   : > { %2243 = vmatprep.mubr.bf16.mxu0 %v7986_v57  ;;  %1370 = vmatprep.mubr.bf16.mxu1 %v7983_v2  ;;  %v1937_v2 = vshrl.u32 %v8025_v29, 16  ;;  %v1941_v57 = vshll.u32 %v1566_v56, 16  ;;  %v8077_v8 = vpack.c.bf16 %v2421_v30, %v2419_v32  ;;  %v2424_v56 = vld [vmem:[#allocation2 + $0x240] sm:$0xff]  ;;  %v8118_v32 = vpack.c.bf16 %v2429_v41, %v2427_v7 }
 0x16e   : > { %v2623_v47 = vsel %vm2617_vm2, %v2621_v53, %v2622_v31 }
 0x16f   : > { %v1943_v52 = vrot.slane %v1941_v57, 1  ;;  %v2626_v21 = vrot.slane %v8077_v8, 3  ;;  %v3380_v4 = vshll.u32 %v8077_v8, 16 }
 0x171   : > { %v3382_v30 = vrot.slane %v3380_v4, 4 }
 0x174   : > { %2244 = vmatmul.mubr.bf16.gmra.mxu0 %v1872_v17  ;;  %1371 = vmatmul.mubr.bf16.gmra.mxu1 %v7999_v6  ;;  %v2412_v6 = vld [vmem:[#allocation2 + $0x30] sm:$0xff]  ;;  %v3256_v17 = vpack.c.bf16 %v2413_v18, %v3170_v43  ;;  %v1936_v18 = vsel %vm1600_vm1, %v1931_v20, %v1935_v27  ;;  %v2431_v20 = vld [vmem:[#allocation2 + $0x218] sm:$0xff] }
 0x175   : > { %2251 = vmatprep.mubr.bf16.mxu0 %v1896_v23  ;;  %1378 = vmatprep.mubr.bf16.mxu1 %v8005_v12  ;;  %v8075_v12 = vpack.c.bf16 %v2416_v24, %v2414_v39  ;;  %v2496_v10 = vpack.c.bf16 %v2412_v6, %v2410_v0  ;;  %v1939_v23 = vor.u32 %v1937_v2, %v8041_v34  ;;  %v7009_v2 = vld [vmem:[%s9414_s3 + $0x228] sm:$0xff]   ;;  %v2422_v39 = vld [vmem:[#allocation2 + $0x120] sm:$0xff]  ;;  %v7015_v27 = vld [vmem:[%s9414_s3 + $0x210] sm:$0xff]  }
 0x176   : > { %v3351_v28 = vshrl.u32 %v3256_v17, 16  ;;  %v3354_v37 = vshll.u32 %v3256_v17, 16  ;;  %v8097_v34 = vpack.c.bf16 %v2425_v50, %v2423_v63  ;;  %v3368_v17 = vshrl.u32 %v8095_v26, 16  ;;  %v7008_v50 = vld [vmem:[%s9414_s3 + $0x2b0] sm:$0xff]  }
 0x177   : > { %v2619_v36 = vrot.slane %v8075_v12, 3  ;;  %v1944_v38 = vsel %vm1600_vm1, %v1939_v23, %v1943_v52  ;;  %v3342_v51 = vshrl.u32 %v8075_v12, 16  ;;  %v7011_v52 = vld [vmem:[%s9414_s3 + $0x220] sm:$0xff]   ;;  %v3416_v63 = vshll.u32 %v8118_v32, 16 }
 0x178   : > { %v3353_v61 = vrot.slane %v3351_v28, 3  ;;  %v3356_v16 = vrot.slane %v3354_v37, 4  ;;  %v2630_v11 = vrot.slane %v8097_v34, 3  ;;  %v3395_v42 = vshrl.u32 %v8097_v34, 16  ;;  %v2428_v37 = vld [vmem:[#allocation2 + $0xa0] sm:$0xff] }
 0x179   : > { %v3344_v13 = vrot.slane %v3342_v51, 3  ;;  %v2625_v53 = vsel %vm2617_vm2, %v2619_v36, %v2624_v22  ;;  %v3398_v23 = vshll.u32 %v8097_v34, 16  ;;  %v7010_v34 = vld [vmem:[%s9414_s3 + $0x2a8] sm:$0xff]  }
 0x17a   : > { %v3357_v15 = vor.u32 %v3356_v16, %v3353_v61  ;;  %v2631_v43 = vsel %vm2617_vm2, %v2626_v21, %v2630_v11  ;;  %v3397_v3 = vrot.slane %v3395_v42, 3 }
 0x17b   : > { %v3400_v44 = vrot.slane %v3398_v23, 4 }
 0x17c   : > { %2252 = vmatmul.mubr.bf16.gmra.mxu0 %v1888_v40  ;;  %1379 = vmatmul.mubr.bf16.gmra.mxu1 %v1062_v49  ;;  %v2618_v49 = vrot.slane %v2496_v10, 3  ;;  %v3169_v40 = vld [vmem:[#allocation2 + $0x10] sm:$0x80] }
 0x17d   : > { %2259 = vmatprep.mubr.bf16.mxu0 %v1912_v59  ;;  %1386 = vmatprep.mubr.bf16.mxu1 %v8025_v29  ;;  %v3361_v29 = vrot.slane %v3359_v33, 3  ;;  %v2627_v59 = vsel %vm2617_vm2, %v2622_v31, %v2626_v21  ;;  %v3370_v21 = vrot.slane %v3368_v17, 3  ;;  %v3401_v16 = vor.u32 %v3400_v44, %v3397_v3 }
 0x17e   : > { %v2620_v55 = vsel %vm2617_vm2, %v2618_v49, %v2619_v36  ;;  %v2634_v36 = vrot.slane %v8118_v32, 3 }
 0x17f   : > { %v3365_v19 = vor.u32 %v3364_v54, %v3361_v29  ;;  %v7013_v29 = vld [vmem:[%s9414_s3 + $0x218] sm:$0xff]   ;;  %v2426_v54 = vld [vmem:[#allocation2 + $0x60] sm:$0xff] }
 0x181   : > { %v3366_v24 = vsel %vm3332_vm3, %v3357_v15, %v3365_v19 }
 0x184   : > { %2260 = vmatmul.mubr.bf16.gmra.mxu0 %v1904_v5  ;;  %1387 = vmatmul.mubr.bf16.gmra.mxu1 %v8036_v9  ;;  %v3255_v9 = vpack.c.bf16 %v2412_v6, %v3169_v40  ;;  %v3345_v5 = vshll.u32 %v8075_v12, 16  ;;  %v8116_v12 = vpack.c.bf16 %v2424_v56, %v2422_v39  ;;  %v2635_v40 = vsel %vm2617_vm2, %v2630_v11, %v2634_v36  ;;  %v2430_v11 = vld [vmem:[#allocation2 + $0x1a8] sm:$0xff] }
 0x185   : > { %2267 = vmatprep.mubr.bf16.mxu0 %v1928_v35  ;;  %2874 = vmatprep.mubr.bf16.mxu1 %v2623_v47  ;;  %v3377_v35 = vshrl.u32 %v8077_v8, 16  ;;  %v3371_v47 = vshll.u32 %v8095_v26, 16  ;;  %v7006_v8 = vld [vmem:[%s9414_s3 + $0x2b8] sm:$0xff]   ;;  %v3413_v26 = vshrl.u32 %v8118_v32, 16 }
 0x186   : > { %v3334_v25 = vshrl.u32 %v3255_v9, 16  ;;  %v3337_v58 = vshll.u32 %v3255_v9, 16  ;;  %v3347_v62 = vrot.slane %v3345_v5, 4  ;;  %v2628_v1 = vrot.slane %v8116_v12, 3 }
 0x187   : > { %v3379_v31 = vrot.slane %v3377_v35, 3  ;;  %v3373_v28 = vrot.slane %v3371_v47, 4  ;;  %v3389_v61 = vshll.u32 %v8116_v12, 16  ;;  %v3415_v15 = vrot.slane %v3413_v26, 3 }
 0x188   : > { %v3336_v57 = vrot.slane %v3334_v25, 3  ;;  %v3339_v6 = vrot.slane %v3337_v58, 4  ;;  %v3348_v0 = vor.u32 %v3347_v62, %v3344_v13  ;;  %v2437_v25 = vld [vmem:[#allocation2 + $0x2d8] sm:$0xff]  ;;  %v2435_v13 = vld [vmem:[#allocation2 + $0x150] sm:$0xff]  ;;  %v7012_v62 = vld [vmem:[%s9414_s3 + $0x2a0] sm:$0xff]  }
 0x189   : > { %v3383_v10 = vor.u32 %v3382_v30, %v3379_v31  ;;  %v3374_v45 = vor.u32 %v3373_v28, %v3370_v21  ;;  %v3391_v4 = vrot.slane %v3389_v61, 4  ;;  %v2434_v28 = vld [vmem:[#allocation2 + $0x40] sm:$0xff]  ;;  %v7018_v61 = vld [vmem:[%s9414_s3 + $0x288] sm:$0xff]  }
 0x18a   : > { %v3340_v33 = vor.u32 %v3339_v6, %v3336_v57 }
 0x18b   : > { %v3384_v49 = vsel %vm3332_vm3, %v3365_v19, %v3383_v10  ;;  %v3375_v5 = vsel %vm3332_vm3, %v3348_v0, %v3374_v45  ;;  %v3402_v58 = vsel %vm3332_vm3, %v3383_v10, %v3401_v16 }
 0x18c   : > { %2268 = vmatmul.mubr.bf16.gmra.mxu0 %v8053_v46  ;;  %2875 = vmatmul.mubr.bf16.vlgmr.msra.gmra.mxu1 %v2620_v55  ;;  %v7007_v46 = vld [vmem:[%s9414_s3 + $0x230] sm:$0xff]   ;;  %v3349_v60 = vsel %vm3332_vm3, %v3340_v33, %v3348_v0  ;;  %v8149_v55 = vpack.c.bf16 %v2428_v37, %v2426_v54 }
 0x18d   : > { %2275 = vmatprep.mubr.bf16.mxu0 %v1944_v38  ;;  %2882 = vmatprep.mubr.bf16.mxu1 %v2627_v59  ;;  %v2433_v38 = vld [vmem:[#allocation2 + $0x230] sm:$0xff]  ;;  %v3386_v59 = vshrl.u32 %v8116_v12, 16  ;;  %v7019_v12 = vld [vmem:[%s9414_s3 + $0x200] sm:$0xff]  }
 0x18e   : > { %4625 = vmatpush1.bf16.msra.mxu1 %v7005_v48  ;;  %v2629_v48 = vsel %vm2617_vm2, %v2624_v22, %v2628_v1  ;;  %v8152_v9 = vpack.c.bf16 %v2433_v38, %v2431_v20  ;;  %v2632_v51 = vrot.slane %v8149_v55, 3  ;;  %v3418_v22 = vrot.slane %v3416_v63, 4  ;;  %v7016_v37 = vld [vmem:[%s9414_s3 + $0x290] sm:$0xff]  }
 0x18f   : > { %4626 = vmatprep.subr.bf16.mxu1 %v9473_v14  ;;  %v3388_v35 = vrot.slane %v3386_v59, 3  ;;  %v3404_v57 = vshrl.u32 %v8149_v55, 16  ;;  %v3407_v6 = vshll.u32 %v8149_v55, 16  ;;  %v2439_v38 = vld [vmem:[#allocation2 + $0xb0] sm:$0xff] }
 0x190   : > { %v2638_v19 = vrot.slane %v8152_v9, 3  ;;  %v2633_v56 = vsel %vm2617_vm2, %v2628_v1, %v2632_v51  ;;  %v8190_v39 = vor.u32 %v3418_v22, %v3415_v15  ;;  %v3431_v7 = vshrl.u32 %v8152_v9, 16 }
 0x191   : > { %v3406_v42 = vrot.slane %v3404_v57, 3  ;;  %v3409_v23 = vrot.slane %v3407_v6, 4 }
 0x192   : > { %4627 = vmatpush1.bf16.msra.mxu1 %v7007_v46  ;;  %v2432_v46 = vld [vmem:[#allocation2 + $0x250] sm:$0xff]  ;;  %v2639_v30 = vsel %vm2617_vm2, %v2634_v36, %v2638_v19  ;;  %v3420_v33 = vsel %vm3332_vm3, %v3401_v16, %v8190_v39 }
 0x193   : > { %4628 = vmatprep.subr.bf16.mxu1 %v9473_v14  ;;  %v8177_v41 = vpack.c.bf16 %v2432_v46, %v2430_v11  ;;  %v2441_v36 = vld [vmem:[#allocation2 + $0x50] sm:$0xff]  ;;  %v8227_v54 = vor.u32 %v3409_v23, %v3406_v42  ;;  %v2443_v11 = vld [vmem:[#allocation2 + $0x208] sm:$0xff] }
 0x194   : > { %2276 = vmatmul.mubr.bf16.gmra.mxu0 %v1936_v18  ;;  %2883 = vmatmul.mubr.bf16.gmra.mxu1 %v2625_v53  ;;  %v7017_v18 = vld [vmem:[%s9414_s3 + $0x208] sm:$0xff]   ;;  %v3434_v53 = vshll.u32 %v8152_v9, 16  ;;  %v7023_v9 = vld [vmem:[%s9414_s3 + $0x270] sm:$0xff]  }
 0x195   : > { %3897 = vmatprep.mubr.bf16.mxu0 %v3366_v24  ;;  %2890 = vmatprep.mubr.bf16.mxu1 %v2631_v43  ;;  %v8179_v24 = vpack.c.bf16 %v2437_v25, %v2435_v13  ;;  %v7014_v43 = vld [vmem:[%s9414_s3 + $0x298] sm:$0xff]   ;;  %v2636_v0 = vrot.slane %v8177_v41, 3  ;;  %v7020_v13 = vld [vmem:[%s9414_s3 + $0x280] sm:$0xff]  }
 0x196   : > { %4629 = vmatpush1.bf16.msra.mxu1 %v7009_v2  ;;  %v3392_v2 = vor.u32 %v3391_v4, %v3388_v35  ;;  %v3436_v1 = vrot.slane %v3434_v53, 4 }
 0x197   : > { %4630 = vmatprep.subr.bf16.mxu1 %v9473_v14  ;;  %v2642_v17 = vrot.slane %v8179_v24, 3  ;;  %v3449_v20 = vshrl.u32 %v8179_v24, 16 }
 0x198   : > { %v3393_v10 = vsel %vm3332_vm3, %v3374_v45, %v3392_v2  ;;  %v3452_v45 = vshll.u32 %v8179_v24, 16  ;;  %v3411_v63 = vsel %vm3332_vm3, %v3392_v2, %v8227_v54  ;;  %v7027_v24 = vld [vmem:[%s9414_s3 + $0x260] sm:$0xff]  }
 0x199   : > { %v2643_v3 = vsel %vm2617_vm2, %v2638_v19, %v2642_v17  ;;  %v2445_v19 = vld [vmem:[#allocation2 + $0x190] sm:$0xff]  ;;  %v3451_v46 = vrot.slane %v3449_v20, 3 }
 0x19a   : > { %4631 = vmatpush1.bf16.msra.mxu1 %v7011_v52  ;;  %v2436_v52 = vld [vmem:[#allocation2 + $0x90] sm:$0xff]  ;;  %v3454_v25 = vrot.slane %v3452_v45, 4  ;;  %v2447_v45 = vld [vmem:[#allocation2 + $0xc0] sm:$0xff] }
 0x19b   : > { %4632 = vmatprep.subr.bf16.mxu1 %v9473_v14  ;;  %v8221_v44 = vpack.c.bf16 %v2436_v52, %v2434_v28 }
 0x19c   : > { %3898 = vmatmul.mubr.bf16.vlgmr.msra.gmra.mxu0 %v3349_v60  ;;  %2891 = vmatmul.mubr.bf16.gmra.mxu1 %v2629_v48  ;;  %v7021_v60 = vld [vmem:[%s9414_s3 + $0x278] sm:$0xff]   ;;  %v3422_v48 = vshrl.u32 %v8177_v41, 16  ;;  %v8285_v53 = vor.u32 %v3454_v25, %v3451_v46 }
 0x19d   : > { %5648 = vmatpush1.bf16.msra.mxu0 %v7006_v8  ;;  %3905 = vmatprep.mubr.bf16.mxu0 %v3384_v49  ;;  %v3433_v8 = vrot.slane %v3431_v7, 3  ;;  %v2637_v49 = vsel %vm2617_vm2, %v2632_v51, %v2636_v0  ;;  %v2640_v16 = vrot.slane %v8221_v44, 3  ;;  %v3440_v6 = vshrl.u32 %v8221_v44, 16 }
 0x19e   : > { %5649 = vmatprep.subr.bf16.mxu0 %v9473_v14  ;;  %2898 = vmatprep.mubr.bf16.mxu1 %v2635_v40  ;;  %v3425_v40 = vshll.u32 %v8177_v41, 16 }
 0x19f   : > { %4633 = vmatpush1.bf16.msra.mxu1 %v7013_v29  ;;  %v8233_v55 = vor.u32 %v3436_v1, %v3433_v8  ;;  %v2444_v1 = vld [vmem:[#allocation2 + $0x8] sm:$0xff] }
 0x1a0   : > { %4634 = vmatprep.subr.bf16.mxu1 %v9473_v14  ;;  %v3427_v51 = vrot.slane %v3425_v40, 4 }
 0x1a1   : > { %5650 = vmatpush1.bf16.msra.mxu0 %v7008_v50  ;;  %v8229_v50 = vpack.c.bf16 %v2441_v36, %v2439_v38  ;;  %v3438_v4 = vsel %vm3332_vm3, %v8190_v39, %v8233_v55  ;;  %v3443_v39 = vshll.u32 %v8221_v44, 16 }
 0x1a2   : > { %5651 = vmatprep.subr.bf16.mxu0 %v9473_v14 }
 0x1a3   : > { %4635 = vmatpush1.bf16.msra.mxu1 %v7015_v27  ;;  %v8183_v31 = vpop.f32.mrf.mxu1  ;;  %v2646_v27 = vrot.slane %v8229_v50, 3  ;;  %v3445_v8 = vrot.slane %v3443_v39, 4  ;;  %v7033_v39 = vld [vmem:[%s9414_s3 + $0x248] sm:$0xff]  }
 0x1a4   : > { %3906 = vmatmul.mubr.bf16.gmra.mxu0 %v3375_v5  ;;  %4636 = vmatprep.subr.bf16.mxu1 %v9473_v14  ;;  %v2440_v5 = vld [vmem:[#allocation2 + $0x1b8] sm:$0xff] }
 0x1a5   : > { %3913 = vmatprep.mubr.bf16.mxu0 %v3402_v58  ;;  %5652 = vmatpush1.bf16.msra.mxu0 %v7010_v34  ;;  %v1230_v32 = vpop.f32.mrf.mxu1  ;;  %v3424_v34 = vrot.slane %v3422_v48, 3  ;;  %v7025_v58 = vld [vmem:[%s9414_s3 + $0x268] sm:$0xff]   ;;  %v2647_v57 = vsel %vm2617_vm2, %v2642_v17, %v2646_v27  ;;  %v7022_v17 = vld [vmem:[%s9414_s3 + $0x2f8] sm:$0xff]   ;;  %v7024_v48 = vld [vmem:[%s9414_s3 + $0x2f0] sm:$0xff]  }
 0x1a6   : > { %5653 = vmatprep.subr.bf16.mxu0 %v9473_v14  ;;  %2899 = vmatmul.mubr.bf16.gmra.mxu1 %v2633_v56  ;;  %v2641_v56 = vsel %vm2617_vm2, %v2636_v0, %v2640_v16  ;;  %v3470_v32 = vshll.u32 %v8229_v50, 16 }
 0x1a7   : > { %2906 = vmatprep.mubr.bf16.mxu1 %v2639_v30  ;;  %4637 = vmatpush1.bf16.msra.mxu1 %v7017_v18  ;;  %v8204_v47 = vpop.f32.mrf.mxu1  ;;  %v2438_v18 = vld [vmem:[#allocation2 + $0x288] sm:$0xff]  ;;  %v8281_v41 = vor.u32 %v3427_v51, %v3424_v34  ;;  %v7031_v51 = vld [vmem:[%s9414_s3 + $0x250] sm:$0xff]  }
 0x1a8   : > { %4638 = vmatprep.subr.bf16.mxu1 %v9473_v14  ;;  %v8268_v30 = vpack.c.bf16 %v2440_v5, %v2438_v18  ;;  %v3472_v28 = vrot.slane %v3470_v32, 4  ;;  %v2451_v32 = vld [vmem:[#allocation2 + $0x1b0] sm:$0xff] }
 0x1a9   : > { %5654 = vmatpush1.bf16.msra.mxu0 %v7012_v62  ;;  %v1233_v21 = vpop.f32.mrf.mxu1 }
 0x1aa   : > { %5655 = vmatprep.subr.bf16.mxu0 %v9473_v14  ;;  %v2644_v42 = vrot.slane %v8268_v30, 3 }
 0x1ab   : > { %4639 = vmatpush1.bf16.msra.mxu1 %v7019_v12  ;;  %v8225_v29 = vpop.f32.mrf.mxu1  ;;  %v3467_v12 = vshrl.u32 %v8229_v50, 16  ;;  %v3461_v50 = vshll.u32 %v8268_v30, 16 }
 0x1ac   : > { %3914 = vmatmul.mubr.bf16.gmra.mxu0 %v3393_v10  ;;  %4640 = vmatprep.subr.bf16.mxu1 %v9473_v14 }
 0x1ad   : > { %3921 = vmatprep.mubr.bf16.mxu0 %v3420_v33  ;;  %5656 = vmatpush1.bf16.msra.mxu0 %v7014_v43  ;;  %v1238_v59 = vpop.f32.mrf.mxu1  ;;  %v3442_v33 = vrot.slane %v3440_v6, 3  ;;  %v3469_v21 = vrot.slane %v3467_v12, 3  ;;  %v3463_v18 = vrot.slane %v3461_v50, 4  ;;  %v2446_v12 = vld [vmem:[#allocation2 + $0xb8] sm:$0xff] }
 0x1ae   : > { %5657 = vmatprep.subr.bf16.mxu0 %v9473_v14  ;;  %2907 = vmatmul.mubr.bf16.gmra.mxu1 %v2637_v49  ;;  %v7029_v49 = vld [vmem:[%s9414_s3 + $0x258] sm:$0xff]  }
 0x1af   : > { %2914 = vmatprep.mubr.bf16.mxu1 %v2643_v3  ;;  %4641 = vmatpush2.bf16.msra.mxu1 %v7021_v60  ;;  %v8246_v26 = vpop.f32.mrf.mxu1  ;;  %v3456_v60 = vsel %vm3332_vm3, %v8233_v55, %v8285_v53  ;;  %v2645_v55 = vsel %vm2617_vm2, %v2640_v16, %v2644_v42  ;;  %v8335_v59 = vor.u32 %v3445_v8, %v3442_v33 }
 0x1b0   : > { %4642 = vmatprep.subr.bf16.mxu1 %v9473_v14  ;;  %v2117_v35 = vpop.f32.mrf.mxu0 }
 0x1b1   : > { %5658 = vmatpush1.bf16.msra.mxu0 %v7016_v37  ;;  %v8258_v15 = vadd.f32 %v2117_v35, %v8183_v31  ;;  %v1241_v22 = vpop.f32.mrf.mxu1  ;;  %v8270_v31 = vpack.c.bf16 %v2445_v19, %v2443_v11  ;;  %v2449_v37 = vld [vmem:[#allocation2 + $0x280] sm:$0xff]  ;;  %v7026_v35 = vld [vmem:[%s9414_s3 + $0x2e8] sm:$0xff]  }
 0x1b2   : > { %5659 = vmatprep.subr.bf16.mxu0 %v9473_v14  ;;  %v2119_v62 = vpop.f32.mrf.mxu0  ;;  %v8337_v44 = vpack.c.bf16 %v2449_v37, %v2447_v45  ;;  %v2448_v11 = vld [vmem:[#allocation2 + $0x1c8] sm:$0xff] }
 0x1b3   : > { %4643 = vmatpush2.bf16.msra.mxu1 %v7023_v9  ;;  %v8274_v2 = vpop.f32.mrf.mxu1  ;;  %v2650_v23 = vrot.slane %v8270_v31, 3  ;;  %v3488_v34 = vshll.u32 %v8270_v31, 16 }
 0x1b4   : > { %3922 = vmatmul.mubr.bf16.gmra.mxu0 %v3411_v63  ;;  %4644 = vmatprep.subr.bf16.mxu1 %v9473_v14  ;;  %v2120_v7 = vpop.f32.mrf.mxu0  ;;  %v8341_v63 = vor.u32 %v3472_v28, %v3469_v21  ;;  %v7030_v28 = vld [vmem:[%s9414_s3 + $0x2d8] sm:$0xff]  }
 0x1b5   : > { %3929 = vmatprep.mubr.bf16.mxu0 %v3438_v4  ;;  %5660 = vmatpush1.bf16.msra.mxu0 %v7018_v61  ;;  %v8293_v43 = vadd.f32 %v2120_v7, %v8204_v47  ;;  %v1246_v0 = vpop.f32.mrf.mxu1  ;;  %v3429_v47 = vsel %vm3332_vm3, %v8227_v54, %v8281_v41  ;;  %v2442_v54 = vld [vmem:[#allocation2 + $0x188] sm:$0xff]  ;;  %v3458_v61 = vshrl.u32 %v8268_v30, 16  ;;  %v3490_v6 = vrot.slane %v3488_v34, 4 }
 0x1b6   : > { %5661 = vmatprep.subr.bf16.mxu0 %v9473_v14  ;;  %2915 = vmatmul.mubr.bf16.gmra.mxu1 %v2641_v56  ;;  %v2122_v10 = vpop.f32.mrf.mxu0  ;;  %v8329_v20 = vpack.c.bf16 %v2444_v1, %v2442_v54  ;;  %v3474_v56 = vsel %vm3332_vm3, %v8285_v53, %v8341_v63 }
 0x1b7   : > { %2922 = vmatprep.mubr.bf16.mxu1 %v2647_v57  ;;  %4645 = vmatpush2.bf16.msra.mxu1 %v7025_v58  ;;  %v8302_v52 = vpop.f32.mrf.mxu1  ;;  %v2654_v58 = vrot.slane %v8337_v44, 3  ;;  %v3460_v22 = vrot.slane %v3458_v61, 3 }
 0x1b8   : > { %4646 = vmatprep.subr.bf16.mxu1 %v9473_v14  ;;  %v2125_v36 = vpop.f32.mrf.mxu0  ;;  %v2648_v46 = vrot.slane %v8329_v20, 3  ;;  %v3479_v33 = vshll.u32 %v8329_v20, 16 }
 0x1b9   : > { %5662 = vmatpush1.bf16.msra.mxu0 %v7020_v13  ;;  %v8314_v3 = vadd.f32 %v2125_v36, %v8225_v29  ;;  %v1249_v38 = vpop.f32.mrf.mxu1  ;;  %v2651_v29 = vsel %vm2617_vm2, %v2646_v27, %v2650_v23  ;;  %v3485_v27 = vshrl.u32 %v8270_v31, 16  ;;  %v2453_v13 = vld [vmem:[#allocation2 + $0x2a0] sm:$0xff]  ;;  %v8393_v30 = vor.u32 %v3463_v18, %v3460_v22 }
 0x1ba   : > { %5663 = vmatprep.subr.bf16.mxu0 %v9473_v14  ;;  %v2127_v40 = vpop.f32.mrf.mxu0  ;;  %v2649_v0 = vsel %vm2617_vm2, %v2644_v42, %v2648_v46  ;;  %v3476_v42 = vshrl.u32 %v8329_v20, 16  ;;  %v3503_v36 = vshrl.u32 %v8337_v44, 16  ;;  %v7035_v31 = vld [vmem:[%s9414_s3 + $0x240] sm:$0xff]  }
 0x1bb   : > { %4647 = vmatpush2.bf16.msra.mxu1 %v7027_v24  ;;  %v8333_v9 = vpop.f32.mrf.mxu1  ;;  %v3487_v57 = vrot.slane %v3485_v27, 3  ;;  %v7028_v24 = vld [vmem:[%s9414_s3 + $0x2e0] sm:$0xff]   ;;  %v3481_v40 = vrot.slane %v3479_v33, 4 }
 0x1bc   : > { %3930 = vmatmul.mubr.bf16.gmra.mxu0 %v3429_v47  ;;  %4648 = vmatprep.subr.bf16.mxu1 %v9473_v14  ;;  %v2128_v16 = vpop.f32.mrf.mxu0  ;;  %v2655_v47 = vsel %vm2617_vm2, %v2650_v23, %v2654_v58  ;;  %v3505_v61 = vrot.slane %v3503_v36, 3 }
 0x1bd   : > { %3937 = vmatprep.mubr.bf16.mxu0 %v3456_v60  ;;  %5664 = vmatpush2.bf16.msra.mxu0 %v7022_v17  ;;  %v8349_v5 = vadd.f32 %v2128_v16, %v8246_v26  ;;  %v1254_v19 = vpop.f32.mrf.mxu1  ;;  %v3447_v26 = vsel %vm3332_vm3, %v8281_v41, %v8335_v59  ;;  %v8380_v17 = vpack.c.bf16 %v2448_v11, %v2446_v12  ;;  %v3506_v60 = vshll.u32 %v8337_v44, 16  ;;  %v2455_v16 = vld [vmem:[#allocation2 + $0x1e0] sm:$0xff] }
 0x1be   : > { %5665 = vmatprep.subr.bf16.mxu0 %v9473_v14  ;;  %2923 = vmatmul.mubr.bf16.gmra.mxu1 %v2645_v55  ;;  %v2130_v4 = vpop.f32.mrf.mxu0  ;;  %v8397_v1 = vor.u32 %v3490_v6, %v3487_v57  ;;  %v2452_v55 = vld [vmem:[#allocation2 + $0xa8] sm:$0xff] }
 0x1bf   : > { %2930 = vmatprep.mubr.bf16.mxu1 %v2651_v29  ;;  %4649 = vmatpush2.bf16.msra.mxu1 %v7029_v49  ;;  %v8357_v25 = vpop.f32.mrf.mxu1  ;;  %v2652_v49 = vrot.slane %v8380_v17, 3  ;;  %v3508_v50 = vrot.slane %v3506_v60, 4  ;;  %v2457_v4 = vld [vmem:[#allocation2 + $0x1e8] sm:$0xff]  ;;  %v3494_v20 = vshrl.u32 %v8380_v17, 16 }
 0x1c0   : > { %4650 = vmatprep.subr.bf16.mxu1 %v9473_v14  ;;  %v2133_v62 = vpop.f32.mrf.mxu0  ;;  %v3492_v45 = vsel %vm3332_vm3, %v8341_v63, %v8397_v1  ;;  %v8443_v18 = vpack.c.bf16 %v2457_v4, %v2455_v16  ;;  %v7034_v57 = vld [vmem:[%s9414_s3 + $0x2c8] sm:$0xff]  }
 0x1c1   : > { %5666 = vmatpush2.bf16.msra.mxu0 %v7024_v48  ;;  %v8370_v41 = vadd.f32 %v2133_v62, %v8274_v2  ;;  %v1257_v7 = vpop.f32.mrf.mxu1  ;;  %v8382_v2 = vpack.c.bf16 %v2453_v13, %v2451_v32  ;;  %v3478_v48 = vrot.slane %v3476_v42, 3  ;;  %v2653_v63 = vsel %vm2617_vm2, %v2648_v46, %v2652_v49  ;;  %v2458_v16 = vld [vmem:[#allocation2 + $0xe8] sm:$0xff] }
 0x1c2   : > { %5667 = vmatprep.subr.bf16.mxu0 %v9473_v14  ;;  %v2135_v53 = vpop.f32.mrf.mxu0  ;;  %v3497_v46 = vshll.u32 %v8380_v17, 16  ;;  %v3509_v44 = vor.u32 %v3508_v50, %v3505_v61  ;;  %v2662_v32 = vrot.slane %v8443_v18, 3 }
 0x1c3   : > { %4651 = vmatpush2.bf16.msra.mxu1 %v7031_v51  ;;  %v8386_v10 = vpop.f32.mrf.mxu1  ;;  %v2658_v38 = vrot.slane %v8382_v2, 3  ;;  %v2450_v51 = vld [vmem:[#allocation2 + $0x100] sm:$0xff]  ;;  %v3482_v22 = vor.u32 %v3481_v40, %v3478_v48  ;;  %v3524_v13 = vshll.u32 %v8382_v2, 16  ;;  %v2454_v53 = vld [vmem:[#allocation2 + $0x210] sm:$0xff] }
 0x1c4   : > { %3938 = vmatmul.mubr.bf16.gmra.mxu0 %v3447_v26  ;;  %4652 = vmatprep.subr.bf16.mxu1 %v9473_v14  ;;  %v2136_v8 = vpop.f32.mrf.mxu0  ;;  %v3510_v42 = vsel %vm3332_vm3, %v8397_v1, %v3509_v44  ;;  %v2459_v1 = vld [vmem:[#allocation2 + $0x248] sm:$0xff] }
 0x1c5   : > { %3945 = vmatprep.mubr.bf16.mxu0 %v3474_v56  ;;  %5668 = vmatpush2.bf16.msra.mxu0 %v7026_v35  ;;  %v8405_v23 = vadd.f32 %v2136_v8, %v8302_v52  ;;  %v1262_v21 = vpop.f32.mrf.mxu1  ;;  %v3465_v52 = vsel %vm3332_vm3, %v8335_v59, %v8393_v30  ;;  %v7032_v59 = vld [vmem:[%s9414_s3 + $0x2d0] sm:$0xff]   ;;  %v8438_v35 = vpack.c.bf16 %v2452_v55, %v2450_v51  ;;  %v3526_v8 = vrot.slane %v3524_v13, 4 }
 0x1c6   : > { %5669 = vmatprep.subr.bf16.mxu0 %v9473_v14  ;;  %2931 = vmatmul.mubr.bf16.gmra.mxu1 %v2649_v0  ;;  %v2138_v37 = vpop.f32.mrf.mxu0  ;;  %v3483_v12 = vsel %vm3332_vm3, %v8393_v30, %v3482_v22  ;;  %v2456_v0 = vld [vmem:[#allocation2 + $0x2c8] sm:$0xff]  ;;  %v7036_v30 = vld [vmem:[%s9414_s3 + $0x2c0] sm:$0xff]  }
 0x1c7   : > { %2938 = vmatprep.mubr.bf16.mxu1 %v2655_v47  ;;  %4653 = vmatpush2.bf16.msra.mxu1 %v7033_v39  ;;  %v8414_v54 = vpop.f32.mrf.mxu1  ;;  %v2656_v39 = vrot.slane %v8438_v35, 3  ;;  %v2461_v37 = vld [vmem:[#allocation2 + $0x108] sm:$0xff]  ;;  %v3512_v40 = vshrl.u32 %v8438_v35, 16  ;;  %v3515_v17 = vshll.u32 %v8438_v35, 16  ;;  %v2465_v35 = vld [vmem:[#allocation2 + $0x178] sm:$0xff] }
 0x1c8   : > { %4654 = vmatprep.subr.bf16.mxu1 %v9473_v14  ;;  %v2141_v29 = vpop.f32.mrf.mxu0  ;;  %v2521_v50 = vpack.c.bf16 %v2461_v37, %v2459_v1  ;;  %v2464_v1 = vld [vmem:[#allocation2 + $0x38] sm:$0xff] }
 0x1c9   : > { %5670 = vmatpush2.bf16.msra.mxu0 %v7028_v24  ;;  %v8423_v27 = vadd.f32 %v2141_v29, %v8333_v9  ;;  %v1265_v34 = vpop.f32.mrf.mxu1  ;;  %v2659_v9 = vsel %vm2617_vm2, %v2654_v58, %v2658_v38  ;;  %v3521_v58 = vshrl.u32 %v8382_v2, 16  ;;  %v3499_v24 = vrot.slane %v3497_v46, 4 }
 0x1ca   : > { %5671 = vmatprep.subr.bf16.mxu0 %v9473_v14  ;;  %v2143_v19 = vpop.f32.mrf.mxu0  ;;  %v2657_v21 = vsel %vm2617_vm2, %v2652_v49, %v2656_v39  ;;  %v3539_v29 = vshrl.u32 %v8443_v18, 16  ;;  %v2460_v34 = vld [vmem:[#allocation2 + $0x138] sm:$0xff] }
 0x1cb   : > { %4655 = vmatpush2.bf16.msra.mxu1 %v7035_v31  ;;  %v8441_v26 = vpop.f32.mrf.mxu1  ;;  %v3523_v33 = vrot.slane %v3521_v58, 3  ;;  %v3514_v19 = vrot.slane %v3512_v40, 3  ;;  %v2666_v58 = vrot.slane %v2521_v50, 3  ;;  %v8496_v13 = vpack.c.bf16 %v2460_v34, %v2458_v16  ;;  %v2469_v40 = vld [vmem:[#allocation2 + $0x148] sm:$0xff] }
 0x1cc   : > { %3946 = vmatmul.mubr.bf16.gmra.mxu0 %v3465_v52  ;;  %v2144_v11 = vpop.f32.mrf.mxu0  ;;  %v2663_v52 = vsel %vm2617_vm2, %v2658_v38, %v2662_v32 }
 0x1cd   : > { %3953 = vmatprep.mubr.bf16.mxu0 %v3492_v45  ;;  %5672 = vmatpush2.bf16.msra.mxu0 %v7030_v28  ;;  %v8450_v62 = vadd.f32 %v2144_v11, %v8357_v25  ;;  %v1270_v56 = vpop.f32.mrf.mxu1  ;;  %v3496_v25 = vrot.slane %v3494_v20, 3  ;;  %v8473_v28 = vpack.c.bf16 %v2456_v0, %v2454_v53  ;;  %v3527_v49 = vor.u32 %v3526_v8, %v3523_v33 }
 0x1ce   : > { %5673 = vmatprep.subr.bf16.mxu0 %v9473_v14  ;;  %2939 = vmatmul.mubr.bf16.gmra.mxu1 %v2653_v63  ;;  %v2146_v6 = vpop.f32.mrf.mxu0  ;;  %v3542_v45 = vshll.u32 %v8443_v18, 16  ;;  %v3517_v63 = vrot.slane %v3515_v17, 4  ;;  %v3541_v18 = vrot.slane %v3539_v29, 3  ;;  %v3557_v8 = vshrl.u32 %v2521_v50, 16 }
 0x1cf   : > { %2946 = vmatprep.mubr.bf16.mxu1 %v2659_v9  ;;  %v8457_v7 = vpop.f32.mrf.mxu1  ;;  %v3500_v48 = vor.u32 %v3499_v24, %v3496_v25  ;;  %v2660_v38 = vrot.slane %v8473_v28, 3  ;;  %v2463_v9 = vld [vmem:[#allocation2 + $0x290] sm:$0xff]  ;;  %v3530_v25 = vshrl.u32 %v8473_v28, 16 }
 0x1d0   : > { %v2149_v47 = vpop.f32.mrf.mxu0  ;;  %v3544_v20 = vrot.slane %v3542_v45, 4 }
 0x1d1   : > { %5674 = vmatpush2.bf16.msra.mxu0 %v7032_v59  ;;  %v8465_v36 = vadd.f32 %v2149_v47, %v8386_v10  ;;  %v1273_v60 = vpop.f32.mrf.mxu1  ;;  %v3501_v59 = vsel %vm3332_vm3, %v3482_v22, %v3500_v48  ;;  %v2661_v22 = vsel %vm2617_vm2, %v2656_v39, %v2660_v38  ;;  %v2664_v39 = vrot.slane %v8496_v13, 3 }
 0x1d2   : > { %5675 = vmatprep.subr.bf16.mxu0 %v9473_v14  ;;  %v2151_v31 = vpop.f32.mrf.mxu0  ;;  %v3545_v53 = vor.u32 %v3544_v20, %v3541_v18  ;;  %v3560_v60 = vshll.u32 %v2521_v50, 16  ;;  %v2466_v20 = vld [vmem:[#allocation2 + $0xc8] sm:$0xff] }
 0x1d3   : > { %v8476_v10 = vpop.f32.mrf.mxu1  ;;  %v3532_v31 = vrot.slane %v3530_v25, 3  ;;  %v2665_v29 = vsel %vm2617_vm2, %v2660_v38, %v2664_v39  ;;  %v2471_v25 = vld [vmem:[#allocation2 + $0x268] sm:$0xff] }
 0x1d4   : > { %3954 = vmatmul.mubr.bf16.gmra.mxu0 %v3483_v12  ;;  %v2152_v55 = vpop.f32.mrf.mxu0  ;;  %v3518_v12 = vor.u32 %v3517_v63, %v3514_v19  ;;  %v3562_v50 = vrot.slane %v3560_v60, 4 }
 0x1d5   : > { %3961 = vmatprep.mubr.bf16.mxu0 %v3510_v42  ;;  %5676 = vmatpush2.bf16.msra.mxu0 %v7034_v57  ;;  %v1278_v61 = vpop.f32.mrf.mxu1  ;;  %v8499_v57 = vpack.c.bf16 %v2465_v35, %v2463_v9 }
 0x1d6   : > { %5677 = vmatprep.subr.bf16.mxu0 %v9473_v14  ;;  %2947 = vmatmul.mubr.bf16.gmra.mxu1 %v2657_v21  ;;  %v8486_v14 = vadd.f32 %v2152_v55, %v8414_v54  ;;  %v2154_v2 = vpop.f32.mrf.mxu0  ;;  %v3528_v54 = vsel %vm3332_vm3, %v3509_v44, %v3527_v49  ;;  %v2667_v44 = vsel %vm2617_vm2, %v2662_v32, %v2666_v58  ;;  %v3559_v61 = vrot.slane %v3557_v8, 3 }
 0x1d7   : > { %2954 = vmatprep.mubr.bf16.mxu1 %v2663_v52  ;;  %v8489_v51 = vpop.f32.mrf.mxu1  ;;  %v2670_v33 = vrot.slane %v8499_v57, 3  ;;  %v2467_v52 = vld [vmem:[#allocation2 + $0x1d8] sm:$0xff]  ;;  %v3575_v38 = vshrl.u32 %v8499_v57, 16  ;;  %v3578_v63 = vshll.u32 %v8499_v57, 16  ;;  %v2473_v57 = vld [vmem:[#allocation2 + $0x228] sm:$0xff] }
 0x1d8   : > { %v2157_v4 = vpop.f32.mrf.mxu0  ;;  %v8524_v34 = vpack.c.bf16 %v2469_v40, %v2467_v52 }
 0x1d9   : > { %5678 = vmatpush2.bf16.msra.mxu0 %v7036_v30  ;;  %v8494_v46 = vadd.f32 %v2157_v4, %v8441_v26  ;;  %v1281_v11 = vpop.f32.mrf.mxu1  ;;  %v3533_v26 = vshll.u32 %v8473_v28, 16  ;;  %v3519_v30 = vsel %vm3332_vm3, %v3500_v48, %v3518_v12  ;;  %v2462_v28 = vld [vmem:[#allocation2 + $0xd8] sm:$0xff]  ;;  %v2671_v48 = vsel %vm2617_vm2, %v2666_v58, %v2670_v33 }
 0x1da   : > { %v2159_v56 = vpop.f32.mrf.mxu0  ;;  %v8520_v2 = vpack.c.bf16 %v2464_v1, %v2462_v28  ;;  %v3593_v52 = vshrl.u32 %v8524_v34, 16 }
 0x1db   : > { %v8501_v6 = vpop.f32.mrf.mxu1  ;;  %v3535_v21 = vrot.slane %v3533_v26, 4 }
 0x1dc   : > { %3962 = vmatmul.mubr.bf16.gmra.mxu0 %v3501_v59  ;;  %v2160_v24 = vpop.f32.mrf.mxu0  ;;  %v3551_v59 = vshll.u32 %v8496_v13, 16  ;;  %v2668_v18 = vrot.slane %v8520_v2, 3  ;;  %v3566_v1 = vshrl.u32 %v8520_v2, 16 }
 0x1dd   : > { %3969 = vmatprep.mubr.bf16.mxu0 %v3528_v54  ;;  %v8507_v0 = vadd.f32 %v2160_v24, %v8457_v7  ;;  %v1286_v47 = vpop.f32.mrf.mxu1  ;;  %v3546_v7 = vsel %vm3332_vm3, %v3527_v49, %v3545_v53  ;;  %v3536_v49 = vor.u32 %v3535_v21, %v3532_v31  ;;  %v3563_v54 = vor.u32 %v3562_v50, %v3559_v61 }
 0x1de   : > { %2955 = vmatmul.mubr.bf16.gmra.mxu1 %v2661_v22  ;;  %v2162_v42 = vpop.f32.mrf.mxu0  ;;  %v3553_v22 = vrot.slane %v3551_v59, 4  ;;  %v3577_v24 = vrot.slane %v3575_v38, 3  ;;  %v3580_v47 = vrot.slane %v3578_v63, 4  ;;  %v8545_v31 = vpack.c.bf16 %v2473_v57, %v2471_v25  ;;  %v2472_v59 = vld [vmem:[#allocation2 + $0x118] sm:$0xff]  ;;  %v2475_v63 = vld [vmem:[#allocation2 + $0x110] sm:$0xff] }
 0x1df   : > { %2962 = vmatprep.mubr.bf16.mxu1 %v2667_v44  ;;  %v8511_v32 = vpop.f32.mrf.mxu1  ;;  %v3537_v58 = vsel %vm3332_vm3, %v3518_v12, %v3536_v49  ;;  %v2468_v44 = vld [vmem:[#allocation2 + $0x1f8] sm:$0xff]  ;;  %v2669_v12 = vsel %vm2617_vm2, %v2664_v39, %v2668_v18  ;;  %v3596_v39 = vshll.u32 %v8524_v34, 16  ;;  %v3568_v50 = vrot.slane %v3566_v1, 3 }
 0x1e0   : > { %v2165_v37 = vpop.f32.mrf.mxu0 }
 0x1e1   : > { %v8516_v17 = vadd.f32 %v2165_v37, %v8476_v10  ;;  %v1289_v55 = vpop.f32.mrf.mxu1  ;;  %v3548_v10 = vshrl.u32 %v8496_v13, 16  ;;  %v2674_v13 = vrot.slane %v8524_v34, 3  ;;  %v3598_v38 = vrot.slane %v3596_v39, 4  ;;  %v2479_v39 = vld [vmem:[#allocation2 + $0x1f0] sm:$0xff] }
 0x1e2   : > { %v2167_v45 = vpop.f32.mrf.mxu0 }
 0x1e3   : > { %v8522_v16 = vpop.f32.mrf.mxu1  ;;  %v3550_v56 = vrot.slane %v3548_v10, 3  ;;  %v2675_v28 = vsel %vm2617_vm2, %v2670_v33, %v2674_v13  ;;  %v2678_v33 = vrot.slane %v8545_v31, 3  ;;  %v2470_v10 = vld [vmem:[#allocation2 + $0x260] sm:$0xff] }
 0x1e4   : > { %3970 = vmatmul.mubr.bf16.gmra.mxu0 %v3519_v30  ;;  %v2168_v19 = vpop.f32.mrf.mxu0  ;;  %v8543_v30 = vpack.c.bf16 %v2468_v44, %v2466_v20 }
 0x1e5   : > { %3977 = vmatprep.mubr.bf16.mxu0 %v3546_v7  ;;  %v8531_v9 = vadd.f32 %v2168_v19, %v8489_v51  ;;  %v1294_v35 = vpop.f32.mrf.mxu1  ;;  %v3564_v51 = vsel %vm3332_vm3, %v3545_v53, %v3563_v54  ;;  %v3554_v53 = vor.u32 %v3553_v22, %v3550_v56  ;;  %v3581_v7 = vor.u32 %v3580_v47, %v3577_v24 }
 0x1e6   : > { %2963 = vmatmul.mubr.bf16.gmra.mxu1 %v2665_v29  ;;  %v2170_v4 = vpop.f32.mrf.mxu0  ;;  %v2672_v45 = vrot.slane %v8543_v30, 3  ;;  %v2477_v35 = vld [vmem:[#allocation2 + $0x1a0] sm:$0xff]  ;;  %v2679_v56 = vsel %vm2617_vm2, %v2674_v13, %v2678_v33  ;;  %v8568_v22 = vpack.c.bf16 %v2472_v59, %v2470_v10  ;;  %v3584_v57 = vshrl.u32 %v8543_v30, 16 }
 0x1e7   : > { %2970 = vmatprep.mubr.bf16.mxu1 %v2671_v48  ;;  %v8534_v11 = vpop.f32.mrf.mxu1  ;;  %v3555_v61 = vsel %vm3332_vm3, %v3536_v49, %v3554_v53  ;;  %v3582_v34 = vsel %vm3332_vm3, %v3563_v54, %v3581_v7  ;;  %v8572_v25 = vpack.c.bf16 %v2477_v35, %v2475_v63  ;;  %v3611_v24 = vshrl.u32 %v8545_v31, 16 }
 0x1e8   : > { %v2173_v26 = vpop.f32.mrf.mxu0  ;;  %v2673_v49 = vsel %vm2617_vm2, %v2668_v18, %v2672_v45  ;;  %v3614_v18 = vshll.u32 %v8545_v31, 16 }
 0x1e9   : > { %v8540_v42 = vadd.f32 %v2173_v26, %v8501_v6  ;;  %v1297_v8 = vpop.f32.mrf.mxu1  ;;  %v3569_v6 = vshll.u32 %v8520_v2, 16 }
 0x1ea   : > { %v2175_v60 = vpop.f32.mrf.mxu0 }
 0x1eb   : > { %v8547_v21 = vpop.f32.mrf.mxu1  ;;  %v3571_v2 = vrot.slane %v3569_v6, 4  ;;  %v2676_v60 = vrot.slane %v8568_v22, 3  ;;  %v3586_v6 = vrot.slane %v3584_v57, 3 }
 0x1ec   : > { %3978 = vmatmul.mubr.bf16.gmra.mxu0 %v3537_v58  ;;  %v2176_v37 = vpop.f32.mrf.mxu0 }
 0x1ed   : > { %3985 = vmatprep.mubr.bf16.mxu0 %v3564_v51  ;;  %v8555_v40 = vadd.f32 %v2176_v37, %v8511_v32  ;;  %v1302_v55 = vpop.f32.mrf.mxu1  ;;  %v3595_v32 = vrot.slane %v3593_v52, 3  ;;  %v3572_v54 = vor.u32 %v3571_v2, %v3568_v50  ;;  %v2476_v52 = vld [vmem:[#allocation2 + $0x278] sm:$0xff] }
 0x1ee   : > { %2971 = vmatmul.mubr.bf16.gmra.mxu1 %v2669_v12  ;;  %v2178_v29 = vpop.f32.mrf.mxu0  ;;  %v2474_v12 = vld [vmem:[#allocation2 + $0x198] sm:$0xff]  ;;  %v2481_v55 = vld [vmem:[#allocation2 + $0x20] sm:$0xff] }
 0x1ef   : > { %2978 = vmatprep.mubr.bf16.mxu1 %v2675_v28  ;;  %v8559_v48 = vpop.f32.mrf.mxu1  ;;  %v3599_v51 = vor.u32 %v3598_v38, %v3595_v32  ;;  %v3573_v1 = vsel %vm3332_vm3, %v3554_v53, %v3572_v54  ;;  %v3613_v29 = vrot.slane %v3611_v24, 3  ;;  %v2677_v53 = vsel %vm2617_vm2, %v2672_v45, %v2676_v60 }
 0x1f0   : > { %v8591_v59 = vpack.c.bf16 %v2476_v52, %v2474_v12  ;;  %v3602_v38 = vshrl.u32 %v8568_v22, 16  ;;  %v3632_v45 = vshll.u32 %v8572_v25, 16 }
 0x1f1   : > { %v2181_v19 = vpop.f32.mrf.mxu0  ;;  %v1305_v20 = vpop.f32.mrf.mxu1 }
 0x1f2   : > { %v8564_v4 = vadd.f32 %v2181_v19, %v8522_v16  ;;  %v3587_v16 = vshll.u32 %v8543_v30, 16  ;;  %v2682_v30 = vrot.slane %v8572_v25, 3  ;;  %v8593_v19 = vpack.c.bf16 %v2481_v55, %v2479_v39 }
 0x1f3   : > { %v2183_v58 = vpop.f32.mrf.mxu0  ;;  %v3629_v20 = vshrl.u32 %v8572_v25, 16  ;;  %v2680_v57 = vrot.slane %v8591_v59, 3  ;;  %v3634_v12 = vrot.slane %v3632_v45, 4 }
 0x1f4   : > { %3986 = vmatmul.mubr.bf16.gmra.mxu0 %v3555_v61  ;;  %v8570_v44 = vpop.f32.mrf.mxu1  ;;  %v3589_v37 = vrot.slane %v3587_v16, 4  ;;  %v3616_v61 = vrot.slane %v3614_v18, 4  ;;  %v2683_v32 = vsel %vm2617_vm2, %v2678_v33, %v2682_v30  ;;  %v2686_v33 = vrot.slane %v8593_v19, 3  ;;  %v2478_v18 = vld [vmem:[#allocation2 + $0x168] sm:$0xff] }
 0x1f5   : > { %3993 = vmatprep.mubr.bf16.mxu0 %v3582_v34  ;;  %v2184_v26 = vpop.f32.mrf.mxu0 }
 0x1f6   : > { %2979 = vmatmul.mubr.bf16.gmra.mxu1 %v2673_v49  ;;  %v8579_v13 = vadd.f32 %v2184_v26, %v8534_v11  ;;  %v1310_v47 = vpop.f32.mrf.mxu1  ;;  %v3600_v11 = vsel %vm3332_vm3, %v3581_v7, %v3599_v51  ;;  %v3590_v7 = vor.u32 %v3589_v37, %v3586_v6  ;;  %v3617_v35 = vor.u32 %v3616_v61, %v3613_v29  ;;  %v2485_v6 = vld [vmem:[#allocation2 + $0x200] sm:$0xff] }
 0x1f7   : > { %2986 = vmatprep.mubr.bf16.mxu1 %v2679_v56  ;;  %v2186_v8 = vpop.f32.mrf.mxu0  ;;  %v3604_v26 = vrot.slane %v3602_v38, 3  ;;  %v2480_v47 = vld [vmem:[#allocation2 + $0x158] sm:$0xff]  ;;  %v2687_v55 = vsel %vm2617_vm2, %v2682_v30, %v2686_v33  ;;  %v3620_v61 = vshrl.u32 %v8591_v59, 16 }
 0x1f8   : > { %v8582_v28 = vpop.f32.mrf.mxu1  ;;  %v3618_v25 = vsel %vm3332_vm3, %v3599_v51, %v3617_v35 }
 0x1f9   : > { %v2189_v31 = vpop.f32.mrf.mxu0 }
 0x1fa   : > { %v8588_v50 = vadd.f32 %v2189_v31, %v8547_v21  ;;  %v1313_v2 = vpop.f32.mrf.mxu1  ;;  %v3605_v21 = vshll.u32 %v8568_v22, 16  ;;  %v3591_v22 = vsel %vm3332_vm3, %v3572_v54, %v3590_v7  ;;  %v2681_v54 = vsel %vm2617_vm2, %v2676_v60, %v2680_v57 }
 0x1fb   : > { %v2191_v10 = vpop.f32.mrf.mxu0  ;;  %v8616_v31 = vpack.c.bf16 %v2480_v47, %v2478_v18  ;;  %v3650_v60 = vshll.u32 %v8593_v19, 16 }
 0x1fc   : > { %3994 = vmatmul.mubr.bf16.gmra.mxu0 %v3573_v1  ;;  %v8595_v34 = vpop.f32.mrf.mxu1  ;;  %v3607_v24 = vrot.slane %v3605_v21, 4  ;;  %v2483_v1 = vld [vmem:[#allocation2 + $0x258] sm:$0xff] }
 0x1fd   : > { %4001 = vmatprep.mubr.bf16.mxu0 %v3600_v11  ;;  %v2192_v63 = vpop.f32.mrf.mxu0  ;;  %v8620_v29 = vpack.c.bf16 %v2485_v6, %v2483_v1  ;;  %v2684_v21 = vrot.slane %v8616_v31, 3  ;;  %v3652_v47 = vrot.slane %v3650_v60, 4 }
 0x1fe   : > { %2987 = vmatmul.mubr.bf16.gmra.mxu1 %v2677_v53  ;;  %v8603_v58 = vadd.f32 %v2192_v63, %v8559_v48  ;;  %v1318_v49 = vpop.f32.mrf.mxu1  ;;  %v3631_v48 = vrot.slane %v3629_v20, 3  ;;  %v3608_v51 = vor.u32 %v3607_v24, %v3604_v26  ;;  %v3647_v53 = vshrl.u32 %v8593_v19, 16  ;;  %v2482_v63 = vld [vmem:[#allocation2 + $0x180] sm:$0xff]  ;;  %v2489_v24 = vld [vmem:[#allocation2 + $0x2b8] sm:$0xff] }
 0x1ff   : > { %2994 = vmatprep.mubr.bf16.mxu1 %v2683_v32  ;;  %v2194_v56 = vpop.f32.mrf.mxu0  ;;  %v3622_v49 = vrot.slane %v3620_v61, 3  ;;  %v2487_v26 = vld [vmem:[#allocation2 + $0x80] sm:$0xff]  ;;  %v3665_v61 = vshrl.u32 %v8620_v29, 16 }
 0x200   : > { %v8607_v16 = vpop.f32.mrf.mxu1  ;;  %v3635_v10 = vor.u32 %v3634_v12, %v3631_v48  ;;  %v3609_v45 = vsel %vm3332_vm3, %v3590_v7, %v3608_v51  ;;  %v3649_v18 = vrot.slane %v3647_v53, 3  ;;  %v2685_v7 = vsel %vm2617_vm2, %v2680_v57, %v2684_v21 }
 0x201   : > { %v2197_v8 = vpop.f32.mrf.mxu0  ;;  %v8641_v1 = vpack.c.bf16 %v2489_v24, %v2487_v26  ;;  %v3668_v57 = vshll.u32 %v8620_v29, 16  ;;  %v2491_v26 = vld [vmem:[#allocation2 + $0x238] sm:$0xff] }
 0x202   : > { %v8612_v37 = vadd.f32 %v2197_v8, %v8570_v44  ;;  %v1321_v52 = vpop.f32.mrf.mxu1  ;;  %v3623_v44 = vshll.u32 %v8591_v59, 16  ;;  %v2690_v59 = vrot.slane %v8620_v29, 3  ;;  %v2493_v24 = vld [vmem:[#allocation2 + $0x58] sm:$0xff] }
 0x203   : > { %v2199_v39 = vpop.f32.mrf.mxu0 }
 0x204   : > { %4002 = vmatmul.mubr.bf16.gmra.mxu0 %v3591_v22  ;;  %v8618_v11 = vpop.f32.mrf.mxu1  ;;  %v3625_v56 = vrot.slane %v3623_v44, 4  ;;  %v2484_v22 = vld [vmem:[#allocation2 + $0x68] sm:$0xff]  ;;  %v2691_v52 = vsel %vm2617_vm2, %v2686_v33, %v2690_v59  ;;  %v3638_v39 = vshrl.u32 %v8616_v31, 16  ;;  %v2694_v33 = vrot.slane %v8641_v1, 3 }
 0x205   : > { %4009 = vmatprep.mubr.bf16.mxu0 %v3618_v25  ;;  %v2200_v2 = vpop.f32.mrf.mxu0  ;;  %v8639_v12 = vpack.c.bf16 %v2484_v22, %v2482_v63  ;;  %v3670_v22 = vrot.slane %v3668_v57, 4 }
 0x206   : > { %2995 = vmatmul.mubr.bf16.gmra.mxu1 %v2681_v54  ;;  %v8627_v30 = vadd.f32 %v2200_v2, %v8582_v28  ;;  %v1326_v32 = vpop.f32.mrf.mxu1  ;;  %v3636_v28 = vsel %vm3332_vm3, %v3617_v35, %v3635_v10  ;;  %v3626_v35 = vor.u32 %v3625_v56, %v3622_v49  ;;  %v2488_v49 = vld [vmem:[#allocation2 + $0x2c0] sm:$0xff] }
 0x207   : > { %3002 = vmatprep.mubr.bf16.mxu1 %v2687_v55  ;;  %v2202_v38 = vpop.f32.mrf.mxu0  ;;  %v3653_v55 = vor.u32 %v3652_v47, %v3649_v18  ;;  %v2688_v60 = vrot.slane %v8639_v12, 3  ;;  %v2695_v47 = vsel %vm2617_vm2, %v2690_v59, %v2694_v33 }
 0x208   : > { %v8630_v20 = vpop.f32.mrf.mxu1  ;;  %v3640_v38 = vrot.slane %v3638_v39, 3 }
 0x209   : > { %v3654_v29 = vsel %vm3332_vm3, %v3635_v10, %v3653_v55 }
 0x20a   : > { %v1329_v25 = vpop.f32.mrf.mxu1 }
 0x20c   : > { %v2205_v19 = vpop.f32.mrf.mxu0  ;;  %4010 = vmatmul.mubr.bf16.gmra.mxu0 %v3609_v45  ;;  %v8643_v6 = vpop.f32.mrf.mxu1  ;;  %v2486_v45 = vld [vmem:[#allocation2 + $0x140] sm:$0xff] }
 0x20d   : > { %v8636_v8 = vadd.f32 %v2205_v19, %v8595_v34  ;;  %4017 = vmatprep.mubr.bf16.mxu0 %v3636_v28  ;;  %v3641_v34 = vshll.u32 %v8616_v31, 16  ;;  %v3627_v31 = vsel %vm3332_vm3, %v3608_v51, %v3626_v35  ;;  %v2689_v51 = vsel %vm2617_vm2, %v2684_v21, %v2688_v60 }
 0x20e   : > { %v2207_v48 = vpop.f32.mrf.mxu0  ;;  %3003 = vmatmul.mubr.bf16.gmra.mxu1 %v2685_v7  ;;  %v1334_v2 = vpop.f32.mrf.mxu1  ;;  %v8664_v25 = vpack.c.bf16 %v2488_v49, %v2486_v45  ;;  %v8668_v7 = vpack.c.bf16 %v2493_v24, %v2491_v26  ;;  %v3686_v21 = vshll.u32 %v8641_v1, 16  ;;  %v2490_v45 = vld [vmem:[#allocation2 + $0x70] sm:$0xff] }
 0x20f   : > { %3010 = vmatprep.mubr.bf16.mxu1 %v2691_v52  ;;  %v3643_v63 = vrot.slane %v3641_v34, 4  ;;  %v3656_v52 = vshrl.u32 %v8639_v12, 16  ;;  %v2492_v49 = vld [vmem:[#allocation2 + $0x130] sm:$0xff] }
 0x210   : > { %v2208_v54 = vpop.f32.mrf.mxu0  ;;  %v8655_v32 = vpop.f32.mrf.mxu1  ;;  %v2692_v2 = vrot.slane %v8664_v25, 3 }
 0x211   : > { %v8651_v44 = vadd.f32 %v2208_v54, %v8607_v16  ;;  %v3667_v16 = vrot.slane %v3665_v61, 3  ;;  %v3644_v10 = vor.u32 %v3643_v63, %v3640_v38  ;;  %v3683_v54 = vshrl.u32 %v8641_v1, 16 }
 0x212   : > { %v2210_v53 = vpop.f32.mrf.mxu0  ;;  %v1337_v28 = vpop.f32.mrf.mxu1  ;;  %v3658_v38 = vrot.slane %v3656_v52, 3 }
 0x213   : > { %v3671_v34 = vor.u32 %v3670_v22, %v3667_v16  ;;  %v2495_v16 = vld [vmem:[#allocation2 + $0x270] sm:$0x3f]  ;;  %v8687_v28 = vpack.c.bf16 %v2492_v49, %v2490_v45 }
 0x214   : > { %v2213_v56 = vpop.f32.mrf.mxu0  ;;  %4018 = vmatmul.mubr.bf16.gmra.mxu0 %v3627_v31  ;;  %v8666_v48 = vpop.f32.mrf.mxu1  ;;  %v3645_v31 = vsel %vm3332_vm3, %v3626_v35, %v3644_v10  ;;  %v2693_v35 = vsel %vm2617_vm2, %v2688_v60, %v2692_v2  ;;  %v3704_v60 = vshll.u32 %v8668_v7, 16 }
 0x215   : > { %v8660_v19 = vadd.f32 %v2213_v56, %v8618_v11  ;;  %4025 = vmatprep.mubr.bf16.mxu0 %v3654_v29  ;;  %v3659_v11 = vshll.u32 %v8639_v12, 16  ;;  %v2698_v12 = vrot.slane %v8668_v7, 3  ;;  %v3672_v1 = vsel %vm3332_vm3, %v3653_v55, %v3671_v34 }
 0x216   : > { %v2215_v18 = vpop.f32.mrf.mxu0  ;;  %3011 = vmatmul.mubr.bf16.gmra.mxu1 %v2689_v51  ;;  %v1342_v61 = vpop.f32.mrf.mxu1  ;;  %v3688_v29 = vrot.slane %v3686_v21, 4  ;;  %v3677_v51 = vshll.u32 %v8664_v25, 16 }
 0x217   : > { %3018 = vmatprep.mubr.bf16.mxu1 %v2695_v47  ;;  %v3661_v63 = vrot.slane %v3659_v11, 4  ;;  %v3674_v18 = vshrl.u32 %v8664_v25, 16  ;;  %v2699_v55 = vsel %vm2617_vm2, %v2694_v33, %v2698_v12  ;;  %v2539_v11 = vpack.c.bf16 %v2495_v16, %v2495_v16 }
 0x218   : > { %v2216_v39 = vpop.f32.mrf.mxu0  ;;  %v8678_v53 = vpop.f32.mrf.mxu1  ;;  %v3679_v49 = vrot.slane %v3677_v51, 4 }
 0x219   : > { %v8675_v59 = vadd.f32 %v2216_v39, %v8630_v20  ;;  %v3685_v20 = vrot.slane %v3683_v54, 3  ;;  %v3662_v52 = vor.u32 %v3661_v63, %v3658_v38  ;;  %v3701_v54 = vshrl.u32 %v8668_v7, 16 }
 0x21a   : > { %v2218_v57 = vpop.f32.mrf.mxu0  ;;  %v1345_v26 = vpop.f32.mrf.mxu1  ;;  %v3676_v45 = vrot.slane %v3674_v18, 3  ;;  %v2702_v63 = vrot.slane %v2539_v11, 3  ;;  %v4197_v11 = vld [vmem:[#allocation2 + $0x298] sm:$0xff] }
 0x21b   : > { %v3689_v39 = vor.u32 %v3688_v29, %v3685_v20  ;;  %v3254_v57 = vld [vmem:[#allocation2 + $0x270] sm:$0x7f]  ;;  %v3663_v38 = vsel %vm3332_vm3, %v3644_v10, %v3662_v52  ;;  %v3703_v20 = vrot.slane %v3701_v54, 3 }
 0x21c   : > { %v2221_v56 = vpop.f32.mrf.mxu0  ;;  %4026 = vmatmul.mubr.bf16.gmra.mxu0 %v3645_v31  ;;  %v8691_v47 = vpop.f32.mrf.mxu1  ;;  %v9440_v31 = vrot.slane %v8687_v28, 3  ;;  %v4199_v29 = vld [vmem:[#allocation2 + $0x170] sm:$0xff]  ;;  %v3298_v16 = vpack.c.bf16 %v3254_v57, %v3254_v57  ;;  %v8710_v18 = vor.u32 %v3679_v49, %v3676_v45  ;;  %v3253_v49 = vld [vmem:[#allocation2 + $0x98] sm:$0x7f] }
 0x21d   : > { %v8684_v22 = vadd.f32 %v2221_v56, %v8643_v6  ;;  %4033 = vmatprep.mubr.bf16.mxu0 %v3672_v1  ;;  %v2494_v56 = vld [vmem:[#allocation2 + $0x98] sm:$0x3f]  ;;  %v3690_v7 = vsel %vm3332_vm3, %v3671_v34, %v3689_v39  ;;  %v8715_v54 = vpack.c.bf16 %v4199_v29, %v4197_v11  ;;  %v4198_v29 = vld [vmem:[#allocation2 + $0x160] sm:$0xff]  ;;  %v3297_v11 = vpack.c.bf16 %v3253_v49, %v3253_v49 }
 0x21e   : > { %v2223_v24 = vpop.f32.mrf.mxu0  ;;  %3019 = vmatmul.mubr.bf16.gmra.mxu1 %v2693_v35  ;;  %v1350_v61 = vpop.f32.mrf.mxu1  ;;  %v2697_v10 = vsel %vm2617_vm2, %v2692_v2, %v9440_v31  ;;  %v2538_v51 = vpack.c.bf16 %v2494_v56, %v2494_v56  ;;  %v4193_v2 = vld [vmem:[#allocation2 + $0x78] sm:$0xf0]  ;;  %v3722_v45 = vshll.u32 %v3298_v16, 16 }
 0x21f   : > { %3026 = vmatprep.mubr.bf16.mxu1 %v2699_v55  ;;  %v4195_v55 = vld [vmem:[#allocation2 + $0xe0] sm:$0xff]  ;;  %v4952_v49 = vld [vmem:[#allocation2 + $0x78] sm:$0xe0] }
 0x220   : > { %v2224_v6 = vpop.f32.mrf.mxu0  ;;  %v8700_v33 = vpop.f32.mrf.mxu1 }
 0x221   : > { %v8697_v21 = vadd.f32 %v2224_v6, %v8655_v32  ;;  %v3706_v32 = vrot.slane %v3704_v60, 4  ;;  %v2703_v6 = vsel %vm2617_vm2, %v2698_v12, %v2702_v63  ;;  %v3695_v60 = vshll.u32 %v8687_v28, 16 }
 0x222   : > { %v2226_v25 = vpop.f32.mrf.mxu0  ;;  %v1353_v24 = vpop.f32.mrf.mxu1  ;;  %v3681_v63 = vsel %vm3332_vm3, %v3662_v52, %v8710_v18  ;;  %v4196_v52 = vld [vmem:[#allocation2] sm:$0xff] }
 0x223   : > { %v8719_v57 = vor.u32 %v3706_v32, %v3703_v20  ;;  %v3719_v25 = vshrl.u32 %v3298_v16, 16  ;;  %v4203_v16 = vld [vmem:[#allocation2 + $0x18] sm:$0xff]  ;;  %v4201_v20 = vld [vmem:[#allocation2 + $0x2a8] sm:$0xff] }
 0x224   : > { %v2229_v1 = vpop.f32.mrf.mxu0  ;;  %4034 = vmatmul.mubr.bf16.gmra.mxu0 %v3663_v38  ;;  %v8712_v34 = vpop.f32.mrf.mxu1 }
 0x225   : > { %v8705_v26 = vadd.f32 %v2229_v1, %v8666_v48  ;;  %4041 = vmatprep.mubr.bf16.mxu0 %v3690_v7  ;;  %v3692_v48 = vshrl.u32 %v8687_v28, 16  ;;  %v4279_v1 = vpack.c.bf16 %v4195_v55, %v4193_v2  ;;  %v2700_v7 = vrot.slane %v2538_v51, 3 }
 0x226   : > { %v2231_v35 = vpop.f32.mrf.mxu0  ;;  %3027 = vmatmul.mubr.bf16.gmra.mxu1 %v2697_v10  ;;  %v1358_v56 = vpop.f32.mrf.mxu1  ;;  %v4194_v10 = vld [vmem:[#allocation2 + $0x128] sm:$0xff]  ;;  %v3724_v2 = vrot.slane %v3722_v45, 4  ;;  %v8739_v45 = vpack.c.bf16 %v4203_v16, %v4201_v20 }
 0x227   : > { %9474 = vst [vmem:[#allocation4_spill] sm:$0xff] %v8705_v26  ;;  %3034 = vmatprep.mubr.bf16.mxu1 %v2703_v6  ;;  %v3694_v32 = vrot.slane %v3692_v48, 3  ;;  %v3697_v35 = vrot.slane %v3695_v60, 4  ;;  %v4192_v56 = vld [vmem:[#allocation2 + $0xf8] sm:$0xf0]  ;;  %v4403_v48 = vrot.slane %v4279_v1, 2  ;;  %v8734_v60 = vpack.c.bf16 %v4198_v29, %v4196_v52 }
 0x228   : > { %v2232_v61 = vpop.f32.mrf.mxu0  ;;  %v8726_v24 = vpop.f32.mrf.mxu1 }
 0x229   : > { %v8722_v38 = vadd.f32 %v2232_v61, %v8678_v53  ;;  %v3708_v53 = vsel %vm3332_vm3, %v3689_v39, %v8719_v57  ;;  %v3721_v61 = vrot.slane %v3719_v25, 3  ;;  %v4278_v25 = vpack.c.bf16 %v4194_v10, %v4192_v56 }
 0x22a   : > { %v2234_v12 = vpop.f32.mrf.mxu0  ;;  %v3698_v29 = vor.u32 %v3697_v35, %v3694_v32  ;;  %v4401_v16 = vrot.slane %v8734_v60, 2 }
 0x22b   : > { %9475 = vst [vmem:[#allocation5_spill] sm:$0xff] %v8722_v38  ;;  %v1361_v12 = vpop.f32.mrf.mxu1  ;;  %v5038_v38 = vpack.c.bf16 %v4195_v55, %v4952_v49 }
 0x22c   : > { %v2237_v6 = vpop.f32.mrf.mxu0  ;;  %4042 = vmatmul.mubr.bf16.gmra.mxu0 %v3681_v63  ;;  %v9477_v63 = vrot.slane %v8687_v28, 3  ;;  %v5141_v28 = vshrl.u32 %v8715_v54, 16  ;;  %v4400_v12 = vrot.slane %v4278_v25, 2  ;;  %v3699_v35 = vsel %vm3332_vm3, %v8710_v18, %v3698_v29 }
 0x22d   : > { %v8732_v51 = vadd.f32 %v2237_v6, %v8691_v47  ;;  %4049 = vmatprep.mubr.bf16.mxu0 %v3708_v53  ;;  %v8741_v26 = vpop.f32.mrf.mxu1  ;;  %v9478_v47 = vrot.slane %v8715_v54, 2  ;;  %v3710_v6 = vshrl.u32 %v3297_v11, 16  ;;  %v3713_v53 = vshll.u32 %v3297_v11, 16 }
 0x22e   : > { %v2239_v31 = vpop.f32.mrf.mxu0  ;;  %v2701_v39 = vsel %vm2617_vm2, %v9477_v63, %v2700_v7  ;;  %v5144_v7 = vshll.u32 %v8715_v54, 16  ;;  %v5133_v49 = vshrl.u32 %v5038_v38, 16  ;;  %v4202_v63 = vld [vmem:[#allocation2 + $0x240] sm:$0xff]  ;;  %v4402_v18 = vsel %vm4399_vm4, %v4400_v12, %v4401_v16 }
 0x22f   : > { %9476 = vst [vmem:[#allocation6_spill] sm:$0xff] %v8732_v51  ;;  %3035 = vmatmul.mubr.bf16.gmra.mxu1 %v2701_v39  ;;  %v4405_v1 = vsel %vm4399_vm4, %v4403_v48, %v9478_v47  ;;  %v3725_v31 = vor.u32 %v3724_v2, %v3721_v61  ;;  %v1366_v55 = vpop.f32.mrf.mxu1  ;;  %v5136_v48 = vshll.u32 %v5038_v38, 16  ;;  %v3712_v61 = vrot.slane %v3710_v6, 3  ;;  %v4207_v39 = vld [vmem:[#allocation2 + $0x28] sm:$0xff]  ;;  %v4200_v6 = vld [vmem:[#allocation2 + $0x120] sm:$0xff] }
 0x230   : > { %v2240_v52 = vpop.f32.mrf.mxu0  ;;  %4656 = vmatprep.mubr.bf16.mxu1 %v4405_v1  ;;  %v3715_v2 = vrot.slane %v3713_v53, 4  ;;  %v5143_v1 = vrot.slane %v5141_v28, 2  ;;  %v5146_v25 = vrot.slane %v5144_v7, 3  ;;  %v4205_v53 = vld [vmem:[#allocation2 + $0x220] sm:$0xff]  ;;  %v8765_v51 = vpack.c.bf16 %v4202_v63, %v4200_v6 }
 0x231   : > { %v8749_v20 = vadd.f32 %v2240_v52, %v8700_v33  ;;  %v8752_v32 = vpop.f32.mrf.mxu1  ;;  %v3726_v47 = vsel %vm3332_vm3, %v8719_v57, %v3725_v31  ;;  %v4951_v52 = vld [vmem:[#allocation2 + $0xf8] sm:$0xe0]  ;;  %v8767_v57 = vpack.c.bf16 %v4207_v39, %v4205_v53  ;;  %v9481_v28 = vrot.slane %v8715_v54, 2 }
 0x232   : > { %v2242_v56 = vpop.f32.mrf.mxu0  ;;  %v3716_v12 = vor.u32 %v3715_v2, %v3712_v61  ;;  %v5162_v63 = vshll.u32 %v8739_v45, 16  ;;  %v4406_v61 = vrot.slane %v8765_v51, 2  ;;  %v4204_v2 = vld [vmem:[#allocation2 + $0x60] sm:$0xff] }
 0x233   : > { %9479 = vst [vmem:[#allocation7_spill] sm:$0xff] %v8749_v20  ;;  %v1369_v55 = vpop.f32.mrf.mxu1  ;;  %v5037_v56 = vpack.c.bf16 %v4194_v10, %v4951_v52  ;;  %v5138_v20 = vrot.slane %v5136_v48, 3  ;;  %v5127_v10 = vshll.u32 %v8734_v60, 16  ;;  %v5147_v48 = vor.u32 %v5146_v25, %v5143_v1 }
 0x234   : > { %v2245_v33 = vpop.f32.mrf.mxu0  ;;  %4050 = vmatmul.mubr.bf16.gmra.mxu0 %v3699_v35  ;;  %v5135_v35 = vrot.slane %v5133_v49, 2  ;;  %v3717_v1 = vsel %vm3332_vm3, %v3698_v29, %v3716_v12  ;;  %v4407_v12 = vsel %vm4399_vm4, %v4401_v16, %v4406_v61 }
 0x235   : > { %v8760_v38 = vadd.f32 %v2245_v33, %v8712_v34  ;;  %4057 = vmatprep.mubr.bf16.mxu0 %v3726_v47  ;;  %v8769_v31 = vpop.f32.mrf.mxu1  ;;  %v9480_v34 = vrot.slane %v8739_v45, 2  ;;  %v5124_v33 = vshrl.u32 %v8734_v60, 16  ;;  %v5116_v52 = vshrl.u32 %v5037_v56, 16 }
 0x236   : > { %v2247_v11 = vpop.f32.mrf.mxu0  ;;  %v5119_v54 = vshll.u32 %v5037_v56, 16  ;;  %v5129_v53 = vrot.slane %v5127_v10, 3  ;;  %v5164_v56 = vrot.slane %v5162_v63, 3  ;;  %v9483_v10 = vrot.slane %v8739_v45, 2 }
 0x237   : > { %4657 = vmatmul.mubr.bf16.vlgmr.msra.gmra.mxu1 %v4402_v18  ;;  %v4409_v7 = vsel %vm4399_vm4, %v9481_v28, %v9480_v34  ;;  %v5159_v11 = vshrl.u32 %v8739_v45, 16  ;;  %v1374_v47 = vpop.f32.mrf.mxu1  ;;  %v5139_v18 = vor.u32 %v5138_v20, %v5135_v35  ;;  %v5126_v25 = vrot.slane %v5124_v33, 2  ;;  %v4206_v34 = vld [vmem:[#allocation2 + $0xa0] sm:$0xff] }
 0x238   : > { %v2248_v49 = vpop.f32.mrf.mxu0  ;;  %4664 = vmatprep.mubr.bf16.mxu1 %v4409_v7  ;;  %v5118_v47 = vrot.slane %v5116_v52, 2  ;;  %v9482_v33 = vrot.slane %v8767_v57, 2  ;;  %v8800_v63 = vpack.c.bf16 %v4206_v34, %v4204_v2  ;;  %v5153_v60 = vshll.u32 %v8765_v51, 16 }
 0x239   : > { %v8781_v39 = vadd.f32 %v2248_v49, %v8726_v24  ;;  %v8785_v6 = vpop.f32.mrf.mxu1  ;;  %v5148_v24 = vsel %vm5114_vm5, %v5139_v18, %v5147_v48  ;;  %v5161_v7 = vrot.slane %v5159_v11, 2  ;;  %v4211_v49 = vld [vmem:[#allocation2 + $0x230] sm:$0xff]  ;;  %v5130_v52 = vor.u32 %v5129_v53, %v5126_v25 }
 0x23a   : > { %v2250_v55 = vpop.f32.mrf.mxu0  ;;  %v4413_v11 = vsel %vm4399_vm4, %v9483_v10, %v9482_v33  ;;  %v5177_v45 = vshrl.u32 %v8767_v57, 16  ;;  %v4410_v25 = vrot.slane %v8800_v63, 2  ;;  %v4215_v33 = vld [vmem:[#allocation2 + $0x2d8] sm:$0xff] }
 0x23b   : > { %v1377_v35 = vpop.f32.mrf.mxu1  ;;  %v5121_v55 = vrot.slane %v5119_v54, 3 }
 0x23c   : > { %v2253_v28 = vpop.f32.mrf.mxu0  ;;  %4058 = vmatmul.mubr.bf16.gmra.mxu0 %v3717_v1  ;;  %v5150_v1 = vshrl.u32 %v8765_v51, 16 }
 0x23d   : > { %v8790_v20 = vadd.f32 %v2253_v28, %v8741_v26  ;;  %5679 = vmatprep.mubr.bf16.mxu0 %v5148_v24  ;;  %v4209_v26 = vld [vmem:[#allocation2 + $0x218] sm:$0xff]  ;;  %v8802_v18 = vpop.f32.mrf.mxu1  ;;  %v5165_v28 = vor.u32 %v5164_v56, %v5161_v7  ;;  %v5180_v24 = vshll.u32 %v8767_v57, 16  ;;  %v5122_v35 = vor.u32 %v5121_v55, %v5118_v47  ;;  %v4210_v56 = vld [vmem:[#allocation2 + $0x250] sm:$0xff] }
 0x23e   : > { %v2255_v29 = vpop.f32.mrf.mxu0  ;;  %v8804_v54 = vpack.c.bf16 %v4211_v49, %v4209_v26  ;;  %v5155_v7 = vrot.slane %v5153_v60, 3 }
 0x23f   : > { %4665 = vmatmul.mubr.bf16.gmra.mxu1 %v4407_v12  ;;  %v1382_v34 = vpop.f32.mrf.mxu1  ;;  %v5131_v49 = vsel %vm5114_vm5, %v5122_v35, %v5130_v52  ;;  %v5152_v12 = vrot.slane %v5150_v1, 2  ;;  %v5182_v26 = vrot.slane %v5180_v24, 3  ;;  %v5168_v24 = vshrl.u32 %v8800_v63, 16 }
 0x240   : > { %v2256_v16 = vpop.f32.mrf.mxu0  ;;  %4672 = vmatprep.mubr.bf16.mxu1 %v4413_v11  ;;  %v4416_v51 = vrot.slane %v8804_v54, 2  ;;  %v5179_v11 = vrot.slane %v5177_v45, 2  ;;  %v4213_v34 = vld [vmem:[#allocation2 + $0x150] sm:$0xff] }
 0x241   : > { %v8811_v2 = vadd.f32 %v2256_v16, %v8752_v32  ;;  %v8814_v53 = vpop.f32.mrf.mxu1  ;;  %v5166_v32 = vsel %vm5114_vm5, %v5147_v48, %v5165_v28  ;;  %v4208_v16 = vld [vmem:[#allocation2 + $0x1a8] sm:$0xff]  ;;  %v8825_v60 = vpack.c.bf16 %v4215_v33, %v4213_v34  ;;  %v9485_v48 = vrot.slane %v8767_v57, 2 }
 0x242   : > { %v2258_v29 = vpop.f32.mrf.mxu0  ;;  %v8823_v1 = vpack.c.bf16 %v4210_v56, %v4208_v16  ;;  %v5198_v56 = vshll.u32 %v8804_v54, 16  ;;  %v5170_v34 = vrot.slane %v5168_v24, 2 }
 0x243   : > { %9484 = vst [vmem:[#allocation8_spill] sm:$0xff] %v8811_v2  ;;  %v1385_v55 = vpop.f32.mrf.mxu1  ;;  %v4411_v29 = vsel %vm4399_vm4, %v4406_v61, %v4410_v25  ;;  %v4417_v45 = vsel %vm4399_vm4, %v9485_v48, %v4416_v51  ;;  %v5195_v61 = vshrl.u32 %v8804_v54, 16  ;;  %v4219_v48 = vld [vmem:[#allocation2 + $0x50] sm:$0xff] }
 0x244   : > { %v2261_v10 = vpop.f32.mrf.mxu0  ;;  %5680 = vmatmul.mubr.bf16.vlgmr.msra.gmra.mxu0 %v5131_v49  ;;  %v5171_v49 = vshll.u32 %v8800_v63, 16  ;;  %v4414_v57 = vrot.slane %v8823_v1, 2 }
 0x245   : > { %v8820_v47 = vadd.f32 %v2261_v10, %v8769_v31  ;;  %5687 = vmatprep.mubr.bf16.mxu0 %v5166_v32  ;;  %v8827_v2 = vpop.f32.mrf.mxu1  ;;  %v5156_v31 = vor.u32 %v5155_v7, %v5152_v12  ;;  %v5183_v32 = vor.u32 %v5182_v26, %v5179_v11  ;;  %v4420_v12 = vrot.slane %v8825_v60, 2  ;;  %v4214_v11 = vld [vmem:[#allocation2 + $0x90] sm:$0xff] }
 0x246   : > { %v2263_v35 = vpop.f32.mrf.mxu0 }
 0x247   : > { %4673 = vmatmul.mubr.bf16.gmra.mxu1 %v4411_v29  ;;  %v1390_v55 = vpop.f32.mrf.mxu1  ;;  %v5157_v63 = vsel %vm5114_vm5, %v5130_v52, %v5156_v31  ;;  %v5173_v35 = vrot.slane %v5171_v49, 3  ;;  %v5184_v54 = vsel %vm5114_vm5, %v5165_v28, %v5183_v32  ;;  %v5197_v29 = vrot.slane %v5195_v61, 2  ;;  %v4217_v49 = vld [vmem:[#allocation2 + $0xb0] sm:$0xff] }
 0x248   : > { %v2264_v10 = vpop.f32.mrf.mxu0  ;;  %4680 = vmatprep.mubr.bf16.mxu1 %v4417_v45  ;;  %v4212_v55 = vld [vmem:[#allocation2 + $0x40] sm:$0xff]  ;;  %v4421_v52 = vsel %vm4399_vm4, %v4416_v51, %v4420_v12  ;;  %v8852_v61 = vpack.c.bf16 %v4219_v48, %v4217_v49  ;;  %v5216_v51 = vshll.u32 %v8825_v60, 16 }
 0x249   : > { %v8837_v33 = vadd.f32 %v2264_v10, %v8785_v6  ;;  %v8841_v7 = vpop.f32.mrf.mxu1  ;;  %v5200_v6 = vrot.slane %v5198_v56, 3  ;;  %v8850_v24 = vpack.c.bf16 %v4214_v11, %v4212_v55  ;;  %v5174_v28 = vor.u32 %v5173_v35, %v5170_v34 }
 0x24a   : > { %v2266_v16 = vpop.f32.mrf.mxu0  ;;  %v5186_v56 = vshrl.u32 %v8823_v1, 16 }
 0x24b   : > { %9486 = vst [vmem:[#allocation9_spill] sm:$0xff] %v8837_v33  ;;  %v1393_v10 = vpop.f32.mrf.mxu1  ;;  %v4415_v33 = vsel %vm4399_vm4, %v4410_v25, %v4414_v57  ;;  %v5213_v25 = vshrl.u32 %v8825_v60, 16  ;;  %v4418_v35 = vrot.slane %v8850_v24, 2  ;;  %v5175_v55 = vsel %vm5114_vm5, %v5156_v31, %v5174_v28  ;;  %v4216_v31 = vld [vmem:[#allocation2 + $0x288] sm:$0xff] }
 0x24c   : > { %v2269_v26 = vpop.f32.mrf.mxu0  ;;  %5688 = vmatmul.mubr.bf16.gmra.mxu0 %v5157_v63  ;;  %v5201_v10 = vor.u32 %v5200_v6, %v5197_v29  ;;  %v4223_v29 = vld [vmem:[#allocation2 + $0x190] sm:$0xff] }
 0x24d   : > { %v8846_v45 = vadd.f32 %v2269_v26, %v8802_v18  ;;  %5695 = vmatprep.mubr.bf16.mxu0 %v5184_v54  ;;  %v2876_v63 = vpop.f32.mrf.mxu1  ;;  %v5189_v18 = vshll.u32 %v8823_v1, 16  ;;  %v4424_v1 = vrot.slane %v8852_v61, 2  ;;  %v5215_v49 = vrot.slane %v5213_v25, 2 }
 0x24e   : > { %v2271_v16 = vpop.f32.mrf.mxu0  ;;  %v3085_v26 = vadd.f32 %v2876_v63, %v8258_v15  ;;  %v5188_v15 = vrot.slane %v5186_v56, 2  ;;  %v5218_v63 = vrot.slane %v5216_v51, 3  ;;  %v5204_v51 = vshrl.u32 %v8850_v24, 16 }
 0x24f   : > { %4681 = vmatmul.mubr.bf16.gmra.mxu1 %v4415_v33  ;;  %v2878_v33 = vpop.f32.mrf.mxu1  ;;  %v5191_v16 = vrot.slane %v5189_v18, 3  ;;  %v4419_v18 = vsel %vm4399_vm4, %v4414_v57, %v4418_v35  ;;  %v5231_v57 = vshrl.u32 %v8852_v61, 16 }
 0x250   : > { %v2272_v54 = vpop.f32.mrf.mxu0  ;;  %4688 = vmatprep.mubr.bf16.mxu1 %v4421_v52  ;;  %v4218_v52 = vld [vmem:[#allocation2 + $0x1b8] sm:$0xff] }
 0x251   : > { %v8860_v11 = vadd.f32 %v2272_v54, %v8814_v53  ;;  %v2879_v48 = vpop.f32.mrf.mxu1  ;;  %v5202_v53 = vsel %vm5114_vm5, %v5183_v32, %v5201_v10  ;;  %v4425_v32 = vsel %vm4399_vm4, %v4420_v12, %v4424_v1  ;;  %v5192_v25 = vor.u32 %v5191_v16, %v5188_v15 }
 0x252   : > { %v2274_v34 = vpop.f32.mrf.mxu0  ;;  %v8866_v6 = vadd.f32 %v2879_v48, %v8293_v43 }
 0x253   : > { %9487 = vst [vmem:[#allocation10_spill] sm:$0xff] %v8860_v11  ;;  %v2881_v33 = vpop.f32.mrf.mxu1  ;;  %v4221_v34 = vld [vmem:[#allocation2 + $0x208] sm:$0xff]  ;;  %v8873_v11 = vpack.c.bf16 %v4218_v52, %v4216_v31  ;;  %v5234_v52 = vshll.u32 %v8852_v61, 16  ;;  %v5233_v61 = vrot.slane %v5231_v57, 2 }
 0x254   : > { %v2277_v60 = vpop.f32.mrf.mxu0  ;;  %5696 = vmatmul.mubr.bf16.gmra.mxu0 %v5175_v55  ;;  %v8875_v43 = vpack.c.bf16 %v4223_v29, %v4221_v34 }
 0x255   : > { %v8870_v54 = vadd.f32 %v2277_v60, %v8827_v2  ;;  %5703 = vmatprep.mubr.bf16.mxu0 %v5202_v53  ;;  %v2884_v48 = vpop.f32.mrf.mxu1  ;;  %v5207_v2 = vshll.u32 %v8850_v24, 16  ;;  %v5219_v53 = vor.u32 %v5218_v63, %v5215_v49  ;;  %v4422_v12 = vrot.slane %v8873_v11, 2 }
 0x256   : > { %v2279_v56 = vpop.f32.mrf.mxu0  ;;  %v3087_v55 = vadd.f32 %v2884_v48, %v8314_v3  ;;  %v9441_v15 = vrot.slane %v8875_v43, 2  ;;  %v5193_v24 = vsel %vm5114_vm5, %v5174_v28, %v5192_v25  ;;  %v5206_v3 = vrot.slane %v5204_v51, 2  ;;  %v4227_v48 = vld [vmem:[#allocation2 + $0x280] sm:$0xff] }
 0x257   : > { %4689 = vmatmul.mubr.bf16.gmra.mxu1 %v4419_v18  ;;  %v2886_v33 = vpop.f32.mrf.mxu1  ;;  %v5209_v34 = vrot.slane %v5207_v2, 3  ;;  %v4222_v56 = vld [vmem:[#allocation2 + $0x8] sm:$0xff]  ;;  %v5236_v18 = vrot.slane %v5234_v52, 3  ;;  %v4423_v28 = vsel %vm4399_vm4, %v4418_v35, %v4422_v12  ;;  %v4225_v2 = vld [vmem:[#allocation2 + $0xc0] sm:$0xff]  ;;  %v5225_v52 = vshll.u32 %v8873_v11, 16 }
 0x258   : > { %v2280_v60 = vpop.f32.mrf.mxu0  ;;  %4696 = vmatprep.mubr.bf16.mxu1 %v4425_v32  ;;  %v4220_v33 = vld [vmem:[#allocation2 + $0x188] sm:$0xff]  ;;  %v8901_v57 = vpack.c.bf16 %v4227_v48, %v4225_v2 }
 0x259   : > { %v8884_v29 = vadd.f32 %v2280_v60, %v8841_v7  ;;  %v2887_v16 = vpop.f32.mrf.mxu1  ;;  %v5220_v7 = vsel %vm5114_vm5, %v5201_v10, %v5219_v53  ;;  %v8899_v51 = vpack.c.bf16 %v4222_v56, %v4220_v33  ;;  %v5210_v10 = vor.u32 %v5209_v34, %v5206_v3 }
 0x25a   : > { %v2282_v31 = vpop.f32.mrf.mxu0  ;;  %v8890_v49 = vadd.f32 %v2887_v16, %v8349_v5  ;;  %v4429_v5 = vsel %vm4399_vm4, %v4424_v1, %v9441_v15  ;;  %v5237_v35 = vor.u32 %v5236_v18, %v5233_v61  ;;  %v5252_v1 = vshll.u32 %v8875_v43, 16  ;;  %v4231_v61 = vld [vmem:[#allocation2 + $0x2a0] sm:$0xff] }
 0x25b   : > { %v2889_v60 = vpop.f32.mrf.mxu1  ;;  %v4426_v34 = vrot.slane %v8899_v51, 2  ;;  %v5211_v33 = vsel %vm5114_vm5, %v5192_v25, %v5210_v10  ;;  %v4224_v25 = vld [vmem:[#allocation2 + $0xb8] sm:$0xff] }
 0x25c   : > { %v3899_v63 = vpop.f32.mrf.mxu0  ;;  %5704 = vmatmul.mubr.bf16.gmra.mxu0 %v5193_v24 }
 0x25d   : > { %v8893_v32 = vadd.f32 %v3899_v63, %v3085_v26  ;;  %5711 = vmatprep.mubr.bf16.mxu0 %v5220_v7  ;;  %v2892_v16 = vpop.f32.mrf.mxu1  ;;  %v5222_v26 = vshrl.u32 %v8873_v11, 16  ;;  %v5249_v7 = vshrl.u32 %v8875_v43, 16  ;;  %v4432_v11 = vrot.slane %v8901_v57, 2 }
 0x25e   : > { %v3901_v31 = vpop.f32.mrf.mxu0  ;;  %v3089_v24 = vadd.f32 %v2892_v16, %v8370_v41  ;;  %v5254_v16 = vrot.slane %v5252_v1, 3  ;;  %v5243_v1 = vshll.u32 %v8899_v51, 16 }
 0x25f   : > { %4697 = vmatmul.mubr.bf16.gmra.mxu1 %v4423_v28  ;;  %v2894_v60 = vpop.f32.mrf.mxu1  ;;  %v5224_v41 = vrot.slane %v5222_v26, 2  ;;  %v5227_v31 = vrot.slane %v5225_v52, 3  ;;  %v4226_v28 = vld [vmem:[#allocation2 + $0x1c8] sm:$0xff]  ;;  %v5251_v2 = vrot.slane %v5249_v7, 2  ;;  %v4427_v26 = vsel %vm4399_vm4, %v4422_v12, %v4426_v34 }
 0x260   : > { %v3902_v63 = vpop.f32.mrf.mxu0  ;;  %4704 = vmatprep.mubr.bf16.mxu1 %v4429_v5  ;;  %v8921_v52 = vpack.c.bf16 %v4226_v28, %v4224_v25  ;;  %v5267_v28 = vshrl.u32 %v8901_v57, 16  ;;  %v5245_v25 = vrot.slane %v5243_v1, 3 }
 0x261   : > { %v8909_v56 = vadd.f32 %v3902_v63, %v8866_v6  ;;  %v2895_v48 = vpop.f32.mrf.mxu1  ;;  %v5238_v6 = vsel %vm5114_vm5, %v5219_v53, %v5237_v35  ;;  %v5228_v7 = vor.u32 %v5227_v31, %v5224_v41  ;;  %v5255_v12 = vor.u32 %v5254_v16, %v5251_v2 }
 0x262   : > { %v3904_v3 = vpop.f32.mrf.mxu0  ;;  %v8915_v18 = vadd.f32 %v2895_v48, %v8405_v23  ;;  %v9489_v48 = vrot.slane %v8875_v43, 2  ;;  %v4430_v41 = vrot.slane %v8921_v52, 2 }
 0x263   : > { %9488 = vst [vmem:[#allocation11_spill] sm:$0xff] %v8909_v56  ;;  %v2897_v60 = vpop.f32.mrf.mxu1  ;;  %v4229_v3 = vld [vmem:[#allocation2 + $0x1b0] sm:$0xff] }
 0x264   : > { %v3907_v5 = vpop.f32.mrf.mxu0  ;;  %5712 = vmatmul.mubr.bf16.gmra.mxu0 %v5211_v33  ;;  %v8923_v56 = vpack.c.bf16 %v4231_v61, %v4229_v3  ;;  %v4433_v53 = vsel %vm4399_vm4, %v9489_v48, %v4432_v11  ;;  %v5270_v61 = vshll.u32 %v8901_v57, 16  ;;  %v4230_v3 = vld [vmem:[#allocation2 + $0xa8] sm:$0xff]  ;;  %v5269_v57 = vrot.slane %v5267_v28, 2 }
 0x265   : > { %v8918_v63 = vadd.f32 %v3907_v5, %v3087_v55  ;;  %5719 = vmatprep.mubr.bf16.mxu0 %v5238_v6  ;;  %v5240_v55 = vshrl.u32 %v8899_v51, 16  ;;  %v5229_v51 = vsel %vm5114_vm5, %v5210_v10, %v5228_v7  ;;  %v4431_v10 = vsel %vm4399_vm4, %v4426_v34, %v4430_v41 }
 0x266   : > { %v3909_v15 = vpop.f32.mrf.mxu0  ;;  %v2900_v23 = vpop.f32.mrf.mxu1  ;;  %v4436_v31 = vrot.slane %v8923_v56, 2  ;;  %v5258_v28 = vshrl.u32 %v8921_v52, 16  ;;  %v5285_v34 = vshrl.u32 %v8923_v56, 16 }
 0x267   : > { %4705 = vmatmul.mubr.bf16.gmra.mxu1 %v4427_v26  ;;  %v3091_v33 = vadd.f32 %v2900_v23, %v8423_v27  ;;  %v5242_v27 = vrot.slane %v5240_v55, 2  ;;  %v5272_v26 = vrot.slane %v5270_v61, 3  ;;  %v4233_v23 = vld [vmem:[#allocation2 + $0x1e0] sm:$0xff] }
 0x268   : > { %v3910_v15 = vpop.f32.mrf.mxu0  ;;  %4712 = vmatprep.mubr.bf16.mxu1 %v4433_v53  ;;  %v2902_v43 = vpop.f32.mrf.mxu1  ;;  %v4437_v55 = vsel %vm4399_vm4, %v4432_v11, %v4436_v31  ;;  %v5288_v11 = vshll.u32 %v8923_v56, 16 }
 0x269   : > { %v8934_v5 = vadd.f32 %v3910_v15, %v8890_v49  ;;  %v5256_v49 = vsel %vm5114_vm5, %v5237_v35, %v5255_v12  ;;  %v4228_v15 = vld [vmem:[#allocation2 + $0x100] sm:$0xff] }
 0x26a   : > { %v3912_v6 = vpop.f32.mrf.mxu0  ;;  %v2903_v60 = vpop.f32.mrf.mxu1  ;;  %v8947_v1 = vpack.c.bf16 %v4230_v3, %v4228_v15 }
 0x26b   : > { %v8940_v2 = vadd.f32 %v2903_v60, %v8450_v62  ;;  %v4235_v62 = vld [vmem:[#allocation2 + $0x1e8] sm:$0xff]  ;;  %v5246_v60 = vor.u32 %v5245_v25, %v5242_v27 }
 0x26c   : > { %v3915_v16 = vpop.f32.mrf.mxu0  ;;  %5720 = vmatmul.mubr.bf16.gmra.mxu0 %v5229_v51  ;;  %v2905_v53 = vpop.f32.mrf.mxu1  ;;  %v8949_v35 = vpack.c.bf16 %v4235_v62, %v4233_v23  ;;  %v4434_v25 = vrot.slane %v8947_v1, 2 }
 0x26d   : > { %v8943_v48 = vadd.f32 %v3915_v16, %v3089_v24  ;;  %5727 = vmatprep.mubr.bf16.mxu0 %v5256_v49  ;;  %v5261_v24 = vshll.u32 %v8921_v52, 16  ;;  %v5273_v16 = vor.u32 %v5272_v26, %v5269_v57  ;;  %v5247_v53 = vsel %vm5114_vm5, %v5228_v7, %v5246_v60  ;;  %v4234_v57 = vld [vmem:[#allocation2 + $0x2c8] sm:$0xff] }
 0x26e   : > { %v3917_v43 = vpop.f32.mrf.mxu0  ;;  %v2908_v6 = vpop.f32.mrf.mxu1  ;;  %v4440_v52 = vrot.slane %v8949_v35, 2 }
 0x26f   : > { %4713 = vmatmul.mubr.bf16.gmra.mxu1 %v4431_v10  ;;  %v3093_v61 = vadd.f32 %v2908_v6, %v8465_v36  ;;  %v5260_v36 = vrot.slane %v5258_v28, 2  ;;  %v5263_v15 = vrot.slane %v5261_v24, 3  ;;  %v4232_v43 = vld [vmem:[#allocation2 + $0x210] sm:$0xff]  ;;  %v5287_v10 = vrot.slane %v5285_v34, 2  ;;  %v4237_v24 = vld [vmem:[#allocation2 + $0x248] sm:$0xff] }
 0x270   : > { %v3918_v51 = vpop.f32.mrf.mxu0  ;;  %4720 = vmatprep.mubr.bf16.mxu1 %v4437_v55  ;;  %v2910_v49 = vpop.f32.mrf.mxu1  ;;  %v5290_v55 = vrot.slane %v5288_v11, 3  ;;  %v8969_v28 = vpack.c.bf16 %v4234_v57, %v4232_v43  ;;  %v5279_v34 = vshll.u32 %v8947_v1, 16  ;;  %v5306_v43 = vshll.u32 %v8949_v35, 16 }
 0x271   : > { %v8957_v3 = vadd.f32 %v3918_v51, %v8915_v18  ;;  %v5274_v18 = vsel %vm5114_vm5, %v5255_v12, %v5273_v16  ;;  %v4435_v51 = vsel %vm4399_vm4, %v4430_v41, %v4434_v25  ;;  %v4239_v49 = vld [vmem:[#allocation2 + $0x108] sm:$0xff]  ;;  %v5276_v12 = vshrl.u32 %v8947_v1, 16 }
 0x272   : > { %v3920_v27 = vpop.f32.mrf.mxu0  ;;  %v2911_v23 = vpop.f32.mrf.mxu1  ;;  %v5303_v41 = vshrl.u32 %v8949_v35, 16 }
 0x273   : > { %v8963_v26 = vadd.f32 %v2911_v23, %v8486_v14  ;;  %v4441_v14 = vsel %vm4399_vm4, %v4436_v31, %v4440_v52  ;;  %v5264_v23 = vor.u32 %v5263_v15, %v5260_v36  ;;  %v4438_v36 = vrot.slane %v8969_v28, 2  ;;  %v4236_v15 = vld [vmem:[#allocation2 + $0xe8] sm:$0xff] }
 0x274   : > { %v3923_v56 = vpop.f32.mrf.mxu0  ;;  %5728 = vmatmul.mubr.bf16.gmra.mxu0 %v5247_v53  ;;  %v2913_v6 = vpop.f32.mrf.mxu1  ;;  %v5291_v53 = vor.u32 %v5290_v55, %v5287_v10  ;;  %v4241_v10 = vld [vmem:[#allocation2 + $0x290] sm:$0xff]  ;;  %v4243_v55 = vld [vmem:[#allocation2 + $0x178] sm:$0xff] }
 0x275   : > { %v8966_v62 = vadd.f32 %v3923_v56, %v3091_v33  ;;  %5735 = vmatprep.mubr.bf16.mxu0 %v5274_v18  ;;  %v4301_v18 = vpack.c.bf16 %v4239_v49, %v4237_v24  ;;  %v4238_v6 = vld [vmem:[#allocation2 + $0x138] sm:$0xff]  ;;  %v5305_v24 = vrot.slane %v5303_v41, 2  ;;  %v5308_v49 = vrot.slane %v5306_v43, 3 }
 0x276   : > { %v3925_v7 = vpop.f32.mrf.mxu0  ;;  %v2916_v27 = vpop.f32.mrf.mxu1 }
 0x277   : > { %4721 = vmatmul.mubr.bf16.gmra.mxu1 %v4435_v51  ;;  %v3095_v33 = vadd.f32 %v2916_v27, %v8494_v46  ;;  %v5265_v46 = vsel %vm5114_vm5, %v5246_v60, %v5264_v23  ;;  %v5278_v7 = vrot.slane %v5276_v12, 2  ;;  %v5281_v51 = vrot.slane %v5279_v34, 3 }
 0x278   : > { %v3926_v11 = vpop.f32.mrf.mxu0  ;;  %4728 = vmatprep.mubr.bf16.mxu1 %v4441_v14  ;;  %v2918_v56 = vpop.f32.mrf.mxu1  ;;  %v4439_v12 = vsel %vm4399_vm4, %v4434_v25, %v4438_v36  ;;  %v8991_v34 = vpack.c.bf16 %v4243_v55, %v4241_v10 }
 0x279   : > { %v8978_v57 = vadd.f32 %v3926_v11, %v8940_v2  ;;  %v5292_v2 = vsel %vm5114_vm5, %v5273_v16, %v5291_v53  ;;  %v4444_v56 = vrot.slane %v4301_v18, 2  ;;  %v5294_v16 = vshrl.u32 %v8969_v28, 16 }
 0x27a   : > { %v3928_v31 = vpop.f32.mrf.mxu0  ;;  %v2919_v1 = vpop.f32.mrf.mxu1 }
 0x27b   : > { %v8983_v27 = vadd.f32 %v2919_v1, %v8507_v0  ;;  %v8988_v31 = vpack.c.bf16 %v4238_v6, %v4236_v15  ;;  %v4445_v1 = vsel %vm4399_vm4, %v4440_v52, %v4444_v56  ;;  %v5309_v15 = vor.u32 %v5308_v49, %v5305_v24 }
 0x27c   : > { %v3931_v35 = vpop.f32.mrf.mxu0  ;;  %5736 = vmatmul.mubr.bf16.gmra.mxu0 %v5265_v46  ;;  %v2921_v11 = vpop.f32.mrf.mxu1  ;;  %v5282_v46 = vor.u32 %v5281_v51, %v5278_v7  ;;  %v9442_v52 = vrot.slane %v8991_v34, 2  ;;  %v5321_v7 = vshrl.u32 %v4301_v18, 16  ;;  %v5324_v51 = vshll.u32 %v4301_v18, 16 }
 0x27d   : > { %v8986_v14 = vadd.f32 %v3931_v35, %v3093_v61  ;;  %5743 = vmatprep.mubr.bf16.mxu0 %v5292_v2  ;;  %v5297_v61 = vshll.u32 %v8969_v28, 16  ;;  %v4442_v10 = vrot.slane %v8988_v31, 2  ;;  %v5296_v2 = vrot.slane %v5294_v16, 2  ;;  %v4240_v11 = vld [vmem:[#allocation2 + $0xd8] sm:$0xff] }
 0x27e   : > { %v3933_v60 = vpop.f32.mrf.mxu0  ;;  %v2924_v0 = vpop.f32.mrf.mxu1  ;;  %v5283_v28 = vsel %vm5114_vm5, %v5264_v23, %v5282_v46  ;;  %v5310_v49 = vsel %vm5114_vm5, %v5291_v53, %v5309_v15  ;;  %v4449_v16 = vsel %vm4399_vm4, %v4444_v56, %v9442_v52  ;;  %v5339_v56 = vshrl.u32 %v8991_v34, 16 }
 0x27f   : > { %4729 = vmatmul.mubr.bf16.gmra.mxu1 %v4439_v12  ;;  %v8997_v41 = vadd.f32 %v2924_v0, %v8516_v17  ;;  %v5299_v17 = vrot.slane %v5297_v61, 3  ;;  %v4242_v60 = vld [vmem:[#allocation2 + $0x38] sm:$0xff]  ;;  %v4247_v0 = vld [vmem:[#allocation2 + $0x148] sm:$0xff]  ;;  %v4443_v18 = vsel %vm4399_vm4, %v4438_v36, %v4442_v10  ;;  %v5323_v61 = vrot.slane %v5321_v7, 2 }
 0x280   : > { %v3934_v43 = vpop.f32.mrf.mxu0  ;;  %4736 = vmatprep.mubr.bf16.mxu1 %v4445_v1  ;;  %v2926_v25 = vpop.f32.mrf.mxu1  ;;  %v4245_v12 = vld [vmem:[#allocation2 + $0x1d8] sm:$0xff]  ;;  %v5342_v7 = vshll.u32 %v8991_v34, 16 }
 0x281   : > { %v9000_v6 = vadd.f32 %v3934_v43, %v8963_v26  ;;  %v9015_v25 = vpack.c.bf16 %v4242_v60, %v4240_v11  ;;  %v5300_v53 = vor.u32 %v5299_v17, %v5296_v2 }
 0x282   : > { %v3936_v55 = vpop.f32.mrf.mxu0  ;;  %v2927_v35 = vpop.f32.mrf.mxu1 }
 0x283   : > { %v9006_v24 = vadd.f32 %v2927_v35, %v8531_v9  ;;  %v5326_v9 = vrot.slane %v5324_v51, 3  ;;  %v9017_v35 = vpack.c.bf16 %v4247_v0, %v4245_v12  ;;  %v4446_v60 = vrot.slane %v9015_v25, 2 }
 0x284   : > { %v3939_v26 = vpop.f32.mrf.mxu0  ;;  %5744 = vmatmul.mubr.bf16.gmra.mxu0 %v5283_v28  ;;  %v2929_v43 = vpop.f32.mrf.mxu1  ;;  %v5315_v28 = vshll.u32 %v8988_v31, 16 }
 0x285   : > { %v9009_v1 = vadd.f32 %v3939_v26, %v3095_v33  ;;  %5751 = vmatprep.mubr.bf16.mxu0 %v5310_v49  ;;  %v5312_v33 = vshrl.u32 %v8988_v31, 16  ;;  %v5327_v17 = vor.u32 %v5326_v9, %v5323_v61  ;;  %v4244_v49 = vld [vmem:[#allocation2 + $0xc8] sm:$0xff]  ;;  %v5301_v31 = vsel %vm5114_vm5, %v5282_v46, %v5300_v53 }
 0x286   : > { %v3941_v23 = vpop.f32.mrf.mxu0  ;;  %v2932_v55 = vpop.f32.mrf.mxu1  ;;  %v5317_v43 = vrot.slane %v5315_v28, 3  ;;  %v5341_v9 = vrot.slane %v5339_v56, 2 }
 0x287   : > { %4737 = vmatmul.mubr.bf16.gmra.mxu1 %v4443_v18  ;;  %v9022_v36 = vadd.f32 %v2932_v55, %v8540_v42  ;;  %v4452_v42 = vrot.slane %v9017_v35, 2  ;;  %v5314_v0 = vrot.slane %v5312_v33, 2  ;;  %v4246_v18 = vld [vmem:[#allocation2 + $0x1f8] sm:$0xff]  ;;  %v4249_v23 = vld [vmem:[#allocation2 + $0x268] sm:$0xff]  ;;  %v5328_v61 = vsel %vm5114_vm5, %v5309_v15, %v5327_v17 }
 0x288   : > { %v3942_v26 = vpop.f32.mrf.mxu0  ;;  %4744 = vmatprep.mubr.bf16.mxu1 %v4449_v16  ;;  %v2934_v11 = vpop.f32.mrf.mxu1  ;;  %v4251_v16 = vld [vmem:[#allocation2 + $0x228] sm:$0xff]  ;;  %v4447_v33 = vsel %vm4399_vm4, %v4442_v10, %v4446_v60  ;;  %v9040_v28 = vpack.c.bf16 %v4246_v18, %v4244_v49  ;;  %v5357_v49 = vshrl.u32 %v9017_v35, 16  ;;  %v5360_v18 = vshll.u32 %v9017_v35, 16 }
 0x289   : > { %v9027_v51 = vadd.f32 %v3942_v26, %v8983_v27  ;;  %v5344_v26 = vrot.slane %v5342_v7, 3  ;;  %v9042_v52 = vpack.c.bf16 %v4251_v16, %v4249_v23  ;;  %v5318_v56 = vor.u32 %v5317_v43, %v5314_v0 }
 0x28a   : > { %v3944_v2 = vpop.f32.mrf.mxu0  ;;  %v2935_v12 = vpop.f32.mrf.mxu1  ;;  %v5330_v7 = vshrl.u32 %v9015_v25, 16  ;;  %v4450_v0 = vrot.slane %v9040_v28, 2 }
 0x28b   : > { %v9033_v55 = vadd.f32 %v2935_v12, %v8555_v40  ;;  %v9490_v12 = vrot.slane %v8991_v34, 2  ;;  %v5345_v10 = vor.u32 %v5344_v26, %v5341_v9  ;;  %v9443_v43 = vrot.slane %v9042_v52, 2  ;;  %v4250_v9 = vld [vmem:[#allocation2 + $0x118] sm:$0xff] }
 0x28c   : > { %v3947_v27 = vpop.f32.mrf.mxu0  ;;  %5752 = vmatmul.mubr.bf16.gmra.mxu0 %v5301_v31  ;;  %v2937_v46 = vpop.f32.mrf.mxu1 }
 0x28d   : > { %v9037_v11 = vadd.f32 %v3947_v27, %v8997_v41  ;;  %5759 = vmatprep.mubr.bf16.mxu0 %v5328_v61  ;;  %v4453_v15 = vsel %vm4399_vm4, %v9490_v12, %v4452_v42  ;;  %v5333_v41 = vshll.u32 %v9015_v25, 16  ;;  %v5332_v61 = vrot.slane %v5330_v7, 2  ;;  %v4253_v12 = vld [vmem:[#allocation2 + $0x110] sm:$0xff] }
 0x28e   : > { %v3949_v2 = vpop.f32.mrf.mxu0  ;;  %v2940_v40 = vpop.f32.mrf.mxu1  ;;  %v4451_v7 = vsel %vm4399_vm4, %v4446_v60, %v4450_v0 }
 0x28f   : > { %4745 = vmatmul.mubr.bf16.gmra.mxu1 %v4447_v33  ;;  %v9050_v31 = vadd.f32 %v2940_v40, %v8564_v4  ;;  %v5319_v4 = vsel %vm5114_vm5, %v5300_v53, %v5318_v56  ;;  %v5335_v46 = vrot.slane %v5333_v41, 3  ;;  %v4248_v2 = vld [vmem:[#allocation2 + $0x260] sm:$0xff]  ;;  %v5359_v33 = vrot.slane %v5357_v49, 2 }
 0x290   : > { %v3950_v27 = vpop.f32.mrf.mxu0  ;;  %4752 = vmatprep.mubr.bf16.mxu1 %v4453_v15  ;;  %v2942_v34 = vpop.f32.mrf.mxu1  ;;  %v5362_v40 = vrot.slane %v5360_v18, 3  ;;  %v4255_v15 = vld [vmem:[#allocation2 + $0x1a0] sm:$0xff]  ;;  %v9071_v41 = vpack.c.bf16 %v4250_v9, %v4248_v2  ;;  %v5348_v18 = vshrl.u32 %v9040_v28, 16 }
 0x291   : > { %v9055_v23 = vadd.f32 %v3950_v27, %v9006_v24  ;;  %v5346_v24 = vsel %vm5114_vm5, %v5327_v17, %v5345_v10  ;;  %v5336_v17 = vor.u32 %v5335_v46, %v5332_v61  ;;  %v9073_v49 = vpack.c.bf16 %v4255_v15, %v4253_v12 }
 0x292   : > { %v3952_v16 = vpop.f32.mrf.mxu0  ;;  %v2943_v25 = vpop.f32.mrf.mxu1  ;;  %v5363_v60 = vor.u32 %v5362_v40, %v5359_v33  ;;  %v4454_v9 = vrot.slane %v9071_v41, 2  ;;  %v5350_v15 = vrot.slane %v5348_v18, 2  ;;  %v4254_v33 = vld [vmem:[#allocation2 + $0x278] sm:$0xff]  ;;  %v4257_v40 = vld [vmem:[#allocation2 + $0x1f0] sm:$0xff] }
 0x293   : > { %v9061_v26 = vadd.f32 %v2943_v25, %v8579_v13  ;;  %v4457_v13 = vsel %vm4399_vm4, %v4452_v42, %v9443_v43  ;;  %v5378_v42 = vshll.u32 %v9042_v52, 16 }
 0x294   : > { %v3955_v35 = vpop.f32.mrf.mxu0  ;;  %5760 = vmatmul.mubr.bf16.gmra.mxu0 %v5319_v4  ;;  %v2945_v34 = vpop.f32.mrf.mxu1  ;;  %v4455_v18 = vsel %vm4399_vm4, %v4450_v0, %v4454_v9 }
 0x295   : > { %v9065_v27 = vadd.f32 %v3955_v35, %v9022_v36  ;;  %5767 = vmatprep.mubr.bf16.mxu0 %v5346_v24  ;;  %v5351_v36 = vshll.u32 %v9040_v28, 16  ;;  %v5375_v35 = vshrl.u32 %v9042_v52, 16  ;;  %v4252_v24 = vld [vmem:[#allocation2 + $0x198] sm:$0xff]  ;;  %v5337_v28 = vsel %vm5114_vm5, %v5318_v56, %v5336_v17 }
 0x296   : > { %v3957_v53 = vpop.f32.mrf.mxu0  ;;  %v2948_v16 = vpop.f32.mrf.mxu1 }
 0x297   : > { %4753 = vmatmul.mubr.bf16.gmra.mxu1 %v4451_v7  ;;  %v9078_v25 = vadd.f32 %v2948_v16, %v8588_v50  ;;  %v4460_v50 = vrot.slane %v9073_v49, 2  ;;  %v5353_v34 = vrot.slane %v5351_v36, 3  ;;  %v4259_v53 = vld [vmem:[#allocation2 + $0x20] sm:$0xff]  ;;  %v5377_v16 = vrot.slane %v5375_v35, 2 }
 0x298   : > { %v3958_v4 = vpop.f32.mrf.mxu0  ;;  %4760 = vmatprep.mubr.bf16.mxu1 %v4457_v13  ;;  %v2950_v61 = vpop.f32.mrf.mxu1  ;;  %v5364_v13 = vsel %vm5114_vm5, %v5345_v10, %v5363_v60  ;;  %v9096_v36 = vpack.c.bf16 %v4254_v33, %v4252_v24  ;;  %v9098_v43 = vpack.c.bf16 %v4259_v53, %v4257_v40  ;;  %v5393_v24 = vshrl.u32 %v9073_v49, 16 }
 0x299   : > { %v9083_v2 = vadd.f32 %v3958_v4, %v9033_v55  ;;  %v5380_v4 = vrot.slane %v5378_v42, 3  ;;  %v5354_v35 = vor.u32 %v5353_v34, %v5350_v15  ;;  %v5366_v42 = vshrl.u32 %v9071_v41, 16 }
 0x29a   : > { %v3960_v46 = vpop.f32.mrf.mxu0  ;;  %v2951_v12 = vpop.f32.mrf.mxu1  ;;  %v5396_v33 = vshll.u32 %v9073_v49, 16  ;;  %v4458_v15 = vrot.slane %v9096_v36, 2  ;;  %v9444_v34 = vrot.slane %v9098_v43, 2 }
 0x29b   : > { %v9089_v7 = vadd.f32 %v2951_v12, %v8603_v58  ;;  %v9491_v12 = vrot.slane %v9042_v52, 2  ;;  %v5381_v0 = vor.u32 %v5380_v4, %v5377_v16  ;;  %v4258_v16 = vld [vmem:[#allocation2 + $0x158] sm:$0xff] }
 0x29c   : > { %v3963_v55 = vpop.f32.mrf.mxu0  ;;  %5768 = vmatmul.mubr.bf16.gmra.mxu0 %v5337_v28  ;;  %v2953_v56 = vpop.f32.mrf.mxu1 }
 0x29d   : > { %v9093_v61 = vadd.f32 %v3963_v55, %v9050_v31  ;;  %5775 = vmatprep.mubr.bf16.mxu0 %v5364_v13  ;;  %v4461_v10 = vsel %vm4399_vm4, %v9491_v12, %v4460_v50  ;;  %v5369_v31 = vshll.u32 %v9071_v41, 16  ;;  %v5368_v13 = vrot.slane %v5366_v42, 2  ;;  %v4261_v12 = vld [vmem:[#allocation2 + $0x258] sm:$0xff] }
 0x29e   : > { %v3965_v46 = vpop.f32.mrf.mxu0  ;;  %v2956_v58 = vpop.f32.mrf.mxu1  ;;  %v4459_v42 = vsel %vm4399_vm4, %v4454_v9, %v4458_v15 }
 0x29f   : > { %4761 = vmatmul.mubr.bf16.gmra.mxu1 %v4455_v18  ;;  %v9106_v28 = vadd.f32 %v2956_v58, %v8612_v37  ;;  %v5355_v37 = vsel %vm5114_vm5, %v5336_v17, %v5354_v35  ;;  %v5371_v56 = vrot.slane %v5369_v31, 3  ;;  %v4256_v46 = vld [vmem:[#allocation2 + $0x168] sm:$0xff]  ;;  %v5395_v18 = vrot.slane %v5393_v24, 2 }
 0x2a0   : > { %v3966_v55 = vpop.f32.mrf.mxu0  ;;  %4768 = vmatprep.mubr.bf16.mxu1 %v4461_v10  ;;  %v2958_v52 = vpop.f32.mrf.mxu1  ;;  %v5398_v58 = vrot.slane %v5396_v33, 3  ;;  %v4263_v10 = vld [vmem:[#allocation2 + $0x200] sm:$0xff]  ;;  %v9127_v31 = vpack.c.bf16 %v4258_v16, %v4256_v46  ;;  %v5384_v33 = vshrl.u32 %v9096_v36, 16 }
 0x2a1   : > { %v9111_v40 = vadd.f32 %v3966_v55, %v9061_v26  ;;  %v5382_v26 = vsel %vm5114_vm5, %v5363_v60, %v5381_v0  ;;  %v5372_v60 = vor.u32 %v5371_v56, %v5368_v13  ;;  %v9129_v24 = vpack.c.bf16 %v4263_v10, %v4261_v12 }
 0x2a2   : > { %v3968_v53 = vpop.f32.mrf.mxu0  ;;  %v2959_v41 = vpop.f32.mrf.mxu1  ;;  %v5399_v9 = vor.u32 %v5398_v58, %v5395_v18  ;;  %v4462_v16 = vrot.slane %v9127_v31, 2  ;;  %v5386_v10 = vrot.slane %v5384_v33, 2  ;;  %v4262_v18 = vld [vmem:[#allocation2 + $0x68] sm:$0xff]  ;;  %v4265_v58 = vld [vmem:[#allocation2 + $0x80] sm:$0xff] }
 0x2a3   : > { %v9117_v4 = vadd.f32 %v2959_v41, %v8627_v30  ;;  %v4465_v30 = vsel %vm4399_vm4, %v4460_v50, %v9444_v34  ;;  %v5414_v50 = vshll.u32 %v9098_v43, 16 }
 0x2a4   : > { %v3971_v49 = vpop.f32.mrf.mxu0  ;;  %5776 = vmatmul.mubr.bf16.gmra.mxu0 %v5355_v37  ;;  %v2961_v52 = vpop.f32.mrf.mxu1  ;;  %v4463_v33 = vsel %vm4399_vm4, %v4458_v15, %v4462_v16 }
 0x2a5   : > { %v9121_v55 = vadd.f32 %v3971_v49, %v9078_v25  ;;  %5783 = vmatprep.mubr.bf16.mxu0 %v5382_v26  ;;  %v5387_v25 = vshll.u32 %v9096_v36, 16  ;;  %v5411_v49 = vshrl.u32 %v9098_v43, 16  ;;  %v4260_v26 = vld [vmem:[#allocation2 + $0x180] sm:$0xff]  ;;  %v5373_v36 = vsel %vm5114_vm5, %v5354_v35, %v5372_v60 }
 0x2a6   : > { %v3973_v17 = vpop.f32.mrf.mxu0  ;;  %v2964_v53 = vpop.f32.mrf.mxu1 }
 0x2a7   : > { %4769 = vmatmul.mubr.bf16.gmra.mxu1 %v4459_v42  ;;  %v9134_v41 = vadd.f32 %v2964_v53, %v8636_v8  ;;  %v4468_v8 = vrot.slane %v9129_v24, 2  ;;  %v5389_v52 = vrot.slane %v5387_v25, 3  ;;  %v4267_v17 = vld [vmem:[#allocation2 + $0x2b8] sm:$0xff]  ;;  %v5413_v53 = vrot.slane %v5411_v49, 2 }
 0x2a8   : > { %v3974_v37 = vpop.f32.mrf.mxu0  ;;  %4776 = vmatprep.mubr.bf16.mxu1 %v4465_v30  ;;  %v2966_v13 = vpop.f32.mrf.mxu1  ;;  %v5400_v30 = vsel %vm5114_vm5, %v5381_v0, %v5399_v9  ;;  %v9152_v25 = vpack.c.bf16 %v4262_v18, %v4260_v26  ;;  %v9154_v34 = vpack.c.bf16 %v4267_v17, %v4265_v58  ;;  %v5429_v26 = vshrl.u32 %v9129_v24, 16 }
 0x2a9   : > { %v9139_v46 = vadd.f32 %v3974_v37, %v9089_v7  ;;  %v5416_v37 = vrot.slane %v5414_v50, 3  ;;  %v5390_v49 = vor.u32 %v5389_v52, %v5386_v10  ;;  %v5402_v50 = vshrl.u32 %v9127_v31, 16 }
 0x2aa   : > { %v3976_v56 = vpop.f32.mrf.mxu0  ;;  %v2967_v12 = vpop.f32.mrf.mxu1  ;;  %v5432_v18 = vshll.u32 %v9129_v24, 16  ;;  %v4466_v10 = vrot.slane %v9152_v25, 2  ;;  %v9445_v52 = vrot.slane %v9154_v34, 2 }
 0x2ab   : > { %v9145_v42 = vadd.f32 %v2967_v12, %v8651_v44  ;;  %v9492_v12 = vrot.slane %v9098_v43, 2  ;;  %v5417_v15 = vor.u32 %v5416_v37, %v5413_v53 }
 0x2ac   : > { %v3979_v7 = vpop.f32.mrf.mxu0  ;;  %5784 = vmatmul.mubr.bf16.gmra.mxu0 %v5373_v36  ;;  %v2969_v35 = vpop.f32.mrf.mxu1 }
 0x2ad   : > { %v9149_v13 = vadd.f32 %v3979_v7, %v9106_v28  ;;  %5791 = vmatprep.mubr.bf16.mxu0 %v5400_v30  ;;  %v4469_v0 = vsel %vm4399_vm4, %v9492_v12, %v4468_v8  ;;  %v5405_v28 = vshll.u32 %v9127_v31, 16  ;;  %v4264_v31 = vld [vmem:[#allocation2 + $0x140] sm:$0xff]  ;;  %v5391_v35 = vsel %vm5114_vm5, %v5372_v60, %v5390_v49  ;;  %v4269_v12 = vld [vmem:[#allocation2 + $0x238] sm:$0xff] }
 0x2ae   : > { %v3981_v56 = vpop.f32.mrf.mxu0  ;;  %v2972_v44 = vpop.f32.mrf.mxu1  ;;  %v4266_v30 = vld [vmem:[#allocation2 + $0x2c0] sm:$0xff] }
 0x2af   : > { %4777 = vmatmul.mubr.bf16.gmra.mxu1 %v4463_v33  ;;  %v9162_v36 = vadd.f32 %v2972_v44, %v8660_v19  ;;  %v5404_v56 = vrot.slane %v5402_v50, 2  ;;  %v5407_v53 = vrot.slane %v5405_v28, 3  ;;  %v5431_v33 = vrot.slane %v5429_v26, 2 }
 0x2b0   : > { %v3982_v7 = vpop.f32.mrf.mxu0  ;;  %4784 = vmatprep.mubr.bf16.mxu1 %v4469_v0  ;;  %v2974_v43 = vpop.f32.mrf.mxu1  ;;  %v5434_v44 = vrot.slane %v5432_v18, 3  ;;  %v4271_v0 = vld [vmem:[#allocation2 + $0x58] sm:$0xff]  ;;  %v4467_v50 = vsel %vm4399_vm4, %v4462_v16, %v4466_v10  ;;  %v5420_v18 = vshrl.u32 %v9152_v25, 16  ;;  %v5447_v16 = vshrl.u32 %v9154_v34, 16 }
 0x2b1   : > { %v9167_v58 = vadd.f32 %v3982_v7, %v9117_v4  ;;  %v5418_v4 = vsel %vm5114_vm5, %v5399_v9, %v5417_v15  ;;  %v5408_v9 = vor.u32 %v5407_v53, %v5404_v56  ;;  %v9185_v26 = vpack.c.bf16 %v4271_v0, %v4269_v12 }
 0x2b2   : > { %v3984_v17 = vpop.f32.mrf.mxu0  ;;  %v2975_v19 = vpop.f32.mrf.mxu1  ;;  %v5422_v0 = vrot.slane %v5420_v18, 2 }
 0x2b3   : > { %v9173_v37 = vadd.f32 %v2975_v19, %v8675_v59  ;;  %v9179_v17 = vpack.c.bf16 %v4266_v30, %v4264_v31  ;;  %v4473_v59 = vsel %vm4399_vm4, %v4468_v8, %v9445_v52  ;;  %v5435_v30 = vor.u32 %v5434_v44, %v5431_v33  ;;  %v4270_v33 = vld [vmem:[#allocation2 + $0x130] sm:$0xff] }
 0x2b4   : > { %v3987_v24 = vpop.f32.mrf.mxu0  ;;  %5792 = vmatmul.mubr.bf16.gmra.mxu0 %v5391_v35  ;;  %v2977_v43 = vpop.f32.mrf.mxu1  ;;  %v5450_v35 = vshll.u32 %v9154_v34, 16  ;;  %v4273_v44 = vld [vmem:[#allocation2 + $0x270] sm:$0xff] }
 0x2b5   : > { %v9177_v7 = vadd.f32 %v3987_v24, %v9134_v41  ;;  %5799 = vmatprep.mubr.bf16.mxu0 %v5418_v4  ;;  %v5423_v41 = vshll.u32 %v9152_v25, 16  ;;  %v4470_v56 = vrot.slane %v9179_v17, 2  ;;  %v4268_v4 = vld [vmem:[#allocation2 + $0x70] sm:$0xff]  ;;  %v5409_v25 = vsel %vm5114_vm5, %v5390_v49, %v5408_v9 }
 0x2b6   : > { %v3989_v60 = vpop.f32.mrf.mxu0  ;;  %v2980_v28 = vpop.f32.mrf.mxu1 }
 0x2b7   : > { %4785 = vmatmul.mubr.bf16.gmra.mxu1 %v4467_v50  ;;  %v3111_v19 = vadd.f32 %v2980_v28, %v8684_v22  ;;  %v4476_v22 = vrot.slane %v9185_v26, 2  ;;  %v5425_v43 = vrot.slane %v5423_v41, 3  ;;  %v4275_v60 = vld [vmem:[#allocation2 + $0x88] sm:$0xff]  ;;  %v5449_v28 = vrot.slane %v5447_v16, 2 }
 0x2b8   : > { %v3990_v31 = vpop.f32.mrf.mxu0  ;;  %4792 = vmatprep.mubr.bf16.mxu1 %v4473_v59  ;;  %v2982_v24 = vpop.f32.mrf.mxu1  ;;  %v4471_v49 = vsel %vm4399_vm4, %v4466_v10, %v4470_v56  ;;  %v9204_v41 = vpack.c.bf16 %v4270_v33, %v4268_v4  ;;  %v9206_v52 = vpack.c.bf16 %v4275_v60, %v4273_v44  ;;  %v5465_v4 = vshrl.u32 %v9185_v26, 16 }
 0x2b9   : > { %v9193_v8 = vadd.f32 %v3990_v31, %v9145_v42  ;;  %v5436_v42 = vsel %vm5114_vm5, %v5417_v15, %v5435_v30  ;;  %v5452_v31 = vrot.slane %v5450_v35, 3  ;;  %v9494_v15 = vrot.slane %v9154_v34, 2  ;;  %v9495_v35 = vld [vmem:[#allocation4_spill] sm:$0xff] }
 0x2ba   : > { %v3992_v53 = vpop.f32.mrf.mxu0  ;;  %v2983_v12 = vpop.f32.mrf.mxu1  ;;  %v5426_v16 = vor.u32 %v5425_v43, %v5422_v0  ;;  %v5468_v33 = vshll.u32 %v9185_v26, 16  ;;  %v4480_v34 = vrot.slane %v9206_v52, 2 }
 0x2bb   : > { %v3112_v50 = vadd.f32 %v2983_v12, %v8697_v21  ;;  %v5438_v21 = vshrl.u32 %v9179_v17, 16  ;;  %v5441_v12 = vshll.u32 %v9179_v17, 16  ;;  %v5453_v10 = vor.u32 %v5452_v31, %v5449_v28  ;;  %v4274_v28 = vld [vmem:[#allocation2 + $0x1d0] sm:$0xff]  ;;  %v9497_v31 = vld [vmem:[#allocation5_spill] sm:$0xff] }
 0x2bc   : > { %v3995_v59 = vpop.f32.mrf.mxu0  ;;  %5800 = vmatmul.mubr.bf16.gmra.mxu0 %v5409_v25  ;;  %v2985_v53 = vpop.f32.mrf.mxu1 }
 0x2bd   : > { %v9201_v24 = vadd.f32 %v3995_v59, %v9162_v36  ;;  %5807 = vmatprep.mubr.bf16.mxu0 %v5436_v42  ;;  %v4477_v36 = vsel %vm4399_vm4, %v9494_v15, %v4476_v22  ;;  %v4474_v53 = vrot.slane %v9204_v41, 2  ;;  %v5443_v0 = vrot.slane %v5441_v12, 3 }
 0x2be   : > { %v3997_v18 = vpop.f32.mrf.mxu0  ;;  %v2988_v25 = vpop.f32.mrf.mxu1 }
 0x2bf   : > { %9493 = vst [vmem:[#allocation12_spill] sm:$0xff] %v9201_v24  ;;  %4793 = vmatmul.mubr.bf16.gmra.mxu1 %v4471_v49  ;;  %v3113_v59 = vadd.f32 %v2988_v25, %v9495_v35  ;;  %v5440_v49 = vrot.slane %v5438_v21, 2  ;;  %v5427_v18 = vsel %vm5114_vm5, %v5408_v9, %v5426_v16  ;;  %v4272_v25 = vld [vmem:[#allocation2 + $0x98] sm:$0xff]  ;;  %v5470_v35 = vrot.slane %v5468_v33, 3  ;;  %v9499_v33 = vld [vmem:[#allocation6_spill] sm:$0xff] }
 0x2c0   : > { %v3998_v42 = vpop.f32.mrf.mxu0  ;;  %4800 = vmatprep.mubr.bf16.mxu1 %v4477_v36  ;;  %v2990_v17 = vpop.f32.mrf.mxu1  ;;  %v5467_v36 = vrot.slane %v5465_v4, 2  ;;  %v4475_v12 = vsel %vm4399_vm4, %v4470_v56, %v4474_v53  ;;  %v4481_v9 = vsel %vm4399_vm4, %v4476_v22, %v4480_v34  ;;  %v9230_v24 = vpack.c.bf16 %v4274_v28, %v4272_v25 }
 0x2c1   : > { %v9217_v44 = vadd.f32 %v3998_v42, %v9173_v37  ;;  %v5454_v37 = vsel %vm5114_vm5, %v5435_v30, %v5453_v10  ;;  %v4277_v42 = vld [vmem:[#allocation2 + $0x2d0] sm:$0xf]  ;;  %v5456_v30 = vshrl.u32 %v9204_v41, 16  ;;  %v5459_v4 = vshll.u32 %v9204_v41, 16 }
 0x2c2   : > { %v4000_v60 = vpop.f32.mrf.mxu0  ;;  %v2991_v43 = vpop.f32.mrf.mxu1  ;;  %v5486_v56 = vshll.u32 %v9206_v52, 16 }
 0x2c3   : > { %9496 = vst [vmem:[#allocation4_spill] sm:$0xff] %v9217_v44  ;;  %v9223_v15 = vadd.f32 %v2991_v43, %v9497_v31  ;;  %v5444_v44 = vor.u32 %v5443_v0, %v5440_v49  ;;  %v5036_v0 = vld [vmem:[#allocation2 + $0x2d0] sm:$0x1f] }
 0x2c4   : > { %v4003_v26 = vpop.f32.mrf.mxu0  ;;  %5808 = vmatmul.mubr.bf16.gmra.mxu0 %v5427_v18  ;;  %v2993_v60 = vpop.f32.mrf.mxu1  ;;  %v4321_v18 = vpack.c.bf16 %v4277_v42, %v4277_v42  ;;  %v4478_v42 = vrot.slane %v9230_v24, 2 }
 0x2c5   : > { %v9226_v17 = vadd.f32 %v4003_v26, %v3111_v19  ;;  %5815 = vmatprep.mubr.bf16.mxu0 %v5454_v37  ;;  %v5483_v19 = vshrl.u32 %v9206_v52, 16  ;;  %v5471_v37 = vor.u32 %v5470_v35, %v5467_v36  ;;  %v5445_v28 = vsel %vm5114_vm5, %v5426_v16, %v5444_v44 }
 0x2c6   : > { %v4005_v21 = vpop.f32.mrf.mxu0  ;;  %v2996_v43 = vpop.f32.mrf.mxu1  ;;  %v4484_v41 = vrot.slane %v4321_v18, 2  ;;  %v5080_v35 = vpack.c.bf16 %v5036_v0, %v5036_v0 }
 0x2c7   : > { %9498 = vst [vmem:[#allocation5_spill] sm:$0xff] %v9226_v17  ;;  %4801 = vmatmul.mubr.bf16.gmra.mxu1 %v4475_v12  ;;  %v3115_v31 = vadd.f32 %v2996_v43, %v9499_v33  ;;  %v5458_v21 = vrot.slane %v5456_v30, 2  ;;  %v5461_v12 = vrot.slane %v5459_v4, 3  ;;  %v5485_v17 = vrot.slane %v5483_v19, 2  ;;  %v4276_v43 = vld [vmem:[#allocation2 + $0x1c0] sm:$0xf] }
 0x2c8   : > { %v4006_v26 = vpop.f32.mrf.mxu0  ;;  %4808 = vmatprep.mubr.bf16.mxu1 %v4481_v9  ;;  %v2998_v49 = vpop.f32.mrf.mxu1  ;;  %v9500_v33 = vld [vmem:[#allocation7_spill] sm:$0xff]  ;;  %v5472_v52 = vsel %vm5114_vm5, %v5453_v10, %v5471_v37  ;;  %v4320_v18 = vpack.c.bf16 %v4276_v43, %v4276_v43  ;;  %v4485_v4 = vsel %vm4399_vm4, %v4480_v34, %v4484_v41  ;;  %v5501_v0 = vshrl.u32 %v5080_v35, 16 }
 0x2c9   : > { %v9237_v22 = vadd.f32 %v4006_v26, %v3112_v50  ;;  %v5488_v50 = vrot.slane %v5486_v56, 3  ;;  %v5462_v19 = vor.u32 %v5461_v12, %v5458_v21 }
 0x2ca   : > { %v4008_v25 = vpop.f32.mrf.mxu0  ;;  %v2999_v60 = vpop.f32.mrf.mxu1 }
 0x2cb   : > { %v3116_v9 = vadd.f32 %v2999_v60, %v9500_v33  ;;  %v4479_v25 = vsel %vm4399_vm4, %v4474_v53, %v4478_v42  ;;  %v5474_v60 = vshrl.u32 %v9230_v24, 16  ;;  %v5504_v33 = vshll.u32 %v5080_v35, 16 }
 0x2cc   : > { %v4011_v36 = vpop.f32.mrf.mxu0  ;;  %5816 = vmatmul.mubr.bf16.gmra.mxu0 %v5445_v28  ;;  %v3001_v49 = vpop.f32.mrf.mxu1  ;;  %v5477_v28 = vshll.u32 %v9230_v24, 16  ;;  %v5463_v41 = vsel %vm5114_vm5, %v5444_v44, %v5462_v19 }
 0x2cd   : > { %v9243_v26 = vadd.f32 %v4011_v36, %v3113_v59  ;;  %5823 = vmatprep.mubr.bf16.mxu0 %v5472_v52  ;;  %v5489_v59 = vor.u32 %v5488_v50, %v5485_v17  ;;  %v5035_v36 = vld [vmem:[#allocation2 + $0x1c0] sm:$0x1f]  ;;  %v4482_v49 = vrot.slane %v4320_v18, 2  ;;  %v5476_v21 = vrot.slane %v5474_v60, 2 }
 0x2ce   : > { %v4013_v16 = vpop.f32.mrf.mxu0  ;;  %v3004_v30 = vpop.f32.mrf.mxu1  ;;  %v5479_v12 = vrot.slane %v5477_v28, 3  ;;  %v5079_v24 = vpack.c.bf16 %v5035_v36, %v5035_v36  ;;  %v5503_v50 = vrot.slane %v5501_v0, 2  ;;  %v5506_v35 = vrot.slane %v5504_v33, 3 }
 0x2cf   : > { %4809 = vmatmul.mubr.bf16.gmra.mxu1 %v4479_v25  ;;  %v3117_v10 = vadd.f32 %v3004_v30, %v8760_v38  ;;  %v5490_v17 = vsel %vm5114_vm5, %v5471_v37, %v5489_v59  ;;  %v4483_v18 = vsel %vm4399_vm4, %v4478_v42, %v4482_v49 }
 0x2d0   : > { %v4014_v56 = vpop.f32.mrf.mxu0  ;;  %4816 = vmatprep.mubr.bf16.mxu1 %v4485_v4  ;;  %v3006_v43 = vpop.f32.mrf.mxu1  ;;  %v5480_v44 = vor.u32 %v5479_v12, %v5476_v21  ;;  %v5492_v60 = vshrl.u32 %v5079_v24, 16  ;;  %v5495_v28 = vshll.u32 %v5079_v24, 16  ;;  %v5507_v36 = vor.u32 %v5506_v35, %v5503_v50 }
 0x2d1   : > { %v9251_v53 = vadd.f32 %v4014_v56, %v9223_v15 }
 0x2d2   : > { %v4016_v52 = vpop.f32.mrf.mxu0  ;;  %v3007_v34 = vpop.f32.mrf.mxu1  ;;  %v5481_v33 = vsel %vm5114_vm5, %v5462_v19, %v5480_v44  ;;  %v5508_v21 = vsel %vm5114_vm5, %v5489_v59, %v5507_v36 }
 0x2d3   : > { %v3118_v38 = vadd.f32 %v3007_v34, %v8781_v39  ;;  %v5494_v52 = vrot.slane %v5492_v60, 2  ;;  %v5497_v34 = vrot.slane %v5495_v28, 3 }
 0x2d4   : > { %v4019_v16 = vpop.f32.mrf.mxu0  ;;  %5824 = vmatmul.mubr.bf16.gmra.mxu0 %v5463_v41  ;;  %v3009_v15 = vpop.f32.mrf.mxu1  ;;  %v9501_v41 = vld [vmem:[#allocation8_spill] sm:$0xff] }
 0x2d5   : > { %v9256_v25 = vadd.f32 %v4019_v16, %v3115_v31  ;;  %5831 = vmatprep.mubr.bf16.mxu0 %v5490_v17  ;;  %v5498_v16 = vor.u32 %v5497_v34, %v5494_v52  ;;  %v9503_v52 = vld [vmem:[#allocation10_spill] sm:$0xff] }
 0x2d6   : > { %v4021_v30 = vpop.f32.mrf.mxu0  ;;  %v3012_v4 = vpop.f32.mrf.mxu1 }
 0x2d7   : > { %4817 = vmatmul.mubr.bf16.gmra.mxu1 %v4483_v18  ;;  %v3119_v39 = vadd.f32 %v3012_v4, %v8790_v20  ;;  %v5499_v18 = vsel %vm5114_vm5, %v5480_v44, %v5498_v16  ;;  %v9502_v4 = vld [vmem:[#allocation9_spill] sm:$0xff] }
 0x2d8   : > { %v4022_v56 = vpop.f32.mrf.mxu0  ;;  %v3014_v37 = vpop.f32.mrf.mxu1 }
 0x2d9   : > { %v9260_v43 = vadd.f32 %v4022_v56, %v3116_v9 }
 0x2da   : > { %v4024_v0 = vpop.f32.mrf.mxu0  ;;  %v3015_v31 = vpop.f32.mrf.mxu1 }
 0x2db   : > { %v3120_v42 = vadd.f32 %v3015_v31, %v9501_v41 }
 0x2dc   : > { %v4027_v49 = vpop.f32.mrf.mxu0  ;;  %5832 = vmatmul.mubr.bf16.gmra.mxu0 %v5481_v33  ;;  %v3017_v20 = vpop.f32.mrf.mxu1 }
 0x2dd   : > { %v9265_v12 = vadd.f32 %v4027_v49, %v3117_v10  ;;  %5839 = vmatprep.mubr.bf16.mxu0 %v5508_v21 }
 0x2de   : > { %v4029_v24 = vpop.f32.mrf.mxu0  ;;  %v3020_v9 = vpop.f32.mrf.mxu1 }
 0x2df   : > { %v3121_v17 = vadd.f32 %v3020_v9, %v8820_v47 }
 0x2e0   : > { %v4030_v50 = vpop.f32.mrf.mxu0  ;;  %v3022_v19 = vpop.f32.mrf.mxu1 }
 0x2e1   : > { %v9268_v35 = vadd.f32 %v4030_v50, %v3118_v38 }
 0x2e2   : > { %v4032_v15 = vpop.f32.mrf.mxu0  ;;  %v3023_v30 = vpop.f32.mrf.mxu1 }
 0x2e3   : > { %v3122_v60 = vadd.f32 %v3023_v30, %v9502_v4 }
 0x2e4   : > { %v4035_v59 = vpop.f32.mrf.mxu0  ;;  %5840 = vmatmul.mubr.bf16.gmra.mxu0 %v5499_v18  ;;  %v3025_v28 = vpop.f32.mrf.mxu1 }
 0x2e5   : > { %v9272_v10 = vadd.f32 %v4035_v59, %v3119_v39 }
 0x2e6   : > { %v4037_v56 = vpop.f32.mrf.mxu0  ;;  %v3028_v36 = vpop.f32.mrf.mxu1 }
 0x2e7   : > { %v3123_v37 = vadd.f32 %v3028_v36, %v8846_v45 }
 0x2e8   : > { %v4038_v47 = vpop.f32.mrf.mxu0  ;;  %v3030_v38 = vpop.f32.mrf.mxu1 }
 0x2e9   : > { %v9275_v0 = vadd.f32 %v4038_v47, %v3120_v42 }
 0x2ea   : > { %v4040_v31 = vpop.f32.mrf.mxu0  ;;  %v3031_v33 = vpop.f32.mrf.mxu1 }
 0x2eb   : > { %v3124_v34 = vadd.f32 %v3031_v33, %v9503_v52 }
 0x2ec   : > { %v4043_v44 = vpop.f32.mrf.mxu0  ;;  %v3033_v49 = vpop.f32.mrf.mxu1 }
 0x2ed   : > { %v9278_v41 = vadd.f32 %v4043_v44, %v3121_v17 }
 0x2ee   : > { %v4045_v21 = vpop.f32.mrf.mxu0 }
 0x2ef   : > { %v3036_v39 = vpop.f32.mrf.mxu1 }
 0x2f0   : > { %v3125_v20 = vadd.f32 %v3036_v39, %v8870_v54  ;;  %v4046_v24 = vpop.f32.mrf.mxu0 }
 0x2f1   : > { %v9281_v9 = vadd.f32 %v4046_v24, %v3122_v60  ;;  %v3038_v45 = vpop.f32.mrf.mxu1 }
 0x2f2   : > { %v4048_v16 = vpop.f32.mrf.mxu0  ;;  %v9504_v45 = vld [vmem:[#allocation11_spill] sm:$0xff] }
 0x2f3   : > { %v3039_v42 = vpop.f32.mrf.mxu1 }
 0x2f4   : > { %v3126_v50 = vadd.f32 %v3039_v42, %v8884_v29  ;;  %v4051_v19 = vpop.f32.mrf.mxu0 }
 0x2f5   : > { %v9284_v15 = vadd.f32 %v4051_v19, %v3123_v37  ;;  %v3041_v30 = vpop.f32.mrf.mxu1 }
 0x2f6   : > { %v4053_v18 = vpop.f32.mrf.mxu0 }
 0x2f7   : > { %v4658_v17 = vpop.f32.mrf.mxu1 }
 0x2f8   : > { %v4054_v4 = vpop.f32.mrf.mxu0  ;;  %v4867_v44 = vadd.f32 %v4658_v17, %v8893_v32 }
 0x2f9   : > { %v9286_v59 = vadd.f32 %v4054_v4, %v3124_v34  ;;  %v4660_v28 = vpop.f32.mrf.mxu1 }
 0x2fa   : > { %v4056_v56 = vpop.f32.mrf.mxu0 }
 0x2fb   : > { %v4661_v54 = vpop.f32.mrf.mxu1 }
 0x2fc   : > { %v4059_v36 = vpop.f32.mrf.mxu0  ;;  %v4868_v16 = vadd.f32 %v4661_v54, %v9504_v45 }
 0x2fd   : > { %v9288_v60 = vadd.f32 %v4059_v36, %v3125_v20  ;;  %v4663_v47 = vpop.f32.mrf.mxu1  ;;  %v9296_v20 = vld [vmem:[%s9415_s4] ss:$0 sm:$0xff] }
 0x2fe   : > { %v4061_v38 = vpop.f32.mrf.mxu0 }
 0x2ff   : > { %v4666_v31 = vpop.f32.mrf.mxu1 }
 0x300   : > { %v4062_v33 = vpop.f32.mrf.mxu0  ;;  %v4869_v17 = vadd.f32 %v4666_v31, %v8918_v63 }
 0x301   : > { %v9290_v29 = vadd.f32 %v4062_v33, %v3126_v50  ;;  %v4668_v37 = vpop.f32.mrf.mxu1 }
 0x302   : > { %v4064_v52 = vpop.f32.mrf.mxu0 }
 0x303   : > { %v4669_v49 = vpop.f32.mrf.mxu1 }
 0x304   : > { %v5681_v34 = vpop.f32.mrf.mxu0  ;;  %v4870_v37 = vadd.f32 %v4669_v49, %v8934_v5 }
 0x305   : > { %v5890_v21 = vadd.f32 %v5681_v34, %v4867_v44  ;;  %v4671_v39 = vpop.f32.mrf.mxu1 }
 0x306   : > { %v5683_v24 = vpop.f32.mrf.mxu0 }
 0x307   : > { %v4674_v42 = vpop.f32.mrf.mxu1  ;;  %v6023_v19 = vadd.f32 %v9296_v20, %v5890_v21 }
 0x308   : > { %v5684_v50 = vpop.f32.mrf.mxu0  ;;  %v4871_v24 = vadd.f32 %v4674_v42, %v8943_v48 }
 0x309   : > { %v5891_v30 = vadd.f32 %v5684_v50, %v4868_v16  ;;  %v4676_v18 = vpop.f32.mrf.mxu1  ;;  %v6065_v36 = vmax.f32 %v6023_v19, 0.0 }
 0x30a   : > { %v5686_v32 = vpop.f32.mrf.mxu0 }
 0x30b   : > { %v6024_v4 = vadd.f32 %v9296_v20, %v5891_v30  ;;  %v4677_v28 = vpop.f32.mrf.mxu1 }
 0x30c   : > { %v5689_v56 = vpop.f32.mrf.mxu0  ;;  %v4872_v32 = vadd.f32 %v4677_v28, %v8957_v3 }
 0x30d   : > { %v6066_v47 = vmax.f32 %v6024_v4, 0.0  ;;  %v5892_v38 = vadd.f32 %v5689_v56, %v4869_v17  ;;  %v4679_v33 = vpop.f32.mrf.mxu1 }
 0x30e   : > { %v5691_v54 = vpop.f32.mrf.mxu0 }
 0x30f   : > { %v6775_v52 = vpack.c.bf16 %v6066_v47, %v6065_v36  ;;  %v4682_v44 = vpop.f32.mrf.mxu1  ;;  %v6025_v31 = vadd.f32 %v9296_v20, %v5892_v38 }
 0x310   : > { %v5692_v63 = vpop.f32.mrf.mxu0  ;;  %v4873_v38 = vadd.f32 %v4682_v44, %v8966_v62 }
 0x311   : > { %6776 = vst [vmem:[%s9306_s26] sm:$0xff] %v6775_v52   ;;  %v5893_v34 = vadd.f32 %v5692_v63, %v4870_v37  ;;  %v4684_v21 = vpop.f32.mrf.mxu1  ;;  %v6067_v19 = vmax.f32 %v6025_v31, 0.0 }
 0x312   : > { %v5694_v39 = vpop.f32.mrf.mxu0 }
 0x313   : > { %v6026_v45 = vadd.f32 %v9296_v20, %v5893_v34  ;;  %v4685_v16 = vpop.f32.mrf.mxu1 }
 0x314   : > { %v5697_v50 = vpop.f32.mrf.mxu0  ;;  %v4874_v34 = vadd.f32 %v4685_v16, %v8978_v57 }
 0x315   : > { %v6068_v30 = vmax.f32 %v6026_v45, 0.0  ;;  %v5894_v18 = vadd.f32 %v5697_v50, %v4871_v24  ;;  %v4687_v5 = vpop.f32.mrf.mxu1 }
 0x316   : > { %v5699_v49 = vpop.f32.mrf.mxu0 }
 0x317   : > { %v6780_v17 = vpack.c.bf16 %v6068_v30, %v6067_v19  ;;  %v4690_v4 = vpop.f32.mrf.mxu1  ;;  %v6027_v36 = vadd.f32 %v9296_v20, %v5894_v18 }
 0x318   : > { %v5700_v56 = vpop.f32.mrf.mxu0  ;;  %v4875_v19 = vadd.f32 %v4690_v4, %v8986_v14 }
 0x319   : > { %6877 = vst [vmem:[%s9306_s26 + $0x8] sm:$0xff] %v6780_v17   ;;  %v5895_v47 = vadd.f32 %v5700_v56, %v4872_v32  ;;  %v4692_v48 = vpop.f32.mrf.mxu1  ;;  %v6069_v52 = vmax.f32 %v6027_v36, 0.0 }
 0x31a   : > { %v5702_v42 = vpop.f32.mrf.mxu0 }
 0x31b   : > { %v6028_v33 = vadd.f32 %v9296_v20, %v5895_v47  ;;  %v4693_v54 = vpop.f32.mrf.mxu1 }
 0x31c   : > { %v5705_v37 = vpop.f32.mrf.mxu0  ;;  %v4876_v56 = vadd.f32 %v4693_v54, %v9000_v6 }
 0x31d   : > { %v6070_v63 = vmax.f32 %v6028_v33, 0.0  ;;  %v5896_v31 = vadd.f32 %v5705_v37, %v4873_v38  ;;  %v4695_v3 = vpop.f32.mrf.mxu1 }
 0x31e   : > { %v5707_v28 = vpop.f32.mrf.mxu0 }
 0x31f   : > { %v6785_v21 = vpack.c.bf16 %v6070_v63, %v6069_v52  ;;  %v4698_v39 = vpop.f32.mrf.mxu1  ;;  %v6029_v45 = vadd.f32 %v9296_v20, %v5896_v31 }
 0x320   : > { %v5708_v24 = vpop.f32.mrf.mxu0  ;;  %v4877_v33 = vadd.f32 %v4698_v39, %v9009_v1 }
 0x321   : > { %6878 = vst [vmem:[%s9306_s26 + $0x10] sm:$0xff] %v6785_v21   ;;  %v5897_v50 = vadd.f32 %v5708_v24, %v4874_v34  ;;  %v4700_v62 = vpop.f32.mrf.mxu1  ;;  %v6071_v49 = vmax.f32 %v6029_v45, 0.0 }
 0x322   : > { %v5710_v44 = vpop.f32.mrf.mxu0 }
 0x323   : > { %v6030_v30 = vadd.f32 %v9296_v20, %v5897_v50  ;;  %v4701_v18 = vpop.f32.mrf.mxu1 }
 0x324   : > { %v5713_v5 = vpop.f32.mrf.mxu0  ;;  %v4878_v34 = vadd.f32 %v4701_v18, %v9027_v51 }
 0x325   : > { %v6072_v32 = vmax.f32 %v6030_v30, 0.0  ;;  %v5898_v17 = vadd.f32 %v5713_v5, %v4875_v19  ;;  %v4703_v57 = vpop.f32.mrf.mxu1 }
 0x326   : > { %v5715_v16 = vpop.f32.mrf.mxu0 }
 0x327   : > { %v6790_v36 = vpack.c.bf16 %v6072_v32, %v6071_v49  ;;  %v4706_v47 = vpop.f32.mrf.mxu1  ;;  %v6031_v42 = vadd.f32 %v9296_v20, %v5898_v17 }
 0x328   : > { %v5716_v48 = vpop.f32.mrf.mxu0  ;;  %v4879_v44 = vadd.f32 %v4706_v47, %v9037_v11 }
 0x329   : > { %6879 = vst [vmem:[%s9306_s26 + $0x18] sm:$0xff] %v6790_v36   ;;  %v5899_v38 = vadd.f32 %v5716_v48, %v4876_v56  ;;  %v4708_v14 = vpop.f32.mrf.mxu1  ;;  %v6073_v31 = vmax.f32 %v6031_v42, 0.0 }
 0x32a   : > { %v5718_v4 = vpop.f32.mrf.mxu0 }
 0x32b   : > { %v6032_v37 = vadd.f32 %v9296_v20, %v5899_v38  ;;  %v4709_v52 = vpop.f32.mrf.mxu1 }
 0x32c   : > { %v5721_v63 = vpop.f32.mrf.mxu0  ;;  %v4880_v57 = vadd.f32 %v4709_v52, %v9055_v23 }
 0x32d   : > { %v6074_v3 = vmax.f32 %v6032_v37, 0.0  ;;  %v5900_v28 = vadd.f32 %v5721_v63, %v4877_v33  ;;  %v4711_v6 = vpop.f32.mrf.mxu1 }
 0x32e   : > { %v5723_v54 = vpop.f32.mrf.mxu0 }
 0x32f   : > { %v6795_v21 = vpack.c.bf16 %v6074_v3, %v6073_v31  ;;  %v4714_v24 = vpop.f32.mrf.mxu1  ;;  %v6033_v50 = vadd.f32 %v9296_v20, %v5900_v28 }
 0x330   : > { %v5724_v45 = vpop.f32.mrf.mxu0  ;;  %v4881_v38 = vadd.f32 %v4714_v24, %v9065_v27 }
 0x331   : > { %6880 = vst [vmem:[%s9306_s26 + $0x20] sm:$0xff] %v6795_v21   ;;  %v5901_v62 = vadd.f32 %v5724_v45, %v4878_v34  ;;  %v4716_v1 = vpop.f32.mrf.mxu1  ;;  %v6075_v49 = vmax.f32 %v6033_v50, 0.0 }
 0x332   : > { %v5726_v39 = vpop.f32.mrf.mxu0 }
 0x333   : > { %v6034_v19 = vadd.f32 %v9296_v20, %v5901_v62  ;;  %v4717_v30 = vpop.f32.mrf.mxu1 }
 0x334   : > { %v5729_v5 = vpop.f32.mrf.mxu0  ;;  %v4882_v3 = vadd.f32 %v4717_v30, %v9083_v2 }
 0x335   : > { %v6076_v32 = vmax.f32 %v6034_v19, 0.0  ;;  %v5902_v17 = vadd.f32 %v5729_v5, %v4879_v44  ;;  %v4719_v51 = vpop.f32.mrf.mxu1 }
 0x336   : > { %v5731_v18 = vpop.f32.mrf.mxu0 }
 0x337   : > { %v6800_v16 = vpack.c.bf16 %v6076_v32, %v6075_v49  ;;  %v4722_v56 = vpop.f32.mrf.mxu1  ;;  %v6035_v48 = vadd.f32 %v9296_v20, %v5902_v17 }
 0x338   : > { %v5732_v36 = vpop.f32.mrf.mxu0  ;;  %v4883_v45 = vadd.f32 %v4722_v56, %v9093_v61 }
 0x339   : > { %6881 = vst [vmem:[%s9306_s26 + $0x28] sm:$0xff] %v6800_v16   ;;  %v5903_v42 = vadd.f32 %v5732_v36, %v4880_v57  ;;  %v4724_v11 = vpop.f32.mrf.mxu1  ;;  %v6077_v37 = vmax.f32 %v6035_v48, 0.0 }
 0x33a   : > { %v5734_v47 = vpop.f32.mrf.mxu0 }
 0x33b   : > { %v6036_v14 = vadd.f32 %v9296_v20, %v5903_v42  ;;  %v4725_v4 = vpop.f32.mrf.mxu1 }
 0x33c   : > { %v5737_v33 = vpop.f32.mrf.mxu0  ;;  %v4884_v5 = vadd.f32 %v4725_v4, %v9111_v40 }
 0x33d   : > { %v6078_v63 = vmax.f32 %v6036_v14, 0.0  ;;  %v5904_v31 = vadd.f32 %v5737_v33, %v4881_v38  ;;  %v4727_v23 = vpop.f32.mrf.mxu1 }
 0x33e   : > { %v5739_v52 = vpop.f32.mrf.mxu0 }
 0x33f   : > { %v6805_v28 = vpack.c.bf16 %v6078_v63, %v6077_v37  ;;  %v4730_v6 = vpop.f32.mrf.mxu1  ;;  %v6037_v34 = vadd.f32 %v9296_v20, %v5904_v31 }
 0x340   : > { %v5740_v54 = vpop.f32.mrf.mxu0  ;;  %v4885_v16 = vadd.f32 %v4730_v6, %v9121_v55 }
 0x341   : > { %6882 = vst [vmem:[%s9306_s26 + $0x30] sm:$0xff] %v6805_v28   ;;  %v5905_v21 = vadd.f32 %v5740_v54, %v4882_v3  ;;  %v4732_v27 = vpop.f32.mrf.mxu1  ;;  %v6079_v39 = vmax.f32 %v6037_v34, 0.0 }
 0x342   : > { %v5742_v24 = vpop.f32.mrf.mxu0 }
 0x343   : > { %v6038_v50 = vadd.f32 %v9296_v20, %v5905_v21  ;;  %v4733_v62 = vpop.f32.mrf.mxu1 }
 0x344   : > { %v5745_v1 = vpop.f32.mrf.mxu0  ;;  %v4886_v14 = vadd.f32 %v4733_v62, %v9139_v46 }
 0x345   : > { %v6080_v44 = vmax.f32 %v6038_v50, 0.0  ;;  %v5906_v19 = vadd.f32 %v5745_v1, %v4883_v45  ;;  %v4735_v2 = vpop.f32.mrf.mxu1 }
 0x346   : > { %v5747_v30 = vpop.f32.mrf.mxu0 }
 0x347   : > { %v6810_v49 = vpack.c.bf16 %v6080_v44, %v6079_v39  ;;  %v4738_v32 = vpop.f32.mrf.mxu1  ;;  %v6039_v51 = vadd.f32 %v9296_v20, %v5906_v19 }
 0x348   : > { %v5748_v17 = vpop.f32.mrf.mxu0  ;;  %v4887_v52 = vadd.f32 %v4738_v32, %v9149_v13 }
 0x349   : > { %6883 = vst [vmem:[%s9306_s26 + $0x38] sm:$0xff] %v6810_v49   ;;  %v5907_v18 = vadd.f32 %v5748_v17, %v4884_v5  ;;  %v4740_v61 = vpop.f32.mrf.mxu1  ;;  %v6081_v42 = vmax.f32 %v6039_v51, 0.0 }
 0x34a   : > { %v5750_v57 = vpop.f32.mrf.mxu0 }
 0x34b   : > { %v6040_v56 = vadd.f32 %v9296_v20, %v5907_v18  ;;  %v4741_v36 = vpop.f32.mrf.mxu1 }
 0x34c   : > { %v5753_v48 = vpop.f32.mrf.mxu0  ;;  %v4888_v24 = vadd.f32 %v4741_v36, %v9167_v58 }
 0x34d   : > { %v6082_v11 = vmax.f32 %v6040_v56, 0.0  ;;  %v5908_v47 = vadd.f32 %v5753_v48, %v4885_v16  ;;  %v4743_v40 = vpop.f32.mrf.mxu1 }
 0x34e   : > { %v5755_v38 = vpop.f32.mrf.mxu0 }
 0x34f   : > { %v6815_v4 = vpack.c.bf16 %v6082_v11, %v6081_v42  ;;  %v4746_v33 = vpop.f32.mrf.mxu1  ;;  %v6041_v63 = vadd.f32 %v9296_v20, %v5908_v47  ;;  %v9505_v42 = vld [vmem:[#allocation12_spill] sm:$0xff] }
 0x350   : > { %v5756_v37 = vpop.f32.mrf.mxu0  ;;  %v4889_v19 = vadd.f32 %v4746_v33, %v9177_v7 }
 0x351   : > { %6884 = vst [vmem:[%s9306_s26 + $0x40] sm:$0xff] %v6815_v4   ;;  %v5909_v31 = vadd.f32 %v5756_v37, %v4886_v14  ;;  %v4748_v55 = vpop.f32.mrf.mxu1  ;;  %v6083_v54 = vmax.f32 %v6041_v63, 0.0  ;;  %v9506_v63 = vld [vmem:[#allocation4_spill] sm:$0xff] }
 0x352   : > { %v5758_v23 = vpop.f32.mrf.mxu0 }
 0x353   : > { %v6042_v3 = vadd.f32 %v9296_v20, %v5909_v31  ;;  %v4749_v28 = vpop.f32.mrf.mxu1 }
 0x354   : > { %v5761_v6 = vpop.f32.mrf.mxu0  ;;  %v4890_v18 = vadd.f32 %v4749_v28, %v9193_v8 }
 0x355   : > { %v6084_v34 = vmax.f32 %v6042_v3, 0.0  ;;  %v5910_v21 = vadd.f32 %v5761_v6, %v4887_v52  ;;  %v4751_v46 = vpop.f32.mrf.mxu1 }
 0x356   : > { %v5763_v27 = vpop.f32.mrf.mxu0 }
 0x357   : > { %v6820_v45 = vpack.c.bf16 %v6084_v34, %v6083_v54  ;;  %v4754_v50 = vpop.f32.mrf.mxu1  ;;  %v6043_v1 = vadd.f32 %v9296_v20, %v5910_v21  ;;  %v9507_v34 = vld [vmem:[#allocation5_spill] sm:$0xff] }
 0x358   : > { %v5764_v62 = vpop.f32.mrf.mxu0  ;;  %v4891_v11 = vadd.f32 %v4754_v50, %v9505_v42 }
 0x359   : > { %6885 = vst [vmem:[%s9306_s26 + $0x48] sm:$0xff] %v6820_v45   ;;  %v5911_v39 = vadd.f32 %v5764_v62, %v4888_v24  ;;  %v4756_v13 = vpop.f32.mrf.mxu1  ;;  %v6085_v49 = vmax.f32 %v6043_v1, 0.0 }
 0x35a   : > { %v5766_v44 = vpop.f32.mrf.mxu0 }
 0x35b   : > { %v6044_v2 = vadd.f32 %v9296_v20, %v5911_v39  ;;  %v4757_v30 = vpop.f32.mrf.mxu1 }
 0x35c   : > { %v5769_v5 = vpop.f32.mrf.mxu0  ;;  %v4892_v31 = vadd.f32 %v4757_v30, %v9506_v63 }
 0x35d   : > { %v6086_v32 = vmax.f32 %v6044_v2, 0.0  ;;  %v5912_v17 = vadd.f32 %v5769_v5, %v4889_v19  ;;  %v4759_v58 = vpop.f32.mrf.mxu1 }
 0x35e   : > { %v5771_v51 = vpop.f32.mrf.mxu0 }
 0x35f   : > { %v6825_v61 = vpack.c.bf16 %v6086_v32, %v6085_v49  ;;  %v4762_v57 = vpop.f32.mrf.mxu1  ;;  %v6045_v56 = vadd.f32 %v9296_v20, %v5912_v17 }
 0x360   : > { %v5772_v16 = vpop.f32.mrf.mxu0  ;;  %v4893_v21 = vadd.f32 %v4762_v57, %v9507_v34 }
 0x361   : > { %6886 = vst [vmem:[%s9306_s26 + $0x50] sm:$0xff] %v6825_v61   ;;  %v5913_v36 = vadd.f32 %v5772_v16, %v4890_v18  ;;  %v4764_v7 = vpop.f32.mrf.mxu1  ;;  %v6087_v14 = vmax.f32 %v6045_v56, 0.0 }
 0x362   : > { %v5774_v48 = vpop.f32.mrf.mxu0 }
 0x363   : > { %v6046_v47 = vadd.f32 %v9296_v20, %v5913_v36  ;;  %v4765_v40 = vpop.f32.mrf.mxu1 }
 0x364   : > { %v5777_v38 = vpop.f32.mrf.mxu0  ;;  %v4894_v13 = vadd.f32 %v4765_v40, %v9237_v22 }
 0x365   : > { %v6088_v4 = vmax.f32 %v6046_v47, 0.0  ;;  %v5914_v33 = vadd.f32 %v5777_v38, %v4891_v11  ;;  %v4767_v8 = vpop.f32.mrf.mxu1 }
 0x366   : > { %v5779_v37 = vpop.f32.mrf.mxu0 }
 0x367   : > { %v6830_v55 = vpack.c.bf16 %v6088_v4, %v6087_v14  ;;  %v4770_v23 = vpop.f32.mrf.mxu1  ;;  %v6047_v3 = vadd.f32 %v9296_v20, %v5914_v33 }
 0x368   : > { %v5780_v52 = vpop.f32.mrf.mxu0  ;;  %v4895_v17 = vadd.f32 %v4770_v23, %v9243_v26 }
 0x369   : > { %6887 = vst [vmem:[%s9306_s26 + $0x58] sm:$0xff] %v6830_v55   ;;  %v5915_v28 = vadd.f32 %v5780_v52, %v4892_v31  ;;  %v4772_v6 = vpop.f32.mrf.mxu1  ;;  %v6089_v45 = vmax.f32 %v6047_v3, 0.0 }
 0x36a   : > { %v5782_v54 = vpop.f32.mrf.mxu0 }
 0x36b   : > { %v6048_v46 = vadd.f32 %v9296_v20, %v5915_v28  ;;  %v4773_v27 = vpop.f32.mrf.mxu1 }
 0x36c   : > { %v5785_v24 = vpop.f32.mrf.mxu0  ;;  %v4896_v36 = vadd.f32 %v4773_v27, %v9251_v53 }
 0x36d   : > { %v6090_v50 = vmax.f32 %v6048_v46, 0.0  ;;  %v5916_v62 = vadd.f32 %v5785_v24, %v4893_v21  ;;  %v4775_v1 = vpop.f32.mrf.mxu1 }
 0x36e   : > { %v5787_v39 = vpop.f32.mrf.mxu0 }
 0x36f   : > { %v6835_v44 = vpack.c.bf16 %v6090_v50, %v6089_v45  ;;  %v4778_v19 = vpop.f32.mrf.mxu1  ;;  %v6049_v30 = vadd.f32 %v9296_v20, %v5916_v62 }
 0x370   : > { %v5788_v2 = vpop.f32.mrf.mxu0  ;;  %v4897_v38 = vadd.f32 %v4778_v19, %v9256_v25 }
 0x371   : > { %6888 = vst [vmem:[%s9306_s26 + $0x60] sm:$0xff] %v6835_v44   ;;  %v5917_v5 = vadd.f32 %v5788_v2, %v4894_v13  ;;  %v4780_v49 = vpop.f32.mrf.mxu1  ;;  %v6091_v61 = vmax.f32 %v6049_v30, 0.0 }
 0x372   : > { %v5790_v32 = vpop.f32.mrf.mxu0 }
 0x373   : > { %v6050_v58 = vadd.f32 %v9296_v20, %v5917_v5  ;;  %v4781_v51 = vpop.f32.mrf.mxu1 }
 0x374   : > { %v5793_v18 = vpop.f32.mrf.mxu0  ;;  %v4898_v55 = vadd.f32 %v4781_v51, %v9260_v43 }
 0x375   : > { %v6092_v57 = vmax.f32 %v6050_v58, 0.0  ;;  %v5918_v16 = vadd.f32 %v5793_v18, %v4895_v17  ;;  %v4783_v22 = vpop.f32.mrf.mxu1 }
 0x376   : > { %v5795_v56 = vpop.f32.mrf.mxu0 }
 0x377   : > { %v6840_v7 = vpack.c.bf16 %v6092_v57, %v6091_v61  ;;  %v4786_v48 = vpop.f32.mrf.mxu1  ;;  %v6051_v11 = vadd.f32 %v9296_v20, %v5918_v16 }
 0x378   : > { %v5796_v42 = vpop.f32.mrf.mxu0  ;;  %v4899_v34 = vadd.f32 %v4786_v48, %v9265_v12 }
 0x379   : > { %6889 = vst [vmem:[%s9306_s26 + $0x68] sm:$0xff] %v6840_v7   ;;  %v5919_v47 = vadd.f32 %v5796_v42, %v4896_v36  ;;  %v4788_v26 = vpop.f32.mrf.mxu1  ;;  %v6093_v8 = vmax.f32 %v6051_v11, 0.0 }
 0x37a   : > { %v5798_v40 = vpop.f32.mrf.mxu0 }
 0x37b   : > { %v6052_v14 = vadd.f32 %v9296_v20, %v5919_v47  ;;  %v4789_v4 = vpop.f32.mrf.mxu1 }
 0x37c   : > { %v5801_v33 = vpop.f32.mrf.mxu0  ;;  %v4900_v1 = vadd.f32 %v4789_v4, %v9268_v35 }
 0x37d   : > { %v6094_v37 = vmax.f32 %v6052_v14, 0.0  ;;  %v5920_v63 = vadd.f32 %v5801_v33, %v4897_v38  ;;  %v4791_v53 = vpop.f32.mrf.mxu1 }
 0x37e   : > { %v5803_v31 = vpop.f32.mrf.mxu0 }
 0x37f   : > { %v6845_v23 = vpack.c.bf16 %v6094_v37, %v6093_v8  ;;  %v4794_v52 = vpop.f32.mrf.mxu1  ;;  %v6053_v28 = vadd.f32 %v9296_v20, %v5920_v63 }
 0x380   : > { %v5804_v3 = vpop.f32.mrf.mxu0  ;;  %v4901_v5 = vadd.f32 %v4794_v52, %v9272_v10 }
 0x381   : > { %6890 = vst [vmem:[%s9306_s26 + $0x70] sm:$0xff] %v6845_v23   ;;  %v5921_v6 = vadd.f32 %v5804_v3, %v4898_v55  ;;  %v4796_v25 = vpop.f32.mrf.mxu1  ;;  %v6095_v24 = vmax.f32 %v6053_v28, 0.0 }
 0x382   : > { %v5806_v54 = vpop.f32.mrf.mxu0 }
 0x383   : > { %v6054_v21 = vadd.f32 %v9296_v20, %v5921_v6  ;;  %v4797_v46 = vpop.f32.mrf.mxu1 }
 0x384   : > { %v5809_v27 = vpop.f32.mrf.mxu0  ;;  %v4902_v57 = vadd.f32 %v4797_v46, %v9275_v0 }
 0x385   : > { %v6096_v45 = vmax.f32 %v6054_v21, 0.0  ;;  %v5922_v50 = vadd.f32 %v5809_v27, %v4899_v34  ;;  %v4799_v43 = vpop.f32.mrf.mxu1 }
 0x386   : > { %v5811_v62 = vpop.f32.mrf.mxu0 }
 0x387   : > { %v6850_v39 = vpack.c.bf16 %v6096_v45, %v6095_v24  ;;  %v4802_v13 = vpop.f32.mrf.mxu1  ;;  %v6055_v19 = vadd.f32 %v9296_v20, %v5922_v50 }
 0x388   : > { %v5812_v44 = vpop.f32.mrf.mxu0  ;;  %v4903_v42 = vadd.f32 %v4802_v13, %v9278_v41 }
 0x389   : > { %6891 = vst [vmem:[%s9306_s26 + $0x78] sm:$0xff] %v6850_v39   ;;  %v5923_v2 = vadd.f32 %v5812_v44, %v4900_v1  ;;  %v4804_v12 = vpop.f32.mrf.mxu1  ;;  %v6097_v58 = vmax.f32 %v6055_v19, 0.0 }
 0x38a   : > { %v5814_v30 = vpop.f32.mrf.mxu0 }
 0x38b   : > { %v6056_v49 = vadd.f32 %v9296_v20, %v5923_v2  ;;  %v4805_v32 = vpop.f32.mrf.mxu1 }
 0x38c   : > { %v5817_v17 = vpop.f32.mrf.mxu0  ;;  %v4904_v33 = vadd.f32 %v4805_v32, %v9281_v9 }
 0x38d   : > { %v6098_v51 = vmax.f32 %v6056_v49, 0.0  ;;  %v5924_v18 = vadd.f32 %v5817_v17, %v4901_v5  ;;  %v4807_v35 = vpop.f32.mrf.mxu1 }
 0x38e   : > { %v5819_v61 = vpop.f32.mrf.mxu0 }
 0x38f   : > { %v6855_v16 = vpack.c.bf16 %v6098_v51, %v6097_v58  ;;  %v4810_v22 = vpop.f32.mrf.mxu1  ;;  %v6057_v36 = vadd.f32 %v9296_v20, %v5924_v18 }
 0x390   : > { %v5820_v56 = vpop.f32.mrf.mxu0  ;;  %v4905_v23 = vadd.f32 %v4810_v22, %v9284_v15 }
 0x391   : > { %6892 = vst [vmem:[%s9306_s26 + $0x80] sm:$0xff] %v6855_v16   ;;  %v5925_v7 = vadd.f32 %v5820_v56, %v4902_v57  ;;  %v4812_v10 = vpop.f32.mrf.mxu1  ;;  %v6099_v40 = vmax.f32 %v6057_v36, 0.0 }
 0x392   : > { %v5822_v48 = vpop.f32.mrf.mxu0 }
 0x393   : > { %v6058_v11 = vadd.f32 %v9296_v20, %v5925_v7  ;;  %v4813_v47 = vpop.f32.mrf.mxu1 }
 0x394   : > { %v5825_v26 = vpop.f32.mrf.mxu0  ;;  %v4906_v21 = vadd.f32 %v4813_v47, %v9286_v59 }
 0x395   : > { %v6100_v38 = vmax.f32 %v6058_v11, 0.0  ;;  %v5926_v14 = vadd.f32 %v5825_v26, %v4903_v42  ;;  %v4815_v0 = vpop.f32.mrf.mxu1 }
 0x396   : > { %v5827_v4 = vpop.f32.mrf.mxu0 }
 0x397   : > { %v6860_v8 = vpack.c.bf16 %v6100_v38, %v6099_v40  ;;  %v4818_v37 = vpop.f32.mrf.mxu1  ;;  %v6059_v53 = vadd.f32 %v9296_v20, %v5926_v14 }
 0x398   : > { %v5828_v63 = vpop.f32.mrf.mxu0  ;;  %v4907_v15 = vadd.f32 %v4818_v37, %v9288_v60 }
 0x399   : > { %6893 = vst [vmem:[%s9306_s26 + $0x88] sm:$0xff] %v6860_v8   ;;  %v5927_v31 = vadd.f32 %v5828_v63, %v4904_v33  ;;  %v4820_v41 = vpop.f32.mrf.mxu1  ;;  %v6101_v6 = vmax.f32 %v6059_v53, 0.0 }
 0x39a   : > { %v5830_v55 = vpop.f32.mrf.mxu0 }
 0x39b   : > { %v6060_v52 = vadd.f32 %v9296_v20, %v5927_v31  ;;  %v4821_v3 = vpop.f32.mrf.mxu1 }
 0x39c   : > { %v5833_v28 = vpop.f32.mrf.mxu0  ;;  %v4908_v59 = vadd.f32 %v4821_v3, %v9290_v29 }
 0x39d   : > { %v6102_v25 = vmax.f32 %v6060_v52, 0.0  ;;  %v5928_v54 = vadd.f32 %v5833_v28, %v4905_v23  ;;  %v4823_v9 = vpop.f32.mrf.mxu1 }
 0x39e   : > { %v5835_v34 = vpop.f32.mrf.mxu0 }
 0x39f   : > { %v6865_v46 = vpack.c.bf16 %v6102_v25, %v6101_v6  ;;  %v6061_v24 = vadd.f32 %v9296_v20, %v5928_v54 }
 0x3a0   : > { %v5836_v27 = vpop.f32.mrf.mxu0 }
 0x3a1   : > { %6894 = vst [vmem:[%s9306_s26 + $0x90] sm:$0xff] %v6865_v46   ;;  %v5929_v45 = vadd.f32 %v5836_v27, %v4906_v21  ;;  %v6103_v1 = vmax.f32 %v6061_v24, 0.0 }
 0x3a2   : > { %v5838_v50 = vpop.f32.mrf.mxu0 }
 0x3a3   : > { %v6062_v43 = vadd.f32 %v9296_v20, %v5929_v45 }
 0x3a4   : > { %v5841_v62 = vpop.f32.mrf.mxu0 }
 0x3a5   : > { %v6104_v39 = vmax.f32 %v6062_v43, 0.0  ;;  %v5930_v13 = vadd.f32 %v5841_v62, %v4907_v15 }
 0x3a6   : > { %v5843_v44 = vpop.f32.mrf.mxu0 }
 0x3a7   : > { %v6870_v19 = vpack.c.bf16 %v6104_v39, %v6103_v1  ;;  %v6063_v12 = vadd.f32 %v9296_v20, %v5930_v13 }
 0x3a8   : > { %v5844_v2 = vpop.f32.mrf.mxu0 }
 0x3a9   : > { %6895 = vst [vmem:[%s9306_s26 + $0x98] sm:$0xff] %v6870_v19   ;;  %v5931_v30 = vadd.f32 %v5844_v2, %v4908_v59  ;;  %v6105_v60 = vmax.f32 %v6063_v12, 0.0 }
 0x3aa   : > { %v5846_v5 = vpop.f32.mrf.mxu0 }
 0x3ab   : > { %v6064_v49 = vadd.f32 %v9296_v20, %v5931_v30 }
 0x3ad   : > { %v6106_v32 = vmax.f32 %v6064_v49, 0.0 }
 0x3af   : > { %v6875_v17 = vpack.c.bf16 %v6106_v32, %v6105_v60 }
 0x3b1   : > { %6896 = vst [vmem:[%s9306_s26 + $0xa0] sm:$0xff] %v6875_v17  }
 0x3b2 PF: > { %s15_s18 = sadd.s32 1, %s7043_s18  }
 0x3b3   : > { %p12_p4 = scmp.ge.s32.totalorder %s15_s18, 4  }
 0x3b5   :  { %14 = sbr.rel (!%p12_p4) target bundleno = 1 (0x1), region = 75 }

</bundles_post_ra>
